<compile_context>
chip_gen: v5e
topology: v5e:2x2
jax: 0.10.0
libtpu: 0.0.40
codegen_flags: <defaults>
</compile_context>

<pallas_src>
import functools

import jax
import jax.numpy as jnp
import numpy as np
from jax import lax
from jax.experimental import pallas as pl
from jax.experimental.pallas import tpu as pltpu

C1 = 192      # concat channels after stage 1 / stage 2
C3 = 64       # conv3 output channels
H1 = 256      # fc1 width
H2 = 128      # fc2 width


# ----------------------------------------------------------------------------
# Fused forward kernel: stage1 -> stage2 -> stage3 -> fc1 -> fc2 -> fc3
# ----------------------------------------------------------------------------
def _fused_forward_kernel(xr_ref, w1_ref, b1_ref, w2_ref, b2_ref, w3_ref, b3_ref,
                          wfc1_ref, bfc1_ref, wfc2_ref, bfc2_ref, wfc3_ref, bfc3_ref,
                          h2_ref, h3_ref, apad_ref, *, Bpad, L):
    rows = Bpad * L

    # ---- stage 1: 5 taps read directly from the pre-padded input ref.
    # Row layout is l*Bpad + b, so a shift of d positions along L is a shift of
    # d*Bpad rows -> every slice below is sublane-aligned (Bpad is a multiple of 8).
    acc1 = jnp.zeros((rows, C1), jnp.float32)
    for t in range(5):                                           # static unroll
        acc1 = acc1 + jnp.dot(xr_ref[t * Bpad:t * Bpad + rows, :], w1_ref[t],
                              preferred_element_type=jnp.float32)
    x1 = jnp.maximum(acc1 + b1_ref[...], 0.0)                    # (rows, 192)

    # ---- conv stages: store x into the scratch at an aligned offset and zero ONLY
    # the pad margins (not the whole buffer); each stage re-zeroes its own margins so
    # no stale data from the previous stage leaks into the conv padding.
    def conv_stage(x_val, w_ref, b_ref, pad, n_taps):
        c_out = w_ref.shape[2]
        m_lo = pad * Bpad
        m_hi = (n_taps - 1 - pad) * Bpad
        apad_ref[0:m_lo, :] = jnp.zeros((m_lo, C1), jnp.float32)
        apad_ref[m_lo:m_lo + rows, :] = x_val
        apad_ref[m_lo + rows:m_lo + rows + m_hi, :] = jnp.zeros((m_hi, C1), jnp.float32)
        acc = jnp.zeros((rows, c_out), jnp.float32)
        for t in range(n_taps):                                  # static unroll
            acc = acc + jnp.dot(apad_ref[t * Bpad:t * Bpad + rows, :], w_ref[t],
                                preferred_element_type=jnp.float32)
        return jnp.maximum(acc + b_ref[...], 0.0)

    x2 = conv_stage(x1, w2_ref, b2_ref, pad=2, n_taps=5)         # (rows, 192)
    x3 = conv_stage(x2, w3_ref, b3_ref, pad=3, n_taps=7)         # (rows, 64)

    # ---- fc1 as ONE matmul: re-lay x3 from row-major (l*Bpad+b, c) to batch-major
    # (b, l*64+c) with lane concatenation (aligned 8-row value slices + XLU lane
    # placement), then (Bpad, L*64) @ (L*64, 256).  The PyTorch channel-major flatten
    # permutation is pre-folded into wfc1.
    pieces = [x3[l * Bpad:(l + 1) * Bpad, :] for l in range(L)]
    if L % 2 == 0:
        pieces = [jnp.concatenate(pieces[i:i + 2], axis=1) for i in range(0, L, 2)]
    x3_flat = jnp.concatenate(pieces, axis=1) if len(pieces) > 1 else pieces[0]
    h1 = jnp.dot(x3_flat, wfc1_ref[...], preferred_element_type=jnp.float32) + bfc1_ref[...]
    h1 = jnp.maximum(h1, 0.0)                                    # (Bpad, 256)

    # ---- fc2 / fc3 (fc3 weight is lane-padded to a multiple of 128 outputs)
    h2 = jnp.dot(h1, wfc2_ref[...], preferred_element_type=jnp.float32) + bfc2_ref[...]
    h2 = jnp.maximum(h2, 0.0)                                    # (Bpad, 128)
    h3 = jnp.dot(h2, wfc3_ref[...], preferred_element_type=jnp.float32) + bfc3_ref[...]

    h2_ref[...] = h2.astype(h2_ref.dtype)
    h3_ref[...] = h3.astype(h3_ref.dtype)


def fused_forward(prep, x):
    """x: (B, L) -> (h2 (Bpad, 128), h3_padded (Bpad, n_pad)); caller slices [:B]."""
    B, L = x.shape
    Bpad = max(8, ((B + 7) // 8) * 8)          # sublane-aligned batch factor
    rows = Bpad * L
    n_pad = prep["wfc3"].shape[1]

    # Row layout (row = l*Bpad + b) with 2 zero L-positions of padding on each side;
    # x sits in lane 0 of an 8-lane operand (the stage-1 taps are built in-kernel).
    xr = jnp.zeros((L + 4, Bpad), jnp.float32).at[2:2 + L, :B].set(x.T.astype(jnp.float32))
    xr = jnp.pad(xr.reshape((L + 4) * Bpad, 1), ((0, 0), (0, 7)))   # ((L+4)*Bpad, 8)

    operands = [xr,
                prep["w1"], prep["b1"],
                prep["w2"], prep["b2"],
                prep["w3"], prep["b3"],
                prep["wfc1"], prep["bfc1"],
                prep["wfc2"], prep["bfc2"],
                prep["wfc3"], prep["bfc3"]]

    def full(a):
        nd = a.ndim
        return pl.BlockSpec(a.shape, lambda i, _nd=nd: (0,) * _nd)

    flops = 2 * (5 * rows * 8 * C1 + 5 * rows * C1 * C1 + 7 * rows * C1 * C3
                 + Bpad * (L * C3) * H1 + Bpad * H1 * H2 + Bpad * H2 * n_pad)
    bytes_accessed = (sum(int(np.prod(a.shape)) * 4 for a in operands)
                      + (Bpad * H2 + Bpad * n_pad) * 4)

    h2p, h3p = pl.pallas_call(
        functools.partial(_fused_forward_kernel, Bpad=Bpad, L=L),
        out_shape=(jax.ShapeDtypeStruct((Bpad, H2), jnp.float32),
                   jax.ShapeDtypeStruct((Bpad, n_pad), jnp.float32)),
        grid=(1,),
        in_specs=[full(a) for a in operands],
        out_specs=(pl.BlockSpec((Bpad, H2), lambda i: (0, 0)),
                   pl.BlockSpec((Bpad, n_pad), lambda i: (0, 0))),
        scratch_shapes=[pltpu.VMEM(((L + 6) * Bpad, C1), jnp.float32)],
        compiler_params=pltpu.CompilerParams(
            dimension_semantics=("arbitrary",),
            vmem_limit_bytes=32 * 1024 * 1024),
        cost_estimate=pl.CostEstimate(flops=flops, transcendentals=0,
                                      bytes_accessed=bytes_accessed),
    )(*operands)
    return h2p, h3p


@functools.partial(jax.jit, static_argnums=(2,))
def forward(prep, x, num_classes):
    B = x.shape[0]
    h2p, h3p = fused_forward(prep, x)
    return h2p[:B], h3p[:B, :num_classes]


# ----------------------------------------------------------------------------
# One-time weight packing (fold all layout transforms out of the hot path)
# ----------------------------------------------------------------------------
def prepare_params(params, input_dim):
    L = input_dim

    # Stage-1 fused weight: (5 taps, 8, 192); only input lane 0 carries x, tap t
    # corresponds to displacement d = t - 2.
    w1 = jnp.zeros((5, 8, C1), jnp.float32)
    w1 = w1.at[2, 0, 0:64].set(params["conv1_1_w"][:, 0, 0])
    w1 = w1.at[1:4, 0, 64:128].set(jnp.transpose(params["conv1_3_w"][:, 0, :], (1, 0)))
    w1 = w1.at[0:5, 0, 128:192].set(jnp.transpose(params["conv1_5_w"][:, 0, :], (1, 0)))
    b1 = jnp.concatenate([params["conv1_1_b"], params["conv1_3_b"], params["conv1_5_b"]])

    # Stage-2 fused weight: (5, 192, 192); zero-filled taps for the k=1/k=3 branches.
    w2 = jnp.zeros((5, C1, C1), jnp.float32)
    w2 = w2.at[2, :, 0:64].set(jnp.transpose(params["conv2_1_w"][:, :, 0], (1, 0)))
    w2 = w2.at[1:4, :, 64:128].set(jnp.transpose(params["conv2_3_w"], (2, 1, 0)))
    w2 = w2.at[0:5, :, 128:192].set(jnp.transpose(params["conv2_5_w"], (2, 1, 0)))
    b2 = jnp.concatenate([params["conv2_1_b"], params["conv2_3_b"], params["conv2_5_b"]])

    # Stage-3 weight: (7, 192, 64)
    w3 = jnp.transpose(params["conv3_w"], (2, 1, 0))
    b3 = params["conv3_b"]

    # fc1: fold the channel-major (NCW) flatten permutation into the weight so the
    # kernel consumes the L-major/channel-last activations directly: row l*64 + c.
    wfc1 = params["fc1_w"].T.reshape(C3, L, H1).transpose(1, 0, 2).reshape(L * C3, H1)
    bfc1 = params["fc1_b"]

    wfc2 = params["fc2_w"].T
    bfc2 = params["fc2_b"]

    # fc3: pad output dim to a lane-dense multiple of 128.
    nc = params["fc3_w"].shape[0]
    n_pad = max(128, ((nc + 127) // 128) * 128)
    wfc3 = jnp.zeros((H2, n_pad), jnp.float32).at[:, :nc].set(params["fc3_w"].T)
    bfc3 = jnp.zeros((n_pad,), jnp.float32).at[:nc].set(params["fc3_b"])

    return {
        "w1": w1, "b1": b1.reshape(1, C1),
        "w2": w2, "b2": b2.reshape(1, C1),
        "w3": w3, "b3": b3.reshape(1, C3),
        "wfc1": wfc1, "bfc1": bfc1.reshape(1, H1),
        "wfc2": wfc2, "bfc2": bfc2.reshape(1, H2),
        "wfc3": wfc3, "bfc3": bfc3.reshape(1, n_pad),
    }


# ----------------------------------------------------------------------------
# Parameters (deterministic, PyTorch-style uniform +-1/sqrt(fan_in))
# ----------------------------------------------------------------------------
def init_params(key, input_dim, num_classes):
    def u(k, shape, fan_in):
        bound = 1.0 / float(np.sqrt(fan_in))
        return jax.random.uniform(k, shape, jnp.float32, -bound, bound)

    ks = iter(jax.random.split(key, 20))
    p = {}
    for name, (c_out, c_in, ksz) in [
        ("conv1_1", (64, 1, 1)), ("conv1_3", (64, 1, 3)), ("conv1_5", (64, 1, 5)),
        ("conv2_1", (64, 192, 1)), ("conv2_3", (64, 192, 3)), ("conv2_5", (64, 192, 5)),
        ("conv3", (64, 192, 7)),
    ]:
        fan = c_in * ksz
        p[name + "_w"] = u(next(ks), (c_out, c_in, ksz), fan)
        p[name + "_b"] = u(next(ks), (c_out,), fan)
    flat = 64 * input_dim
    p["fc1_w"] = u(next(ks), (256, flat), flat)
    p["fc1_b"] = u(next(ks), (256,), flat)
    p["fc2_w"] = u(next(ks), (128, 256), 256)
    p["fc2_b"] = u(next(ks), (128,), 256)
    p["fc3_w"] = u(next(ks), (num_classes, 128), 128)
    p["fc3_b"] = u(next(ks), (num_classes,), 128)
    return p


# ----------------------------------------------------------------------------
# Pure-JAX reference (NCW, lax.conv) for correctness checking
# ----------------------------------------------------------------------------
def forward_ref(params, x):
    def conv(x_ncw, w, b, relu=True):
        k = w.shape[-1]
        p = (k - 1) // 2
        y = lax.conv_general_dilated(
            x_ncw, w, window_strides=(1,), padding=[(p, p)],
            dimension_numbers=("NCH", "OIH", "NCH"))
        y = y + b[None, :, None]
        return jnp.maximum(y, 0.0) if relu else y

    x_ncw = x[:, None, :]
    x1 = jnp.concatenate(
        [conv(x_ncw, params["conv1_1_w"], params["conv1_1_b"]),
         conv(x_ncw, params["conv1_3_w"], params["conv1_3_b"]),
         conv(x_ncw, params["conv1_5_w"], params["conv1_5_b"])], axis=1)
    x2 = jnp.concatenate(
        [conv(x1, params["conv2_1_w"], params["conv2_1_b"]),
         conv(x1, params["conv2_3_w"], params["conv2_3_b"]),
         conv(x1, params["conv2_5_w"], params["conv2_5_b"])], axis=1)
    x3 = conv(x2, params["conv3_w"], params["conv3_b"])
    x_flat = x3.reshape(x.shape[0], -1)
    h1 = jnp.maximum(x_flat @ params["fc1_w"].T + params["fc1_b"], 0.0)
    h2 = jnp.maximum(h1 @ params["fc2_w"].T + params["fc2_b"], 0.0)
    h3 = h2 @ params["fc3_w"].T + params["fc3_b"]
    return h2, h3


if __name__ == "__main__":
    B, INPUT_DIM, NUM_CLASSES = 2, 16, 10

    key = jax.random.PRNGKey(0)
    k_param, k_x = jax.random.split(key)
    params = init_params(k_param, INPUT_DIM, NUM_CLASSES)
    x = jax.random.normal(k_x, (B, INPUT_DIM), jnp.float32)

    prep = prepare_params(params, INPUT_DIM)           # one-time weight packing
    fc2_out, fc3_out = forward(prep, x, NUM_CLASSES)
    jax.block_until_ready((fc2_out, fc3_out))

    # sanity check vs pure-JAX reference
    r2, r3 = jax.jit(forward_ref)(params, x)
    assert fc2_out.shape == (B, 128) and fc3_out.shape == (B, NUM_CLASSES)
    np.testing.assert_allclose(np.asarray(fc2_out), np.asarray(r2), rtol=1e-4, atol=1e-4)
    np.testing.assert_allclose(np.asarray(fc3_out), np.asarray(r3), rtol=1e-4, atol=1e-4)

    # NOTE: nn.Softmax is defined in the module's __init__ but never used in forward().
    print("KERNEL_OK")
</pallas_src>

<mosaic_0001>
module attributes {stable_mosaic.version = 11 : i64} {
  func.func @_fused_forward_kernel(%arg0: i32, %arg1: memref<160x8xf32, #tpu.memory_space<vmem>>, %arg2: memref<5x8x192xf32, #tpu.memory_space<vmem>>, %arg3: memref<1x192xf32, #tpu.memory_space<vmem>>, %arg4: memref<5x192x192xf32, #tpu.memory_space<vmem>>, %arg5: memref<1x192xf32, #tpu.memory_space<vmem>>, %arg6: memref<7x192x64xf32, #tpu.memory_space<vmem>>, %arg7: memref<1x64xf32, #tpu.memory_space<vmem>>, %arg8: memref<1024x256xf32, #tpu.memory_space<vmem>>, %arg9: memref<1x256xf32, #tpu.memory_space<vmem>>, %arg10: memref<256x128xf32, #tpu.memory_space<vmem>>, %arg11: memref<1x128xf32, #tpu.memory_space<vmem>>, %arg12: memref<128x128xf32, #tpu.memory_space<vmem>>, %arg13: memref<1x128xf32, #tpu.memory_space<vmem>>, %arg14: memref<8x128xf32, #tpu.memory_space<vmem>>, %arg15: memref<8x128xf32, #tpu.memory_space<vmem>>, %arg16: memref<176x192xf32, #tpu.memory_space<vmem>>) attributes {dimension_semantics = [#tpu.dimension_semantics<arbitrary>], iteration_bounds = array<i64: 1>, scalar_prefetch = 0 : i64, scratch_operands = 1 : i64, tpu.core_type = #tpu.core_type<tc>, window_params = [{pipeline_mode = #tpu.pipeline_mode<synchronous>, transform_indices = @transform_0, window_bounds = array<i64: 160, 8>}, {pipeline_mode = #tpu.pipeline_mode<synchronous>, transform_indices = @transform_1, window_bounds = array<i64: 5, 8, 192>}, {pipeline_mode = #tpu.pipeline_mode<synchronous>, transform_indices = @transform_2, window_bounds = array<i64: 1, 192>}, {pipeline_mode = #tpu.pipeline_mode<synchronous>, transform_indices = @transform_3, window_bounds = array<i64: 5, 192, 192>}, {pipeline_mode = #tpu.pipeline_mode<synchronous>, transform_indices = @transform_4, window_bounds = array<i64: 1, 192>}, {pipeline_mode = #tpu.pipeline_mode<synchronous>, transform_indices = @transform_5, window_bounds = array<i64: 7, 192, 64>}, {pipeline_mode = #tpu.pipeline_mode<synchronous>, transform_indices = @transform_6, window_bounds = array<i64: 1, 64>}, {pipeline_mode = #tpu.pipeline_mode<synchronous>, transform_indices = @transform_7, window_bounds = array<i64: 1024, 256>}, {pipeline_mode = #tpu.pipeline_mode<synchronous>, transform_indices = @transform_8, window_bounds = array<i64: 1, 256>}, {pipeline_mode = #tpu.pipeline_mode<synchronous>, transform_indices = @transform_9, window_bounds = array<i64: 256, 128>}, {pipeline_mode = #tpu.pipeline_mode<synchronous>, transform_indices = @transform_10, window_bounds = array<i64: 1, 128>}, {pipeline_mode = #tpu.pipeline_mode<synchronous>, transform_indices = @transform_11, window_bounds = array<i64: 128, 128>}, {pipeline_mode = #tpu.pipeline_mode<synchronous>, transform_indices = @transform_12, window_bounds = array<i64: 1, 128>}, {pipeline_mode = #tpu.pipeline_mode<synchronous>, transform_indices = @transform_13, window_bounds = array<i64: 8, 128>}, {pipeline_mode = #tpu.pipeline_mode<synchronous>, transform_indices = @transform_14, window_bounds = array<i64: 8, 128>}]} {
    %cst = arith.constant 0.000000e+00 : f32
    %0 = vector.broadcast %cst : f32 to vector<128x192xf32>
    %c0 = arith.constant 0 : index
    %c0_0 = arith.constant 0 : index
    %1 = vector.load %arg1[%c0, %c0_0] : memref<160x8xf32, #tpu.memory_space<vmem>>, vector<128x8xf32>
    %c0_1 = arith.constant 0 : index
    %c0_2 = arith.constant 0 : index
    %c0_3 = arith.constant 0 : index
    %2 = vector.load %arg2[%c0_1, %c0_2, %c0_3] : memref<5x8x192xf32, #tpu.memory_space<vmem>>, vector<1x8x192xf32>
    %3 = vector.shape_cast %2 : vector<1x8x192xf32> to vector<8x192xf32>
    %cst_4 = arith.constant dense<0.000000e+00> : vector<128x192xf32>
    %4 = tpu.matmul %1, %3, %cst_4 {dimension_numbers = #tpu.dot_dimension_numbers<[1], [0], [0], [1], [0, 0, 1, 1], [], []>} : vector<128x8xf32>, vector<8x192xf32>, vector<128x192xf32> -> vector<128x192xf32>
    %5 = arith.addf %0, %4 : vector<128x192xf32>
    %c8 = arith.constant 8 : index
    %c0_5 = arith.constant 0 : index
    %6 = vector.load %arg1[%c8, %c0_5] : memref<160x8xf32, #tpu.memory_space<vmem>>, vector<128x8xf32>
    %c1 = arith.constant 1 : index
    %c0_6 = arith.constant 0 : index
    %c0_7 = arith.constant 0 : index
    %7 = vector.load %arg2[%c1, %c0_6, %c0_7] : memref<5x8x192xf32, #tpu.memory_space<vmem>>, vector<1x8x192xf32>
    %8 = vector.shape_cast %7 : vector<1x8x192xf32> to vector<8x192xf32>
    %cst_8 = arith.constant dense<0.000000e+00> : vector<128x192xf32>
    %9 = tpu.matmul %6, %8, %cst_8 {dimension_numbers = #tpu.dot_dimension_numbers<[1], [0], [0], [1], [0, 0, 1, 1], [], []>} : vector<128x8xf32>, vector<8x192xf32>, vector<128x192xf32> -> vector<128x192xf32>
    %10 = arith.addf %5, %9 : vector<128x192xf32>
    %c16 = arith.constant 16 : index
    %c0_9 = arith.constant 0 : index
    %11 = vector.load %arg1[%c16, %c0_9] : memref<160x8xf32, #tpu.memory_space<vmem>>, vector<128x8xf32>
    %c2 = arith.constant 2 : index
    %c0_10 = arith.constant 0 : index
    %c0_11 = arith.constant 0 : index
    %12 = vector.load %arg2[%c2, %c0_10, %c0_11] : memref<5x8x192xf32, #tpu.memory_space<vmem>>, vector<1x8x192xf32>
    %13 = vector.shape_cast %12 : vector<1x8x192xf32> to vector<8x192xf32>
    %cst_12 = arith.constant dense<0.000000e+00> : vector<128x192xf32>
    %14 = tpu.matmul %11, %13, %cst_12 {dimension_numbers = #tpu.dot_dimension_numbers<[1], [0], [0], [1], [0, 0, 1, 1], [], []>} : vector<128x8xf32>, vector<8x192xf32>, vector<128x192xf32> -> vector<128x192xf32>
    %15 = arith.addf %10, %14 : vector<128x192xf32>
    %c24 = arith.constant 24 : index
    %c0_13 = arith.constant 0 : index
    %16 = vector.load %arg1[%c24, %c0_13] : memref<160x8xf32, #tpu.memory_space<vmem>>, vector<128x8xf32>
    %c3 = arith.constant 3 : index
    %c0_14 = arith.constant 0 : index
    %c0_15 = arith.constant 0 : index
    %17 = vector.load %arg2[%c3, %c0_14, %c0_15] : memref<5x8x192xf32, #tpu.memory_space<vmem>>, vector<1x8x192xf32>
    %18 = vector.shape_cast %17 : vector<1x8x192xf32> to vector<8x192xf32>
    %cst_16 = arith.constant dense<0.000000e+00> : vector<128x192xf32>
    %19 = tpu.matmul %16, %18, %cst_16 {dimension_numbers = #tpu.dot_dimension_numbers<[1], [0], [0], [1], [0, 0, 1, 1], [], []>} : vector<128x8xf32>, vector<8x192xf32>, vector<128x192xf32> -> vector<128x192xf32>
    %20 = arith.addf %15, %19 : vector<128x192xf32>
    %c32 = arith.constant 32 : index
    %c0_17 = arith.constant 0 : index
    %21 = vector.load %arg1[%c32, %c0_17] : memref<160x8xf32, #tpu.memory_space<vmem>>, vector<128x8xf32>
    %c4 = arith.constant 4 : index
    %c0_18 = arith.constant 0 : index
    %c0_19 = arith.constant 0 : index
    %22 = vector.load %arg2[%c4, %c0_18, %c0_19] : memref<5x8x192xf32, #tpu.memory_space<vmem>>, vector<1x8x192xf32>
    %23 = vector.shape_cast %22 : vector<1x8x192xf32> to vector<8x192xf32>
    %cst_20 = arith.constant dense<0.000000e+00> : vector<128x192xf32>
    %24 = tpu.matmul %21, %23, %cst_20 {dimension_numbers = #tpu.dot_dimension_numbers<[1], [0], [0], [1], [0, 0, 1, 1], [], []>} : vector<128x8xf32>, vector<8x192xf32>, vector<128x192xf32> -> vector<128x192xf32>
    %25 = arith.addf %20, %24 : vector<128x192xf32>
    %c0_21 = arith.constant 0 : index
    %c0_22 = arith.constant 0 : index
    %26 = vector.load %arg3[%c0_21, %c0_22] : memref<1x192xf32, #tpu.memory_space<vmem>>, vector<1x192xf32>
    %27 = vector.broadcast %26 : vector<1x192xf32> to vector<128x192xf32>
    %28 = arith.addf %25, %27 : vector<128x192xf32>
    %cst_23 = arith.constant 0.000000e+00 : f32
    %29 = vector.broadcast %cst_23 : f32 to vector<128x192xf32>
    %30 = arith.maximumf %28, %29 : vector<128x192xf32>
    %cst_24 = arith.constant 0.000000e+00 : f32
    %31 = vector.broadcast %cst_24 : f32 to vector<16x192xf32>
    %c0_25 = arith.constant 0 : index
    %c0_26 = arith.constant 0 : index
    %32 = vector.load %arg16[%c0_25, %c0_26] : memref<176x192xf32, #tpu.memory_space<vmem>>, vector<16x192xf32>
    tpu.vector_store %arg16[%c0_25, %c0_26], %31 {strides = array<i32>} : memref<176x192xf32, #tpu.memory_space<vmem>>, vector<16x192xf32>,
    %c16_27 = arith.constant 16 : index
    %c0_28 = arith.constant 0 : index
    %33 = vector.load %arg16[%c16_27, %c0_28] : memref<176x192xf32, #tpu.memory_space<vmem>>, vector<128x192xf32>
    tpu.vector_store %arg16[%c16_27, %c0_28], %30 {strides = array<i32>} : memref<176x192xf32, #tpu.memory_space<vmem>>, vector<128x192xf32>,
    %cst_29 = arith.constant 0.000000e+00 : f32
    %34 = vector.broadcast %cst_29 : f32 to vector<16x192xf32>
    %c144 = arith.constant 144 : index
    %c0_30 = arith.constant 0 : index
    %35 = vector.load %arg16[%c144, %c0_30] : memref<176x192xf32, #tpu.memory_space<vmem>>, vector<16x192xf32>
    tpu.vector_store %arg16[%c144, %c0_30], %34 {strides = array<i32>} : memref<176x192xf32, #tpu.memory_space<vmem>>, vector<16x192xf32>,
    %cst_31 = arith.constant 0.000000e+00 : f32
    %36 = vector.broadcast %cst_31 : f32 to vector<128x192xf32>
    %c0_32 = arith.constant 0 : index
    %c0_33 = arith.constant 0 : index
    %37 = vector.load %arg16[%c0_32, %c0_33] : memref<176x192xf32, #tpu.memory_space<vmem>>, vector<128x192xf32>
    %c0_34 = arith.constant 0 : index
    %c0_35 = arith.constant 0 : index
    %c0_36 = arith.constant 0 : index
    %38 = vector.load %arg4[%c0_34, %c0_35, %c0_36] : memref<5x192x192xf32, #tpu.memory_space<vmem>>, vector<1x192x192xf32>
    %39 = vector.shape_cast %38 : vector<1x192x192xf32> to vector<192x192xf32>
    %cst_37 = arith.constant dense<0.000000e+00> : vector<128x192xf32>
    %40 = tpu.matmul %37, %39, %cst_37 {dimension_numbers = #tpu.dot_dimension_numbers<[1], [0], [0], [1], [0, 0, 1, 1], [], []>} : vector<128x192xf32>, vector<192x192xf32>, vector<128x192xf32> -> vector<128x192xf32>
    %41 = arith.addf %36, %40 : vector<128x192xf32>
    %c8_38 = arith.constant 8 : index
    %c0_39 = arith.constant 0 : index
    %42 = vector.load %arg16[%c8_38, %c0_39] : memref<176x192xf32, #tpu.memory_space<vmem>>, vector<128x192xf32>
    %c1_40 = arith.constant 1 : index
    %c0_41 = arith.constant 0 : index
    %c0_42 = arith.constant 0 : index
    %43 = vector.load %arg4[%c1_40, %c0_41, %c0_42] : memref<5x192x192xf32, #tpu.memory_space<vmem>>, vector<1x192x192xf32>
    %44 = vector.shape_cast %43 : vector<1x192x192xf32> to vector<192x192xf32>
    %cst_43 = arith.constant dense<0.000000e+00> : vector<128x192xf32>
    %45 = tpu.matmul %42, %44, %cst_43 {dimension_numbers = #tpu.dot_dimension_numbers<[1], [0], [0], [1], [0, 0, 1, 1], [], []>} : vector<128x192xf32>, vector<192x192xf32>, vector<128x192xf32> -> vector<128x192xf32>
    %46 = arith.addf %41, %45 : vector<128x192xf32>
    %c16_44 = arith.constant 16 : index
    %c0_45 = arith.constant 0 : index
    %47 = vector.load %arg16[%c16_44, %c0_45] : memref<176x192xf32, #tpu.memory_space<vmem>>, vector<128x192xf32>
    %c2_46 = arith.constant 2 : index
    %c0_47 = arith.constant 0 : index
    %c0_48 = arith.constant 0 : index
    %48 = vector.load %arg4[%c2_46, %c0_47, %c0_48] : memref<5x192x192xf32, #tpu.memory_space<vmem>>, vector<1x192x192xf32>
    %49 = vector.shape_cast %48 : vector<1x192x192xf32> to vector<192x192xf32>
    %cst_49 = arith.constant dense<0.000000e+00> : vector<128x192xf32>
    %50 = tpu.matmul %47, %49, %cst_49 {dimension_numbers = #tpu.dot_dimension_numbers<[1], [0], [0], [1], [0, 0, 1, 1], [], []>} : vector<128x192xf32>, vector<192x192xf32>, vector<128x192xf32> -> vector<128x192xf32>
    %51 = arith.addf %46, %50 : vector<128x192xf32>
    %c24_50 = arith.constant 24 : index
    %c0_51 = arith.constant 0 : index
    %52 = vector.load %arg16[%c24_50, %c0_51] : memref<176x192xf32, #tpu.memory_space<vmem>>, vector<128x192xf32>
    %c3_52 = arith.constant 3 : index
    %c0_53 = arith.constant 0 : index
    %c0_54 = arith.constant 0 : index
    %53 = vector.load %arg4[%c3_52, %c0_53, %c0_54] : memref<5x192x192xf32, #tpu.memory_space<vmem>>, vector<1x192x192xf32>
    %54 = vector.shape_cast %53 : vector<1x192x192xf32> to vector<192x192xf32>
    %cst_55 = arith.constant dense<0.000000e+00> : vector<128x192xf32>
    %55 = tpu.matmul %52, %54, %cst_55 {dimension_numbers = #tpu.dot_dimension_numbers<[1], [0], [0], [1], [0, 0, 1, 1], [], []>} : vector<128x192xf32>, vector<192x192xf32>, vector<128x192xf32> -> vector<128x192xf32>
    %56 = arith.addf %51, %55 : vector<128x192xf32>
    %c32_56 = arith.constant 32 : index
    %c0_57 = arith.constant 0 : index
    %57 = vector.load %arg16[%c32_56, %c0_57] : memref<176x192xf32, #tpu.memory_space<vmem>>, vector<128x192xf32>
    %c4_58 = arith.constant 4 : index
    %c0_59 = arith.constant 0 : index
    %c0_60 = arith.constant 0 : index
    %58 = vector.load %arg4[%c4_58, %c0_59, %c0_60] : memref<5x192x192xf32, #tpu.memory_space<vmem>>, vector<1x192x192xf32>
    %59 = vector.shape_cast %58 : vector<1x192x192xf32> to vector<192x192xf32>
    %cst_61 = arith.constant dense<0.000000e+00> : vector<128x192xf32>
    %60 = tpu.matmul %57, %59, %cst_61 {dimension_numbers = #tpu.dot_dimension_numbers<[1], [0], [0], [1], [0, 0, 1, 1], [], []>} : vector<128x192xf32>, vector<192x192xf32>, vector<128x192xf32> -> vector<128x192xf32>
    %61 = arith.addf %56, %60 : vector<128x192xf32>
    %c0_62 = arith.constant 0 : index
    %c0_63 = arith.constant 0 : index
    %62 = vector.load %arg5[%c0_62, %c0_63] : memref<1x192xf32, #tpu.memory_space<vmem>>, vector<1x192xf32>
    %63 = vector.broadcast %62 : vector<1x192xf32> to vector<128x192xf32>
    %64 = arith.addf %61, %63 : vector<128x192xf32>
    %cst_64 = arith.constant 0.000000e+00 : f32
    %65 = vector.broadcast %cst_64 : f32 to vector<128x192xf32>
    %66 = arith.maximumf %64, %65 : vector<128x192xf32>
    %cst_65 = arith.constant 0.000000e+00 : f32
    %67 = vector.broadcast %cst_65 : f32 to vector<24x192xf32>
    %c0_66 = arith.constant 0 : index
    %c0_67 = arith.constant 0 : index
    %68 = vector.load %arg16[%c0_66, %c0_67] : memref<176x192xf32, #tpu.memory_space<vmem>>, vector<24x192xf32>
    tpu.vector_store %arg16[%c0_66, %c0_67], %67 {strides = array<i32>} : memref<176x192xf32, #tpu.memory_space<vmem>>, vector<24x192xf32>,
    %c24_68 = arith.constant 24 : index
    %c0_69 = arith.constant 0 : index
    %69 = vector.load %arg16[%c24_68, %c0_69] : memref<176x192xf32, #tpu.memory_space<vmem>>, vector<128x192xf32>
    tpu.vector_store %arg16[%c24_68, %c0_69], %66 {strides = array<i32>} : memref<176x192xf32, #tpu.memory_space<vmem>>, vector<128x192xf32>,
    %cst_70 = arith.constant 0.000000e+00 : f32
    %70 = vector.broadcast %cst_70 : f32 to vector<24x192xf32>
    %c152 = arith.constant 152 : index
    %c0_71 = arith.constant 0 : index
    %71 = vector.load %arg16[%c152, %c0_71] : memref<176x192xf32, #tpu.memory_space<vmem>>, vector<24x192xf32>
    tpu.vector_store %arg16[%c152, %c0_71], %70 {strides = array<i32>} : memref<176x192xf32, #tpu.memory_space<vmem>>, vector<24x192xf32>,
    %cst_72 = arith.constant 0.000000e+00 : f32
    %72 = vector.broadcast %cst_72 : f32 to vector<128x64xf32>
    %c0_73 = arith.constant 0 : index
    %c0_74 = arith.constant 0 : index
    %73 = vector.load %arg16[%c0_73, %c0_74] : memref<176x192xf32, #tpu.memory_space<vmem>>, vector<128x192xf32>
    %c0_75 = arith.constant 0 : index
    %c0_76 = arith.constant 0 : index
    %c0_77 = arith.constant 0 : index
    %74 = vector.load %arg6[%c0_75, %c0_76, %c0_77] : memref<7x192x64xf32, #tpu.memory_space<vmem>>, vector<1x192x64xf32>
    %75 = vector.shape_cast %74 : vector<1x192x64xf32> to vector<192x64xf32>
    %cst_78 = arith.constant dense<0.000000e+00> : vector<128x64xf32>
    %76 = tpu.matmul %73, %75, %cst_78 {dimension_numbers = #tpu.dot_dimension_numbers<[1], [0], [0], [1], [0, 0, 1, 1], [], []>} : vector<128x192xf32>, vector<192x64xf32>, vector<128x64xf32> -> vector<128x64xf32>
    %77 = arith.addf %72, %76 : vector<128x64xf32>
    %c8_79 = arith.constant 8 : index
    %c0_80 = arith.constant 0 : index
    %78 = vector.load %arg16[%c8_79, %c0_80] : memref<176x192xf32, #tpu.memory_space<vmem>>, vector<128x192xf32>
    %c1_81 = arith.constant 1 : index
    %c0_82 = arith.constant 0 : index
    %c0_83 = arith.constant 0 : index
    %79 = vector.load %arg6[%c1_81, %c0_82, %c0_83] : memref<7x192x64xf32, #tpu.memory_space<vmem>>, vector<1x192x64xf32>
    %80 = vector.shape_cast %79 : vector<1x192x64xf32> to vector<192x64xf32>
    %cst_84 = arith.constant dense<0.000000e+00> : vector<128x64xf32>
    %81 = tpu.matmul %78, %80, %cst_84 {dimension_numbers = #tpu.dot_dimension_numbers<[1], [0], [0], [1], [0, 0, 1, 1], [], []>} : vector<128x192xf32>, vector<192x64xf32>, vector<128x64xf32> -> vector<128x64xf32>
    %82 = arith.addf %77, %81 : vector<128x64xf32>
    %c16_85 = arith.constant 16 : index
    %c0_86 = arith.constant 0 : index
    %83 = vector.load %arg16[%c16_85, %c0_86] : memref<176x192xf32, #tpu.memory_space<vmem>>, vector<128x192xf32>
    %c2_87 = arith.constant 2 : index
    %c0_88 = arith.constant 0 : index
    %c0_89 = arith.constant 0 : index
    %84 = vector.load %arg6[%c2_87, %c0_88, %c0_89] : memref<7x192x64xf32, #tpu.memory_space<vmem>>, vector<1x192x64xf32>
    %85 = vector.shape_cast %84 : vector<1x192x64xf32> to vector<192x64xf32>
    %cst_90 = arith.constant dense<0.000000e+00> : vector<128x64xf32>
    %86 = tpu.matmul %83, %85, %cst_90 {dimension_numbers = #tpu.dot_dimension_numbers<[1], [0], [0], [1], [0, 0, 1, 1], [], []>} : vector<128x192xf32>, vector<192x64xf32>, vector<128x64xf32> -> vector<128x64xf32>
    %87 = arith.addf %82, %86 : vector<128x64xf32>
    %c24_91 = arith.constant 24 : index
    %c0_92 = arith.constant 0 : index
    %88 = vector.load %arg16[%c24_91, %c0_92] : memref<176x192xf32, #tpu.memory_space<vmem>>, vector<128x192xf32>
    %c3_93 = arith.constant 3 : index
    %c0_94 = arith.constant 0 : index
    %c0_95 = arith.constant 0 : index
    %89 = vector.load %arg6[%c3_93, %c0_94, %c0_95] : memref<7x192x64xf32, #tpu.memory_space<vmem>>, vector<1x192x64xf32>
    %90 = vector.shape_cast %89 : vector<1x192x64xf32> to vector<192x64xf32>
    %cst_96 = arith.constant dense<0.000000e+00> : vector<128x64xf32>
    %91 = tpu.matmul %88, %90, %cst_96 {dimension_numbers = #tpu.dot_dimension_numbers<[1], [0], [0], [1], [0, 0, 1, 1], [], []>} : vector<128x192xf32>, vector<192x64xf32>, vector<128x64xf32> -> vector<128x64xf32>
    %92 = arith.addf %87, %91 : vector<128x64xf32>
    %c32_97 = arith.constant 32 : index
    %c0_98 = arith.constant 0 : index
    %93 = vector.load %arg16[%c32_97, %c0_98] : memref<176x192xf32, #tpu.memory_space<vmem>>, vector<128x192xf32>
    %c4_99 = arith.constant 4 : index
    %c0_100 = arith.constant 0 : index
    %c0_101 = arith.constant 0 : index
    %94 = vector.load %arg6[%c4_99, %c0_100, %c0_101] : memref<7x192x64xf32, #tpu.memory_space<vmem>>, vector<1x192x64xf32>
    %95 = vector.shape_cast %94 : vector<1x192x64xf32> to vector<192x64xf32>
    %cst_102 = arith.constant dense<0.000000e+00> : vector<128x64xf32>
    %96 = tpu.matmul %93, %95, %cst_102 {dimension_numbers = #tpu.dot_dimension_numbers<[1], [0], [0], [1], [0, 0, 1, 1], [], []>} : vector<128x192xf32>, vector<192x64xf32>, vector<128x64xf32> -> vector<128x64xf32>
    %97 = arith.addf %92, %96 : vector<128x64xf32>
    %c40 = arith.constant 40 : index
    %c0_103 = arith.constant 0 : index
    %98 = vector.load %arg16[%c40, %c0_103] : memref<176x192xf32, #tpu.memory_space<vmem>>, vector<128x192xf32>
    %c5 = arith.constant 5 : index
    %c0_104 = arith.constant 0 : index
    %c0_105 = arith.constant 0 : index
    %99 = vector.load %arg6[%c5, %c0_104, %c0_105] : memref<7x192x64xf32, #tpu.memory_space<vmem>>, vector<1x192x64xf32>
    %100 = vector.shape_cast %99 : vector<1x192x64xf32> to vector<192x64xf32>
    %cst_106 = arith.constant dense<0.000000e+00> : vector<128x64xf32>
    %101 = tpu.matmul %98, %100, %cst_106 {dimension_numbers = #tpu.dot_dimension_numbers<[1], [0], [0], [1], [0, 0, 1, 1], [], []>} : vector<128x192xf32>, vector<192x64xf32>, vector<128x64xf32> -> vector<128x64xf32>
    %102 = arith.addf %97, %101 : vector<128x64xf32>
    %c48 = arith.constant 48 : index
    %c0_107 = arith.constant 0 : index
    %103 = vector.load %arg16[%c48, %c0_107] : memref<176x192xf32, #tpu.memory_space<vmem>>, vector<128x192xf32>
    %c6 = arith.constant 6 : index
    %c0_108 = arith.constant 0 : index
    %c0_109 = arith.constant 0 : index
    %104 = vector.load %arg6[%c6, %c0_108, %c0_109] : memref<7x192x64xf32, #tpu.memory_space<vmem>>, vector<1x192x64xf32>
    %105 = vector.shape_cast %104 : vector<1x192x64xf32> to vector<192x64xf32>
    %cst_110 = arith.constant dense<0.000000e+00> : vector<128x64xf32>
    %106 = tpu.matmul %103, %105, %cst_110 {dimension_numbers = #tpu.dot_dimension_numbers<[1], [0], [0], [1], [0, 0, 1, 1], [], []>} : vector<128x192xf32>, vector<192x64xf32>, vector<128x64xf32> -> vector<128x64xf32>
    %107 = arith.addf %102, %106 : vector<128x64xf32>
    %c0_111 = arith.constant 0 : index
    %c0_112 = arith.constant 0 : index
    %108 = vector.load %arg7[%c0_111, %c0_112] : memref<1x64xf32, #tpu.memory_space<vmem>>, vector<1x64xf32>
    %109 = vector.broadcast %108 : vector<1x64xf32> to vector<128x64xf32>
    %110 = arith.addf %107, %109 : vector<128x64xf32>
    %cst_113 = arith.constant 0.000000e+00 : f32
    %111 = vector.broadcast %cst_113 : f32 to vector<128x64xf32>
    %112 = arith.maximumf %110, %111 : vector<128x64xf32>
    %113 = vector.extract_strided_slice %112 {offsets = [0, 0], sizes = [8, 64], strides = [1, 1]} : vector<128x64xf32> to vector<8x64xf32>
    %114 = vector.extract_strided_slice %112 {offsets = [8, 0], sizes = [8, 64], strides = [1, 1]} : vector<128x64xf32> to vector<8x64xf32>
    %115 = vector.extract_strided_slice %112 {offsets = [16, 0], sizes = [8, 64], strides = [1, 1]} : vector<128x64xf32> to vector<8x64xf32>
    %116 = vector.extract_strided_slice %112 {offsets = [24, 0], sizes = [8, 64], strides = [1, 1]} : vector<128x64xf32> to vector<8x64xf32>
    %117 = vector.extract_strided_slice %112 {offsets = [32, 0], sizes = [8, 64], strides = [1, 1]} : vector<128x64xf32> to vector<8x64xf32>
    %118 = vector.extract_strided_slice %112 {offsets = [40, 0], sizes = [8, 64], strides = [1, 1]} : vector<128x64xf32> to vector<8x64xf32>
    %119 = vector.extract_strided_slice %112 {offsets = [48, 0], sizes = [8, 64], strides = [1, 1]} : vector<128x64xf32> to vector<8x64xf32>
    %120 = vector.extract_strided_slice %112 {offsets = [56, 0], sizes = [8, 64], strides = [1, 1]} : vector<128x64xf32> to vector<8x64xf32>
    %121 = vector.extract_strided_slice %112 {offsets = [64, 0], sizes = [8, 64], strides = [1, 1]} : vector<128x64xf32> to vector<8x64xf32>
    %122 = vector.extract_strided_slice %112 {offsets = [72, 0], sizes = [8, 64], strides = [1, 1]} : vector<128x64xf32> to vector<8x64xf32>
    %123 = vector.extract_strided_slice %112 {offsets = [80, 0], sizes = [8, 64], strides = [1, 1]} : vector<128x64xf32> to vector<8x64xf32>
    %124 = vector.extract_strided_slice %112 {offsets = [88, 0], sizes = [8, 64], strides = [1, 1]} : vector<128x64xf32> to vector<8x64xf32>
    %125 = vector.extract_strided_slice %112 {offsets = [96, 0], sizes = [8, 64], strides = [1, 1]} : vector<128x64xf32> to vector<8x64xf32>
    %126 = vector.extract_strided_slice %112 {offsets = [104, 0], sizes = [8, 64], strides = [1, 1]} : vector<128x64xf32> to vector<8x64xf32>
    %127 = vector.extract_strided_slice %112 {offsets = [112, 0], sizes = [8, 64], strides = [1, 1]} : vector<128x64xf32> to vector<8x64xf32>
    %128 = vector.extract_strided_slice %112 {offsets = [120, 0], sizes = [8, 64], strides = [1, 1]} : vector<128x64xf32> to vector<8x64xf32>
    %129 = tpu.concatenate %113, %114 in 1 : vector<8x64xf32>, vector<8x64xf32> -> vector<8x128xf32>
    %130 = tpu.concatenate %115, %116 in 1 : vector<8x64xf32>, vector<8x64xf32> -> vector<8x128xf32>
    %131 = tpu.concatenate %117, %118 in 1 : vector<8x64xf32>, vector<8x64xf32> -> vector<8x128xf32>
    %132 = tpu.concatenate %119, %120 in 1 : vector<8x64xf32>, vector<8x64xf32> -> vector<8x128xf32>
    %133 = tpu.concatenate %121, %122 in 1 : vector<8x64xf32>, vector<8x64xf32> -> vector<8x128xf32>
    %134 = tpu.concatenate %123, %124 in 1 : vector<8x64xf32>, vector<8x64xf32> -> vector<8x128xf32>
    %135 = tpu.concatenate %125, %126 in 1 : vector<8x64xf32>, vector<8x64xf32> -> vector<8x128xf32>
    %136 = tpu.concatenate %127, %128 in 1 : vector<8x64xf32>, vector<8x64xf32> -> vector<8x128xf32>
    %137 = tpu.concatenate %129, %130, %131, %132, %133, %134, %135, %136 in 1 : vector<8x128xf32>, vector<8x128xf32>, vector<8x128xf32>, vector<8x128xf32>, vector<8x128xf32>, vector<8x128xf32>, vector<8x128xf32>, vector<8x128xf32> -> vector<8x1024xf32>
    %c0_114 = arith.constant 0 : index
    %c0_115 = arith.constant 0 : index
    %138 = vector.load %arg8[%c0_114, %c0_115] : memref<1024x256xf32, #tpu.memory_space<vmem>>, vector<1024x256xf32>
    %cst_116 = arith.constant dense<0.000000e+00> : vector<8x256xf32>
    %139 = tpu.matmul %137, %138, %cst_116 {dimension_numbers = #tpu.dot_dimension_numbers<[1], [0], [0], [1], [0, 0, 1, 1], [], []>} : vector<8x1024xf32>, vector<1024x256xf32>, vector<8x256xf32> -> vector<8x256xf32>
    %c0_117 = arith.constant 0 : index
    %c0_118 = arith.constant 0 : index
    %140 = vector.load %arg9[%c0_117, %c0_118] : memref<1x256xf32, #tpu.memory_space<vmem>>, vector<1x256xf32>
    %141 = vector.broadcast %140 : vector<1x256xf32> to vector<8x256xf32>
    %142 = arith.addf %139, %141 : vector<8x256xf32>
    %cst_119 = arith.constant 0.000000e+00 : f32
    %143 = vector.broadcast %cst_119 : f32 to vector<8x256xf32>
    %144 = arith.maximumf %142, %143 : vector<8x256xf32>
    %c0_120 = arith.constant 0 : index
    %c0_121 = arith.constant 0 : index
    %145 = vector.load %arg10[%c0_120, %c0_121] : memref<256x128xf32, #tpu.memory_space<vmem>>, vector<256x128xf32>
    %cst_122 = arith.constant dense<0.000000e+00> : vector<8x128xf32>
    %146 = tpu.matmul %144, %145, %cst_122 {dimension_numbers = #tpu.dot_dimension_numbers<[1], [0], [0], [1], [0, 0, 1, 1], [], []>} : vector<8x256xf32>, vector<256x128xf32>, vector<8x128xf32> -> vector<8x128xf32>
    %c0_123 = arith.constant 0 : index
    %c0_124 = arith.constant 0 : index
    %147 = vector.load %arg11[%c0_123, %c0_124] : memref<1x128xf32, #tpu.memory_space<vmem>>, vector<1x128xf32>
    %148 = vector.broadcast %147 : vector<1x128xf32> to vector<8x128xf32>
    %149 = arith.addf %146, %148 : vector<8x128xf32>
    %cst_125 = arith.constant 0.000000e+00 : f32
    %150 = vector.broadcast %cst_125 : f32 to vector<8x128xf32>
    %151 = arith.maximumf %149, %150 : vector<8x128xf32>
    %c0_126 = arith.constant 0 : index
    %c0_127 = arith.constant 0 : index
    %152 = vector.load %arg12[%c0_126, %c0_127] : memref<128x128xf32, #tpu.memory_space<vmem>>, vector<128x128xf32>
    %cst_128 = arith.constant dense<0.000000e+00> : vector<8x128xf32>
    %153 = tpu.matmul %151, %152, %cst_128 {dimension_numbers = #tpu.dot_dimension_numbers<[1], [0], [0], [1], [0, 0, 1, 1], [], []>} : vector<8x128xf32>, vector<128x128xf32>, vector<8x128xf32> -> vector<8x128xf32>
    %c0_129 = arith.constant 0 : index
    %c0_130 = arith.constant 0 : index
    %154 = vector.load %arg13[%c0_129, %c0_130] : memref<1x128xf32, #tpu.memory_space<vmem>>, vector<1x128xf32>
    %155 = vector.broadcast %154 : vector<1x128xf32> to vector<8x128xf32>
    %156 = arith.addf %153, %155 : vector<8x128xf32>
    %c0_131 = arith.constant 0 : index
    %c0_132 = arith.constant 0 : index
    %157 = vector.load %arg14[%c0_131, %c0_132] : memref<8x128xf32, #tpu.memory_space<vmem>>, vector<8x128xf32>
    tpu.vector_store %arg14[%c0_131, %c0_132], %151 {strides = array<i32>} : memref<8x128xf32, #tpu.memory_space<vmem>>, vector<8x128xf32>,
    %c0_133 = arith.constant 0 : index
    %c0_134 = arith.constant 0 : index
    %158 = vector.load %arg15[%c0_133, %c0_134] : memref<8x128xf32, #tpu.memory_space<vmem>>, vector<8x128xf32>
    tpu.vector_store %arg15[%c0_133, %c0_134], %156 {strides = array<i32>} : memref<8x128xf32, #tpu.memory_space<vmem>>, vector<8x128xf32>,
    return
  }
  func.func @transform_0(%arg0: i32) -> (i32, i32) {
    %c0_i32 = arith.constant 0 : i32
    %c0_i32_0 = arith.constant 0 : i32
    %c0_i32_1 = arith.constant 0 : i32
    return %c0_i32, %c0_i32_0 : i32, i32
  }
  func.func @transform_1(%arg0: i32) -> (i32, i32, i32) {
    %c0_i32 = arith.constant 0 : i32
    %c0_i32_0 = arith.constant 0 : i32
    %c0_i32_1 = arith.constant 0 : i32
    %c0_i32_2 = arith.constant 0 : i32
    return %c0_i32, %c0_i32_0, %c0_i32_1 : i32, i32, i32
  }
  func.func @transform_2(%arg0: i32) -> (i32, i32) {
    %c0_i32 = arith.constant 0 : i32
    %c0_i32_0 = arith.constant 0 : i32
    %c0_i32_1 = arith.constant 0 : i32
    return %c0_i32, %c0_i32_0 : i32, i32
  }
  func.func @transform_3(%arg0: i32) -> (i32, i32, i32) {
    %c0_i32 = arith.constant 0 : i32
    %c0_i32_0 = arith.constant 0 : i32
    %c0_i32_1 = arith.constant 0 : i32
    %c0_i32_2 = arith.constant 0 : i32
    return %c0_i32, %c0_i32_0, %c0_i32_1 : i32, i32, i32
  }
  func.func @transform_4(%arg0: i32) -> (i32, i32) {
    %c0_i32 = arith.constant 0 : i32
    %c0_i32_0 = arith.constant 0 : i32
    %c0_i32_1 = arith.constant 0 : i32
    return %c0_i32, %c0_i32_0 : i32, i32
  }
  func.func @transform_5(%arg0: i32) -> (i32, i32, i32) {
    %c0_i32 = arith.constant 0 : i32
    %c0_i32_0 = arith.constant 0 : i32
    %c0_i32_1 = arith.constant 0 : i32
    %c0_i32_2 = arith.constant 0 : i32
    return %c0_i32, %c0_i32_0, %c0_i32_1 : i32, i32, i32
  }
  func.func @transform_6(%arg0: i32) -> (i32, i32) {
    %c0_i32 = arith.constant 0 : i32
    %c0_i32_0 = arith.constant 0 : i32
    %c0_i32_1 = arith.constant 0 : i32
    return %c0_i32, %c0_i32_0 : i32, i32
  }
  func.func @transform_7(%arg0: i32) -> (i32, i32) {
    %c0_i32 = arith.constant 0 : i32
    %c0_i32_0 = arith.constant 0 : i32
    %c0_i32_1 = arith.constant 0 : i32
    return %c0_i32, %c0_i32_0 : i32, i32
  }
  func.func @transform_8(%arg0: i32) -> (i32, i32) {
    %c0_i32 = arith.constant 0 : i32
    %c0_i32_0 = arith.constant 0 : i32
    %c0_i32_1 = arith.constant 0 : i32
    return %c0_i32, %c0_i32_0 : i32, i32
  }
  func.func @transform_9(%arg0: i32) -> (i32, i32) {
    %c0_i32 = arith.constant 0 : i32
    %c0_i32_0 = arith.constant 0 : i32
    %c0_i32_1 = arith.constant 0 : i32
    return %c0_i32, %c0_i32_0 : i32, i32
  }
  func.func @transform_10(%arg0: i32) -> (i32, i32) {
    %c0_i32 = arith.constant 0 : i32
    %c0_i32_0 = arith.constant 0 : i32
    %c0_i32_1 = arith.constant 0 : i32
    return %c0_i32, %c0_i32_0 : i32, i32
  }
  func.func @transform_11(%arg0: i32) -> (i32, i32) {
    %c0_i32 = arith.constant 0 : i32
    %c0_i32_0 = arith.constant 0 : i32
    %c0_i32_1 = arith.constant 0 : i32
    return %c0_i32, %c0_i32_0 : i32, i32
  }
  func.func @transform_12(%arg0: i32) -> (i32, i32) {
    %c0_i32 = arith.constant 0 : i32
    %c0_i32_0 = arith.constant 0 : i32
    %c0_i32_1 = arith.constant 0 : i32
    return %c0_i32, %c0_i32_0 : i32, i32
  }
  func.func @transform_13(%arg0: i32) -> (i32, i32) {
    %c0_i32 = arith.constant 0 : i32
    %c0_i32_0 = arith.constant 0 : i32
    %c0_i32_1 = arith.constant 0 : i32
    return %c0_i32, %c0_i32_0 : i32, i32
  }
  func.func @transform_14(%arg0: i32) -> (i32, i32) {
    %c0_i32 = arith.constant 0 : i32
    %c0_i32_0 = arith.constant 0 : i32
    %c0_i32_1 = arith.constant 0 : i32
    return %c0_i32, %c0_i32_0 : i32, i32
  }
}

</mosaic_0001>

<bundles_post_ra>
// kernel: forward.1
= control target key start
LH: loop header
LB: loop body
LE: loop exit
PB: predicated region body
PF: predicated region fallthrough
CT: control target
= control target key end

     0   :  { %20 = vsyncpa [#allocation4], 0  ;;  %s6356_s16 = smov [#allocation3]   ;;  %s6357_s18 = smov 256   ;;  %s10547_s0 = inlined_call_operand.vmem [shape: f32[160,8], index: 0, kind: input, shape index: {}]   ;;  %s10548_s1 = inlined_call_operand.vmem [shape: f32[5,8,192], index: 1, kind: input, shape index: {}]   ;;  %s10549_s2 = inlined_call_operand.vmem [shape: f32[1,192], index: 2, kind: input, shape index: {}]   ;;  %s10550_s3 = inlined_call_operand.hbm [shape: f32[5,192,192], index: 3, kind: input, shape index: {}]   ;;  %s10551_s4 = inlined_call_operand.vmem [shape: f32[1,192], index: 4, kind: input, shape index: {}]   ;;  %s10552_s5 = inlined_call_operand.vmem [shape: f32[7,192,64], index: 5, kind: input, shape index: {}]   ;;  %s10553_s6 = inlined_call_operand.vmem [shape: f32[1,64], index: 6, kind: input, shape index: {}]   ;;  %s10554_s7 = inlined_call_operand.vmem [shape: f32[1024,256], index: 7, kind: input, shape index: {}]   ;;  %s10555_s8 = inlined_call_operand.vmem [shape: f32[1,256], index: 8, kind: input, shape index: {}]   ;;  %s10556_s9 = inlined_call_operand.vmem [shape: f32[256,128], index: 9, kind: input, shape index: {}]   ;;  %s10557_s10 = inlined_call_operand.vmem [shape: f32[1,128], index: 10, kind: input, shape index: {}]   ;;  %s10558_s11 = inlined_call_operand.vmem [shape: f32[128,128], index: 11, kind: input, shape index: {}]   ;;  %s10559_s12 = inlined_call_operand.vmem [shape: f32[1,128], index: 12, kind: input, shape index: {}]   ;;  %s10560_s13 = inlined_call_operand.vmem [shape: f32[8,128], index: 13, kind: output, shape index: {0}]   ;;  %s10561_s14 = inlined_call_operand.vmem [shape: f32[8,128], index: 14, kind: output, shape index: {1}]  }
   0x1   :  { %s31_s15 = sshll.u32 %s10550_s3, 4  ;;  %s33_s17 = sshll.u32 %s6356_s16, 4  ;;  %s32_s15 = int_to_ptr.hbm [resolvable:$true] %s31_s15  ;;  %s34_s17 = int_to_ptr.vmem [resolvable:$true] %s33_s17 }
   0x2   :  { %s6358_s19 = smov 16  }
   0x3   :  { %39 = dma.hbm_to_vmem [thread:$0]  %s32_s15, 30720, %s34_s17, [#allocation4], %s6357_s18, %s6357_s18, %s6358_s19  }
   0x4   :  { %6354 = dma.done.wait [#allocation4], 30720  }
   0x5   :  { %6355 = vsyncadd [#allocation4], 4294936576  ;;  %v5710_v0 = vld [vmem:[%s10548_s1 + $0x10] sm:$0xff]  ;;  %v5711_v1 = vld [vmem:[%s10548_s1 + $0x18] sm:$0xff]  ;;  %vm84_vm0 = vcmask 64512   ;;  %vm1154_vm1 = vcmask 523264  }
   0x6   :  { %v78_v2 = vld [vmem:[%s10548_s1] sm:$0xff]  ;;  %148 = vmatpush.msra.mxu0 %v5710_v0  ;;  %6294 = vmatpush.msra.mxu3 %v5710_v0  ;;  %v63_v3 = vld [vmem:[%s10547_s0 + $0x8] sm:$0xff]  ;;  %v6473_v8 = vld [vmem:[%s10547_s0 + $0x10] sm:$0xff] }
   0x7   :  { %v6454_v4 = vld [vmem:[%s10547_s0 + $0x80] sm:$0xff]  ;;  %213 = vmatpush.msra.mxu1 %v5711_v1  ;;  %281 = vmatpush.msra.mxu2 %v78_v2  ;;  %v5777_v7 = vld [vmem:[%s10548_s1 + $0x28] sm:$0xff]  ;;  %v6488_v10 = vld [vmem:[%s10547_s0 + $0x18] sm:$0xff] }
   0x8   :  { %v62_v5 = vld [vmem:[%s10547_s0] sm:$0xff]  ;;  %5712 = vmatmul.msk.f32.vlgmr.msra.gmra.mxu0 %vm84_vm0, %v63_v3  ;;  %5727 = vmatmul.msk.f32.vlgmr.msra.gmra.mxu3 %vm84_vm0, %v6454_v4  ;;  %v79_v9 = vld [vmem:[%s10548_s1 + $0x8] sm:$0xff]  ;;  %v6493_v11 = vld [vmem:[%s10547_s0 + $0x78] sm:$0xff] }
   0x9   :  { %v5776_v6 = vld [vmem:[%s10548_s1 + $0x20] sm:$0xff]  ;;  %5728 = vmatmul.msk.f32.vlgmr.msra.gmra.mxu1 %vm84_vm0, %v63_v3  ;;  %5744 = vmatmul.msk.f32.vlgmr.msra.gmra.mxu2 %vm84_vm0, %v62_v5  ;;  %v6518_v13 = vld [vmem:[%s10547_s0 + $0x28] sm:$0xff]  ;;  %v6530_v14 = vld [vmem:[%s10547_s0 + $0x30] sm:$0xff] }
   0xa   :  { %478 = vmatpush.msrb.mxu0 %v5776_v6  ;;  %543 = vmatpush.msrb.mxu1 %v5777_v7  ;;  %v6506_v12 = vld [vmem:[%s10547_s0 + $0x20] sm:$0xff]  ;;  %v6543_v15 = vld [vmem:[%s10547_s0 + $0x38] sm:$0xff]  ;;  %v6569_v17 = vld [vmem:[%s10547_s0 + $0x48] sm:$0xff] }
   0xb   :  { %6295 = vmatpush.msrb.mxu3 %v5711_v1  ;;  %v6556_v16 = vld [vmem:[%s10547_s0 + $0x40] sm:$0xff]  ;;  %v6582_v18 = vld [vmem:[%s10547_s0 + $0x50] sm:$0xff]  ;;  %v6595_v19 = vld [vmem:[%s10547_s0 + $0x58] sm:$0xff] }
   0xc   :  { %v5811_v20 = vld [vmem:[%s10548_s1 + $0x38] sm:$0xff]  ;;  %v5810_v21 = vld [vmem:[%s10548_s1 + $0x30] sm:$0xff]  ;;  %v6614_v22 = vld [vmem:[%s10547_s0 + $0x60] sm:$0xff] }
   0xd   :  { %6296 = vmatpush.msra.mxu3 %v78_v2  ;;  %707 = vmatpush.msrb.mxu2 %v5810_v21  ;;  %v5844_v23 = vld [vmem:[%s10548_s1 + $0x40] sm:$0xff]  ;;  %v5845_v24 = vld [vmem:[%s10548_s1 + $0x48] sm:$0xff]  ;;  %v6646_v26 = vld [vmem:[%s10547_s0 + $0x70] sm:$0xff] }
   0xe   :  { %936 = vmatpush.msra.mxu0 %v5844_v23  ;;  %1001 = vmatpush.msra.mxu1 %v5845_v24  ;;  %v6633_v25 = vld [vmem:[%s10547_s0 + $0x68] sm:$0xff] }
  0x10   :  { %5713 = vmatmul.msk.f32.gmra.mxu0 %vm84_vm0, %v6473_v8  ;;  %5743 = vmatmul.msk.f32.vlgmr.msrb.gmra.mxu3 %vm84_vm0, %v6454_v4 }
  0x11   :  { %5729 = vmatmul.msk.f32.gmra.mxu1 %vm84_vm0, %v6473_v8  ;;  %5745 = vmatmul.msk.f32.gmra.mxu2 %vm84_vm0, %v63_v3 }
  0x12   :  { %346 = vmatpush.msrb.mxu3 %v79_v9 }
  0x18   :  { %5714 = vmatmul.msk.f32.gmra.mxu0 %vm84_vm0, %v6488_v10  ;;  %5759 = vmatmul.msk.f32.vlgmr.msra.gmra.mxu3 %vm84_vm0, %v6493_v11 }
  0x19   :  { %5730 = vmatmul.msk.f32.gmra.mxu1 %vm84_vm0, %v6488_v10  ;;  %5746 = vmatmul.msk.f32.gmra.mxu2 %vm84_vm0, %v6473_v8 }
  0x1a   :  { %772 = vmatpush.msra.mxu3 %v5811_v20 }
  0x20   :  { %5715 = vmatmul.msk.f32.gmra.mxu0 %vm84_vm0, %v6506_v12  ;;  %5760 = vmatmul.msk.f32.vlgmr.msrb.gmra.mxu3 %vm84_vm0, %v62_v5 }
  0x21   :  { %5731 = vmatmul.msk.f32.gmra.mxu1 %vm84_vm0, %v6506_v12  ;;  %5747 = vmatmul.msk.f32.gmra.mxu2 %vm84_vm0, %v6488_v10 }
  0x28   :  { %5716 = vmatmul.msk.f32.gmra.mxu0 %vm84_vm0, %v6518_v13  ;;  %5761 = vmatmul.msk.f32.gmra.mxu3 %vm84_vm0, %v63_v3 }
  0x29   :  { %5732 = vmatmul.msk.f32.gmra.mxu1 %vm84_vm0, %v6518_v13  ;;  %5748 = vmatmul.msk.f32.gmra.mxu2 %vm84_vm0, %v6506_v12 }
  0x30   :  { %5717 = vmatmul.msk.f32.gmra.mxu0 %vm84_vm0, %v6530_v14  ;;  %5762 = vmatmul.msk.f32.gmra.mxu3 %vm84_vm0, %v6473_v8 }
  0x31   :  { %5733 = vmatmul.msk.f32.gmra.mxu1 %vm84_vm0, %v6530_v14  ;;  %5749 = vmatmul.msk.f32.gmra.mxu2 %vm84_vm0, %v6518_v13 }
  0x38   :  { %5718 = vmatmul.msk.f32.gmra.mxu0 %vm84_vm0, %v6543_v15  ;;  %5763 = vmatmul.msk.f32.gmra.mxu3 %vm84_vm0, %v6488_v10 }
  0x39   :  { %5734 = vmatmul.msk.f32.gmra.mxu1 %vm84_vm0, %v6543_v15  ;;  %5750 = vmatmul.msk.f32.gmra.mxu2 %vm84_vm0, %v6530_v14 }
  0x40   :  { %5719 = vmatmul.msk.f32.gmra.mxu0 %vm84_vm0, %v6556_v16  ;;  %5764 = vmatmul.msk.f32.gmra.mxu3 %vm84_vm0, %v6506_v12 }
  0x41   :  { %5735 = vmatmul.msk.f32.gmra.mxu1 %vm84_vm0, %v6556_v16  ;;  %5751 = vmatmul.msk.f32.gmra.mxu2 %vm84_vm0, %v6543_v15 }
  0x48   :  { %5720 = vmatmul.msk.f32.gmra.mxu0 %vm84_vm0, %v6569_v17  ;;  %5765 = vmatmul.msk.f32.gmra.mxu3 %vm84_vm0, %v6518_v13 }
  0x49   :  { %5736 = vmatmul.msk.f32.gmra.mxu1 %vm84_vm0, %v6569_v17  ;;  %5752 = vmatmul.msk.f32.gmra.mxu2 %vm84_vm0, %v6556_v16 }
  0x50   :  { %5721 = vmatmul.msk.f32.gmra.mxu0 %vm84_vm0, %v6582_v18  ;;  %5766 = vmatmul.msk.f32.gmra.mxu3 %vm84_vm0, %v6530_v14 }
  0x51   :  { %5737 = vmatmul.msk.f32.gmra.mxu1 %vm84_vm0, %v6582_v18  ;;  %5753 = vmatmul.msk.f32.gmra.mxu2 %vm84_vm0, %v6569_v17 }
  0x58   :  { %5722 = vmatmul.msk.f32.gmra.mxu0 %vm84_vm0, %v6595_v19  ;;  %5767 = vmatmul.msk.f32.gmra.mxu3 %vm84_vm0, %v6543_v15 }
  0x59   :  { %5738 = vmatmul.msk.f32.gmra.mxu1 %vm84_vm0, %v6595_v19  ;;  %5754 = vmatmul.msk.f32.gmra.mxu2 %vm84_vm0, %v6582_v18 }
  0x60   :  { %5723 = vmatmul.msk.f32.gmra.mxu0 %vm84_vm0, %v6614_v22  ;;  %5768 = vmatmul.msk.f32.gmra.mxu3 %vm84_vm0, %v6556_v16 }
  0x61   :  { %5739 = vmatmul.msk.f32.gmra.mxu1 %vm84_vm0, %v6614_v22  ;;  %5755 = vmatmul.msk.f32.gmra.mxu2 %vm84_vm0, %v6595_v19 }
  0x68   :  { %5724 = vmatmul.msk.f32.gmra.mxu0 %vm84_vm0, %v6633_v25  ;;  %5769 = vmatmul.msk.f32.gmra.mxu3 %vm84_vm0, %v6569_v17 }
  0x69   :  { %5740 = vmatmul.msk.f32.gmra.mxu1 %vm84_vm0, %v6633_v25  ;;  %5756 = vmatmul.msk.f32.gmra.mxu2 %vm84_vm0, %v6614_v22 }
  0x70   :  { %5725 = vmatmul.msk.f32.gmra.mxu0 %vm84_vm0, %v6646_v26  ;;  %5770 = vmatmul.msk.f32.gmra.mxu3 %vm84_vm0, %v6582_v18 }
  0x71   :  { %5741 = vmatmul.msk.f32.gmra.mxu1 %vm84_vm0, %v6646_v26  ;;  %5757 = vmatmul.msk.f32.gmra.mxu2 %vm84_vm0, %v6633_v25 }
  0x78   :  { %5726 = vmatmul.msk.f32.gmra.mxu0 %vm84_vm0, %v6493_v11  ;;  %5771 = vmatmul.msk.f32.gmra.mxu3 %vm84_vm0, %v6595_v19 }
  0x79   :  { %5742 = vmatmul.msk.f32.gmra.mxu1 %vm84_vm0, %v6493_v11  ;;  %5758 = vmatmul.msk.f32.gmra.mxu2 %vm84_vm0, %v6646_v26 }
  0x80   :  { %5772 = vmatmul.msk.f32.gmra.mxu3 %vm84_vm0, %v6614_v22  ;;  %5778 = vmatmul.msk.f32.vlgmr.msrb.gmra.mxu0 %vm84_vm0, %v6473_v8 }
  0x81   :  { %5794 = vmatmul.msk.f32.vlgmr.msrb.gmra.mxu1 %vm84_vm0, %v6473_v8  ;;  %5812 = vmatmul.msk.f32.vlgmr.msrb.gmra.mxu2 %vm84_vm0, %v6488_v10 }
  0x85   :  { %v150_v27 = vpop.f32.mrf.mxu0 }
  0x86   :  { %v215_v28 = vpop.f32.mrf.mxu1 }
  0x88   :  { %5773 = vmatmul.msk.f32.gmra.mxu3 %vm84_vm0, %v6633_v25  ;;  %5779 = vmatmul.msk.f32.gmra.mxu0 %vm84_vm0, %v6488_v10 }
  0x89   :  { %5795 = vmatmul.msk.f32.gmra.mxu1 %vm84_vm0, %v6488_v10  ;;  %5813 = vmatmul.msk.f32.gmra.mxu2 %vm84_vm0, %v6506_v12 }
  0x8b   :  { %v195_v29 = vpop.f32.mrf.mxu3 }
  0x8c   :  { %v283_v30 = vpop.f32.mrf.mxu2 }
  0x8d   :  { %v6680_v31 = vadd.f32 %v283_v30, %v150_v27  ;;  %v153_v32 = vpop.f32.mrf.mxu0 }
  0x8e   :  { %v218_v33 = vpop.f32.mrf.mxu1 }
  0x90   :  { %5774 = vmatmul.msk.f32.gmra.mxu3 %vm84_vm0, %v6646_v26  ;;  %5780 = vmatmul.msk.f32.gmra.mxu0 %vm84_vm0, %v6506_v12 }
  0x91   :  { %5796 = vmatmul.msk.f32.gmra.mxu1 %vm84_vm0, %v6506_v12  ;;  %5814 = vmatmul.msk.f32.gmra.mxu2 %vm84_vm0, %v6518_v13 }
  0x93   :  { %v6690_v34 = vpop.f32.mrf.mxu3 }
  0x94   :  { %10578 = vst [vmem:[#allocation6_spill] sm:$0xff] %v6690_v34  ;;  %v286_v35 = vpop.f32.mrf.mxu2  ;;  %v1292_v34 = vld [vmem:[#allocation3 + $0x1f8] sm:$0xff] }
  0x95   :  { %v6692_v36 = vadd.f32 %v286_v35, %v153_v32  ;;  %v156_v37 = vpop.f32.mrf.mxu0 }
  0x96   :  { %v221_v38 = vpop.f32.mrf.mxu1 }
  0x98   :  { %5775 = vmatmul.msk.f32.gmra.mxu3 %vm84_vm0, %v6493_v11  ;;  %5781 = vmatmul.msk.f32.gmra.mxu0 %vm84_vm0, %v6518_v13 }
  0x99   :  { %5797 = vmatmul.msk.f32.gmra.mxu1 %vm84_vm0, %v6518_v13  ;;  %5815 = vmatmul.msk.f32.gmra.mxu2 %vm84_vm0, %v6530_v14 }
  0x9b   :  { %v328_v39 = vpop.f32.mrf.mxu3 }
  0x9c   :  { %v289_v40 = vpop.f32.mrf.mxu2  ;;  %v6702_v41 = vadd.f32 %v328_v39, %v195_v29  ;;  %v1323_v39 = vld [vmem:[#allocation3 + $0x2f0] sm:$0xff] }
  0x9d   :  { %v6704_v42 = vadd.f32 %v289_v40, %v156_v37  ;;  %v159_v43 = vpop.f32.mrf.mxu0  ;;  %1446 = vmatpush.msrb.mxu3 %v1323_v39  ;;  %v1320_v39 = vld [vmem:[#allocation3 + $0x2d8] sm:$0xff] }
  0x9e   :  { %10579 = vst [vmem:[#allocation7_spill] sm:$0xff] %v6702_v41  ;;  %v224_v44 = vpop.f32.mrf.mxu1 }
  0xa0   :  { %5782 = vmatmul.msk.f32.gmra.mxu0 %vm84_vm0, %v6530_v14  ;;  %5828 = vmatmul.msk.f32.vlgmr.msra.gmra.mxu3 %vm84_vm0, %v6488_v10 }
  0xa1   :  { %5798 = vmatmul.msk.f32.gmra.mxu1 %vm84_vm0, %v6530_v14  ;;  %5816 = vmatmul.msk.f32.gmra.mxu2 %vm84_vm0, %v6543_v15 }
  0xa3   :  { %v348_v45 = vpop.f32.mrf.mxu3 }
  0xa4   :  { %v292_v46 = vpop.f32.mrf.mxu2  ;;  %v6714_v47 = vadd.f32 %v348_v45, %v215_v28 }
  0xa5   :  { %v6716_v48 = vadd.f32 %v292_v46, %v159_v43  ;;  %v162_v49 = vpop.f32.mrf.mxu0  ;;  %v1308_v43 = vld [vmem:[#allocation3 + $0x278] sm:$0xff]  ;;  %v1305_v46 = vld [vmem:[#allocation3 + $0x260] sm:$0xff] }
  0xa6   :  { %v227_v50 = vpop.f32.mrf.mxu1  ;;  %1503 = vmatpush.msrb.mxu0 %v1308_v43 }
  0xa8   :  { %5783 = vmatmul.msk.f32.gmra.mxu0 %vm84_vm0, %v6543_v15  ;;  %5829 = vmatmul.msk.f32.gmra.mxu3 %vm84_vm0, %v6506_v12 }
  0xa9   :  { %5799 = vmatmul.msk.f32.gmra.mxu1 %vm84_vm0, %v6543_v15  ;;  %5817 = vmatmul.msk.f32.gmra.mxu2 %vm84_vm0, %v6556_v16 }
  0xab   :  { %v351_v51 = vpop.f32.mrf.mxu3 }
  0xac   :  { %v295_v52 = vpop.f32.mrf.mxu2  ;;  %v6726_v53 = vadd.f32 %v351_v51, %v218_v33  ;;  %v1306_v51 = vld [vmem:[#allocation3 + $0x268] sm:$0xff] }
  0xad   :  { %v6728_v54 = vadd.f32 %v295_v52, %v162_v49  ;;  %v165_v55 = vpop.f32.mrf.mxu0  ;;  %1504 = vmatpush.msrb.mxu0 %v1306_v51  ;;  %v1297_v51 = vld [vmem:[#allocation3 + $0x220] sm:$0xff] }
  0xae   :  { %v230_v56 = vpop.f32.mrf.mxu1 }
  0xb0   :  { %5784 = vmatmul.msk.f32.gmra.mxu0 %vm84_vm0, %v6556_v16  ;;  %5830 = vmatmul.msk.f32.gmra.mxu3 %vm84_vm0, %v6518_v13 }
  0xb1   :  { %5800 = vmatmul.msk.f32.gmra.mxu1 %vm84_vm0, %v6556_v16  ;;  %5818 = vmatmul.msk.f32.gmra.mxu2 %vm84_vm0, %v6569_v17 }
  0xb3   :  { %v354_v57 = vpop.f32.mrf.mxu3 }
  0xb4   :  { %v298_v58 = vpop.f32.mrf.mxu2  ;;  %v6738_v59 = vadd.f32 %v354_v57, %v221_v38  ;;  %v1307_v38 = vld [vmem:[#allocation3 + $0x270] sm:$0xff] }
  0xb5   :  { %v6740_v60 = vadd.f32 %v298_v58, %v165_v55  ;;  %v168_v61 = vpop.f32.mrf.mxu0  ;;  %1373 = vmatpush.msra.mxu2 %v1307_v38  ;;  %v1303_v55 = vld [vmem:[#allocation3 + $0x250] sm:$0xff] }
  0xb6   :  { %v233_v62 = vpop.f32.mrf.mxu1  ;;  %v6856_v58 = vld [vmem:[%s10547_s0 + $0x90] sm:$0xff] }
  0xb7   :  { %1374 = vmatpush.msra.mxu2 %v1305_v46 }
  0xb8   :  { %5785 = vmatmul.msk.f32.gmra.mxu0 %vm84_vm0, %v6569_v17  ;;  %5831 = vmatmul.msk.f32.gmra.mxu3 %vm84_vm0, %v6530_v14 }
  0xb9   :  { %5801 = vmatmul.msk.f32.gmra.mxu1 %vm84_vm0, %v6569_v17  ;;  %5819 = vmatmul.msk.f32.gmra.mxu2 %vm84_vm0, %v6582_v18 }
  0xba   :  { %1375 = vmatpush.msra.mxu2 %v1303_v55 }
  0xbb   :  { %v357_v63 = vpop.f32.mrf.mxu3 }
  0xbc   :  { %v301_v0 = vpop.f32.mrf.mxu2  ;;  %v6750_v1 = vadd.f32 %v357_v63, %v224_v44  ;;  %v1324_v44 = vld [vmem:[#allocation3 + $0x2f8] sm:$0xff] }
  0xbd   :  { %v6752_v2 = vadd.f32 %v301_v0, %v168_v61  ;;  %v6754_v3 = vpop.f32.mrf.mxu0  ;;  %1576 = vmatpush.msrb.mxu1 %v1324_v44  ;;  %v1304_v61 = vld [vmem:[#allocation3 + $0x258] sm:$0xff]  ;;  %v1301_v0 = vld [vmem:[#allocation3 + $0x240] sm:$0xff] }
  0xbe   :  { %v236_v5 = vpop.f32.mrf.mxu1  ;;  %1505 = vmatpush.msrb.mxu0 %v1304_v61  ;;  %1376 = vmatpush.msra.mxu2 %v1301_v0  ;;  %v1317_v0 = vld [vmem:[#allocation3 + $0x2c0] sm:$0xff] }
  0xc0   :  { %5786 = vmatmul.msk.f32.gmra.mxu0 %vm84_vm0, %v6582_v18  ;;  %5832 = vmatmul.msk.f32.gmra.mxu3 %vm84_vm0, %v6543_v15 }
  0xc1   :  { %5802 = vmatmul.msk.f32.gmra.mxu1 %vm84_vm0, %v6582_v18  ;;  %5820 = vmatmul.msk.f32.gmra.mxu2 %vm84_vm0, %v6595_v19 }
  0xc3   :  { %v360_v6 = vpop.f32.mrf.mxu3 }
  0xc4   :  { %v6764_v7 = vadd.f32 %v360_v6, %v227_v50  ;;  %v6839_v50 = vld [vmem:[%s10547_s0 + $0x88] sm:$0xff]  ;;  %v6886_v43 = vpop.f32.mrf.mxu2 }
  0xc5   :  { %v6766_v8 = vpop.f32.mrf.mxu0  ;;  %v1302_v6 = vld [vmem:[#allocation3 + $0x248] sm:$0xff] }
  0xc6   :  { %v6768_v9 = vpop.f32.mrf.mxu1  ;;  %1506 = vmatpush.msrb.mxu0 %v1302_v6 }
  0xc8   :  { %5787 = vmatmul.msk.f32.gmra.mxu0 %vm84_vm0, %v6595_v19  ;;  %5833 = vmatmul.msk.f32.gmra.mxu3 %vm84_vm0, %v6556_v16 }
  0xc9   :  { %5803 = vmatmul.msk.f32.gmra.mxu1 %vm84_vm0, %v6595_v19  ;;  %5821 = vmatmul.msk.f32.gmra.mxu2 %vm84_vm0, %v6614_v22 }
  0xcb   :  { %v363_v10 = vpop.f32.mrf.mxu3 }
  0xcc   :  { %v6778_v20 = vadd.f32 %v363_v10, %v230_v56  ;;  %v1321_v56 = vld [vmem:[#allocation3 + $0x2e0] sm:$0xff] }
  0xcd   :  { %v6780_v21 = vpop.f32.mrf.mxu0  ;;  %1447 = vmatpush.msrb.mxu3 %v1321_v56  ;;  %v6900_v56 = vpop.f32.mrf.mxu2 }
  0xce   :  { %v6782_v23 = vpop.f32.mrf.mxu1 }
  0xcf   :  { %10580 = vst [vmem:[#allocation8_spill] sm:$0xff] %v6782_v23  ;;  %v10617_v23 = vmov 0.0  }
  0xd0   :  { %5788 = vmatmul.msk.f32.gmra.mxu0 %vm84_vm0, %v6614_v22  ;;  %5834 = vmatmul.msk.f32.gmra.mxu3 %vm84_vm0, %v6569_v17 }
  0xd1   :  { %5804 = vmatmul.msk.f32.gmra.mxu1 %vm84_vm0, %v6614_v22  ;;  %5822 = vmatmul.msk.f32.gmra.mxu2 %vm84_vm0, %v6633_v25 }
  0xd3   :  { %v366_v24 = vpop.f32.mrf.mxu3 }
  0xd4   :  { %v6792_v27 = vadd.f32 %v366_v24, %v233_v62  ;;  %v1322_v62 = vld [vmem:[#allocation3 + $0x2e8] sm:$0xff]  ;;  %v1299_v24 = vld [vmem:[#allocation3 + $0x230] sm:$0xff] }
  0xd5   :  { %v6794_v28 = vpop.f32.mrf.mxu0  ;;  %1577 = vmatpush.msrb.mxu1 %v1322_v62  ;;  %1377 = vmatpush.msra.mxu2 %v1299_v24  ;;  %v1295_v62 = vld [vmem:[#allocation3 + $0x210] sm:$0xff] }
  0xd6   :  { %10581 = vst [vmem:[#allocation9_spill] sm:$0xff] %v6794_v28  ;;  %v6796_v29 = vpop.f32.mrf.mxu1  ;;  %v1271_v28 = vld [vmem:[#allocation3 + $0x168] sm:$0xff] }
  0xd7   :  { %10582 = vst [vmem:[#allocation10_spill] sm:$0xff] %v6796_v29  ;;  %1578 = vmatpush.msrb.mxu1 %v1320_v39  ;;  %1378 = vmatpush.msra.mxu2 %v1297_v51  ;;  %v1293_v39 = vld [vmem:[#allocation3 + $0x200] sm:$0xff] }
  0xd8   :  { %5789 = vmatmul.msk.f32.gmra.mxu0 %vm84_vm0, %v6633_v25  ;;  %5835 = vmatmul.msk.f32.gmra.mxu3 %vm84_vm0, %v6582_v18 }
  0xd9   :  { %5805 = vmatmul.msk.f32.gmra.mxu1 %vm84_vm0, %v6633_v25  ;;  %5823 = vmatmul.msk.f32.gmra.mxu2 %vm84_vm0, %v6646_v26 }
  0xda   :  { %1379 = vmatpush.msra.mxu2 %v1295_v62 }
  0xdb   :  { %v369_v30 = vpop.f32.mrf.mxu3 }
  0xdc   :  { %v6806_v32 = vadd.f32 %v369_v30, %v236_v5  ;;  %v1319_v30 = vld [vmem:[#allocation3 + $0x2d0] sm:$0xff]  ;;  %1380 = vmatpush.msra.mxu2 %v1293_v39 }
  0xdd   :  { %v6808_v33 = vpop.f32.mrf.mxu0  ;;  %1448 = vmatpush.msrb.mxu3 %v1319_v30  ;;  %v1318_v30 = vld [vmem:[#allocation3 + $0x2c8] sm:$0xff] }
  0xde   :  { %10583 = vst [vmem:[#allocation11_spill] sm:$0xff] %v6808_v33  ;;  %v6810_v35 = vpop.f32.mrf.mxu1  ;;  %1579 = vmatpush.msrb.mxu1 %v1318_v30  ;;  %v1315_v30 = vld [vmem:[#allocation3 + $0x2b0] sm:$0xff] }
  0xdf   :  { %10584 = vst [vmem:[#allocation12_spill] sm:$0xff] %v6810_v35  ;;  %1449 = vmatpush.msrb.mxu3 %v1317_v0 }
  0xe0   :  { %5790 = vmatmul.msk.f32.gmra.mxu0 %vm84_vm0, %v6646_v26  ;;  %5836 = vmatmul.msk.f32.gmra.mxu3 %vm84_vm0, %v6595_v19 }
  0xe1   :  { %5806 = vmatmul.msk.f32.gmra.mxu1 %vm84_vm0, %v6646_v26  ;;  %5824 = vmatmul.msk.f32.gmra.mxu2 %vm84_vm0, %v6493_v11 }
  0xe2   :  { %1450 = vmatpush.msrb.mxu3 %v1315_v30 }
  0xe3   :  { %v6888_v44 = vpop.f32.mrf.mxu3 }
  0xe5   :  { %v6820_v37 = vpop.f32.mrf.mxu0 }
  0xe6   :  { %10585 = vst [vmem:[#allocation13_spill] sm:$0xff] %v6820_v37  ;;  %v6822_v40 = vpop.f32.mrf.mxu1  ;;  %v1285_v37 = vld [vmem:[#allocation3 + $0x1c0] sm:$0xff] }
  0xe7   :  { %10586 = vst [vmem:[#allocation14_spill] sm:$0xff] %v6822_v40 }
  0xe8   :  { %5791 = vmatmul.msk.f32.gmra.mxu0 %vm84_vm0, %v6493_v11  ;;  %5837 = vmatmul.msk.f32.gmra.mxu3 %vm84_vm0, %v6614_v22 }
  0xe9   :  { %5807 = vmatmul.msk.f32.gmra.mxu1 %vm84_vm0, %v6493_v11  ;;  %5825 = vmatmul.msk.f32.gmra.mxu2 %vm84_vm0, %v6454_v4 }
  0xeb   :  { %v6904_v6 = vpop.f32.mrf.mxu3 }
  0xec   :  { %10591 = vst [vmem:[#allocation19_spill] sm:$0xff] %v6904_v6 }
  0xed   :  { %v6832_v45 = vpop.f32.mrf.mxu0 }
  0xee   :  { %10587 = vst [vmem:[#allocation15_spill] sm:$0xff] %v6832_v45  ;;  %v6834_v49 = vpop.f32.mrf.mxu1  ;;  %v1313_v45 = vld [vmem:[#allocation3 + $0x2a0] sm:$0xff] }
  0xef   :  { %10588 = vst [vmem:[#allocation16_spill] sm:$0xff] %v6834_v49  ;;  %1451 = vmatpush.msrb.mxu3 %v1313_v45 }
  0xf0   :  { %5792 = vmatmul.msk.f32.gmra.mxu0 %vm84_vm0, %v6454_v4  ;;  %5838 = vmatmul.msk.f32.gmra.mxu3 %vm84_vm0, %v6633_v25 }
  0xf1   :  { %5808 = vmatmul.msk.f32.gmra.mxu1 %vm84_vm0, %v6454_v4  ;;  %5826 = vmatmul.msk.f32.gmra.mxu2 %vm84_vm0, %v6839_v50 }
  0xf3   :  { %v6920_v62 = vpop.f32.mrf.mxu3 }
  0xf4   :  { %10592 = vst [vmem:[#allocation20_spill] sm:$0xff] %v6920_v62 }
  0xf5   :  { %v6849_v52 = vpop.f32.mrf.mxu0 }
  0xf6   :  { %10589 = vst [vmem:[#allocation17_spill] sm:$0xff] %v6849_v52  ;;  %v6851_v57 = vpop.f32.mrf.mxu1  ;;  %v1289_v52 = vld [vmem:[#allocation3 + $0x1e0] sm:$0xff] }
  0xf7   :  { %10590 = vst [vmem:[#allocation18_spill] sm:$0xff] %v6851_v57 }
  0xf8   :  { %5793 = vmatmul.msk.f32.gmra.mxu0 %vm84_vm0, %v6839_v50  ;;  %5839 = vmatmul.msk.f32.gmra.mxu3 %vm84_vm0, %v6646_v26 }
  0xf9   :  { %5809 = vmatmul.msk.f32.gmra.mxu1 %vm84_vm0, %v6839_v50  ;;  %5827 = vmatmul.msk.f32.gmra.mxu2 %vm84_vm0, %v6856_v58 }
  0xfb   :  { %v6936_v57 = vpop.f32.mrf.mxu3 }
  0xfc   :  { %10594 = vst [vmem:[#allocation22_spill] sm:$0xff] %v6936_v57 }
  0xfd   :  { %v6866_v63 = vpop.f32.mrf.mxu0 }
  0xfe   :  { %v6868_v5 = vpop.f32.mrf.mxu1 }
 0x100   :  { %5840 = vmatmul.msk.f32.gmra.mxu3 %vm84_vm0, %v6493_v11  ;;  %5846 = vmatmul.msk.f32.vlgmr.msra.gmra.mxu0 %vm84_vm0, %v6506_v12 }
 0x101   :  { %5862 = vmatmul.msk.f32.vlgmr.msra.gmra.mxu1 %vm84_vm0, %v6506_v12  ;;  %v1300_v12 = vld [vmem:[#allocation3 + $0x238] sm:$0xff] }
 0x102   :  { %1507 = vmatpush.msrb.mxu0 %v1300_v12 }
 0x103   :  { %v6948_v30 = vpop.f32.mrf.mxu3 }
 0x104   :  { %10596 = vst [vmem:[#allocation24_spill] sm:$0xff] %v6948_v30 }
 0x105   :  { %v6876_v10 = vpop.f32.mrf.mxu0 }
 0x106   :  { %v6878_v38 = vpop.f32.mrf.mxu1 }
 0x108   :  { %5841 = vmatmul.msk.f32.gmra.mxu3 %vm84_vm0, %v6454_v4  ;;  %5847 = vmatmul.msk.f32.gmra.mxu0 %vm84_vm0, %v6518_v13 }
 0x109   :  { %5863 = vmatmul.msk.f32.gmra.mxu1 %vm84_vm0, %v6518_v13  ;;  %v1298_v13 = vld [vmem:[#allocation3 + $0x228] sm:$0xff] }
 0x10a   :  { %1508 = vmatpush.msrb.mxu0 %v1298_v13  ;;  %v6918_v13 = vpop.f32.mrf.mxu2 }
 0x10b   :  { %v6962_v57 = vpop.f32.mrf.mxu3 }
 0x10c   :  { %10598 = vst [vmem:[#allocation26_spill] sm:$0xff] %v6962_v57 }
 0x10d   :  { %v6890_v46 = vpop.f32.mrf.mxu0 }
 0x10e   :  { %v6892_v55 = vpop.f32.mrf.mxu1 }
 0x110   :  { %5842 = vmatmul.msk.f32.gmra.mxu3 %vm84_vm0, %v6839_v50  ;;  %5848 = vmatmul.msk.f32.gmra.mxu0 %vm84_vm0, %v6530_v14 }
 0x111   :  { %5864 = vmatmul.msk.f32.gmra.mxu1 %vm84_vm0, %v6530_v14  ;;  %v1296_v14 = vld [vmem:[#allocation3 + $0x218] sm:$0xff] }
 0x112   :  { %1509 = vmatpush.msrb.mxu0 %v1296_v14  ;;  %v1291_v14 = vld [vmem:[#allocation3 + $0x1f0] sm:$0xff]  ;;  %v6932_v39 = vpop.f32.mrf.mxu2 }
 0x113   :  { %1381 = vmatpush.msra.mxu2 %v1291_v14  ;;  %10593 = vst [vmem:[#allocation21_spill] sm:$0xff] %v6932_v39  ;;  %v1290_v14 = vld [vmem:[#allocation3 + $0x1e8] sm:$0xff] }
 0x115   :  { %v6902_v61 = vpop.f32.mrf.mxu0  ;;  %1382 = vmatpush.msra.mxu2 %v1289_v52  ;;  %v1314_v52 = vld [vmem:[#allocation3 + $0x2a8] sm:$0xff] }
 0x116   :  { %v6906_v24 = vpop.f32.mrf.mxu1 }
 0x118   :  { %5843 = vmatmul.msk.f32.gmra.mxu3 %vm84_vm0, %v6856_v58  ;;  %5849 = vmatmul.msk.f32.gmra.mxu0 %vm84_vm0, %v6543_v15 }
 0x119   :  { %5865 = vmatmul.msk.f32.gmra.mxu1 %vm84_vm0, %v6543_v15  ;;  %v1294_v15 = vld [vmem:[#allocation3 + $0x208] sm:$0xff] }
 0x11a   :  { %1510 = vmatpush.msrb.mxu0 %v1294_v15 }
 0x11c   :  { %1511 = vmatpush.msrb.mxu0 %v1292_v34 }
 0x11d   :  { %v6914_v12 = vpop.f32.mrf.mxu0 }
 0x11e   :  { %v6916_v51 = vpop.f32.mrf.mxu1  ;;  %1512 = vmatpush.msrb.mxu0 %v1290_v14 }
 0x120   :  { %5850 = vmatmul.msk.f32.gmra.mxu0 %vm84_vm0, %v6556_v16 }
 0x121   :  { %5866 = vmatmul.msk.f32.gmra.mxu1 %vm84_vm0, %v6556_v16  ;;  %v1316_v16 = vld [vmem:[#allocation3 + $0x2b8] sm:$0xff] }
 0x122   :  { %1580 = vmatpush.msrb.mxu1 %v1316_v16  ;;  %v1287_v16 = vld [vmem:[#allocation3 + $0x1d0] sm:$0xff] }
 0x123   :  { %1383 = vmatpush.msra.mxu2 %v1287_v16  ;;  %v1283_v16 = vld [vmem:[#allocation3 + $0x1b0] sm:$0xff] }
 0x124   :  { %1581 = vmatpush.msrb.mxu1 %v1314_v52 }
 0x125   :  { %v6926_v0 = vpop.f32.mrf.mxu0  ;;  %1384 = vmatpush.msra.mxu2 %v1285_v37  ;;  %v1312_v37 = vld [vmem:[#allocation3 + $0x298] sm:$0xff] }
 0x126   :  { %v6928_v41 = vpop.f32.mrf.mxu1  ;;  %1582 = vmatpush.msrb.mxu1 %v1312_v37  ;;  %v1279_v37 = vld [vmem:[#allocation3 + $0x190] sm:$0xff] }
 0x127   :  { %1385 = vmatpush.msra.mxu2 %v1283_v16 }
 0x128   :  { %5851 = vmatmul.msk.f32.gmra.mxu0 %vm84_vm0, %v6569_v17 }
 0x129   :  { %5867 = vmatmul.msk.f32.gmra.mxu1 %vm84_vm0, %v6569_v17  ;;  %v6946_v17 = vpop.f32.mrf.mxu2 }
 0x12a   :  { %10595 = vst [vmem:[#allocation23_spill] sm:$0xff] %v6946_v17  ;;  %v1281_v17 = vld [vmem:[#allocation3 + $0x1a0] sm:$0xff] }
 0x12b   :  { %1386 = vmatpush.msra.mxu2 %v1281_v17  ;;  %v1280_v17 = vld [vmem:[#allocation3 + $0x198] sm:$0xff] }
 0x12d   :  { %v6938_v15 = vpop.f32.mrf.mxu0  ;;  %1387 = vmatpush.msra.mxu2 %v1279_v37 }
 0x12e   :  { %v6940_v49 = vpop.f32.mrf.mxu1 }
 0x130   :  { %5852 = vmatmul.msk.f32.gmra.mxu0 %vm84_vm0, %v6582_v18 }
 0x131   :  { %5868 = vmatmul.msk.f32.gmra.mxu1 %vm84_vm0, %v6582_v18  ;;  %v1288_v18 = vld [vmem:[#allocation3 + $0x1d8] sm:$0xff]  ;;  %v6958_v14 = vpop.f32.mrf.mxu2 }
 0x132   :  { %1513 = vmatpush.msrb.mxu0 %v1288_v18  ;;  %10597 = vst [vmem:[#allocation25_spill] sm:$0xff] %v6958_v14  ;;  %v1311_v18 = vld [vmem:[#allocation3 + $0x290] sm:$0xff]  ;;  %v6976_v14 = vpop.f32.mrf.mxu3 }
 0x133   :  { %1452 = vmatpush.msrb.mxu3 %v1311_v18  ;;  %10602 = vst [vmem:[#allocation30_spill] sm:$0xff] %v6976_v14  ;;  %v1282_v18 = vld [vmem:[#allocation3 + $0x1a8] sm:$0xff]  ;;  %v1309_v14 = vld [vmem:[#allocation3 + $0x280] sm:$0xff] }
 0x135   :  { %v6950_v34 = vpop.f32.mrf.mxu0  ;;  %1453 = vmatpush.msrb.mxu3 %v1309_v14 }
 0x136   :  { %v6952_v40 = vpop.f32.mrf.mxu1 }
 0x138   :  { %5853 = vmatmul.msk.f32.gmra.mxu0 %vm84_vm0, %v6595_v19 }
 0x139   :  { %5869 = vmatmul.msk.f32.gmra.mxu1 %vm84_vm0, %v6595_v19  ;;  %v1286_v19 = vld [vmem:[#allocation3 + $0x1c8] sm:$0xff]  ;;  %v6974_v57 = vpop.f32.mrf.mxu2 }
 0x13a   :  { %1514 = vmatpush.msrb.mxu0 %v1286_v19  ;;  %10601 = vst [vmem:[#allocation29_spill] sm:$0xff] %v6974_v57 }
 0x13d   :  { %v6960_v30 = vpop.f32.mrf.mxu0 }
 0x13e   :  { %v6964_v35 = vpop.f32.mrf.mxu1 }
 0x140   :  { %5854 = vmatmul.msk.f32.gmra.mxu0 %vm84_vm0, %v6614_v22 }
 0x141   :  { %5870 = vmatmul.msk.f32.gmra.mxu1 %vm84_vm0, %v6614_v22  ;;  %v1284_v22 = vld [vmem:[#allocation3 + $0x1b8] sm:$0xff]  ;;  %v6988_v16 = vpop.f32.mrf.mxu2 }
 0x142   :  { %1515 = vmatpush.msrb.mxu0 %v1284_v22  ;;  %10605 = vst [vmem:[#allocation33_spill] sm:$0xff] %v6988_v16 }
 0x144   :  { %1516 = vmatpush.msrb.mxu0 %v1282_v18  ;;  %v1277_v18 = vld [vmem:[#allocation3 + $0x180] sm:$0xff] }
 0x145   :  { %v6970_v45 = vpop.f32.mrf.mxu0  ;;  %1388 = vmatpush.msra.mxu2 %v1277_v18  ;;  %v1272_v18 = vld [vmem:[#allocation3 + $0x170] sm:$0xff] }
 0x146   :  { %10599 = vst [vmem:[#allocation27_spill] sm:$0xff] %v6970_v45  ;;  %v6972_v52 = vpop.f32.mrf.mxu1  ;;  %1517 = vmatpush.msrb.mxu0 %v1280_v17  ;;  %1709 = vmatpush.msra.mxu3 %v1272_v18 }
 0x147   :  { %10600 = vst [vmem:[#allocation28_spill] sm:$0xff] %v6972_v52  ;;  %v1250_v52 = vld [vmem:[#allocation3 + $0xc0] sm:$0xff] }
 0x148   :  { %5855 = vmatmul.msk.f32.gmra.mxu0 %vm84_vm0, %v6633_v25 }
 0x149   :  { %5871 = vmatmul.msk.f32.gmra.mxu1 %vm84_vm0, %v6633_v25  ;;  %v6992_v25 = vpop.f32.mrf.mxu3 }
 0x14a   :  { %10606 = vst [vmem:[#allocation34_spill] sm:$0xff] %v6992_v25  ;;  %v709_v25 = vpop.f32.mrf.mxu2 }
 0x14d   :  { %v6982_v19 = vpop.f32.mrf.mxu0 }
 0x14e   :  { %10603 = vst [vmem:[#allocation31_spill] sm:$0xff] %v6982_v19  ;;  %v6984_v33 = vpop.f32.mrf.mxu1 }
 0x14f   :  { %10604 = vst [vmem:[#allocation32_spill] sm:$0xff] %v6984_v33  ;;  %v1254_v33 = vld [vmem:[#allocation3 + $0xe0] sm:$0xff] }
 0x150   :  { %5856 = vmatmul.msk.f32.gmra.mxu0 %vm84_vm0, %v6646_v26 }
 0x151   :  { %5872 = vmatmul.msk.f32.gmra.mxu1 %vm84_vm0, %v6646_v26  ;;  %v1310_v26 = vld [vmem:[#allocation3 + $0x288] sm:$0xff]  ;;  %v774_v16 = vpop.f32.mrf.mxu3 }
 0x152   :  { %1583 = vmatpush.msrb.mxu1 %v1310_v26  ;;  %v7022_v37 = vpop.f32.mrf.mxu2  ;;  %v1256_v26 = vld [vmem:[#allocation3 + $0xf0] sm:$0xff] }
 0x153   :  { %1636 = vmatpush.msrb.mxu2 %v1256_v26 }
 0x155   :  { %v6994_v22 = vpop.f32.mrf.mxu0  ;;  %1637 = vmatpush.msrb.mxu2 %v1254_v33 }
 0x156   :  { %10607 = vst [vmem:[#allocation35_spill] sm:$0xff] %v6994_v22  ;;  %v6996_v57 = vpop.f32.mrf.mxu1 }
 0x157   :  { %10608 = vst [vmem:[#allocation36_spill] sm:$0xff] %v6996_v57  ;;  %v10562_v57 = vmov 0.0  }
 0x158   :  { %5857 = vmatmul.msk.f32.gmra.mxu0 %vm84_vm0, %v6493_v11  ;;  %1389 = vmatmul.f32.vlgmr.msra.gmra.mxu2 %v10562_v57  ;;  %3231 = vst [vmem:[#allocation2 + $0x10] sm:$0xff] %v10562_v57 }
 0x159   :  { %5873 = vmatmul.msk.f32.gmra.mxu1 %vm84_vm0, %v6493_v11  ;;  %1155 = vst.msk [vmem:[#allocation2 + $0x8] sm:$0xff] %vm1154_vm1, %v10562_v57  ;;  %v1278_v11 = vld [vmem:[#allocation3 + $0x188] sm:$0xff] }
 0x15a   :  { %1157 = vst.msk [vmem:[#allocation2 + $0x18] sm:$0xff] %vm1154_vm1, %v10562_v57  ;;  %1518 = vmatpush.msrb.mxu0 %v1278_v11  ;;  %v7046_v26 = vpop.f32.mrf.mxu2 }
 0x15b   :  { %1191 = vst.msk [vmem:[#allocation2 + $0x128] sm:$0xff] %vm1154_vm1, %v10562_v57 }
 0x15c   :  { %1193 = vst.msk [vmem:[#allocation2 + $0x138] sm:$0xff] %vm1154_vm1, %v10562_v57 }
 0x15d   :  { %v7002_v22 = vpop.f32.mrf.mxu0  ;;  %3270 = vst.msk [vmem:[#allocation2 + $0x148] sm:$0xff] %vm1154_vm1, %v10562_v57 }
 0x15e   :  { %10609 = vst [vmem:[#allocation37_spill] sm:$0xff] %v7002_v22  ;;  %v7006_v14 = vpop.f32.mrf.mxu1 }
 0x15f   :  { %10610 = vst [vmem:[#allocation38_spill] sm:$0xff] %v7006_v14  ;;  %v7028_v14 = vpop.f32.mrf.mxu3 }
 0x160   :  { %5858 = vmatmul.msk.f32.gmra.mxu0 %vm84_vm0, %v6454_v4  ;;  %3272 = vst.msk [vmem:[#allocation2 + $0x158] sm:$0xff] %vm1154_vm1, %v10562_v57 }
 0x161   :  { %5874 = vmatmul.msk.f32.gmra.mxu1 %vm84_vm0, %v6454_v4  ;;  %v7032_v4 = vld [vmem:[#allocation2 + $0x18] sm:$0xff] }
 0x162   :  { %5878 = vmatmul.msk.f32.vlgmr.msrb.gmra.mxu3 %vm1154_vm1, %v7032_v4  ;;  %3232 = vst.msk [vmem:[#allocation2 + $0x18] sm:$0xff] %vm1154_vm1, %v10562_v57  ;;  %v7062_v33 = vpop.f32.mrf.mxu2 }
 0x165   :  { %v7024_v17 = vpop.f32.mrf.mxu0 }
 0x166   :  { %10611 = vst [vmem:[#allocation39_spill] sm:$0xff] %v7024_v17  ;;  %v7030_v22 = vpop.f32.mrf.mxu1  ;;  %v1257_v17 = vld [vmem:[#allocation3 + $0xf8] sm:$0xff] }
 0x167   :  { %10612 = vst [vmem:[#allocation40_spill] sm:$0xff] %v7030_v22  ;;  %v1273_v22 = vld [vmem:[#allocation3 + $0x178] sm:$0xff]  ;;  %1766 = vmatpush.msra.mxu0 %v1257_v17  ;;  %v7048_v18 = vpop.f32.mrf.mxu3  ;;  %v1252_v17 = vld [vmem:[#allocation3 + $0xd0] sm:$0xff] }
 0x168   :  { %5859 = vmatmul.msk.f32.gmra.mxu0 %vm84_vm0, %v6839_v50  ;;  %1839 = vmatpush.msra.mxu1 %v1273_v22  ;;  %v1270_v22 = vld [vmem:[#allocation3 + $0x160] sm:$0xff] }
 0x169   :  { %5875 = vmatmul.msk.f32.gmra.mxu1 %vm84_vm0, %v6839_v50  ;;  %v869_v50 = vld [vmem:[%s10547_s0 + $0x98] sm:$0xff]  ;;  %1638 = vmatpush.msrb.mxu2 %v1252_v17 }
 0x16a   :  { %1710 = vmatpush.msra.mxu3 %v1270_v22  ;;  %1840 = vmatpush.msra.mxu1 %v1271_v28  ;;  %v7089_v28 = vpop.f32.mrf.mxu2 }
 0x16b   :  { %1639 = vmatpush.msrb.mxu2 %v1250_v52 }
 0x16d   :  { %v7042_v11 = vpop.f32.mrf.mxu0 }
 0x16e   :  { %10613 = vst [vmem:[#allocation41_spill] sm:$0xff] %v7042_v11  ;;  %v7044_v19 = vpop.f32.mrf.mxu1 }
 0x16f   :  { %10614 = vst [vmem:[#allocation42_spill] sm:$0xff] %v7044_v19  ;;  %v1255_v19 = vld [vmem:[#allocation3 + $0xe8] sm:$0xff]  ;;  %v7070_v62 = vpop.f32.mrf.mxu3 }
 0x170   :  { %5860 = vmatmul.msk.f32.gmra.mxu0 %vm84_vm0, %v6856_v58 }
 0x171   :  { %5876 = vmatmul.msk.f32.gmra.mxu1 %vm84_vm0, %v6856_v58  ;;  %1767 = vmatpush.msra.mxu0 %v1255_v19  ;;  %v1083_v58 = vld [vmem:[%s10549_s2] sm:$0x3]  ;;  %v594_v19 = vadd.f32 %v6868_v5, %v6714_v47 }
 0x172   :  { %v7074_v22 = vperm.slane %v1083_v58, 0  ;;  %v7076_v39 = vperm.slane %v1083_v58, 1 }
 0x175   :  { %v7057_v57 = vpop.f32.mrf.mxu0 }
 0x176   :  { %10615 = vst [vmem:[#allocation43_spill] sm:$0xff] %v7057_v57  ;;  %v7059_v11 = vpop.f32.mrf.mxu1  ;;  %v593_v57 = vadd.f32 %v6866_v63, %v6680_v31 }
 0x177   :  { %10616 = vst [vmem:[#allocation44_spill] sm:$0xff] %v7059_v11  ;;  %v823_v11 = vadd.f32 %v774_v16, %v594_v19  ;;  %v7092_v52 = vpop.f32.mrf.mxu3 }
 0x178   :  { %5861 = vmatmul.msk.f32.gmra.mxu0 %vm84_vm0, %v869_v50  ;;  %v822_v17 = vadd.f32 %v709_v25, %v593_v57  ;;  %v595_v57 = vadd.f32 %v6876_v10, %v6692_v36  ;;  %v1251_v10 = vld [vmem:[#allocation3 + $0xc8] sm:$0xff]  ;;  %v1248_v25 = vld [vmem:[#allocation3 + $0xb0] sm:$0xff] }
 0x179   :  { %5877 = vmatmul.msk.f32.gmra.mxu1 %vm84_vm0, %v869_v50  ;;  %v1253_v50 = vld [vmem:[#allocation3 + $0xd8] sm:$0xff]  ;;  %1640 = vmatpush.msrb.mxu2 %v1248_v25 }
 0x17a   :  { %1768 = vmatpush.msra.mxu0 %v1253_v50  ;;  %v598_v50 = vadd.f32 %v6892_v55, %v6738_v59  ;;  %v1269_v55 = vld [vmem:[#allocation3 + $0x158] sm:$0xff] }
 0x17b   :  { %1841 = vmatpush.msra.mxu1 %v1269_v55 }
 0x17c   :  { %1769 = vmatpush.msra.mxu0 %v1251_v10 }
 0x17d   :  { %v938_v29 = vpop.f32.mrf.mxu0 }
 0x17e   :  { %v1051_v45 = vadd.f32 %v938_v29, %v822_v17  ;;  %v1003_v6 = vpop.f32.mrf.mxu1  ;;  %v596_v29 = vadd.f32 %v6878_v38, %v6726_v53 }
 0x17f   :  { %v1052_v31 = vadd.f32 %v1003_v6, %v823_v11  ;;  %v1268_v11 = vld [vmem:[#allocation3 + $0x150] sm:$0xff] }
 0x180   :  { %v1089_v63 = vadd.f32 %v7074_v22, %v1051_v45  ;;  %1519 = vmatmul.f32.vlgmr.msrb.gmra.mxu0 %v10617_v23  ;;  %v824_v45 = vadd.f32 %v7022_v37, %v595_v57  ;;  %v825_v16 = vadd.f32 %v7028_v14, %v596_v29  ;;  %1711 = vmatpush.msra.mxu3 %v1268_v11  ;;  %v7114_v29 = vpop.f32.mrf.mxu2 }
 0x181   :  { %v1090_v47 = vadd.f32 %v7076_v39, %v1052_v31  ;;  %5894 = vmatmul.msk.f32.vlgmr.msrb.gmra.mxu1 %vm1154_vm1, %v7032_v4  ;;  %v597_v14 = vadd.f32 %v6890_v46, %v6704_v42  ;;  %v827_v42 = vadd.f32 %v7048_v18, %v598_v50  ;;  %v1249_v46 = vld [vmem:[#allocation3 + $0xb8] sm:$0xff]  ;;  %v599_v11 = vadd.f32 %v6902_v61, %v6716_v48  ;;  %v1244_v61 = vld [vmem:[#allocation3 + $0x90] sm:$0xff] }
 0x182   :  { %v7085_v5 = vmax.f32 %v1089_v63, 0.0  ;;  %1770 = vmatpush.msra.mxu0 %v1249_v46  ;;  %v601_v46 = vadd.f32 %v6914_v12, %v6728_v54  ;;  %v1267_v12 = vld [vmem:[#allocation3 + $0x148] sm:$0xff] }
 0x183   :  { %v1122_v6 = vmax.f32 %v1090_v47, 0.0  ;;  %v826_v63 = vadd.f32 %v7046_v26, %v597_v14  ;;  %v1246_v26 = vld [vmem:[#allocation3 + $0xa0] sm:$0xff]  ;;  %1842 = vmatpush.msra.mxu1 %v1267_v12 }
 0x184   :  { %1158 = vst [vmem:[#allocation2 + $0x20] sm:$0xff] %v7085_v5  ;;  %1392 = vmatmul.f32.gmra.mxu2 %v7085_v5 }
 0x185   :  { %1159 = vst.msk [vmem:[#allocation2 + $0x28] sm:$0xff] %vm1154_vm1, %v1122_v6  ;;  %v941_v36 = vpop.f32.mrf.mxu0  ;;  %v7122_v6 = vpop.f32.mrf.mxu3  ;;  %1641 = vmatpush.msrb.mxu2 %v1246_v26  ;;  %v602_v26 = vadd.f32 %v6916_v51, %v6764_v7  ;;  %v1245_v7 = vld [vmem:[#allocation3 + $0x98] sm:$0xff]  ;;  %v1242_v51 = vld [vmem:[#allocation3 + $0x80] sm:$0xff] }
 0x186   :  { %v1053_v53 = vadd.f32 %v941_v36, %v824_v45  ;;  %v1006_v38 = vpop.f32.mrf.mxu1 }
 0x187   :  { %v1054_v58 = vadd.f32 %v1006_v38, %v825_v16  ;;  %v600_v38 = vadd.f32 %v6906_v24, %v6750_v1  ;;  %v1247_v1 = vld [vmem:[#allocation3 + $0xa8] sm:$0xff]  ;;  %v1266_v24 = vld [vmem:[#allocation3 + $0x140] sm:$0xff]  ;;  %1642 = vmatpush.msrb.mxu2 %v1244_v61 }
 0x188   :  { %v1091_v37 = vadd.f32 %v7074_v22, %v1053_v53  ;;  %1522 = vmatmul.f32.gmra.mxu0 %v7085_v5  ;;  %1712 = vmatpush.msra.mxu3 %v1266_v24 }
 0x189   :  { %v1092_v19 = vadd.f32 %v7076_v39, %v1054_v58  ;;  %v829_v14 = vadd.f32 %v7070_v62, %v600_v38  ;;  %1771 = vmatpush.msra.mxu0 %v1247_v1  ;;  %1643 = vmatpush.msrb.mxu2 %v1242_v51  ;;  %v604_v1 = vadd.f32 %v6928_v41, %v6778_v20  ;;  %v1240_v20 = vld [vmem:[#allocation3 + $0x70] sm:$0xff] }
 0x18a   :  { %v7103_v17 = vmax.f32 %v1091_v37, 0.0  ;;  %v828_v37 = vadd.f32 %v7062_v33, %v599_v11 }
 0x18b   :  { %v1124_v31 = vmax.f32 %v1092_v19, 0.0  ;;  %v7112_v57 = vld [vmem:[#allocation2 + $0x20] sm:$0xff]  ;;  %1772 = vmatpush.msra.mxu0 %v1245_v7  ;;  %1644 = vmatpush.msrb.mxu2 %v1240_v20 }
 0x18c   :  { %1160 = vst [vmem:[#allocation2 + $0x30] sm:$0xff] %v7103_v17  ;;  %v7109_v47 = vld [vmem:[#allocation2 + $0x28] sm:$0xff]  ;;  %1395 = vmatmul.f32.gmra.mxu2 %v7103_v17 }
 0x18d   :  { %1161 = vst.msk [vmem:[#allocation2 + $0x38] sm:$0xff] %vm1154_vm1, %v1124_v31  ;;  %5879 = vmatmul.msk.f32.gmra.mxu3 %vm1154_vm1, %v7109_v47  ;;  %5895 = vmatmul.msk.f32.gmra.mxu1 %vm1154_vm1, %v7109_v47  ;;  %v944_v59 = vpop.f32.mrf.mxu0  ;;  %v7125_v18 = vld [vmem:[#allocation2 + $0x28] sm:$0xff]  ;;  %v7149_v31 = vpop.f32.mrf.mxu2 }
 0x18e   :  { %v1055_v45 = vadd.f32 %v944_v59, %v826_v63  ;;  %v1009_v16 = vpop.f32.mrf.mxu1  ;;  %3233 = vst [vmem:[#allocation2 + $0x20] sm:$0xff] %v10617_v23  ;;  %v7151_v62 = vpop.f32.mrf.mxu3 }
 0x18f   :  { %v1056_v36 = vadd.f32 %v1009_v16, %v827_v42  ;;  %3234 = vst.msk [vmem:[#allocation2 + $0x28] sm:$0xff] %vm1154_vm1, %v10617_v23  ;;  %v830_v16 = vadd.f32 %v7089_v28, %v601_v46  ;;  %v605_v46 = vadd.f32 %v6938_v15, %v6752_v2  ;;  %v1238_v15 = vld [vmem:[#allocation3 + $0x60] sm:$0xff] }
 0x190   :  { %v1093_v10 = vadd.f32 %v7074_v22, %v1055_v45  ;;  %1525 = vmatmul.f32.gmra.mxu0 %v7103_v17  ;;  %1645 = vmatpush.msrb.mxu2 %v1238_v15  ;;  %v10618_v15 = vld [vmem:[#allocation8_spill] sm:$0xff] }
 0x191   :  { %v1094_v25 = vadd.f32 %v7076_v39, %v1056_v36 }
 0x192   :  { %v7134_v53 = vmax.f32 %v1093_v10, 0.0  ;;  %v831_v10 = vadd.f32 %v7092_v52, %v602_v26 }
 0x193   :  { %v1126_v58 = vmax.f32 %v1094_v25, 0.0 }
 0x194   :  { %1162 = vst [vmem:[#allocation2 + $0x40] sm:$0xff] %v7134_v53  ;;  %v7140_v19 = vld [vmem:[#allocation2 + $0x38] sm:$0xff]  ;;  %1398 = vmatmul.f32.gmra.mxu2 %v7134_v53 }
 0x195   :  { %1163 = vst.msk [vmem:[#allocation2 + $0x48] sm:$0xff] %vm1154_vm1, %v1126_v58  ;;  %5880 = vmatmul.msk.f32.gmra.mxu3 %vm1154_vm1, %v7140_v19  ;;  %5896 = vmatmul.msk.f32.gmra.mxu1 %vm1154_vm1, %v7140_v19  ;;  %v947_v48 = vpop.f32.mrf.mxu0  ;;  %v730_v38 = vpop.f32.mrf.mxu2 }
 0x196   :  { %v1057_v33 = vadd.f32 %v947_v48, %v828_v37  ;;  %v1012_v50 = vpop.f32.mrf.mxu1  ;;  %v603_v37 = vadd.f32 %v6926_v0, %v6740_v60  ;;  %v1243_v60 = vld [vmem:[#allocation3 + $0x88] sm:$0xff]  ;;  %v1264_v0 = vld [vmem:[#allocation3 + $0x130] sm:$0xff] }
 0x197   :  { %v1058_v63 = vadd.f32 %v1012_v50, %v829_v14  ;;  %v795_v14 = vpop.f32.mrf.mxu3  ;;  %v833_v50 = vadd.f32 %v7122_v6, %v604_v1  ;;  %1773 = vmatpush.msra.mxu0 %v1243_v60  ;;  %1713 = vmatpush.msra.mxu3 %v1264_v0  ;;  %v608_v1 = vadd.f32 %v6952_v40, %v6806_v32  ;;  %v1239_v32 = vld [vmem:[#allocation3 + $0x68] sm:$0xff]  ;;  %v1236_v40 = vld [vmem:[#allocation3 + $0x50] sm:$0xff] }
 0x198   :  { %v1095_v42 = vadd.f32 %v7074_v22, %v1057_v33  ;;  %1528 = vmatmul.f32.gmra.mxu0 %v7134_v53  ;;  %v832_v24 = vadd.f32 %v7114_v29, %v603_v37  ;;  %1646 = vmatpush.msrb.mxu2 %v1236_v40  ;;  %v1260_v40 = vld [vmem:[#allocation3 + $0x110] sm:$0xff] }
 0x199   :  { %v1096_v59 = vadd.f32 %v7076_v39, %v1058_v63 }
 0x19a   :  { %v7158_v55 = vmax.f32 %v1095_v42, 0.0 }
 0x19b   :  { %v1128_v45 = vmax.f32 %v1096_v59, 0.0 }
 0x19c   :  { %1164 = vst [vmem:[#allocation2 + $0x50] sm:$0xff] %v7158_v55  ;;  %v7164_v36 = vld [vmem:[#allocation2 + $0x48] sm:$0xff]  ;;  %1401 = vmatmul.f32.gmra.mxu2 %v7158_v55 }
 0x19d   :  { %1165 = vst.msk [vmem:[#allocation2 + $0x58] sm:$0xff] %vm1154_vm1, %v1128_v45  ;;  %5881 = vmatmul.msk.f32.gmra.mxu3 %vm1154_vm1, %v7164_v36  ;;  %5897 = vmatmul.msk.f32.gmra.mxu1 %vm1154_vm1, %v7164_v36  ;;  %v950_v54 = vpop.f32.mrf.mxu0  ;;  %v606_v45 = vadd.f32 %v6940_v49, %v6792_v27  ;;  %v1241_v27 = vld [vmem:[#allocation3 + $0x78] sm:$0xff] }
 0x19e   :  { %v1059_v28 = vadd.f32 %v950_v54, %v830_v16  ;;  %v1015_v25 = vpop.f32.mrf.mxu1  ;;  %v733_v16 = vpop.f32.mrf.mxu2  ;;  %v834_v54 = vadd.f32 %v7149_v31, %v605_v46  ;;  %v1265_v49 = vld [vmem:[#allocation3 + $0x138] sm:$0xff]  ;;  %1774 = vmatpush.msra.mxu0 %v1241_v27 }
 0x19f   :  { %v1060_v11 = vadd.f32 %v1015_v25, %v831_v10  ;;  %v798_v7 = vpop.f32.mrf.mxu3  ;;  %v835_v51 = vadd.f32 %v7151_v62, %v606_v45  ;;  %1843 = vmatpush.msra.mxu1 %v1265_v49  ;;  %v305_v62 = vadd.f32 %v6886_v43, %v6754_v3  ;;  %v837_v43 = vadd.f32 %v795_v14, %v608_v1 }
 0x1a0   :  { %v1097_v52 = vadd.f32 %v7074_v22, %v1059_v28  ;;  %1531 = vmatmul.f32.gmra.mxu0 %v7158_v55  ;;  %v308_v14 = vadd.f32 %v6900_v56, %v6766_v8 }
 0x1a1   :  { %v1098_v58 = vadd.f32 %v7076_v39, %v1060_v11  ;;  %1775 = vmatpush.msra.mxu0 %v1239_v32  ;;  %v1232_v32 = vld [vmem:[#allocation3 + $0x30] sm:$0xff] }
 0x1a2   :  { %v7178_v48 = vmax.f32 %v1097_v52, 0.0 }
 0x1a3   :  { %v1130_v61 = vmax.f32 %v1098_v58, 0.0  ;;  %v607_v58 = vadd.f32 %v6950_v34, %v305_v62  ;;  %v10620_v62 = vld [vmem:[#allocation27_spill] sm:$0xff] }
 0x1a4   :  { %1166 = vst [vmem:[#allocation2 + $0x60] sm:$0xff] %v7178_v48  ;;  %v7184_v33 = vld [vmem:[#allocation2 + $0x58] sm:$0xff]  ;;  %1404 = vmatmul.f32.gmra.mxu2 %v7178_v48 }
 0x1a5   :  { %1167 = vst.msk [vmem:[#allocation2 + $0x68] sm:$0xff] %vm1154_vm1, %v1130_v61  ;;  %5882 = vmatmul.msk.f32.gmra.mxu3 %vm1154_vm1, %v7184_v33  ;;  %5898 = vmatmul.msk.f32.gmra.mxu1 %vm1154_vm1, %v7184_v33  ;;  %v953_v41 = vpop.f32.mrf.mxu0 }
 0x1a6   :  { %v1061_v29 = vadd.f32 %v953_v41, %v832_v24  ;;  %v1018_v63 = vpop.f32.mrf.mxu1  ;;  %v836_v24 = vadd.f32 %v730_v38, %v607_v58  ;;  %v736_v3 = vpop.f32.mrf.mxu2  ;;  %v1262_v38 = vld [vmem:[#allocation3 + $0x120] sm:$0xff]  ;;  %v10621_v58 = vld [vmem:[#allocation28_spill] sm:$0xff] }
 0x1a7   :  { %v1062_v42 = vadd.f32 %v1018_v63, %v833_v50  ;;  %v801_v41 = vpop.f32.mrf.mxu3  ;;  %1714 = vmatpush.msra.mxu3 %v1262_v38  ;;  %v373_v63 = vadd.f32 %v6888_v44, %v6768_v9  ;;  %v1237_v44 = vld [vmem:[#allocation3 + $0x58] sm:$0xff] }
 0x1a8   :  { %v1099_v6 = vadd.f32 %v7074_v22, %v1061_v29  ;;  %1534 = vmatmul.f32.gmra.mxu0 %v7178_v48 }
 0x1a9   :  { %v1100_v59 = vadd.f32 %v7076_v39, %v1062_v42  ;;  %v610_v46 = vadd.f32 %v6964_v35, %v373_v63  ;;  %v1263_v35 = vld [vmem:[#allocation3 + $0x128] sm:$0xff]  ;;  %1776 = vmatpush.msra.mxu0 %v1237_v44  ;;  %1715 = vmatpush.msra.mxu3 %v1260_v40  ;;  %v10625_v63 = vld [vmem:[#allocation20_spill] sm:$0xff] }
 0x1aa   :  { %v7198_v26 = vmax.f32 %v1099_v6, 0.0  ;;  %v609_v6 = vadd.f32 %v6960_v30, %v308_v14  ;;  %v1234_v30 = vld [vmem:[#allocation3 + $0x40] sm:$0xff]  ;;  %1844 = vmatpush.msra.mxu1 %v1263_v35  ;;  %v10627_v44 = vld [vmem:[#allocation32_spill] sm:$0xff] }
 0x1ab   :  { %v1132_v10 = vmax.f32 %v1100_v59, 0.0  ;;  %v839_v56 = vadd.f32 %v798_v7, %v610_v46  ;;  %1647 = vmatpush.msrb.mxu2 %v1234_v30  ;;  %v311_v7 = vadd.f32 %v6918_v13, %v6780_v21  ;;  %v10633_v40 = vld [vmem:[#allocation36_spill] sm:$0xff] }
 0x1ac   :  { %1168 = vst [vmem:[#allocation2 + $0x70] sm:$0xff] %v7198_v26  ;;  %v7204_v12 = vld [vmem:[#allocation2 + $0x68] sm:$0xff]  ;;  %1407 = vmatmul.f32.gmra.mxu2 %v7198_v26 }
 0x1ad   :  { %1169 = vst.msk [vmem:[#allocation2 + $0x78] sm:$0xff] %vm1154_vm1, %v1132_v10  ;;  %5883 = vmatmul.msk.f32.gmra.mxu3 %vm1154_vm1, %v7204_v12  ;;  %5899 = vmatmul.msk.f32.gmra.mxu1 %vm1154_vm1, %v7204_v12  ;;  %v956_v2 = vpop.f32.mrf.mxu0  ;;  %v838_v10 = vadd.f32 %v733_v16, %v609_v6 }
 0x1ae   :  { %v1063_v31 = vadd.f32 %v956_v2, %v834_v54  ;;  %v1021_v28 = vpop.f32.mrf.mxu1  ;;  %1648 = vmatpush.msrb.mxu2 %v1232_v32 }
 0x1af   :  { %v1064_v25 = vadd.f32 %v1021_v28, %v835_v51  ;;  %v739_v51 = vpop.f32.mrf.mxu2  ;;  %v804_v27 = vpop.f32.mrf.mxu3 }
 0x1b0   :  { %v1101_v11 = vadd.f32 %v7074_v22, %v1063_v31  ;;  %1537 = vmatmul.f32.gmra.mxu0 %v7198_v26  ;;  %v10619_v31 = vld [vmem:[#allocation19_spill] sm:$0xff] }
 0x1b1   :  { %v1102_v52 = vadd.f32 %v7076_v39, %v1064_v25  ;;  %v376_v28 = vadd.f32 %v10619_v31, %v10618_v15  ;;  %v1261_v15 = vld [vmem:[#allocation3 + $0x118] sm:$0xff]  ;;  %v1230_v31 = vld [vmem:[#allocation3 + $0x20] sm:$0xff] }
 0x1b2   :  { %v7219_v37 = vmax.f32 %v1101_v11, 0.0  ;;  %v611_v11 = vadd.f32 %v10620_v62, %v311_v7  ;;  %1845 = vmatpush.msra.mxu1 %v1261_v15  ;;  %1649 = vmatpush.msrb.mxu2 %v1230_v31  ;;  %v10628_v62 = vld [vmem:[#allocation11_spill] sm:$0xff]  ;;  %v10638_v15 = vld [vmem:[#allocation37_spill] sm:$0xff] }
 0x1b3   :  { %v1134_v61 = vmax.f32 %v1102_v52, 0.0  ;;  %v612_v1 = vadd.f32 %v10621_v58, %v376_v28 }
 0x1b4   :  { %1170 = vst [vmem:[#allocation2 + $0x80] sm:$0xff] %v7219_v37  ;;  %v7224_v50 = vld [vmem:[#allocation2 + $0x78] sm:$0xff]  ;;  %1410 = vmatmul.f32.gmra.mxu2 %v7219_v37 }
 0x1b5   :  { %1171 = vst.msk [vmem:[#allocation2 + $0x88] sm:$0xff] %vm1154_vm1, %v1134_v61  ;;  %5884 = vmatmul.msk.f32.gmra.mxu3 %vm1154_vm1, %v7224_v50  ;;  %5900 = vmatmul.msk.f32.gmra.mxu1 %vm1154_vm1, %v7224_v50  ;;  %v959_v34 = vpop.f32.mrf.mxu0  ;;  %v841_v13 = vadd.f32 %v801_v41, %v612_v1  ;;  %v10623_v41 = vld [vmem:[#allocation21_spill] sm:$0xff]  ;;  %v10630_v1 = vld [vmem:[#allocation12_spill] sm:$0xff] }
 0x1b6   :  { %v1065_v60 = vadd.f32 %v959_v34, %v836_v24  ;;  %v1024_v20 = vpop.f32.mrf.mxu1  ;;  %v840_v24 = vadd.f32 %v736_v3, %v611_v11  ;;  %v1235_v34 = vld [vmem:[#allocation3 + $0x48] sm:$0xff] }
 0x1b7   :  { %v1066_v0 = vadd.f32 %v1024_v20, %v837_v43  ;;  %1777 = vmatpush.msra.mxu0 %v1235_v34  ;;  %v10622_v20 = vld [vmem:[#allocation9_spill] sm:$0xff]  ;;  %v742_v6 = vpop.f32.mrf.mxu2 }
 0x1b8   :  { %v1103_v29 = vadd.f32 %v7074_v22, %v1065_v60  ;;  %1540 = vmatmul.f32.gmra.mxu0 %v7219_v37 }
 0x1b9   :  { %v1104_v42 = vadd.f32 %v7076_v39, %v1066_v0  ;;  %v314_v0 = vadd.f32 %v10623_v41, %v10622_v20 }
 0x1ba   :  { %v7240_v59 = vmax.f32 %v1103_v29, 0.0  ;;  %v10624_v29 = vld [vmem:[#allocation10_spill] sm:$0xff] }
 0x1bb   :  { %v1136_v45 = vmax.f32 %v1104_v42, 0.0  ;;  %v379_v42 = vadd.f32 %v10625_v63, %v10624_v29  ;;  %v1231_v63 = vld [vmem:[#allocation3 + $0x28] sm:$0xff] }
 0x1bc   :  { %1172 = vst [vmem:[#allocation2 + $0x90] sm:$0xff] %v7240_v59  ;;  %v7244_v8 = vld [vmem:[#allocation2 + $0x88] sm:$0xff]  ;;  %1413 = vmatmul.f32.gmra.mxu2 %v7240_v59 }
 0x1bd   :  { %1173 = vst.msk [vmem:[#allocation2 + $0x98] sm:$0xff] %vm1154_vm1, %v1136_v45  ;;  %5885 = vmatmul.msk.f32.gmra.mxu3 %vm1154_vm1, %v7244_v8  ;;  %5901 = vmatmul.msk.f32.gmra.mxu1 %vm1154_vm1, %v7244_v8  ;;  %v962_v9 = vpop.f32.mrf.mxu0  ;;  %v10626_v45 = vld [vmem:[#allocation31_spill] sm:$0xff]  ;;  %v614_v35 = vadd.f32 %v10627_v44, %v379_v42  ;;  %v1228_v42 = vld [vmem:[#allocation3 + $0x10] sm:$0xff]  ;;  %v10634_v44 = vld [vmem:[#allocation13_spill] sm:$0xff] }
 0x1be   :  { %v1067_v16 = vadd.f32 %v962_v9, %v838_v10  ;;  %v1027_v54 = vpop.f32.mrf.mxu1  ;;  %v613_v10 = vadd.f32 %v10626_v45, %v314_v0  ;;  %1650 = vmatpush.msrb.mxu2 %v1228_v42  ;;  %v10642_v42 = vld [vmem:[#allocation16_spill] sm:$0xff] }
 0x1bf   :  { %v1068_v2 = vadd.f32 %v1027_v54, %v839_v56  ;;  %v807_v56 = vpop.f32.mrf.mxu3 }
 0x1c0   :  { %v1105_v49 = vadd.f32 %v7074_v22, %v1067_v16  ;;  %1543 = vmatmul.f32.gmra.mxu0 %v7240_v59  ;;  %v842_v16 = vadd.f32 %v739_v51, %v613_v10 }
 0x1c1   :  { %v1106_v25 = vadd.f32 %v7076_v39, %v1068_v2  ;;  %v843_v2 = vadd.f32 %v804_v27, %v614_v35  ;;  %v10629_v27 = vld [vmem:[#allocation23_spill] sm:$0xff] }
 0x1c2   :  { %v7260_v52 = vmax.f32 %v1105_v49, 0.0  ;;  %v1233_v49 = vld [vmem:[#allocation3 + $0x38] sm:$0xff]  ;;  %v317_v11 = vadd.f32 %v10629_v27, %v10628_v62 }
 0x1c3   :  { %v1138_v61 = vmax.f32 %v1106_v25, 0.0  ;;  %1778 = vmatpush.msra.mxu0 %v1233_v49 }
 0x1c4   :  { %1174 = vst [vmem:[#allocation2 + $0xa0] sm:$0xff] %v7260_v52  ;;  %v7264_v21 = vld [vmem:[#allocation2 + $0x98] sm:$0xff]  ;;  %1416 = vmatmul.f32.gmra.mxu2 %v7260_v52 }
 0x1c5   :  { %1175 = vst.msk [vmem:[#allocation2 + $0xa8] sm:$0xff] %vm1154_vm1, %v1138_v61  ;;  %5886 = vmatmul.msk.f32.gmra.mxu3 %vm1154_vm1, %v7264_v21  ;;  %5902 = vmatmul.msk.f32.gmra.mxu1 %vm1154_vm1, %v7264_v21  ;;  %v965_v43 = vpop.f32.mrf.mxu0  ;;  %v10631_v61 = vld [vmem:[#allocation22_spill] sm:$0xff] }
 0x1c6   :  { %v1069_v3 = vadd.f32 %v965_v43, %v840_v24  ;;  %v1030_v38 = vpop.f32.mrf.mxu1  ;;  %v382_v24 = vadd.f32 %v10631_v61, %v10630_v1  ;;  %v10632_v43 = vld [vmem:[#allocation35_spill] sm:$0xff]  ;;  %1779 = vmatpush.msra.mxu0 %v1231_v63 }
 0x1c7   :  { %v1070_v60 = vadd.f32 %v1030_v38, %v841_v13  ;;  %v615_v34 = vadd.f32 %v10632_v43, %v317_v11  ;;  %v745_v38 = vpop.f32.mrf.mxu2  ;;  %v810_v41 = vpop.f32.mrf.mxu3  ;;  %v1259_v43 = vld [vmem:[#allocation3 + $0x108] sm:$0xff] }
 0x1c8   :  { %v1107_v14 = vadd.f32 %v7074_v22, %v1069_v3  ;;  %1546 = vmatmul.f32.gmra.mxu0 %v7260_v52  ;;  %v616_v3 = vadd.f32 %v10633_v40, %v382_v24  ;;  %1846 = vmatpush.msra.mxu1 %v1259_v43 }
 0x1c9   :  { %v1108_v46 = vadd.f32 %v7076_v39, %v1070_v60  ;;  %v844_v20 = vadd.f32 %v742_v6, %v615_v34  ;;  %v1258_v6 = vld [vmem:[#allocation3 + $0x100] sm:$0xff] }
 0x1ca   :  { %v7280_v9 = vmax.f32 %v1107_v14, 0.0  ;;  %v845_v14 = vadd.f32 %v807_v56, %v616_v3  ;;  %1716 = vmatpush.msra.mxu3 %v1258_v6  ;;  %v10635_v56 = vld [vmem:[#allocation25_spill] sm:$0xff]  ;;  %v10643_v6 = vld [vmem:[#allocation26_spill] sm:$0xff] }
 0x1cb   :  { %v1140_v30 = vmax.f32 %v1108_v46, 0.0  ;;  %v320_v35 = vadd.f32 %v10635_v56, %v10634_v44 }
 0x1cc   :  { %1176 = vst [vmem:[#allocation2 + $0xb0] sm:$0xff] %v7280_v9  ;;  %v7284_v54 = vld [vmem:[#allocation2 + $0xa8] sm:$0xff]  ;;  %1419 = vmatmul.f32.gmra.mxu2 %v7280_v9 }
 0x1cd   :  { %1177 = vst.msk [vmem:[#allocation2 + $0xb8] sm:$0xff] %vm1154_vm1, %v1140_v30  ;;  %5887 = vmatmul.msk.f32.gmra.mxu3 %vm1154_vm1, %v7284_v54  ;;  %5903 = vmatmul.msk.f32.gmra.mxu1 %vm1154_vm1, %v7284_v54  ;;  %v968_v7 = vpop.f32.mrf.mxu0  ;;  %v617_v31 = vadd.f32 %v10638_v15, %v320_v35  ;;  %v10645_v35 = vld [vmem:[#allocation40_spill] sm:$0xff] }
 0x1ce   :  { %v1071_v51 = vadd.f32 %v968_v7, %v842_v16  ;;  %v1033_v28 = vpop.f32.mrf.mxu1  ;;  %v10636_v16 = vld [vmem:[#allocation14_spill] sm:$0xff] }
 0x1cf   :  { %v1072_v25 = vadd.f32 %v1033_v28, %v843_v2  ;;  %v10637_v2 = vld [vmem:[#allocation24_spill] sm:$0xff]  ;;  %v10639_v28 = vld [vmem:[#allocation38_spill] sm:$0xff]  ;;  %v846_v27 = vadd.f32 %v745_v38, %v617_v31  ;;  %v748_v1 = vpop.f32.mrf.mxu2  ;;  %v813_v34 = vpop.f32.mrf.mxu3 }
 0x1d0   :  { %v1109_v58 = vadd.f32 %v7074_v22, %v1071_v51  ;;  %1549 = vmatmul.f32.gmra.mxu0 %v7280_v9  ;;  %v385_v7 = vadd.f32 %v10637_v2, %v10636_v16  ;;  %v1959_v31 = vld [vmem:[#allocation3 + $0x3f0] sm:$0xff] }
 0x1d1   :  { %v1110_v13 = vadd.f32 %v7076_v39, %v1072_v25 }
 0x1d2   :  { %v7300_v32 = vmax.f32 %v1109_v58, 0.0  ;;  %v618_v25 = vadd.f32 %v10639_v28, %v385_v7  ;;  %v1226_v58 = vld [vmem:[#allocation3] sm:$0xff]  ;;  %v1975_v28 = vld [vmem:[#allocation3 + $0x470] sm:$0xff] }
 0x1d3   :  { %v1142_v60 = vmax.f32 %v1110_v13, 0.0  ;;  %v1229_v13 = vld [vmem:[#allocation3 + $0x18] sm:$0xff]  ;;  %1651 = vmatpush.msrb.mxu2 %v1226_v58  ;;  %2098 = vmatpush.msrb.mxu3 %v1975_v28  ;;  %v10653_v28 = vld [vmem:[#allocation34_spill] sm:$0xff] }
 0x1d4   :  { %1178 = vst [vmem:[#allocation2 + $0xc0] sm:$0xff] %v7300_v32  ;;  %v7304_v0 = vld [vmem:[#allocation2 + $0xb8] sm:$0xff]  ;;  %1422 = vmatmul.f32.gmra.mxu2 %v7300_v32  ;;  %v847_v61 = vadd.f32 %v810_v41, %v618_v25  ;;  %1780 = vmatpush.msra.mxu0 %v1229_v13  ;;  %v10640_v41 = vld [vmem:[#allocation15_spill] sm:$0xff] }
 0x1d5   :  { %1179 = vst.msk [vmem:[#allocation2 + $0xc8] sm:$0xff] %vm1154_vm1, %v1142_v60  ;;  %5888 = vmatmul.msk.f32.gmra.mxu3 %vm1154_vm1, %v7304_v0  ;;  %5904 = vmatmul.msk.f32.gmra.mxu1 %vm1154_vm1, %v7304_v0  ;;  %v971_v29 = vpop.f32.mrf.mxu0  ;;  %v1227_v60 = vld [vmem:[#allocation3 + $0x8] sm:$0xff] }
 0x1d6   :  { %v1073_v46 = vadd.f32 %v971_v29, %v844_v20  ;;  %v1036_v45 = vpop.f32.mrf.mxu1  ;;  %v7332_v20 = vld [vmem:[#allocation2 + $0x8] sm:$0xff]  ;;  %1781 = vmatpush.msra.mxu0 %v1227_v60  ;;  %2025 = vmatpush.msra.mxu2 %v1959_v31  ;;  %v10650_v60 = vld [vmem:[#allocation41_spill] sm:$0xff]  ;;  %v10652_v31 = vld [vmem:[#allocation6_spill] sm:$0xff] }
 0x1d7   :  { %v1074_v10 = vadd.f32 %v1036_v45, %v845_v14  ;;  %v10641_v14 = vld [vmem:[#allocation29_spill] sm:$0xff]  ;;  %3230 = vst.msk [vmem:[#allocation2 + $0x8] sm:$0xff] %vm1154_vm1, %v10617_v23  ;;  %v816_v13 = vpop.f32.mrf.mxu3 }
 0x1d8   :  { %v1111_v30 = vadd.f32 %v7074_v22, %v1073_v46  ;;  %1552 = vmatmul.f32.gmra.mxu0 %v7300_v32  ;;  %v323_v29 = vadd.f32 %v10641_v14, %v10640_v41  ;;  %v388_v46 = vadd.f32 %v10643_v6, %v10642_v42  ;;  %v1960_v6 = vld [vmem:[#allocation3 + $0x3f8] sm:$0xff] }
 0x1d9   :  { %v1112_v49 = vadd.f32 %v7076_v39, %v1074_v10  ;;  %v10644_v10 = vld [vmem:[#allocation39_spill] sm:$0xff]  ;;  %2155 = vmatpush.msrb.mxu0 %v1960_v6 }
 0x1da   :  { %v7320_v51 = vmax.f32 %v1111_v30, 0.0  ;;  %v619_v44 = vadd.f32 %v10644_v10, %v323_v29  ;;  %v620_v30 = vadd.f32 %v10645_v35, %v388_v46  ;;  %v10651_v29 = vld [vmem:[#allocation42_spill] sm:$0xff]  ;;  %v1976_v46 = vld [vmem:[#allocation3 + $0x478] sm:$0xff] }
 0x1db   :  { %v1144_v62 = vmax.f32 %v1112_v49, 0.0  ;;  %2228 = vmatpush.msrb.mxu1 %v1976_v46 }
 0x1dc   :  { %1180 = vst [vmem:[#allocation2 + $0xd0] sm:$0xff] %v7320_v51  ;;  %v7324_v11 = vld [vmem:[#allocation2 + $0xc8] sm:$0xff]  ;;  %1425 = vmatmul.f32.gmra.mxu2 %v7320_v51  ;;  %v848_v2 = vadd.f32 %v748_v1, %v619_v44  ;;  %v849_v49 = vadd.f32 %v813_v34, %v620_v30  ;;  %v10646_v1 = vld [vmem:[#allocation17_spill] sm:$0xff]  ;;  %v10648_v34 = vld [vmem:[#allocation18_spill] sm:$0xff] }
 0x1dd   :  { %1181 = vst.msk [vmem:[#allocation2 + $0xd8] sm:$0xff] %vm1154_vm1, %v1144_v62  ;;  %5889 = vmatmul.msk.f32.gmra.mxu3 %vm1154_vm1, %v7324_v11  ;;  %5905 = vmatmul.msk.f32.gmra.mxu1 %vm1154_vm1, %v7324_v11  ;;  %v974_v24 = vpop.f32.mrf.mxu0  ;;  %v1957_v30 = vld [vmem:[#allocation3 + $0x3e0] sm:$0xff] }
 0x1de   :  { %v1075_v40 = vadd.f32 %v974_v24, %v846_v27  ;;  %v1039_v3 = vpop.f32.mrf.mxu1  ;;  %v751_v27 = vpop.f32.mrf.mxu2  ;;  %2026 = vmatpush.msra.mxu2 %v1957_v30 }
 0x1df   :  { %v1076_v38 = vadd.f32 %v1039_v3, %v847_v61  ;;  %v10647_v61 = vld [vmem:[#allocation33_spill] sm:$0xff] }
 0x1e0   :  { %v1113_v63 = vadd.f32 %v7074_v22, %v1075_v40  ;;  %1555 = vmatmul.f32.gmra.mxu0 %v7320_v51  ;;  %v326_v24 = vadd.f32 %v10647_v61, %v10646_v1  ;;  %v10649_v40 = vld [vmem:[#allocation30_spill] sm:$0xff]  ;;  %v10655_v1 = vld [vmem:[#allocation43_spill] sm:$0xff] }
 0x1e1   :  { %v1114_v45 = vadd.f32 %v7076_v39, %v1076_v38  ;;  %v391_v3 = vadd.f32 %v10649_v40, %v10648_v34 }
 0x1e2   :  { %v7344_v56 = vmax.f32 %v1113_v63, 0.0  ;;  %v621_v41 = vadd.f32 %v10650_v60, %v326_v24  ;;  %v819_v24 = vpop.f32.mrf.mxu3 }
 0x1e3   :  { %v1146_v16 = vmax.f32 %v1114_v45, 0.0  ;;  %v622_v63 = vadd.f32 %v10651_v29, %v391_v3  ;;  %v1958_v3 = vld [vmem:[#allocation3 + $0x3e8] sm:$0xff] }
 0x1e4   :  { %1182 = vst [vmem:[#allocation2 + $0xe0] sm:$0xff] %v7344_v56  ;;  %v7348_v7 = vld [vmem:[#allocation2 + $0xd8] sm:$0xff]  ;;  %1428 = vmatmul.f32.gmra.mxu2 %v7344_v56  ;;  %v850_v45 = vadd.f32 %v751_v27, %v621_v41  ;;  %2156 = vmatpush.msrb.mxu0 %v1958_v3 }
 0x1e5   :  { %1183 = vst.msk [vmem:[#allocation2 + $0xe8] sm:$0xff] %vm1154_vm1, %v1146_v16  ;;  %5890 = vmatmul.msk.f32.gmra.mxu3 %vm1154_vm1, %v7348_v7  ;;  %5906 = vmatmul.msk.f32.gmra.mxu1 %vm1154_vm1, %v7348_v7  ;;  %v977_v15 = vpop.f32.mrf.mxu0  ;;  %v851_v44 = vadd.f32 %v816_v13, %v622_v63  ;;  %v1955_v63 = vld [vmem:[#allocation3 + $0x3d0] sm:$0xff] }
 0x1e6   :  { %v1077_v25 = vadd.f32 %v977_v15, %v848_v2  ;;  %v1042_v62 = vpop.f32.mrf.mxu1  ;;  %2027 = vmatpush.msra.mxu2 %v1955_v63  ;;  %v1947_v63 = vld [vmem:[#allocation3 + $0x390] sm:$0xff] }
 0x1e7   :  { %v1078_v58 = vadd.f32 %v1042_v62, %v849_v49  ;;  %v754_v62 = vpop.f32.mrf.mxu2 }
 0x1e8   :  { %v1115_v43 = vadd.f32 %v7074_v22, %v1077_v25  ;;  %1558 = vmatmul.f32.gmra.mxu0 %v7344_v56  ;;  %v394_v25 = vadd.f32 %v10653_v28, %v10652_v31 }
 0x1e9   :  { %v1116_v38 = vadd.f32 %v7076_v39, %v1078_v58  ;;  %v10654_v58 = vld [vmem:[#allocation7_spill] sm:$0xff] }
 0x1ea   :  { %v7364_v14 = vmax.f32 %v1115_v43, 0.0  ;;  %v623_v61 = vadd.f32 %v10655_v1, %v10654_v58  ;;  %v10656_v43 = vld [vmem:[#allocation44_spill] sm:$0xff] }
 0x1eb   :  { %v1148_v42 = vmax.f32 %v1116_v38, 0.0  ;;  %v624_v34 = vadd.f32 %v10656_v43, %v394_v25  ;;  %v1954_v25 = vld [vmem:[#allocation3 + $0x3c8] sm:$0xff]  ;;  %v1951_v58 = vld [vmem:[#allocation3 + $0x3b0] sm:$0xff]  ;;  %v1972_v43 = vld [vmem:[#allocation3 + $0x458] sm:$0xff] }
 0x1ec   :  { %1184 = vst [vmem:[#allocation2 + $0xf0] sm:$0xff] %v7364_v14  ;;  %v7368_v10 = vld [vmem:[#allocation2 + $0xe8] sm:$0xff]  ;;  %1431 = vmatmul.f32.gmra.mxu2 %v7364_v14  ;;  %v852_v38 = vadd.f32 %v754_v62, %v623_v61  ;;  %v6325_v62 = vld [vmem:[#allocation2 + $0x10] sm:$0xff]  ;;  %v7410_v61 = vpop.f32.mrf.mxu3 }
 0x1ed   :  { %1185 = vst.msk [vmem:[#allocation2 + $0xf8] sm:$0xff] %vm1154_vm1, %v1148_v42  ;;  %5891 = vmatmul.msk.f32.gmra.mxu3 %vm1154_vm1, %v7368_v10  ;;  %5907 = vmatmul.msk.f32.gmra.mxu1 %vm1154_vm1, %v7368_v10  ;;  %v980_v35 = vpop.f32.mrf.mxu0  ;;  %v853_v41 = vadd.f32 %v819_v24, %v624_v34  ;;  %v1973_v42 = vld [vmem:[#allocation3 + $0x460] sm:$0xff]  ;;  %v1971_v1 = vld [vmem:[#allocation3 + $0x450] sm:$0xff] }
 0x1ee   :  { %v1079_v16 = vadd.f32 %v980_v35, %v850_v45  ;;  %v1045_v2 = vpop.f32.mrf.mxu1  ;;  %2099 = vmatpush.msrb.mxu3 %v1973_v42  ;;  %v1949_v34 = vld [vmem:[#allocation3 + $0x3a0] sm:$0xff] }
 0x1ef   :  { %v1080_v49 = vadd.f32 %v1045_v2, %v851_v44  ;;  %v1956_v2 = vld [vmem:[#allocation3 + $0x3d8] sm:$0xff]  ;;  %v1969_v42 = vld [vmem:[#allocation3 + $0x440] sm:$0xff] }
 0x1f0   :  { %v1117_v15 = vadd.f32 %v7074_v22, %v1079_v16  ;;  %1561 = vmatmul.f32.gmra.mxu0 %v7364_v14  ;;  %2100 = vmatpush.msrb.mxu3 %v1971_v1 }
 0x1f1   :  { %v1118_v27 = vadd.f32 %v7076_v39, %v1080_v49  ;;  %v1974_v49 = vld [vmem:[#allocation3 + $0x468] sm:$0xff]  ;;  %2157 = vmatpush.msrb.mxu0 %v1956_v2 }
 0x1f2   :  { %v1149_v13 = vmax.f32 %v1117_v15, 0.0  ;;  %2229 = vmatpush.msrb.mxu1 %v1974_v49  ;;  %2101 = vmatpush.msrb.mxu3 %v1969_v42  ;;  %v1965_v42 = vld [vmem:[#allocation3 + $0x420] sm:$0xff] }
 0x1f3   :  { %v1150_v40 = vmax.f32 %v1118_v27, 0.0  ;;  %2158 = vmatpush.msrb.mxu0 %v1954_v25  ;;  %v1967_v25 = vld [vmem:[#allocation3 + $0x430] sm:$0xff] }
 0x1f4   :  { %1186 = vst [vmem:[#allocation2 + $0x100] sm:$0xff] %v1149_v13  ;;  %v7384_v60 = vld [vmem:[#allocation2 + $0xf8] sm:$0xff]  ;;  %1434 = vmatmul.f32.gmra.mxu2 %v1149_v13  ;;  %2230 = vmatpush.msrb.mxu1 %v1972_v43  ;;  %v1941_v43 = vld [vmem:[#allocation3 + $0x360] sm:$0xff] }
 0x1f5   :  { %1187 = vst.msk [vmem:[#allocation2 + $0x108] sm:$0xff] %vm1154_vm1, %v1150_v40  ;;  %5892 = vmatmul.msk.f32.gmra.mxu3 %vm1154_vm1, %v7384_v60  ;;  %5908 = vmatmul.msk.f32.gmra.mxu1 %vm1154_vm1, %v7384_v60  ;;  %v983_v29 = vpop.f32.mrf.mxu0 }
 0x1f6   :  { %v1081_v6 = vadd.f32 %v983_v29, %v852_v38  ;;  %v1048_v46 = vpop.f32.mrf.mxu1  ;;  %v1950_v29 = vld [vmem:[#allocation3 + $0x3a8] sm:$0xff]  ;;  %2102 = vmatpush.msrb.mxu3 %v1967_v25 }
 0x1f7   :  { %v1082_v45 = vadd.f32 %v1048_v46, %v853_v41  ;;  %v1938_v25 = vld [vmem:[#allocation3 + $0x348] sm:$0xff] }
 0x1f8   :  { %v1119_v44 = vadd.f32 %v7074_v22, %v1081_v6  ;;  %1564 = vmatmul.f32.gmra.mxu0 %v1149_v13  ;;  %v7399_v22 = vpop.f32.mrf.mxu2  ;;  %v1952_v13 = vld [vmem:[#allocation3 + $0x3b8] sm:$0xff]  ;;  %2103 = vmatpush.msrb.mxu3 %v1965_v42 }
 0x1f9   :  { %v1120_v35 = vadd.f32 %v7076_v39, %v1082_v45  ;;  %v1953_v39 = vld [vmem:[#allocation3 + $0x3c0] sm:$0xff]  ;;  %2159 = vmatpush.msrb.mxu0 %v1952_v13  ;;  %v1968_v13 = vld [vmem:[#allocation3 + $0x438] sm:$0xff] }
 0x1fa   :  { %v1151_v30 = vmax.f32 %v1119_v44, 0.0  ;;  %2028 = vmatpush.msra.mxu2 %v1953_v39  ;;  %v1948_v44 = vld [vmem:[#allocation3 + $0x398] sm:$0xff]  ;;  %v1943_v39 = vld [vmem:[#allocation3 + $0x370] sm:$0xff] }
 0x1fb   :  { %v1152_v16 = vmax.f32 %v1120_v35, 0.0  ;;  %2160 = vmatpush.msrb.mxu0 %v1950_v29  ;;  %v1970_v35 = vld [vmem:[#allocation3 + $0x448] sm:$0xff] }
 0x1fc   :  { %1188 = vst [vmem:[#allocation2 + $0x110] sm:$0xff] %v1151_v30  ;;  %v1275_v15 = vld [vmem:[#allocation2 + $0x108] sm:$0xff]  ;;  %1652 = vmatmul.f32.vlgmr.msrb.gmra.mxu2 %v10617_v23  ;;  %v1945_v30 = vld [vmem:[#allocation3 + $0x380] sm:$0xff]  ;;  %2231 = vmatpush.msrb.mxu1 %v1970_v35  ;;  %v1940_v35 = vld [vmem:[#allocation3 + $0x358] sm:$0xff] }
 0x1fd   :  { %1189 = vst.msk [vmem:[#allocation2 + $0x118] sm:$0xff] %vm1154_vm1, %v1152_v16  ;;  %5893 = vmatmul.msk.f32.gmra.mxu3 %vm1154_vm1, %v1275_v15  ;;  %5909 = vmatmul.msk.f32.gmra.mxu1 %vm1154_vm1, %v1275_v15  ;;  %v7397_v31 = vpop.f32.mrf.mxu0  ;;  %v1946_v15 = vld [vmem:[#allocation3 + $0x388] sm:$0xff] }
 0x1fe   :  { %10657 = vst [vmem:[#allocation8_spill] sm:$0xff] %v7397_v31  ;;  %v7401_v28 = vpop.f32.mrf.mxu1  ;;  %2029 = vmatpush.msra.mxu2 %v1951_v58  ;;  %2161 = vmatpush.msrb.mxu0 %v1948_v44  ;;  %v1942_v29 = vld [vmem:[#allocation3 + $0x368] sm:$0xff]  ;;  %v7645_v31 = vld [vmem:[#allocation2 + $0x60] sm:$0xff] }
 0x1ff   :  { %10658 = vst [vmem:[#allocation19_spill] sm:$0xff] %v7401_v28  ;;  %2232 = vmatpush.msrb.mxu1 %v1968_v13 }
 0x200   :  { %1782 = vmatmul.f32.vlgmr.msra.gmra.mxu0 %v10617_v23  ;;  %2030 = vmatpush.msra.mxu2 %v1949_v34 }
 0x201   :  { %2162 = vmatpush.msrb.mxu0 %v1946_v15 }
 0x202   :  { %2031 = vmatpush.msra.mxu2 %v1947_v63  ;;  %v1939_v63 = vld [vmem:[#allocation3 + $0x350] sm:$0xff] }
 0x204   :  { %1655 = vmatmul.f32.gmra.mxu2 %v6325_v62 }
 0x205   :  { %5910 = vmatmul.msk.f32.vlgmr.msra.gmra.mxu3 %vm1154_vm1, %v7332_v20  ;;  %5926 = vmatmul.msk.f32.vlgmr.msra.gmra.mxu1 %vm1154_vm1, %v7332_v20  ;;  %v7408_v27 = vpop.f32.mrf.mxu0 }
 0x206   :  { %2032 = vmatpush.msra.mxu2 %v1945_v30  ;;  %v1966_v30 = vld [vmem:[#allocation3 + $0x428] sm:$0xff] }
 0x207   :  { %v1393_v24 = vpop.f32.mrf.mxu2  ;;  %2233 = vmatpush.msrb.mxu1 %v1966_v30  ;;  %v1961_v30 = vld [vmem:[#allocation3 + $0x400] sm:$0xff] }
 0x208   :  { %1785 = vmatmul.f32.gmra.mxu0 %v6325_v62  ;;  %2033 = vmatpush.msra.mxu2 %v1943_v39 }
 0x20a   :  { %v7412_v23 = vpop.f32.mrf.mxu1  ;;  %2034 = vmatpush.msra.mxu2 %v1941_v43 }
 0x20c   :  { %1658 = vmatmul.f32.gmra.mxu2 %v7085_v5 }
 0x20d   :  { %5911 = vmatmul.msk.f32.gmra.mxu3 %vm1154_vm1, %v7032_v4  ;;  %5927 = vmatmul.msk.f32.gmra.mxu1 %vm1154_vm1, %v7032_v4  ;;  %v7419_v20 = vpop.f32.mrf.mxu0 }
 0x20e   :  { %2035 = vmatpush.msra.mxu2 %v1939_v63 }
 0x20f   :  { %v1396_v40 = vpop.f32.mrf.mxu2 }
 0x210   :  { %v1458_v3 = vpop.f32.mrf.mxu3  ;;  %1788 = vmatmul.f32.gmra.mxu0 %v7085_v5 }
 0x211   :  { %v7422_v38 = vadd.f32 %v1458_v3, %v1393_v24  ;;  %v1944_v24 = vld [vmem:[#allocation3 + $0x378] sm:$0xff] }
 0x212   :  { %v7424_v41 = vpop.f32.mrf.mxu1  ;;  %2163 = vmatpush.msrb.mxu0 %v1944_v24 }
 0x214   :  { %1661 = vmatmul.f32.gmra.mxu2 %v7103_v17  ;;  %2164 = vmatpush.msrb.mxu0 %v1942_v29  ;;  %v1933_v29 = vld [vmem:[#allocation3 + $0x320] sm:$0xff] }
 0x215   :  { %5912 = vmatmul.msk.f32.gmra.mxu3 %vm1154_vm1, %v7109_v47  ;;  %5928 = vmatmul.msk.f32.gmra.mxu1 %vm1154_vm1, %v7109_v47  ;;  %v7431_v4 = vpop.f32.mrf.mxu0 }
 0x216   :  { %2165 = vmatpush.msrb.mxu0 %v1940_v35  ;;  %v1931_v35 = vld [vmem:[#allocation3 + $0x310] sm:$0xff] }
 0x217   :  { %v1399_v5 = vpop.f32.mrf.mxu2 }
 0x218   :  { %v1461_v6 = vpop.f32.mrf.mxu3  ;;  %1791 = vmatmul.f32.gmra.mxu0 %v7103_v17 }
 0x219   :  { %v7434_v46 = vadd.f32 %v1461_v6, %v1396_v40  ;;  %2166 = vmatpush.msrb.mxu0 %v1938_v25  ;;  %v1932_v25 = vld [vmem:[#allocation3 + $0x318] sm:$0xff] }
 0x21a   :  { %v7436_v45 = vpop.f32.mrf.mxu1 }
 0x21c   :  { %1664 = vmatmul.f32.gmra.mxu2 %v7134_v53 }
 0x21d   :  { %5913 = vmatmul.msk.f32.gmra.mxu3 %vm1154_vm1, %v7140_v19  ;;  %5929 = vmatmul.msk.f32.gmra.mxu1 %vm1154_vm1, %v7140_v19  ;;  %v7443_v47 = vpop.f32.mrf.mxu0 }
 0x21f   :  { %v1402_v17 = vpop.f32.mrf.mxu2 }
 0x220   :  { %v1464_v16 = vpop.f32.mrf.mxu3  ;;  %1794 = vmatmul.f32.gmra.mxu0 %v7134_v53 }
 0x221   :  { %v7446_v2 = vadd.f32 %v1464_v16, %v1399_v5 }
 0x222   :  { %v7448_v49 = vpop.f32.mrf.mxu1 }
 0x224   :  { %1667 = vmatmul.f32.gmra.mxu2 %v7158_v55 }
 0x225   :  { %5914 = vmatmul.msk.f32.gmra.mxu3 %vm1154_vm1, %v7164_v36  ;;  %5930 = vmatmul.msk.f32.gmra.mxu1 %vm1154_vm1, %v7164_v36  ;;  %v7455_v19 = vpop.f32.mrf.mxu0 }
 0x227   :  { %v1405_v53 = vpop.f32.mrf.mxu2 }
 0x228   :  { %v1467_v62 = vpop.f32.mrf.mxu3  ;;  %1797 = vmatmul.f32.gmra.mxu0 %v7158_v55 }
 0x229   :  { %v7458_v58 = vadd.f32 %v1467_v62, %v1402_v17  ;;  %v1937_v17 = vld [vmem:[#allocation3 + $0x340] sm:$0xff]  ;;  %v1963_v62 = vld [vmem:[#allocation3 + $0x410] sm:$0xff] }
 0x22a   :  { %v7460_v1 = vpop.f32.mrf.mxu1  ;;  %2036 = vmatpush.msra.mxu2 %v1937_v17  ;;  %2104 = vmatpush.msrb.mxu3 %v1963_v62  ;;  %v1929_v62 = vld [vmem:[#allocation3 + $0x300] sm:$0xff] }
 0x22c   :  { %1670 = vmatmul.f32.gmra.mxu2 %v7178_v48  ;;  %2105 = vmatpush.msrb.mxu3 %v1961_v30  ;;  %v2381_v30 = vld [vmem:[#allocation3 + $0x578] sm:$0xff] }
 0x22d   :  { %5915 = vmatmul.msk.f32.gmra.mxu3 %vm1154_vm1, %v7184_v33  ;;  %5931 = vmatmul.msk.f32.gmra.mxu1 %vm1154_vm1, %v7184_v33  ;;  %v7467_v36 = vpop.f32.mrf.mxu0 }
 0x22f   :  { %v1408_v55 = vpop.f32.mrf.mxu2 }
 0x230   :  { %v1470_v34 = vpop.f32.mrf.mxu3  ;;  %1800 = vmatmul.f32.gmra.mxu0 %v7178_v48 }
 0x231   :  { %v7470_v40 = vadd.f32 %v1470_v34, %v1405_v53  ;;  %v1935_v53 = vld [vmem:[#allocation3 + $0x330] sm:$0xff]  ;;  %v1964_v34 = vld [vmem:[#allocation3 + $0x418] sm:$0xff] }
 0x232   :  { %v7472_v3 = vpop.f32.mrf.mxu1  ;;  %2037 = vmatpush.msra.mxu2 %v1935_v53  ;;  %2234 = vmatpush.msrb.mxu1 %v1964_v34  ;;  %v1962_v53 = vld [vmem:[#allocation3 + $0x408] sm:$0xff] }
 0x234   :  { %1673 = vmatmul.f32.gmra.mxu2 %v7198_v26  ;;  %2235 = vmatpush.msrb.mxu1 %v1962_v53 }
 0x235   :  { %5916 = vmatmul.msk.f32.gmra.mxu3 %vm1154_vm1, %v7204_v12  ;;  %5932 = vmatmul.msk.f32.gmra.mxu1 %vm1154_vm1, %v7204_v12  ;;  %v7479_v33 = vpop.f32.mrf.mxu0 }
 0x236   :  { %10659 = vst [vmem:[#allocation27_spill] sm:$0xff] %v7479_v33  ;;  %2038 = vmatpush.msra.mxu2 %v1933_v29  ;;  %v2380_v29 = vld [vmem:[#allocation3 + $0x570] sm:$0xff]  ;;  %v2387_v33 = vld [vmem:[#allocation3 + $0x5a8] sm:$0xff] }
 0x237   :  { %v1411_v48 = vpop.f32.mrf.mxu2 }
 0x238   :  { %v1473_v5 = vpop.f32.mrf.mxu3  ;;  %1803 = vmatmul.f32.gmra.mxu0 %v7198_v26  ;;  %2039 = vmatpush.msra.mxu2 %v1931_v35 }
 0x239   :  { %v7482_v6 = vadd.f32 %v1473_v5, %v1408_v55  ;;  %v1936_v55 = vld [vmem:[#allocation3 + $0x338] sm:$0xff]  ;;  %v1934_v5 = vld [vmem:[#allocation3 + $0x328] sm:$0xff] }
 0x23a   :  { %v7484_v44 = vpop.f32.mrf.mxu1  ;;  %2167 = vmatpush.msrb.mxu0 %v1936_v55  ;;  %2040 = vmatpush.msra.mxu2 %v1929_v62 }
 0x23b   :  { %10660 = vst [vmem:[#allocation28_spill] sm:$0xff] %v7484_v44  ;;  %v2361_v44 = vld [vmem:[#allocation3 + $0x4d8] sm:$0xff] }
 0x23c   :  { %1676 = vmatmul.f32.gmra.mxu2 %v7219_v37  ;;  %2168 = vmatpush.msrb.mxu0 %v1934_v5 }
 0x23d   :  { %5917 = vmatmul.msk.f32.gmra.mxu3 %vm1154_vm1, %v7224_v50  ;;  %5933 = vmatmul.msk.f32.gmra.mxu1 %vm1154_vm1, %v7224_v50  ;;  %v7491_v12 = vpop.f32.mrf.mxu0 }
 0x23e   :  { %10661 = vst [vmem:[#allocation9_spill] sm:$0xff] %v7491_v12  ;;  %2169 = vmatpush.msrb.mxu0 %v1932_v25  ;;  %2446 = vmatpush.msrb.mxu2 %v2380_v29  ;;  %v7713_v12 = vld [vmem:[#allocation2 + $0xa0] sm:$0xff] }
 0x23f   :  { %v1414_v26 = vpop.f32.mrf.mxu2 }
 0x240   :  { %v1476_v16 = vpop.f32.mrf.mxu3  ;;  %1806 = vmatmul.f32.gmra.mxu0 %v7219_v37 }
 0x241   :  { %v7494_v15 = vadd.f32 %v1476_v16, %v1411_v48 }
 0x242   :  { %v7496_v39 = vpop.f32.mrf.mxu1 }
 0x243   :  { %10662 = vst [vmem:[#allocation21_spill] sm:$0xff] %v7496_v39 }
 0x244   :  { %1679 = vmatmul.f32.gmra.mxu2 %v7240_v59 }
 0x245   :  { %5918 = vmatmul.msk.f32.gmra.mxu3 %vm1154_vm1, %v7244_v8  ;;  %5934 = vmatmul.msk.f32.gmra.mxu1 %vm1154_vm1, %v7244_v8  ;;  %v7503_v50 = vpop.f32.mrf.mxu0 }
 0x246   :  { %10663 = vst [vmem:[#allocation10_spill] sm:$0xff] %v7503_v50  ;;  %v7698_v50 = vld [vmem:[#allocation2 + $0x88] sm:$0xff] }
 0x247   :  { %v1417_v37 = vpop.f32.mrf.mxu2 }
 0x248   :  { %v1479_v24 = vpop.f32.mrf.mxu3  ;;  %1809 = vmatmul.f32.gmra.mxu0 %v7240_v59 }
 0x249   :  { %v7506_v13 = vadd.f32 %v1479_v24, %v1414_v26 }
 0x24a   :  { %v7508_v43 = vpop.f32.mrf.mxu1 }
 0x24b   :  { %10664 = vst [vmem:[#allocation20_spill] sm:$0xff] %v7508_v43  ;;  %v2363_v43 = vld [vmem:[#allocation3 + $0x4e8] sm:$0xff] }
 0x24c   :  { %1682 = vmatmul.f32.gmra.mxu2 %v7260_v52 }
 0x24d   :  { %5919 = vmatmul.msk.f32.gmra.mxu3 %vm1154_vm1, %v7264_v21  ;;  %5935 = vmatmul.msk.f32.gmra.mxu1 %vm1154_vm1, %v7264_v21  ;;  %v7515_v8 = vpop.f32.mrf.mxu0 }
 0x24e   :  { %10665 = vst [vmem:[#allocation31_spill] sm:$0xff] %v7515_v8  ;;  %v7696_v8 = vld [vmem:[#allocation2 + $0x90] sm:$0xff] }
 0x24f   :  { %v1420_v59 = vpop.f32.mrf.mxu2 }
 0x250   :  { %v1482_v63 = vpop.f32.mrf.mxu3  ;;  %1812 = vmatmul.f32.gmra.mxu0 %v7260_v52 }
 0x251   :  { %v7518_v42 = vadd.f32 %v1482_v63, %v1417_v37  ;;  %v1930_v37 = vld [vmem:[#allocation3 + $0x308] sm:$0xff] }
 0x252   :  { %v7520_v48 = vpop.f32.mrf.mxu1  ;;  %2170 = vmatpush.msrb.mxu0 %v1930_v37  ;;  %v2376_v37 = vld [vmem:[#allocation3 + $0x550] sm:$0xff] }
 0x253   :  { %10666 = vst [vmem:[#allocation32_spill] sm:$0xff] %v7520_v48  ;;  %v7681_v48 = vld [vmem:[#allocation2 + $0x78] sm:$0xff] }
 0x254   :  { %1685 = vmatmul.f32.gmra.mxu2 %v7280_v9  ;;  %2576 = vmatpush.msra.mxu0 %v2381_v30  ;;  %v2395_v30 = vld [vmem:[#allocation3 + $0x5e8] sm:$0xff] }
 0x255   :  { %5920 = vmatmul.msk.f32.gmra.mxu3 %vm1154_vm1, %v7284_v54  ;;  %5936 = vmatmul.msk.f32.gmra.mxu1 %vm1154_vm1, %v7284_v54  ;;  %v7527_v21 = vpop.f32.mrf.mxu0 }
 0x256   :  { %10667 = vst [vmem:[#allocation11_spill] sm:$0xff] %v7527_v21  ;;  %v2389_v21 = vld [vmem:[#allocation3 + $0x5b8] sm:$0xff] }
 0x257   :  { %v1423_v52 = vpop.f32.mrf.mxu2 }
 0x258   :  { %v1485_v17 = vpop.f32.mrf.mxu3  ;;  %1815 = vmatmul.f32.gmra.mxu0 %v7280_v9 }
 0x259   :  { %v7530_v26 = vadd.f32 %v1485_v17, %v1420_v59  ;;  %v2396_v59 = vld [vmem:[#allocation3 + $0x5f0] sm:$0xff]  ;;  %v2378_v17 = vld [vmem:[#allocation3 + $0x560] sm:$0xff] }
 0x25a   :  { %v7532_v16 = vpop.f32.mrf.mxu1  ;;  %2519 = vmatpush.msra.mxu3 %v2396_v59  ;;  %2447 = vmatpush.msrb.mxu2 %v2378_v17 }
 0x25b   :  { %10668 = vst [vmem:[#allocation23_spill] sm:$0xff] %v7532_v16  ;;  %v2365_v16 = vld [vmem:[#allocation3 + $0x4f8] sm:$0xff] }
 0x25c   :  { %1688 = vmatmul.f32.gmra.mxu2 %v7300_v32 }
 0x25d   :  { %5921 = vmatmul.msk.f32.gmra.mxu3 %vm1154_vm1, %v7304_v0  ;;  %5937 = vmatmul.msk.f32.gmra.mxu1 %vm1154_vm1, %v7304_v0  ;;  %v7539_v54 = vpop.f32.mrf.mxu0 }
 0x25e   :  { %10669 = vst [vmem:[#allocation12_spill] sm:$0xff] %v7539_v54  ;;  %2448 = vmatpush.msrb.mxu2 %v2376_v37  ;;  %v2375_v37 = vld [vmem:[#allocation3 + $0x548] sm:$0xff]  ;;  %v7679_v54 = vld [vmem:[#allocation2 + $0x80] sm:$0xff] }
 0x25f   :  { %v1426_v9 = vpop.f32.mrf.mxu2 }
 0x260   :  { %v1488_v24 = vpop.f32.mrf.mxu3  ;;  %1818 = vmatmul.f32.gmra.mxu0 %v7300_v32 }
 0x261   :  { %v7542_v55 = vadd.f32 %v1488_v24, %v1423_v52  ;;  %v2397_v52 = vld [vmem:[#allocation3 + $0x5f8] sm:$0xff]  ;;  %v2394_v24 = vld [vmem:[#allocation3 + $0x5e0] sm:$0xff] }
 0x262   :  { %v7544_v34 = vpop.f32.mrf.mxu1  ;;  %2649 = vmatpush.msra.mxu1 %v2397_v52  ;;  %2520 = vmatpush.msra.mxu3 %v2394_v24  ;;  %v2374_v52 = vld [vmem:[#allocation3 + $0x540] sm:$0xff]  ;;  %v2372_v24 = vld [vmem:[#allocation3 + $0x530] sm:$0xff] }
 0x263   :  { %10670 = vst [vmem:[#allocation22_spill] sm:$0xff] %v7544_v34  ;;  %2449 = vmatpush.msrb.mxu2 %v2374_v52 }
 0x264   :  { %1691 = vmatmul.f32.gmra.mxu2 %v7320_v51  ;;  %2650 = vmatpush.msra.mxu1 %v2395_v30 }
 0x265   :  { %5922 = vmatmul.msk.f32.gmra.mxu3 %vm1154_vm1, %v7324_v11  ;;  %5938 = vmatmul.msk.f32.gmra.mxu1 %vm1154_vm1, %v7324_v11  ;;  %v7551_v0 = vpop.f32.mrf.mxu0 }
 0x266   :  { %10671 = vst [vmem:[#allocation35_spill] sm:$0xff] %v7551_v0  ;;  %2450 = vmatpush.msrb.mxu2 %v2372_v24  ;;  %v7664_v0 = vld [vmem:[#allocation2 + $0x68] sm:$0xff] }
 0x267   :  { %v1429_v32 = vpop.f32.mrf.mxu2 }
 0x268   :  { %v1491_v63 = vpop.f32.mrf.mxu3  ;;  %1821 = vmatmul.f32.gmra.mxu0 %v7320_v51 }
 0x269   :  { %v7554_v5 = vadd.f32 %v1491_v63, %v1426_v9  ;;  %v2379_v9 = vld [vmem:[#allocation3 + $0x568] sm:$0xff]  ;;  %v2377_v63 = vld [vmem:[#allocation3 + $0x558] sm:$0xff] }
 0x26a   :  { %v7556_v35 = vpop.f32.mrf.mxu1  ;;  %2577 = vmatpush.msra.mxu0 %v2379_v9  ;;  %v7594_v9 = vld [vmem:[#allocation2 + $0x30] sm:$0xff] }
 0x26b   :  { %10672 = vst [vmem:[#allocation36_spill] sm:$0xff] %v7556_v35  ;;  %v2367_v35 = vld [vmem:[#allocation3 + $0x508] sm:$0xff] }
 0x26c   :  { %1694 = vmatmul.f32.gmra.mxu2 %v7344_v56  ;;  %2578 = vmatpush.msra.mxu0 %v2377_v63 }
 0x26d   :  { %5923 = vmatmul.msk.f32.gmra.mxu3 %vm1154_vm1, %v7348_v7  ;;  %5939 = vmatmul.msk.f32.gmra.mxu1 %vm1154_vm1, %v7348_v7  ;;  %v7563_v11 = vpop.f32.mrf.mxu0 }
 0x26e   :  { %10673 = vst [vmem:[#allocation13_spill] sm:$0xff] %v7563_v11  ;;  %2579 = vmatpush.msra.mxu0 %v2375_v37  ;;  %v2393_v37 = vld [vmem:[#allocation3 + $0x5d8] sm:$0xff]  ;;  %v7662_v11 = vld [vmem:[#allocation2 + $0x70] sm:$0xff] }
 0x26f   :  { %v1432_v51 = vpop.f32.mrf.mxu2  ;;  %2651 = vmatpush.msra.mxu1 %v2393_v37 }
 0x270   :  { %v1494_v25 = vpop.f32.mrf.mxu3  ;;  %1824 = vmatmul.f32.gmra.mxu0 %v7344_v56 }
 0x271   :  { %v7566_v53 = vadd.f32 %v1494_v25, %v1429_v32 }
 0x272   :  { %v7568_v62 = vpop.f32.mrf.mxu1 }
 0x273   :  { %10674 = vst [vmem:[#allocation25_spill] sm:$0xff] %v7568_v62  ;;  %v7647_v62 = vld [vmem:[#allocation2 + $0x58] sm:$0xff] }
 0x274   :  { %1697 = vmatmul.f32.gmra.mxu2 %v7364_v14 }
 0x275   :  { %5924 = vmatmul.msk.f32.gmra.mxu3 %vm1154_vm1, %v7368_v10  ;;  %5940 = vmatmul.msk.f32.gmra.mxu1 %vm1154_vm1, %v7368_v10  ;;  %v7575_v7 = vpop.f32.mrf.mxu0 }
 0x276   :  { %10675 = vst [vmem:[#allocation14_spill] sm:$0xff] %v7575_v7  ;;  %v2391_v7 = vld [vmem:[#allocation3 + $0x5c8] sm:$0xff] }
 0x277   :  { %v1435_v56 = vpop.f32.mrf.mxu2  ;;  %2652 = vmatpush.msra.mxu1 %v2391_v7 }
 0x278   :  { %v1497_v29 = vpop.f32.mrf.mxu3  ;;  %1827 = vmatmul.f32.gmra.mxu0 %v7364_v14 }
 0x279   :  { %v7578_v59 = vadd.f32 %v1497_v29, %v1432_v51  ;;  %2653 = vmatpush.msra.mxu1 %v2389_v21 }
 0x27a   :  { %v7580_v32 = vpop.f32.mrf.mxu1 }
 0x27b   :  { %10676 = vst [vmem:[#allocation24_spill] sm:$0xff] %v7580_v32  ;;  %v2369_v32 = vld [vmem:[#allocation3 + $0x518] sm:$0xff]  ;;  %2654 = vmatpush.msra.mxu1 %v2387_v33 }
 0x27c   :  { %2041 = vmatmul.f32.vlgmr.msra.gmra.mxu2 %v7112_v57 }
 0x27d   :  { %5925 = vmatmul.msk.f32.gmra.mxu3 %vm1154_vm1, %v7384_v60  ;;  %5941 = vmatmul.msk.f32.gmra.mxu1 %vm1154_vm1, %v7384_v60  ;;  %v7587_v10 = vpop.f32.mrf.mxu0  ;;  %v1456_v60 = vadd.f32 %v7410_v61, %v7399_v22 }
 0x27e   :  { %10677 = vst [vmem:[#allocation37_spill] sm:$0xff] %v7587_v10  ;;  %v7630_v10 = vld [vmem:[#allocation2 + $0x48] sm:$0xff] }
 0x27f   :  { %v1653_v14 = vpop.f32.mrf.mxu2 }
 0x280   :  { %v1500_v17 = vpop.f32.mrf.mxu3  ;;  %2171 = vmatmul.f32.vlgmr.msrb.gmra.mxu0 %v7112_v57  ;;  %v1654_v29 = vadd.f32 %v1653_v14, %v1456_v60  ;;  %v2370_v14 = vld [vmem:[#allocation3 + $0x520] sm:$0xff] }
 0x281   :  { %v7590_v51 = vadd.f32 %v1500_v17, %v1435_v56  ;;  %v2392_v56 = vld [vmem:[#allocation3 + $0x5d0] sm:$0xff]  ;;  %v7611_v17 = vld [vmem:[#allocation2 + $0x40] sm:$0xff]  ;;  %2451 = vmatpush.msrb.mxu2 %v2370_v14 }
 0x282   :  { %v7592_v25 = vpop.f32.mrf.mxu1  ;;  %2521 = vmatpush.msra.mxu3 %v2392_v56 }
 0x283   :  { %10678 = vst [vmem:[#allocation38_spill] sm:$0xff] %v7592_v25  ;;  %v7613_v25 = vld [vmem:[#allocation2 + $0x38] sm:$0xff] }
 0x284   :  { %2044 = vmatmul.f32.gmra.mxu2 %v7594_v9 }
 0x285   :  { %5942 = vmatmul.msk.f32.vlgmr.msrb.gmra.mxu3 %vm1154_vm1, %v7125_v18  ;;  %5958 = vmatmul.msk.f32.vlgmr.msrb.gmra.mxu1 %vm1154_vm1, %v7125_v18  ;;  %v7603_v57 = vpop.f32.mrf.mxu0  ;;  %v2373_v18 = vld [vmem:[#allocation3 + $0x538] sm:$0xff] }
 0x286   :  { %2580 = vmatpush.msra.mxu0 %v2373_v18  ;;  %v2371_v18 = vld [vmem:[#allocation3 + $0x528] sm:$0xff] }
 0x287   :  { %v1656_v63 = vpop.f32.mrf.mxu2 }
 0x288   :  { %v1718_v30 = vpop.f32.mrf.mxu3  ;;  %2174 = vmatmul.f32.gmra.mxu0 %v7594_v9  ;;  %v1657_v52 = vadd.f32 %v1656_v63, %v7422_v38 }
 0x289   :  { %v7607_v22 = vadd.f32 %v1718_v30, %v1654_v29  ;;  %v7628_v30 = vld [vmem:[#allocation2 + $0x50] sm:$0xff]  ;;  %2581 = vmatpush.msra.mxu0 %v2371_v18 }
 0x28a   :  { %v7609_v61 = vpop.f32.mrf.mxu1 }
 0x28b   :  { %2582 = vmatpush.msra.mxu0 %v2369_v32 }
 0x28c   :  { %2047 = vmatmul.f32.gmra.mxu2 %v7611_v17 }
 0x28d   :  { %5943 = vmatmul.msk.f32.gmra.mxu3 %vm1154_vm1, %v7613_v25  ;;  %5959 = vmatmul.msk.f32.gmra.mxu1 %vm1154_vm1, %v7613_v25  ;;  %v7620_v38 = vpop.f32.mrf.mxu0 }
 0x28e   :  { %2583 = vmatpush.msra.mxu0 %v2367_v35 }
 0x28f   :  { %v1659_v60 = vpop.f32.mrf.mxu2 }
 0x290   :  { %v1721_v24 = vpop.f32.mrf.mxu3  ;;  %2177 = vmatmul.f32.gmra.mxu0 %v7611_v17  ;;  %v1660_v56 = vadd.f32 %v1659_v60, %v7434_v46  ;;  %v2368_v46 = vld [vmem:[#allocation3 + $0x510] sm:$0xff] }
 0x291   :  { %v7624_v29 = vadd.f32 %v1721_v24, %v1657_v52  ;;  %v2390_v52 = vld [vmem:[#allocation3 + $0x5c0] sm:$0xff]  ;;  %2452 = vmatpush.msrb.mxu2 %v2368_v46  ;;  %2584 = vmatpush.msra.mxu0 %v2365_v16 }
 0x292   :  { %v7626_v63 = vpop.f32.mrf.mxu1  ;;  %2522 = vmatpush.msra.mxu3 %v2390_v52 }
 0x293   :  { %2585 = vmatpush.msra.mxu0 %v2363_v43 }
 0x294   :  { %2050 = vmatmul.f32.gmra.mxu2 %v7628_v30 }
 0x295   :  { %5944 = vmatmul.msk.f32.gmra.mxu3 %vm1154_vm1, %v7630_v10  ;;  %5960 = vmatmul.msk.f32.gmra.mxu1 %vm1154_vm1, %v7630_v10  ;;  %v7637_v37 = vpop.f32.mrf.mxu0 }
 0x296   :  { %2586 = vmatpush.msra.mxu0 %v2361_v44 }
 0x297   :  { %v1662_v14 = vpop.f32.mrf.mxu2 }
 0x298   :  { %v1724_v60 = vpop.f32.mrf.mxu3  ;;  %2180 = vmatmul.f32.gmra.mxu0 %v7628_v30  ;;  %v1663_v24 = vadd.f32 %v1662_v14, %v7446_v2 }
 0x299   :  { %v7641_v28 = vadd.f32 %v1724_v60, %v1660_v56  ;;  %v2366_v56 = vld [vmem:[#allocation3 + $0x500] sm:$0xff] }
 0x29a   :  { %v7643_v18 = vpop.f32.mrf.mxu1  ;;  %2453 = vmatpush.msrb.mxu2 %v2366_v56 }
 0x29c   :  { %2053 = vmatmul.f32.gmra.mxu2 %v7645_v31 }
 0x29d   :  { %5945 = vmatmul.msk.f32.gmra.mxu3 %vm1154_vm1, %v7647_v62  ;;  %5961 = vmatmul.msk.f32.gmra.mxu1 %vm1154_vm1, %v7647_v62  ;;  %v7654_v2 = vpop.f32.mrf.mxu0 }
 0x29f   :  { %v1665_v46 = vpop.f32.mrf.mxu2 }
 0x2a0   :  { %v1727_v52 = vpop.f32.mrf.mxu3  ;;  %2183 = vmatmul.f32.gmra.mxu0 %v7645_v31  ;;  %v1666_v14 = vadd.f32 %v1665_v46, %v7458_v58  ;;  %v2364_v58 = vld [vmem:[#allocation3 + $0x4f0] sm:$0xff] }
 0x2a1   :  { %v7658_v60 = vadd.f32 %v1727_v52, %v1663_v24  ;;  %v2388_v24 = vld [vmem:[#allocation3 + $0x5b0] sm:$0xff]  ;;  %2454 = vmatpush.msrb.mxu2 %v2364_v58 }
 0x2a2   :  { %v7660_v32 = vpop.f32.mrf.mxu1  ;;  %2523 = vmatpush.msra.mxu3 %v2388_v24 }
 0x2a4   :  { %2056 = vmatmul.f32.gmra.mxu2 %v7662_v11 }
 0x2a5   :  { %5946 = vmatmul.msk.f32.gmra.mxu3 %vm1154_vm1, %v7664_v0  ;;  %5962 = vmatmul.msk.f32.gmra.mxu1 %vm1154_vm1, %v7664_v0  ;;  %v7671_v7 = vpop.f32.mrf.mxu0 }
 0x2a7   :  { %v1668_v56 = vpop.f32.mrf.mxu2 }
 0x2a8   :  { %v1730_v46 = vpop.f32.mrf.mxu3  ;;  %2186 = vmatmul.f32.gmra.mxu0 %v7662_v11  ;;  %v1669_v52 = vadd.f32 %v1668_v56, %v7470_v40 }
 0x2a9   :  { %v7675_v34 = vadd.f32 %v1730_v46, %v1666_v14  ;;  %v2362_v14 = vld [vmem:[#allocation3 + $0x4e0] sm:$0xff] }
 0x2aa   :  { %v7677_v35 = vpop.f32.mrf.mxu1  ;;  %2455 = vmatpush.msrb.mxu2 %v2362_v14 }
 0x2ac   :  { %2059 = vmatmul.f32.gmra.mxu2 %v7679_v54 }
 0x2ad   :  { %5947 = vmatmul.msk.f32.gmra.mxu3 %vm1154_vm1, %v7681_v48  ;;  %5963 = vmatmul.msk.f32.gmra.mxu1 %vm1154_vm1, %v7681_v48  ;;  %v7688_v40 = vpop.f32.mrf.mxu0 }
 0x2af   :  { %v1671_v58 = vpop.f32.mrf.mxu2 }
 0x2b0   :  { %v1733_v24 = vpop.f32.mrf.mxu3  ;;  %2189 = vmatmul.f32.gmra.mxu0 %v7679_v54  ;;  %v1672_v56 = vadd.f32 %v1671_v58, %v7482_v6  ;;  %v2360_v6 = vld [vmem:[#allocation3 + $0x4d0] sm:$0xff] }
 0x2b1   :  { %v7692_v46 = vadd.f32 %v1733_v24, %v1669_v52  ;;  %v2386_v52 = vld [vmem:[#allocation3 + $0x5a0] sm:$0xff]  ;;  %2456 = vmatpush.msrb.mxu2 %v2360_v6 }
 0x2b2   :  { %v7694_v16 = vpop.f32.mrf.mxu1  ;;  %2524 = vmatpush.msra.mxu3 %v2386_v52 }
 0x2b3   :  { %10679 = vst [vmem:[#allocation15_spill] sm:$0xff] %v7692_v46  ;;  %v7715_v46 = vld [vmem:[#allocation2 + $0x98] sm:$0xff] }
 0x2b4   :  { %2062 = vmatmul.f32.gmra.mxu2 %v7696_v8  ;;  %10683 = vst [vmem:[#allocation39_spill] sm:$0xff] %v7715_v46 }
 0x2b5   :  { %5948 = vmatmul.msk.f32.gmra.mxu3 %vm1154_vm1, %v7698_v50  ;;  %5964 = vmatmul.msk.f32.gmra.mxu1 %vm1154_vm1, %v7698_v50  ;;  %v7705_v21 = vpop.f32.mrf.mxu0 }
 0x2b6   :  { %10680 = vst [vmem:[#allocation29_spill] sm:$0xff] %v7705_v21  ;;  %v7732_v21 = vld [vmem:[#allocation2 + $0xa8] sm:$0xff] }
 0x2b7   :  { %v1674_v14 = vpop.f32.mrf.mxu2  ;;  %10687 = vst [vmem:[#allocation18_spill] sm:$0xff] %v7732_v21 }
 0x2b8   :  { %v1736_v58 = vpop.f32.mrf.mxu3  ;;  %2192 = vmatmul.f32.gmra.mxu0 %v7696_v8  ;;  %v1675_v24 = vadd.f32 %v1674_v14, %v7494_v15 }
 0x2b9   :  { %v7709_v39 = vadd.f32 %v1736_v58, %v1672_v56  ;;  %v2358_v56 = vld [vmem:[#allocation3 + $0x4c0] sm:$0xff] }
 0x2ba   :  { %v7711_v43 = vpop.f32.mrf.mxu1  ;;  %2457 = vmatpush.msrb.mxu2 %v2358_v56 }
 0x2bb   :  { %10681 = vst [vmem:[#allocation16_spill] sm:$0xff] %v7709_v39  ;;  %v7730_v39 = vld [vmem:[#allocation2 + $0xb0] sm:$0xff] }
 0x2bc   :  { %10682 = vst [vmem:[#allocation26_spill] sm:$0xff] %v7711_v43  ;;  %2065 = vmatmul.f32.gmra.mxu2 %v7713_v12  ;;  %v2359_v43 = vld [vmem:[#allocation3 + $0x4c8] sm:$0xff] }
 0x2bd   :  { %5949 = vmatmul.msk.f32.gmra.mxu3 %vm1154_vm1, %v7715_v46  ;;  %5965 = vmatmul.msk.f32.gmra.mxu1 %vm1154_vm1, %v7715_v46  ;;  %v7722_v15 = vpop.f32.mrf.mxu0  ;;  %v7749_v46 = vld [vmem:[#allocation2 + $0xb8] sm:$0xff] }
 0x2be   :  { %10684 = vst [vmem:[#allocation40_spill] sm:$0xff] %v7722_v15  ;;  %2587 = vmatpush.msra.mxu0 %v2359_v43  ;;  %v2357_v15 = vld [vmem:[#allocation3 + $0x4b8] sm:$0xff] }
 0x2bf   :  { %v1677_v6 = vpop.f32.mrf.mxu2  ;;  %10691 = vst [vmem:[#allocation6_spill] sm:$0xff] %v7749_v46 }
 0x2c0   :  { %v1739_v52 = vpop.f32.mrf.mxu3  ;;  %2195 = vmatmul.f32.gmra.mxu0 %v7713_v12  ;;  %v1678_v14 = vadd.f32 %v1677_v6, %v7506_v13  ;;  %v2356_v13 = vld [vmem:[#allocation3 + $0x4b0] sm:$0xff] }
 0x2c1   :  { %v7726_v58 = vadd.f32 %v1739_v52, %v1675_v24  ;;  %v2384_v24 = vld [vmem:[#allocation3 + $0x590] sm:$0xff]  ;;  %2458 = vmatpush.msrb.mxu2 %v2356_v13  ;;  %2588 = vmatpush.msra.mxu0 %v2357_v15 }
 0x2c2   :  { %v7728_v44 = vpop.f32.mrf.mxu1  ;;  %2525 = vmatpush.msra.mxu3 %v2384_v24 }
 0x2c3   :  { %10685 = vst [vmem:[#allocation17_spill] sm:$0xff] %v7726_v58 }
 0x2c4   :  { %10686 = vst [vmem:[#allocation33_spill] sm:$0xff] %v7728_v44  ;;  %2068 = vmatmul.f32.gmra.mxu2 %v7730_v39  ;;  %v7747_v44 = vld [vmem:[#allocation2 + $0xc0] sm:$0xff] }
 0x2c5   :  { %5950 = vmatmul.msk.f32.gmra.mxu3 %vm1154_vm1, %v7732_v21  ;;  %5966 = vmatmul.msk.f32.gmra.mxu1 %vm1154_vm1, %v7732_v21  ;;  %v7739_v33 = vpop.f32.mrf.mxu0  ;;  %v2385_v21 = vld [vmem:[#allocation3 + $0x598] sm:$0xff] }
 0x2c6   :  { %10688 = vst [vmem:[#allocation30_spill] sm:$0xff] %v7739_v33  ;;  %2655 = vmatpush.msra.mxu1 %v2385_v21  ;;  %v7766_v33 = vld [vmem:[#allocation2 + $0xc8] sm:$0xff] }
 0x2c7   :  { %v1680_v56 = vpop.f32.mrf.mxu2  ;;  %10695 = vst [vmem:[#allocation44_spill] sm:$0xff] %v7766_v33 }
 0x2c8   :  { %v1742_v6 = vpop.f32.mrf.mxu3  ;;  %2198 = vmatmul.f32.gmra.mxu0 %v7730_v39  ;;  %v1681_v52 = vadd.f32 %v1680_v56, %v7518_v42 }
 0x2c9   :  { %v7743_v58 = vadd.f32 %v1742_v6, %v1678_v14  ;;  %v2354_v14 = vld [vmem:[#allocation3 + $0x4a0] sm:$0xff] }
 0x2ca   :  { %v7745_v43 = vpop.f32.mrf.mxu1  ;;  %2459 = vmatpush.msrb.mxu2 %v2354_v14 }
 0x2cb   :  { %10689 = vst [vmem:[#allocation41_spill] sm:$0xff] %v7743_v58  ;;  %v7764_v58 = vld [vmem:[#allocation2 + $0xd0] sm:$0xff] }
 0x2cc   :  { %10690 = vst [vmem:[#allocation42_spill] sm:$0xff] %v7745_v43  ;;  %2071 = vmatmul.f32.gmra.mxu2 %v7747_v44  ;;  %v2355_v43 = vld [vmem:[#allocation3 + $0x4a8] sm:$0xff] }
 0x2cd   :  { %5951 = vmatmul.msk.f32.gmra.mxu3 %vm1154_vm1, %v7749_v46  ;;  %5967 = vmatmul.msk.f32.gmra.mxu1 %vm1154_vm1, %v7749_v46  ;;  %v7756_v42 = vpop.f32.mrf.mxu0  ;;  %v2350_v46 = vld [vmem:[#allocation3 + $0x480] sm:$0xff] }
 0x2ce   :  { %10692 = vst [vmem:[#allocation34_spill] sm:$0xff] %v7756_v42  ;;  %2589 = vmatpush.msra.mxu0 %v2355_v43  ;;  %v2353_v42 = vld [vmem:[#allocation3 + $0x498] sm:$0xff] }
 0x2cf   :  { %v1683_v13 = vpop.f32.mrf.mxu2 }
 0x2d0   :  { %v1745_v24 = vpop.f32.mrf.mxu3  ;;  %2201 = vmatmul.f32.gmra.mxu0 %v7747_v44  ;;  %v1684_v56 = vadd.f32 %v1683_v13, %v7530_v26  ;;  %v2352_v26 = vld [vmem:[#allocation3 + $0x490] sm:$0xff] }
 0x2d1   :  { %v7760_v6 = vadd.f32 %v1745_v24, %v1681_v52  ;;  %v2382_v52 = vld [vmem:[#allocation3 + $0x580] sm:$0xff]  ;;  %2460 = vmatpush.msrb.mxu2 %v2352_v26  ;;  %2590 = vmatpush.msra.mxu0 %v2353_v42  ;;  %v2351_v26 = vld [vmem:[#allocation3 + $0x488] sm:$0xff] }
 0x2d2   :  { %v7762_v15 = vpop.f32.mrf.mxu1  ;;  %2526 = vmatpush.msra.mxu3 %v2382_v52 }
 0x2d3   :  { %10693 = vst [vmem:[#allocation7_spill] sm:$0xff] %v7760_v6  ;;  %2461 = vmatpush.msrb.mxu2 %v2350_v46  ;;  %2591 = vmatpush.msra.mxu0 %v2351_v26 }
 0x2d4   :  { %10694 = vst [vmem:[#allocation43_spill] sm:$0xff] %v7762_v15  ;;  %2074 = vmatmul.f32.gmra.mxu2 %v7764_v58  ;;  %v7781_v15 = vld [vmem:[#allocation2 + $0xe0] sm:$0xff] }
 0x2d5   :  { %5952 = vmatmul.msk.f32.gmra.mxu3 %vm1154_vm1, %v7766_v33  ;;  %5968 = vmatmul.msk.f32.gmra.mxu1 %vm1154_vm1, %v7766_v33  ;;  %v7773_v21 = vpop.f32.mrf.mxu0  ;;  %v2383_v33 = vld [vmem:[#allocation3 + $0x588] sm:$0xff] }
 0x2d6   :  { %10696 = vst [vmem:[#allocation45_spill] sm:$0xff] %v7773_v21  ;;  %v7783_v21 = vld [vmem:[#allocation2 + $0xd8] sm:$0xff]  ;;  %2656 = vmatpush.msra.mxu1 %v2383_v33  ;;  %v2817_v33 = vld [vmem:[#allocation3 + $0x770] sm:$0xff] }
 0x2d7   :  { %v1686_v14 = vpop.f32.mrf.mxu2  ;;  %2940 = vmatpush.msrb.mxu3 %v2817_v33  ;;  %v2802_v33 = vld [vmem:[#allocation3 + $0x6f8] sm:$0xff] }
 0x2d8   :  { %v1748_v13 = vpop.f32.mrf.mxu3  ;;  %2204 = vmatmul.f32.gmra.mxu0 %v7764_v58  ;;  %v1687_v24 = vadd.f32 %v1686_v14, %v7542_v55 }
 0x2d9   :  { %v7777_v6 = vadd.f32 %v1748_v13, %v1684_v56  ;;  %2997 = vmatpush.msrb.mxu0 %v2802_v33 }
 0x2da   :  { %v7779_v43 = vpop.f32.mrf.mxu1 }
 0x2db   :  { %10697 = vst [vmem:[#allocation46_spill] sm:$0xff] %v7777_v6  ;;  %v7798_v6 = vld [vmem:[#allocation2 + $0xf0] sm:$0xff] }
 0x2dc   :  { %10698 = vst [vmem:[#allocation47_spill] sm:$0xff] %v7779_v43  ;;  %2077 = vmatmul.f32.gmra.mxu2 %v7781_v15  ;;  %v7800_v43 = vld [vmem:[#allocation2 + $0xe8] sm:$0xff] }
 0x2dd   :  { %5953 = vmatmul.msk.f32.gmra.mxu3 %vm1154_vm1, %v7783_v21  ;;  %5969 = vmatmul.msk.f32.gmra.mxu1 %vm1154_vm1, %v7783_v21  ;;  %v7790_v55 = vpop.f32.mrf.mxu0  ;;  %10702 = vst [vmem:[#allocation51_spill] sm:$0xff] %v7800_v43 }
 0x2de   :  { %10699 = vst [vmem:[#allocation48_spill] sm:$0xff] %v7790_v55  ;;  %v7817_v55 = vld [vmem:[#allocation2 + $0xf8] sm:$0xff] }
 0x2df   :  { %v1689_v56 = vpop.f32.mrf.mxu2  ;;  %10706 = vst [vmem:[#allocation55_spill] sm:$0xff] %v7817_v55 }
 0x2e0   :  { %v1751_v52 = vpop.f32.mrf.mxu3  ;;  %2207 = vmatmul.f32.gmra.mxu0 %v7781_v15  ;;  %v1690_v14 = vadd.f32 %v1689_v56, %v7554_v5  ;;  %v2801_v5 = vld [vmem:[#allocation3 + $0x6f0] sm:$0xff] }
 0x2e1   :  { %v7794_v13 = vadd.f32 %v1751_v52, %v1687_v24  ;;  %2867 = vmatpush.msra.mxu2 %v2801_v5 }
 0x2e2   :  { %v7796_v42 = vpop.f32.mrf.mxu1 }
 0x2e3   :  { %10700 = vst [vmem:[#allocation49_spill] sm:$0xff] %v7794_v13 }
 0x2e4   :  { %10701 = vst [vmem:[#allocation50_spill] sm:$0xff] %v7796_v42  ;;  %2080 = vmatmul.f32.gmra.mxu2 %v7798_v6  ;;  %v7815_v42 = vld [vmem:[#allocation2 + $0x100] sm:$0xff] }
 0x2e5   :  { %5954 = vmatmul.msk.f32.gmra.mxu3 %vm1154_vm1, %v7800_v43  ;;  %5970 = vmatmul.msk.f32.gmra.mxu1 %vm1154_vm1, %v7800_v43  ;;  %v7807_v46 = vpop.f32.mrf.mxu0  ;;  %v7832_v43 = vld [vmem:[#allocation2 + $0x110] sm:$0xff] }
 0x2e6   :  { %10703 = vst [vmem:[#allocation52_spill] sm:$0xff] %v7807_v46 }
 0x2e7   :  { %v1692_v24 = vpop.f32.mrf.mxu2 }
 0x2e8   :  { %v1754_v56 = vpop.f32.mrf.mxu3  ;;  %2210 = vmatmul.f32.gmra.mxu0 %v7798_v6  ;;  %v1693_v26 = vadd.f32 %v1692_v24, %v7566_v53  ;;  %v2818_v53 = vld [vmem:[#allocation3 + $0x778] sm:$0xff] }
 0x2e9   :  { %v7811_v52 = vadd.f32 %v1754_v56, %v1690_v14  ;;  %v2799_v14 = vld [vmem:[#allocation3 + $0x6e0] sm:$0xff]  ;;  %3070 = vmatpush.msrb.mxu1 %v2818_v53  ;;  %v2800_v53 = vld [vmem:[#allocation3 + $0x6e8] sm:$0xff] }
 0x2ea   :  { %v7813_v13 = vpop.f32.mrf.mxu1  ;;  %2868 = vmatpush.msra.mxu2 %v2799_v14  ;;  %2998 = vmatpush.msrb.mxu0 %v2800_v53 }
 0x2eb   :  { %10704 = vst [vmem:[#allocation53_spill] sm:$0xff] %v7811_v52 }
 0x2ec   :  { %10705 = vst [vmem:[#allocation54_spill] sm:$0xff] %v7813_v13  ;;  %2083 = vmatmul.f32.gmra.mxu2 %v7815_v42 }
 0x2ed   :  { %5955 = vmatmul.msk.f32.gmra.mxu3 %vm1154_vm1, %v7817_v55  ;;  %5971 = vmatmul.msk.f32.gmra.mxu1 %vm1154_vm1, %v7817_v55  ;;  %v7824_v5 = vpop.f32.mrf.mxu0  ;;  %v7834_v55 = vld [vmem:[#allocation2 + $0x108] sm:$0xff] }
 0x2ee   :  { %10707 = vst [vmem:[#allocation56_spill] sm:$0xff] %v7824_v5  ;;  %v7849_v5 = vld [vmem:[#allocation2 + $0x118] sm:$0xff] }
 0x2ef   :  { %v1695_v24 = vpop.f32.mrf.mxu2  ;;  %10713 = vst [vmem:[#allocation62_spill] sm:$0xff] %v7849_v5 }
 0x2f0   :  { %v1757_v56 = vpop.f32.mrf.mxu3  ;;  %2213 = vmatmul.f32.gmra.mxu0 %v7815_v42  ;;  %v1696_v52 = vadd.f32 %v1695_v24, %v7578_v59  ;;  %v2797_v59 = vld [vmem:[#allocation3 + $0x6d0] sm:$0xff] }
 0x2f1   :  { %v7828_v13 = vadd.f32 %v1757_v56, %v1693_v26  ;;  %v2815_v26 = vld [vmem:[#allocation3 + $0x760] sm:$0xff]  ;;  %2869 = vmatpush.msra.mxu2 %v2797_v59  ;;  %v2798_v59 = vld [vmem:[#allocation3 + $0x6d8] sm:$0xff] }
 0x2f2   :  { %v7830_v46 = vpop.f32.mrf.mxu1  ;;  %2941 = vmatpush.msrb.mxu3 %v2815_v26  ;;  %v2816_v26 = vld [vmem:[#allocation3 + $0x768] sm:$0xff]  ;;  %2999 = vmatpush.msrb.mxu0 %v2798_v59 }
 0x2f3   :  { %10708 = vst [vmem:[#allocation57_spill] sm:$0xff] %v7828_v13  ;;  %3071 = vmatpush.msrb.mxu1 %v2816_v26  ;;  %v2796_v59 = vld [vmem:[#allocation3 + $0x6c8] sm:$0xff]  ;;  %v2793_v26 = vld [vmem:[#allocation3 + $0x6b0] sm:$0xff] }
 0x2f4   :  { %10709 = vst [vmem:[#allocation58_spill] sm:$0xff] %v7830_v46  ;;  %2086 = vmatmul.f32.gmra.mxu2 %v7832_v43  ;;  %3000 = vmatpush.msrb.mxu0 %v2796_v59 }
 0x2f5   :  { %5956 = vmatmul.msk.f32.gmra.mxu3 %vm1154_vm1, %v7834_v55  ;;  %5972 = vmatmul.msk.f32.gmra.mxu1 %vm1154_vm1, %v7834_v55  ;;  %v7841_v33 = vpop.f32.mrf.mxu0 }
 0x2f6   :  { %10710 = vst [vmem:[#allocation59_spill] sm:$0xff] %v7841_v33  ;;  %v2795_v33 = vld [vmem:[#allocation3 + $0x6c0] sm:$0xff] }
 0x2f7   :  { %v1698_v14 = vpop.f32.mrf.mxu2  ;;  %2870 = vmatpush.msra.mxu2 %v2795_v33 }
 0x2f8   :  { %v1760_v24 = vpop.f32.mrf.mxu3  ;;  %2216 = vmatmul.f32.gmra.mxu0 %v7832_v43  ;;  %v1699_v56 = vadd.f32 %v1698_v14, %v7590_v51 }
 0x2f9   :  { %v7845_v13 = vadd.f32 %v1760_v24, %v1696_v52  ;;  %2871 = vmatpush.msra.mxu2 %v2793_v26 }
 0x2fa   :  { %v7847_v46 = vpop.f32.mrf.mxu1 }
 0x2fb   :  { %10711 = vst [vmem:[#allocation60_spill] sm:$0xff] %v7845_v13  ;;  %v2813_v13 = vld [vmem:[#allocation3 + $0x750] sm:$0xff] }
 0x2fc   :  { %10712 = vst [vmem:[#allocation61_spill] sm:$0xff] %v7847_v46  ;;  %2462 = vmatmul.f32.vlgmr.msrb.gmra.mxu2 %v7594_v9  ;;  %2942 = vmatpush.msrb.mxu3 %v2813_v13 }
 0x2fd   :  { %5957 = vmatmul.msk.f32.gmra.mxu3 %vm1154_vm1, %v7849_v5  ;;  %5973 = vmatmul.msk.f32.gmra.mxu1 %vm1154_vm1, %v7849_v5  ;;  %v7856_v53 = vpop.f32.mrf.mxu0 }
 0x2fe   :  { %10714 = vst [vmem:[#allocation63_spill] sm:$0xff] %v7856_v53 }
 0x2ff   :  { %v2042_v51 = vpop.f32.mrf.mxu2 }
 0x300   :  { %v1763_v52 = vpop.f32.mrf.mxu3  ;;  %2592 = vmatmul.f32.vlgmr.msra.gmra.mxu0 %v7594_v9  ;;  %v1589_v9 = vadd.f32 %v7412_v23, %v7408_v27  ;;  %v2794_v23 = vld [vmem:[#allocation3 + $0x6b8] sm:$0xff] }
 0x301   :  { %v7859_v14 = vadd.f32 %v1763_v52, %v1699_v56  ;;  %3001 = vmatpush.msrb.mxu0 %v2794_v23 }
 0x302   :  { %v7861_v24 = vpop.f32.mrf.mxu1  ;;  %v1787_v52 = vadd.f32 %v7603_v57, %v1589_v9  ;;  %v2814_v57 = vld [vmem:[#allocation3 + $0x758] sm:$0xff] }
 0x303   :  { %10715 = vst [vmem:[#allocation64_spill] sm:$0xff] %v7859_v14  ;;  %3072 = vmatpush.msrb.mxu1 %v2814_v57 }
 0x304   :  { %10716 = vst [vmem:[#allocation65_spill] sm:$0xff] %v7861_v24  ;;  %2465 = vmatmul.f32.gmra.mxu2 %v7611_v17 }
 0x305   :  { %5974 = vmatmul.msk.f32.vlgmr.msra.gmra.mxu3 %vm1154_vm1, %v7613_v25  ;;  %5990 = vmatmul.msk.f32.vlgmr.msra.gmra.mxu1 %vm1154_vm1, %v7613_v25  ;;  %v2175_v53 = vpop.f32.mrf.mxu0  ;;  %v1852_v25 = vadd.f32 %v7609_v61, %v1787_v52 }
 0x307   :  { %v2045_v33 = vpop.f32.mrf.mxu2 }
 0x308   :  { %v2107_v56 = vpop.f32.mrf.mxu3  ;;  %2595 = vmatmul.f32.gmra.mxu0 %v7611_v17  ;;  %v2791_v17 = vld [vmem:[#allocation3 + $0x6a0] sm:$0xff] }
 0x309   :  { %v2108_v14 = vadd.f32 %v2107_v56, %v2042_v51  ;;  %2872 = vmatpush.msra.mxu2 %v2791_v17 }
 0x30a   :  { %v2240_v24 = vpop.f32.mrf.mxu1 }
 0x30b   :  { %v7874_v46 = vadd.f32 %v2108_v14, %v7607_v22  ;;  %v2241_v5 = vadd.f32 %v2240_v24, %v2175_v53  ;;  %v1592_v22 = vadd.f32 %v7424_v41, %v7419_v20  ;;  %v2792_v41 = vld [vmem:[#allocation3 + $0x6a8] sm:$0xff] }
 0x30c   :  { %2468 = vmatmul.f32.gmra.mxu2 %v7628_v30  ;;  %3002 = vmatpush.msrb.mxu0 %v2792_v41 }
 0x30d   :  { %v7877_v59 = vadd.f32 %v2241_v5, %v1852_v25  ;;  %5975 = vmatmul.msk.f32.gmra.mxu3 %vm1154_vm1, %v7630_v10  ;;  %5991 = vmatmul.msk.f32.gmra.mxu1 %vm1154_vm1, %v7630_v10  ;;  %v2178_v27 = vpop.f32.mrf.mxu0  ;;  %v1790_v5 = vadd.f32 %v7620_v38, %v1592_v22  ;;  %v2789_v38 = vld [vmem:[#allocation3 + $0x690] sm:$0xff] }
 0x30e   :  { %2873 = vmatpush.msra.mxu2 %v2789_v38 }
 0x30f   :  { %v2048_v61 = vpop.f32.mrf.mxu2  ;;  %v1855_v10 = vadd.f32 %v7626_v63, %v1790_v5 }
 0x310   :  { %v2110_v13 = vpop.f32.mrf.mxu3  ;;  %2598 = vmatmul.f32.gmra.mxu0 %v7628_v30  ;;  %v2811_v30 = vld [vmem:[#allocation3 + $0x740] sm:$0xff] }
 0x311   :  { %v2111_v53 = vadd.f32 %v2110_v13, %v2045_v33  ;;  %2943 = vmatpush.msrb.mxu3 %v2811_v30 }
 0x312   :  { %v2243_v51 = vpop.f32.mrf.mxu1 }
 0x313   :  { %v7889_v14 = vadd.f32 %v2111_v53, %v7624_v29  ;;  %v2244_v24 = vadd.f32 %v2243_v51, %v2178_v27  ;;  %v1595_v29 = vadd.f32 %v7436_v45, %v7431_v4  ;;  %v2790_v4 = vld [vmem:[#allocation3 + $0x698] sm:$0xff]  ;;  %v2812_v45 = vld [vmem:[#allocation3 + $0x748] sm:$0xff] }
 0x314   :  { %2471 = vmatmul.f32.gmra.mxu2 %v7645_v31  ;;  %3003 = vmatpush.msrb.mxu0 %v2790_v4  ;;  %v10720_v4 = vld [vmem:[#allocation28_spill] sm:$0xff] }
 0x315   :  { %v7892_v26 = vadd.f32 %v2244_v24, %v1855_v10  ;;  %5976 = vmatmul.msk.f32.gmra.mxu3 %vm1154_vm1, %v7647_v62  ;;  %5992 = vmatmul.msk.f32.gmra.mxu1 %vm1154_vm1, %v7647_v62  ;;  %v2181_v20 = vpop.f32.mrf.mxu0  ;;  %v1793_v33 = vadd.f32 %v7637_v37, %v1595_v29  ;;  %v2787_v37 = vld [vmem:[#allocation3 + $0x680] sm:$0xff] }
 0x316   :  { %3073 = vmatpush.msrb.mxu1 %v2812_v45  ;;  %2874 = vmatpush.msra.mxu2 %v2787_v37 }
 0x317   :  { %v2051_v63 = vpop.f32.mrf.mxu2  ;;  %v1858_v62 = vadd.f32 %v7643_v18, %v1793_v33 }
 0x318   :  { %v2113_v9 = vpop.f32.mrf.mxu3  ;;  %2601 = vmatmul.f32.gmra.mxu0 %v7645_v31 }
 0x319   :  { %v2114_v56 = vadd.f32 %v2113_v9, %v2048_v61 }
 0x31a   :  { %v2246_v52 = vpop.f32.mrf.mxu1 }
 0x31b   :  { %v7904_v25 = vadd.f32 %v2114_v56, %v7641_v28  ;;  %v2247_v27 = vadd.f32 %v2246_v52, %v2181_v20  ;;  %v1598_v28 = vadd.f32 %v7448_v49, %v7443_v47  ;;  %v2788_v49 = vld [vmem:[#allocation3 + $0x688] sm:$0xff] }
 0x31c   :  { %2474 = vmatmul.f32.gmra.mxu2 %v7662_v11  ;;  %3004 = vmatpush.msrb.mxu0 %v2788_v49  ;;  %v10717_v56 = vld [vmem:[#allocation15_spill] sm:$0xff] }
 0x31d   :  { %v7907_v23 = vadd.f32 %v2247_v27, %v1858_v62  ;;  %5977 = vmatmul.msk.f32.gmra.mxu3 %vm1154_vm1, %v7664_v0  ;;  %5993 = vmatmul.msk.f32.gmra.mxu1 %vm1154_vm1, %v7664_v0  ;;  %v2184_v31 = vpop.f32.mrf.mxu0  ;;  %v1796_v17 = vadd.f32 %v7654_v2, %v1598_v28  ;;  %v2809_v2 = vld [vmem:[#allocation3 + $0x730] sm:$0xff] }
 0x31e   :  { %2944 = vmatpush.msrb.mxu3 %v2809_v2  ;;  %v10724_v2 = vld [vmem:[#allocation18_spill] sm:$0xff] }
 0x31f   :  { %v2054_v18 = vpop.f32.mrf.mxu2  ;;  %v1861_v0 = vadd.f32 %v7660_v32, %v1796_v17 }
 0x320   :  { %v2116_v57 = vpop.f32.mrf.mxu3  ;;  %2604 = vmatmul.f32.gmra.mxu0 %v7662_v11  ;;  %v2785_v11 = vld [vmem:[#allocation3 + $0x670] sm:$0xff] }
 0x321   :  { %v2117_v22 = vadd.f32 %v2116_v57, %v2051_v63  ;;  %2875 = vmatpush.msra.mxu2 %v2785_v11 }
 0x322   :  { %v2249_v61 = vpop.f32.mrf.mxu1 }
 0x323   :  { %v7919_v13 = vadd.f32 %v2117_v22, %v7658_v60  ;;  %v2250_v5 = vadd.f32 %v2249_v61, %v2184_v31  ;;  %v1601_v60 = vadd.f32 %v7460_v1, %v7455_v19  ;;  %v2786_v1 = vld [vmem:[#allocation3 + $0x678] sm:$0xff]  ;;  %v2807_v31 = vld [vmem:[#allocation3 + $0x720] sm:$0xff] }
 0x324   :  { %2477 = vmatmul.f32.gmra.mxu2 %v7679_v54  ;;  %3005 = vmatpush.msrb.mxu0 %v2786_v1  ;;  %v10722_v61 = vld [vmem:[#allocation26_spill] sm:$0xff] }
 0x325   :  { %v7922_v53 = vadd.f32 %v2250_v5, %v1861_v0  ;;  %5978 = vmatmul.msk.f32.gmra.mxu3 %vm1154_vm1, %v7681_v48  ;;  %5994 = vmatmul.msk.f32.gmra.mxu1 %vm1154_vm1, %v7681_v48  ;;  %v2187_v47 = vpop.f32.mrf.mxu0  ;;  %v1799_v10 = vadd.f32 %v7671_v7, %v1601_v60  ;;  %v2783_v7 = vld [vmem:[#allocation3 + $0x660] sm:$0xff]  ;;  %v10723_v5 = vld [vmem:[#allocation16_spill] sm:$0xff]  ;;  %v2782_v60 = vld [vmem:[#allocation3 + $0x658] sm:$0xff] }
 0x326   :  { %2876 = vmatpush.msra.mxu2 %v2783_v7  ;;  %2945 = vmatpush.msrb.mxu3 %v2807_v31 }
 0x327   :  { %v2057_v32 = vpop.f32.mrf.mxu2  ;;  %v1864_v48 = vadd.f32 %v7677_v35, %v1799_v10  ;;  %v10725_v10 = vld [vmem:[#allocation9_spill] sm:$0xff] }
 0x328   :  { %v2119_v51 = vpop.f32.mrf.mxu3  ;;  %2607 = vmatmul.f32.gmra.mxu0 %v7679_v54  ;;  %v2810_v54 = vld [vmem:[#allocation3 + $0x738] sm:$0xff] }
 0x329   :  { %v2120_v24 = vadd.f32 %v2119_v51, %v2054_v18  ;;  %3074 = vmatpush.msrb.mxu1 %v2810_v54  ;;  %v10721_v18 = vld [vmem:[#allocation29_spill] sm:$0xff]  ;;  %v2779_v51 = vld [vmem:[#allocation3 + $0x640] sm:$0xff] }
 0x32a   :  { %v2252_v20 = vpop.f32.mrf.mxu1 }
 0x32b   :  { %v7934_v41 = vadd.f32 %v2120_v24, %v7675_v34  ;;  %v2253_v38 = vadd.f32 %v2252_v20, %v2187_v47  ;;  %v1604_v34 = vadd.f32 %v7472_v3, %v7467_v36  ;;  %v10718_v36 = vld [vmem:[#allocation39_spill] sm:$0xff]  ;;  %v10726_v24 = vld [vmem:[#allocation21_spill] sm:$0xff] }
 0x32c   :  { %2480 = vmatmul.f32.gmra.mxu2 %v7696_v8  ;;  %v1610_v20 = vadd.f32 %v10726_v24, %v10725_v10 }
 0x32d   :  { %v7937_v30 = vadd.f32 %v2253_v38, %v1864_v48  ;;  %5979 = vmatmul.msk.f32.gmra.mxu3 %vm1154_vm1, %v7698_v50  ;;  %5995 = vmatmul.msk.f32.gmra.mxu1 %vm1154_vm1, %v7698_v50  ;;  %v2190_v19 = vpop.f32.mrf.mxu0  ;;  %v1802_v63 = vadd.f32 %v7688_v40, %v1604_v34  ;;  %v2781_v40 = vld [vmem:[#allocation3 + $0x650] sm:$0xff]  ;;  %v10728_v34 = vld [vmem:[#allocation33_spill] sm:$0xff] }
 0x32e   :  { %2877 = vmatpush.msra.mxu2 %v2781_v40 }
 0x32f   :  { %v2060_v35 = vpop.f32.mrf.mxu2  ;;  %v1867_v50 = vadd.f32 %v7694_v16, %v1802_v63  ;;  %v10719_v16 = vld [vmem:[#allocation27_spill] sm:$0xff] }
 0x330   :  { %v2122_v29 = vpop.f32.mrf.mxu3  ;;  %2610 = vmatmul.f32.gmra.mxu0 %v7696_v8  ;;  %v2784_v8 = vld [vmem:[#allocation3 + $0x668] sm:$0xff]  ;;  %v1607_v45 = vadd.f32 %v10720_v4, %v10719_v16  ;;  %2878 = vmatpush.msra.mxu2 %v2779_v51  ;;  %v10733_v4 = vld [vmem:[#allocation30_spill] sm:$0xff] }
 0x331   :  { %v2123_v9 = vadd.f32 %v2122_v29, %v2057_v32  ;;  %3006 = vmatpush.msrb.mxu0 %v2784_v8  ;;  %v2808_v32 = vld [vmem:[#allocation3 + $0x728] sm:$0xff]  ;;  %v10729_v29 = vld [vmem:[#allocation17_spill] sm:$0xff]  ;;  %v10732_v8 = vld [vmem:[#allocation20_spill] sm:$0xff] }
 0x332   :  { %v2255_v33 = vpop.f32.mrf.mxu1  ;;  %v1805_v57 = vadd.f32 %v10721_v18, %v1607_v45  ;;  %3075 = vmatpush.msrb.mxu1 %v2808_v32  ;;  %v10734_v18 = vld [vmem:[#allocation42_spill] sm:$0xff]  ;;  %v10738_v32 = vld [vmem:[#allocation32_spill] sm:$0xff] }
 0x333   :  { %v7949_v52 = vadd.f32 %v2123_v9, %v10717_v56  ;;  %v2256_v62 = vadd.f32 %v2255_v33, %v2190_v19  ;;  %3007 = vmatpush.msrb.mxu0 %v2782_v60  ;;  %v10727_v19 = vld [vmem:[#allocation40_spill] sm:$0xff]  ;;  %v2780_v56 = vld [vmem:[#allocation3 + $0x648] sm:$0xff] }
 0x334   :  { %2483 = vmatmul.f32.gmra.mxu2 %v7713_v12  ;;  %v1870_v0 = vadd.f32 %v10722_v61, %v1805_v57  ;;  %v1808_v1 = vadd.f32 %v10727_v19, %v1610_v20  ;;  %v10737_v60 = vld [vmem:[#allocation31_spill] sm:$0xff]  ;;  %v10739_v20 = vld [vmem:[#allocation34_spill] sm:$0xff] }
 0x335   :  { %v7952_v27 = vadd.f32 %v2256_v62, %v1867_v50  ;;  %5980 = vmatmul.msk.f32.gmra.mxu3 %vm1154_vm1, %v10718_v36  ;;  %5996 = vmatmul.msk.f32.gmra.mxu1 %vm1154_vm1, %v10718_v36  ;;  %v2193_v3 = vpop.f32.mrf.mxu0  ;;  %v10730_v50 = vld [vmem:[#allocation6_spill] sm:$0xff]  ;;  %v2777_v62 = vld [vmem:[#allocation3 + $0x630] sm:$0xff]  ;;  %v1616_v51 = vadd.f32 %v10738_v32, %v10737_v60  ;;  %v2772_v32 = vld [vmem:[#allocation3 + $0x608] sm:$0xff] }
 0x336   :  { %v2805_v36 = vld [vmem:[#allocation3 + $0x710] sm:$0xff]  ;;  %3008 = vmatpush.msrb.mxu0 %v2780_v56  ;;  %2879 = vmatpush.msra.mxu2 %v2777_v62  ;;  %v10742_v56 = vld [vmem:[#allocation11_spill] sm:$0xff] }
 0x337   :  { %v2063_v37 = vpop.f32.mrf.mxu2  ;;  %2946 = vmatpush.msrb.mxu3 %v2805_v36  ;;  %v10743_v62 = vld [vmem:[#allocation23_spill] sm:$0xff] }
 0x338   :  { %v2125_v28 = vpop.f32.mrf.mxu3  ;;  %2613 = vmatmul.f32.gmra.mxu0 %v7713_v12  ;;  %v1619_v36 = vadd.f32 %v10743_v62, %v10742_v56 }
 0x339   :  { %v2126_v17 = vadd.f32 %v2125_v28, %v2060_v35  ;;  %v1873_v35 = vadd.f32 %v10728_v34, %v1808_v1  ;;  %v10740_v1 = vld [vmem:[#allocation43_spill] sm:$0xff] }
 0x33a   :  { %v2258_v22 = vpop.f32.mrf.mxu1 }
 0x33b   :  { %v7964_v47 = vadd.f32 %v2126_v17, %v10723_v5  ;;  %v2259_v49 = vadd.f32 %v2258_v22, %v2193_v3  ;;  %v10731_v3 = vld [vmem:[#allocation10_spill] sm:$0xff]  ;;  %v10735_v17 = vld [vmem:[#allocation41_spill] sm:$0xff]  ;;  %v10736_v5 = vld [vmem:[#allocation44_spill] sm:$0xff] }
 0x33c   :  { %2486 = vmatmul.f32.gmra.mxu2 %v7730_v39  ;;  %v1613_v40 = vadd.f32 %v10732_v8, %v10731_v3 }
 0x33d   :  { %v7967_v11 = vadd.f32 %v2259_v49, %v1870_v0  ;;  %5981 = vmatmul.msk.f32.gmra.mxu3 %vm1154_vm1, %v10724_v2  ;;  %5997 = vmatmul.msk.f32.gmra.mxu1 %vm1154_vm1, %v10724_v2  ;;  %v2196_v12 = vpop.f32.mrf.mxu0  ;;  %v2778_v49 = vld [vmem:[#allocation3 + $0x638] sm:$0xff] }
 0x33e   :  { %v1811_v45 = vadd.f32 %v10733_v4, %v1613_v40  ;;  %v2806_v2 = vld [vmem:[#allocation3 + $0x718] sm:$0xff]  ;;  %3009 = vmatpush.msrb.mxu0 %v2778_v49  ;;  %v10748_v49 = vld [vmem:[#allocation12_spill] sm:$0xff] }
 0x33f   :  { %v2066_v48 = vpop.f32.mrf.mxu2  ;;  %3076 = vmatpush.msrb.mxu1 %v2806_v2  ;;  %v10744_v40 = vld [vmem:[#allocation45_spill] sm:$0xff]  ;;  %v10749_v2 = vld [vmem:[#allocation22_spill] sm:$0xff] }
 0x340   :  { %v2128_v38 = vpop.f32.mrf.mxu3  ;;  %2616 = vmatmul.f32.gmra.mxu0 %v7730_v39  ;;  %v1876_v57 = vadd.f32 %v10734_v18, %v1811_v45  ;;  %v10745_v45 = vld [vmem:[#allocation47_spill] sm:$0xff] }
 0x341   :  { %v2129_v54 = vadd.f32 %v2128_v38, %v2063_v37 }
 0x342   :  { %v2261_v7 = vpop.f32.mrf.mxu1 }
 0x343   :  { %v7979_v63 = vadd.f32 %v2129_v54, %v10729_v29  ;;  %v2262_v9 = vadd.f32 %v2261_v7, %v2196_v12  ;;  %v2775_v12 = vld [vmem:[#allocation3 + $0x620] sm:$0xff]  ;;  %v10741_v7 = vld [vmem:[#allocation7_spill] sm:$0xff] }
 0x344   :  { %2489 = vmatmul.f32.gmra.mxu2 %v7747_v44 }
 0x345   :  { %v7982_v33 = vadd.f32 %v2262_v9, %v1873_v35  ;;  %5982 = vmatmul.msk.f32.gmra.mxu3 %vm1154_vm1, %v10730_v50  ;;  %5998 = vmatmul.msk.f32.gmra.mxu1 %vm1154_vm1, %v10730_v50  ;;  %v2199_v39 = vpop.f32.mrf.mxu0  ;;  %v2776_v9 = vld [vmem:[#allocation3 + $0x628] sm:$0xff]  ;;  %v2773_v50 = vld [vmem:[#allocation3 + $0x610] sm:$0xff] }
 0x346   :  { %2880 = vmatpush.msra.mxu2 %v2775_v12  ;;  %3010 = vmatpush.msrb.mxu0 %v2776_v9  ;;  %v1622_v12 = vadd.f32 %v10749_v2, %v10748_v49  ;;  %v10754_v9 = vld [vmem:[#allocation35_spill] sm:$0xff]  ;;  %v10761_v2 = vld [vmem:[#allocation56_spill] sm:$0xff] }
 0x347   :  { %v2069_v31 = vpop.f32.mrf.mxu2 }
 0x348   :  { %v2131_v16 = vpop.f32.mrf.mxu3  ;;  %2619 = vmatmul.f32.gmra.mxu0 %v7747_v44  ;;  %2881 = vmatpush.msra.mxu2 %v2773_v50  ;;  %v10755_v50 = vld [vmem:[#allocation36_spill] sm:$0xff] }
 0x349   :  { %v2132_v37 = vadd.f32 %v2131_v16, %v2066_v48  ;;  %v1814_v48 = vadd.f32 %v10739_v20, %v1616_v51 }
 0x34a   :  { %v2264_v28 = vpop.f32.mrf.mxu1 }
 0x34b   :  { %v7994_v22 = vadd.f32 %v2132_v37, %v10735_v17  ;;  %v2265_v61 = vadd.f32 %v2264_v28, %v2199_v39  ;;  %v1879_v54 = vadd.f32 %v10740_v1, %v1814_v48  ;;  %v2803_v39 = vld [vmem:[#allocation3 + $0x700] sm:$0xff]  ;;  %v10752_v1 = vld [vmem:[#allocation49_spill] sm:$0xff] }
 0x34c   :  { %2492 = vmatmul.f32.gmra.mxu2 %v7764_v58  ;;  %2947 = vmatpush.msrb.mxu3 %v2803_v39  ;;  %v10746_v37 = vld [vmem:[#allocation46_spill] sm:$0xff]  ;;  %v1625_v39 = vadd.f32 %v10755_v50, %v10754_v9 }
 0x34d   :  { %v7997_v0 = vadd.f32 %v2265_v61, %v1876_v57  ;;  %5983 = vmatmul.msk.f32.gmra.mxu3 %vm1154_vm1, %v10736_v5  ;;  %5999 = vmatmul.msk.f32.gmra.mxu1 %vm1154_vm1, %v10736_v5  ;;  %v2202_v44 = vpop.f32.mrf.mxu0  ;;  %v2771_v57 = vld [vmem:[#allocation3 + $0x600] sm:$0xff]  ;;  %v10747_v61 = vld [vmem:[#allocation51_spill] sm:$0xff]  ;;  %v2774_v5 = vld [vmem:[#allocation3 + $0x618] sm:$0xff] }
 0x34e   :  { %3011 = vmatpush.msrb.mxu0 %v2774_v5  ;;  %2882 = vmatpush.msra.mxu2 %v2771_v57 }
 0x34f   :  { %v2072_v10 = vpop.f32.mrf.mxu2 }
 0x350   :  { %v2134_v24 = vpop.f32.mrf.mxu3  ;;  %2622 = vmatmul.f32.gmra.mxu0 %v7764_v58 }
 0x351   :  { %v2135_v38 = vadd.f32 %v2134_v24, %v2069_v31  ;;  %v1817_v31 = vadd.f32 %v10744_v40, %v1619_v36  ;;  %3012 = vmatpush.msrb.mxu0 %v2772_v32  ;;  %v10756_v36 = vld [vmem:[#allocation52_spill] sm:$0xff] }
 0x352   :  { %v2267_v19 = vpop.f32.mrf.mxu1 }
 0x353   :  { %v8009_v34 = vadd.f32 %v2135_v38, %v10741_v7  ;;  %v2268_v35 = vadd.f32 %v2267_v19, %v2202_v44  ;;  %v2804_v44 = vld [vmem:[#allocation3 + $0x708] sm:$0xff]  ;;  %v10751_v38 = vld [vmem:[#allocation50_spill] sm:$0xff] }
 0x354   :  { %2495 = vmatmul.f32.gmra.mxu2 %v7781_v15  ;;  %3077 = vmatpush.msrb.mxu1 %v2804_v44 }
 0x355   :  { %v8012_v29 = vadd.f32 %v2268_v35, %v1879_v54  ;;  %5984 = vmatmul.msk.f32.gmra.mxu3 %vm1154_vm1, %v7783_v21  ;;  %6000 = vmatmul.msk.f32.gmra.mxu1 %vm1154_vm1, %v7783_v21  ;;  %v2205_v58 = vpop.f32.mrf.mxu0  ;;  %v1882_v21 = vadd.f32 %v10745_v45, %v1817_v31  ;;  %v10757_v31 = vld [vmem:[#allocation54_spill] sm:$0xff] }
 0x357   :  { %v2075_v3 = vpop.f32.mrf.mxu2 }
 0x358   :  { %v2137_v8 = vpop.f32.mrf.mxu3  ;;  %2625 = vmatmul.f32.gmra.mxu0 %v7781_v15 }
 0x359   :  { %v2138_v16 = vadd.f32 %v2137_v8, %v2072_v10  ;;  %v10750_v10 = vld [vmem:[#allocation48_spill] sm:$0xff] }
 0x35a   :  { %v2270_v4 = vpop.f32.mrf.mxu1  ;;  %v1820_v24 = vadd.f32 %v10750_v10, %v1622_v12 }
 0x35b   :  { %v8024_v28 = vadd.f32 %v2138_v16, %v10746_v37  ;;  %v2271_v18 = vadd.f32 %v2270_v4, %v2205_v58  ;;  %v10753_v58 = vld [vmem:[#allocation55_spill] sm:$0xff]  ;;  %v10758_v4 = vld [vmem:[#allocation53_spill] sm:$0xff] }
 0x35c   :  { %2498 = vmatmul.f32.gmra.mxu2 %v7798_v6  ;;  %v1885_v19 = vadd.f32 %v10751_v38, %v1820_v24  ;;  %v6053_v37 = vld [vmem:[%s10552_s5 + $0x138] sm:$0xff]  ;;  %v8080_v38 = vld [vmem:[#allocation2 + $0x10] sm:$0xff] }
 0x35d   :  { %v8027_v17 = vadd.f32 %v2271_v18, %v1882_v21  ;;  %5985 = vmatmul.msk.f32.gmra.mxu3 %vm1154_vm1, %v10747_v61  ;;  %6001 = vmatmul.msk.f32.gmra.mxu1 %vm1154_vm1, %v10747_v61  ;;  %v2208_v15 = vpop.f32.mrf.mxu0  ;;  %v6061_v18 = vld [vmem:[%s10552_s5 + $0x178] sm:$0xff] }
 0x35e   :  { %3477 = vmatpush.msra.mxu3 %v6061_v18  ;;  %3404 = vmatpush.msrb.mxu2 %v6053_v37  ;;  %v10759_v61 = vld [vmem:[#allocation13_spill] sm:$0xff]  ;;  %v6051_v37 = vld [vmem:[%s10552_s5 + $0x128] sm:$0xff]  ;;  %v6060_v18 = vld [vmem:[%s10552_s5 + $0x170] sm:$0xff] }
 0x35f   :  { %v2078_v60 = vpop.f32.mrf.mxu2  ;;  %v10763_v24 = vld [vmem:[#allocation57_spill] sm:$0xff] }
 0x360   :  { %v2140_v51 = vpop.f32.mrf.mxu3  ;;  %2628 = vmatmul.f32.gmra.mxu0 %v7798_v6  ;;  %3478 = vmatpush.msra.mxu3 %v6060_v18  ;;  %v6049_v18 = vld [vmem:[%s10552_s5 + $0x118] sm:$0xff] }
 0x361   :  { %v2141_v20 = vadd.f32 %v2140_v51, %v2075_v3  ;;  %v1823_v3 = vadd.f32 %v10756_v36, %v1625_v39  ;;  %v10762_v51 = vld [vmem:[#allocation58_spill] sm:$0xff]  ;;  %v10767_v39 = vld [vmem:[#allocation59_spill] sm:$0xff] }
 0x362   :  { %v2273_v48 = vpop.f32.mrf.mxu1 }
 0x363   :  { %v8039_v54 = vadd.f32 %v2141_v20, %v10752_v1  ;;  %v2274_v7 = vadd.f32 %v2273_v48, %v2208_v15  ;;  %v1888_v16 = vadd.f32 %v10757_v31, %v1823_v3  ;;  %v10760_v15 = vld [vmem:[#allocation25_spill] sm:$0xff]  ;;  %v8093_v3 = vld [vmem:[#allocation2 + $0x128] sm:$0xff]  ;;  %v10769_v31 = vld [vmem:[#allocation60_spill] sm:$0xff] }
 0x364   :  { %2501 = vmatmul.f32.gmra.mxu2 %v7815_v42  ;;  %v1628_v5 = vadd.f32 %v10760_v15, %v10759_v61  ;;  %v10771_v61 = vld [vmem:[#allocation19_spill] sm:$0xff] }
 0x365   :  { %v8042_v35 = vadd.f32 %v2274_v7, %v1885_v19  ;;  %5986 = vmatmul.msk.f32.gmra.mxu3 %vm1154_vm1, %v10753_v58  ;;  %6002 = vmatmul.msk.f32.gmra.mxu1 %vm1154_vm1, %v10753_v58  ;;  %v2211_v6 = vpop.f32.mrf.mxu0  ;;  %v10765_v7 = vld [vmem:[#allocation14_spill] sm:$0xff]  ;;  %v10766_v58 = vld [vmem:[#allocation24_spill] sm:$0xff] }
 0x366   :  { %v1826_v12 = vadd.f32 %v10761_v2, %v1628_v5 }
 0x367   :  { %v2081_v56 = vpop.f32.mrf.mxu2 }
 0x368   :  { %v2143_v62 = vpop.f32.mrf.mxu3  ;;  %2631 = vmatmul.f32.gmra.mxu0 %v7815_v42  ;;  %v1891_v10 = vadd.f32 %v10762_v51, %v1826_v12  ;;  %v10773_v12 = vld [vmem:[#allocation63_spill] sm:$0xff] }
 0x369   :  { %v2144_v8 = vadd.f32 %v2143_v62, %v2078_v60 }
 0x36a   :  { %v2276_v40 = vpop.f32.mrf.mxu1 }
 0x36b   :  { %v8054_v45 = vadd.f32 %v2144_v8, %v10758_v4  ;;  %v2277_v21 = vadd.f32 %v2276_v40, %v2211_v6  ;;  %v1631_v6 = vadd.f32 %v10766_v58, %v10765_v7  ;;  %v10768_v8 = vld [vmem:[#allocation61_spill] sm:$0xff]  ;;  %v10776_v7 = vld [vmem:[#allocation64_spill] sm:$0xff] }
 0x36c   :  { %2504 = vmatmul.f32.gmra.mxu2 %v7832_v43 }
 0x36d   :  { %v8063_v42 = vadd.f32 %v2277_v21, %v1888_v16  ;;  %5987 = vmatmul.msk.f32.gmra.mxu3 %vm1154_vm1, %v7834_v55  ;;  %6003 = vmatmul.msk.f32.gmra.mxu1 %vm1154_vm1, %v7834_v55  ;;  %v2214_v57 = vpop.f32.mrf.mxu0  ;;  %v6052_v55 = vld [vmem:[%s10552_s5 + $0x130] sm:$0xff]  ;;  %v2738_v21 = vld [vmem:[#allocation2 + $0x40] sm:$0xff] }
 0x36e   :  { %3405 = vmatpush.msrb.mxu2 %v6052_v55 }
 0x36f   :  { %v2084_v44 = vpop.f32.mrf.mxu2 }
 0x370   :  { %v2146_v49 = vpop.f32.mrf.mxu3  ;;  %2634 = vmatmul.f32.gmra.mxu0 %v7832_v43  ;;  %v10764_v43 = vld [vmem:[#allocation62_spill] sm:$0xff]  ;;  %3406 = vmatpush.msrb.mxu2 %v6051_v37 }
 0x371   :  { %v2147_v60 = vadd.f32 %v2146_v49, %v2081_v56  ;;  %v1829_v56 = vadd.f32 %v10767_v39, %v1631_v6  ;;  %v10772_v49 = vld [vmem:[#allocation37_spill] sm:$0xff]  ;;  %v6050_v39 = vld [vmem:[%s10552_s5 + $0x120] sm:$0xff] }
 0x372   :  { %v2279_v32 = vpop.f32.mrf.mxu1  ;;  %3407 = vmatpush.msrb.mxu2 %v6050_v39  ;;  %v2742_v37 = vld [vmem:[#allocation2 + $0x60] sm:$0xff] }
 0x373   :  { %v8075_v20 = vadd.f32 %v2147_v60, %v10763_v24  ;;  %v2280_v48 = vadd.f32 %v2279_v32, %v2214_v57  ;;  %v1894_v40 = vadd.f32 %v10768_v8, %v1829_v56  ;;  %v10770_v57 = vld [vmem:[#allocation8_spill] sm:$0xff]  ;;  %v10774_v60 = vld [vmem:[#allocation65_spill] sm:$0xff]  ;;  %v10775_v24 = vld [vmem:[#allocation38_spill] sm:$0xff] }
 0x374   :  { %2507 = vmatmul.f32.gmra.mxu2 %v8080_v38  ;;  %v1586_v15 = vadd.f32 %v10771_v61, %v10770_v57  ;;  %v2238_v32 = vadd.f32 %v10774_v60, %v10773_v12  ;;  %v2739_v56 = vld [vmem:[#allocation2 + $0x48] sm:$0xff]  ;;  %v2741_v61 = vld [vmem:[#allocation2 + $0x58] sm:$0xff]  ;;  %v6058_v39 = vld [vmem:[%s10552_s5 + $0x160] sm:$0xff] }
 0x375   :  { %v8083_v19 = vadd.f32 %v2280_v48, %v1891_v10  ;;  %5988 = vmatmul.msk.f32.gmra.mxu3 %vm1154_vm1, %v10764_v43  ;;  %6004 = vmatmul.msk.f32.gmra.mxu1 %vm1154_vm1, %v10764_v43  ;;  %v2217_v1 = vpop.f32.mrf.mxu0  ;;  %v6059_v57 = vld [vmem:[%s10552_s5 + $0x168] sm:$0xff] }
 0x376   :  { %v1784_v2 = vadd.f32 %v10772_v49, %v1586_v15  ;;  %3479 = vmatpush.msra.mxu3 %v6059_v57  ;;  %3408 = vmatpush.msrb.mxu2 %v6049_v18  ;;  %v2748_v18 = vld [vmem:[#allocation2 + $0x90] sm:$0xff]  ;;  %v2747_v57 = vld [vmem:[#allocation2 + $0x88] sm:$0xff] }
 0x377   :  { %v2087_v9 = vpop.f32.mrf.mxu2 }
 0x378   :  { %v2149_v50 = vpop.f32.mrf.mxu3  ;;  %2637 = vmatmul.f32.gmra.mxu0 %v8080_v38  ;;  %v1849_v48 = vadd.f32 %v10775_v24, %v1784_v2  ;;  %3480 = vmatpush.msra.mxu3 %v6058_v39  ;;  %v2751_v39 = vld [vmem:[#allocation2 + $0xa8] sm:$0xff] }
 0x379   :  { %v2150_v62 = vadd.f32 %v2149_v50, %v2084_v44  ;;  %v2740_v50 = vld [vmem:[#allocation2 + $0x50] sm:$0xff] }
 0x37a   :  { %v2282_v36 = vpop.f32.mrf.mxu1 }
 0x37b   :  { %v8097_v16 = vadd.f32 %v2150_v62, %v10769_v31  ;;  %v2283_v4 = vadd.f32 %v2282_v36, %v2217_v1  ;;  %v2286_v1 = vadd.f32 %v2238_v32, %v1849_v48 }
 0x37c   :  { %2883 = vmatmul.f32.vlgmr.msra.gmra.mxu2 %v2738_v21 }
 0x37d   :  { %v8107_v5 = vadd.f32 %v2283_v4, %v1894_v40  ;;  %5989 = vmatmul.msk.f32.gmra.mxu3 %vm1154_vm1, %v8093_v3  ;;  %6005 = vmatmul.msk.f32.gmra.mxu1 %vm1154_vm1, %v8093_v3  ;;  %v2593_v44 = vpop.f32.mrf.mxu0 }
 0x37f   :  { %v2463_v51 = vpop.f32.mrf.mxu2 }
 0x380   :  { %v2152_v10 = vpop.f32.mrf.mxu3  ;;  %3013 = vmatmul.f32.vlgmr.msrb.gmra.mxu0 %v2738_v21 }
 0x381   :  { %v2153_v55 = vadd.f32 %v2152_v10, %v2087_v9  ;;  %v2743_v10 = vld [vmem:[#allocation2 + $0x68] sm:$0xff] }
 0x382   :  { %v2658_v43 = vpop.f32.mrf.mxu1 }
 0x383   :  { %v8118_v58 = vadd.f32 %v2153_v55, %v10776_v7  ;;  %v2659_v6 = vadd.f32 %v2658_v43, %v2593_v44 }
 0x384   :  { %2886 = vmatmul.f32.gmra.mxu2 %v2740_v50 }
 0x385   :  { %v8123_v62 = vadd.f32 %v2659_v6, %v2286_v1  ;;  %6006 = vmatmul.msk.f32.vlgmr.msrb.gmra.mxu3 %vm1154_vm1, %v2739_v56  ;;  %6022 = vmatmul.msk.f32.vlgmr.msrb.gmra.mxu1 %vm1154_vm1, %v2739_v56  ;;  %v2596_v9 = vpop.f32.mrf.mxu0  ;;  %v2745_v56 = vld [vmem:[#allocation2 + $0x78] sm:$0xff] }
 0x387   :  { %v2466_v36 = vpop.f32.mrf.mxu2 }
 0x388   :  { %v2528_v8 = vpop.f32.mrf.mxu3  ;;  %3016 = vmatmul.f32.gmra.mxu0 %v2740_v50  ;;  %v2746_v50 = vld [vmem:[#allocation2 + $0x80] sm:$0xff] }
 0x389   :  { %v2529_v40 = vadd.f32 %v2528_v8, %v2463_v51  ;;  %v2744_v51 = vld [vmem:[#allocation2 + $0x70] sm:$0xff] }
 0x38a   :  { %v2661_v31 = vpop.f32.mrf.mxu1 }
 0x38b   :  { %v8128_v4 = vadd.f32 %v2529_v40, %v7874_v46  ;;  %v2662_v21 = vadd.f32 %v2661_v31, %v2596_v9 }
 0x38c   :  { %2889 = vmatmul.f32.gmra.mxu2 %v2742_v37 }
 0x38d   :  { %v8137_v15 = vadd.f32 %v2662_v21, %v7877_v59  ;;  %6007 = vmatmul.msk.f32.gmra.mxu3 %vm1154_vm1, %v2741_v61  ;;  %6023 = vmatmul.msk.f32.gmra.mxu1 %vm1154_vm1, %v2741_v61  ;;  %v2599_v46 = vpop.f32.mrf.mxu0  ;;  %v6048_v59 = vld [vmem:[%s10552_s5 + $0x110] sm:$0xff] }
 0x38e   :  { %3409 = vmatpush.msrb.mxu2 %v6048_v59  ;;  %v6057_v59 = vld [vmem:[%s10552_s5 + $0x158] sm:$0xff] }
 0x38f   :  { %v2469_v44 = vpop.f32.mrf.mxu2  ;;  %3481 = vmatpush.msra.mxu3 %v6057_v59  ;;  %v6042_v59 = vld [vmem:[%s10552_s5 + $0xe0] sm:$0xff] }
 0x390   :  { %v2531_v49 = vpop.f32.mrf.mxu3  ;;  %3019 = vmatmul.f32.gmra.mxu0 %v2742_v37 }
 0x391   :  { %v2532_v2 = vadd.f32 %v2531_v49, %v2466_v36 }
 0x392   :  { %v2664_v12 = vpop.f32.mrf.mxu1 }
 0x393   :  { %v8142_v60 = vadd.f32 %v2532_v2, %v7889_v14  ;;  %v2665_v32 = vadd.f32 %v2664_v12, %v2599_v46 }
 0x394   :  { %2892 = vmatmul.f32.gmra.mxu2 %v2744_v51 }
 0x395   :  { %v8148_v24 = vadd.f32 %v2665_v32, %v7892_v26  ;;  %6008 = vmatmul.msk.f32.gmra.mxu3 %vm1154_vm1, %v2743_v10  ;;  %6024 = vmatmul.msk.f32.gmra.mxu1 %vm1154_vm1, %v2743_v10  ;;  %v2602_v48 = vpop.f32.mrf.mxu0  ;;  %v6047_v26 = vld [vmem:[%s10552_s5 + $0x108] sm:$0xff]  ;;  %v2749_v10 = vld [vmem:[#allocation2 + $0x98] sm:$0xff] }
 0x396   :  { %3410 = vmatpush.msrb.mxu2 %v6047_v26  ;;  %v2752_v26 = vld [vmem:[#allocation2 + $0xb0] sm:$0xff] }
 0x397   :  { %v2472_v55 = vpop.f32.mrf.mxu2 }
 0x398   :  { %v2534_v14 = vpop.f32.mrf.mxu3  ;;  %3022 = vmatmul.f32.gmra.mxu0 %v2744_v51  ;;  %v2750_v51 = vld [vmem:[#allocation2 + $0xa0] sm:$0xff] }
 0x399   :  { %v2535_v43 = vadd.f32 %v2534_v14, %v2469_v44 }
 0x39a   :  { %v2667_v1 = vpop.f32.mrf.mxu1 }
 0x39b   :  { %v8153_v7 = vadd.f32 %v2535_v43, %v7904_v25  ;;  %v2668_v6 = vadd.f32 %v2667_v1, %v2602_v48 }
 0x39c   :  { %2895 = vmatmul.f32.gmra.mxu2 %v2746_v50 }
 0x39d   :  { %v8162_v9 = vadd.f32 %v2668_v6, %v7907_v23  ;;  %6009 = vmatmul.msk.f32.gmra.mxu3 %vm1154_vm1, %v2745_v56  ;;  %6025 = vmatmul.msk.f32.gmra.mxu1 %vm1154_vm1, %v2745_v56  ;;  %v2605_v25 = vpop.f32.mrf.mxu0  ;;  %v6046_v23 = vld [vmem:[%s10552_s5 + $0x100] sm:$0xff] }
 0x39e   :  { %3411 = vmatpush.msrb.mxu2 %v6046_v23  ;;  %v6056_v23 = vld [vmem:[%s10552_s5 + $0x150] sm:$0xff] }
 0x39f   :  { %v2475_v36 = vpop.f32.mrf.mxu2  ;;  %3482 = vmatpush.msra.mxu3 %v6056_v23 }
 0x3a0   :  { %v2537_v8 = vpop.f32.mrf.mxu3  ;;  %3025 = vmatmul.f32.gmra.mxu0 %v2746_v50 }
 0x3a1   :  { %v2538_v40 = vadd.f32 %v2537_v8, %v2472_v55 }
 0x3a2   :  { %v2670_v31 = vpop.f32.mrf.mxu1 }
 0x3a3   :  { %v8167_v21 = vadd.f32 %v2538_v40, %v7919_v13  ;;  %v2671_v37 = vadd.f32 %v2670_v31, %v2605_v25 }
 0x3a4   :  { %2898 = vmatmul.f32.gmra.mxu2 %v2748_v18 }
 0x3a5   :  { %v8173_v61 = vadd.f32 %v2671_v37, %v7922_v53  ;;  %6010 = vmatmul.msk.f32.gmra.mxu3 %vm1154_vm1, %v2747_v57  ;;  %6026 = vmatmul.msk.f32.gmra.mxu1 %vm1154_vm1, %v2747_v57  ;;  %v2608_v46 = vpop.f32.mrf.mxu0  ;;  %v6045_v53 = vld [vmem:[%s10552_s5 + $0xf8] sm:$0xff] }
 0x3a6   :  { %3412 = vmatpush.msrb.mxu2 %v6045_v53  ;;  %v2753_v57 = vld [vmem:[#allocation2 + $0xb8] sm:$0xff]  ;;  %v2756_v53 = vld [vmem:[#allocation2 + $0xd0] sm:$0xff] }
 0x3a7   :  { %v2478_v44 = vpop.f32.mrf.mxu2 }
 0x3a8   :  { %v2540_v13 = vpop.f32.mrf.mxu3  ;;  %3028 = vmatmul.f32.gmra.mxu0 %v2748_v18  ;;  %v2754_v18 = vld [vmem:[#allocation2 + $0xc0] sm:$0xff] }
 0x3a9   :  { %v2541_v49 = vadd.f32 %v2540_v13, %v2475_v36 }
 0x3aa   :  { %v2673_v2 = vpop.f32.mrf.mxu1 }
 0x3ab   :  { %v8178_v12 = vadd.f32 %v2541_v49, %v7934_v41  ;;  %v2674_v32 = vadd.f32 %v2673_v2, %v2608_v46 }
 0x3ac   :  { %2901 = vmatmul.f32.gmra.mxu2 %v2750_v51 }
 0x3ad   :  { %v8187_v48 = vadd.f32 %v2674_v32, %v7937_v30  ;;  %6011 = vmatmul.msk.f32.gmra.mxu3 %vm1154_vm1, %v2749_v10  ;;  %6027 = vmatmul.msk.f32.gmra.mxu1 %vm1154_vm1, %v2749_v10  ;;  %v2611_v41 = vpop.f32.mrf.mxu0  ;;  %v6044_v30 = vld [vmem:[%s10552_s5 + $0xf0] sm:$0xff]  ;;  %v3320_v32 = vld [vmem:[%s10552_s5 + $0x78] sm:$0xff]  ;;  %v2755_v10 = vld [vmem:[#allocation2 + $0xc8] sm:$0xff] }
 0x3ae   :  { %3413 = vmatpush.msrb.mxu2 %v6044_v30  ;;  %3537 = vmatpush.msra.mxu0 %v3320_v32  ;;  %v2758_v30 = vld [vmem:[#allocation2 + $0xe0] sm:$0xff] }
 0x3af   :  { %v2481_v55 = vpop.f32.mrf.mxu2  ;;  %v3313_v32 = vld [vmem:[%s10552_s5 + $0x40] sm:$0xff] }
 0x3b0   :  { %v2543_v14 = vpop.f32.mrf.mxu3  ;;  %3031 = vmatmul.f32.gmra.mxu0 %v2750_v51 }
 0x3b1   :  { %v2544_v43 = vadd.f32 %v2543_v14, %v2478_v44  ;;  %v3318_v14 = vld [vmem:[%s10552_s5 + $0x68] sm:$0xff] }
 0x3b2   :  { %v2676_v1 = vpop.f32.mrf.mxu1 }
 0x3b3   :  { %v8192_v6 = vadd.f32 %v2544_v43, %v7949_v52  ;;  %v2677_v50 = vadd.f32 %v2676_v1, %v2611_v41  ;;  %v3319_v41 = vld [vmem:[%s10552_s5 + $0x70] sm:$0xff] }
 0x3b4   :  { %2904 = vmatmul.f32.gmra.mxu2 %v2752_v26  ;;  %3538 = vmatpush.msra.mxu0 %v3319_v41 }
 0x3b5   :  { %v8198_v56 = vadd.f32 %v2677_v50, %v7952_v27  ;;  %6012 = vmatmul.msk.f32.gmra.mxu3 %vm1154_vm1, %v2751_v39  ;;  %6028 = vmatmul.msk.f32.gmra.mxu1 %vm1154_vm1, %v2751_v39  ;;  %v2614_v25 = vpop.f32.mrf.mxu0  ;;  %v6043_v27 = vld [vmem:[%s10552_s5 + $0xe8] sm:$0xff]  ;;  %v3317_v50 = vld [vmem:[%s10552_s5 + $0x60] sm:$0xff] }
 0x3b6   :  { %3414 = vmatpush.msrb.mxu2 %v6043_v27  ;;  %3539 = vmatpush.msra.mxu0 %v3318_v14  ;;  %v3327_v14 = vld [vmem:[%s10552_s5 + $0xb0] sm:$0xff] }
 0x3b7   :  { %v2484_v36 = vpop.f32.mrf.mxu2 }
 0x3b8   :  { %v2546_v52 = vpop.f32.mrf.mxu3  ;;  %3034 = vmatmul.f32.gmra.mxu0 %v2752_v26  ;;  %3415 = vmatpush.msrb.mxu2 %v6042_v59  ;;  %v3328_v59 = vld [vmem:[%s10552_s5 + $0xb8] sm:$0xff] }
 0x3b9   :  { %v2547_v8 = vadd.f32 %v2546_v52, %v2481_v55  ;;  %v6055_v52 = vld [vmem:[%s10552_s5 + $0x148] sm:$0xff]  ;;  %3540 = vmatpush.msra.mxu0 %v3317_v50  ;;  %3610 = vmatpush.msra.mxu1 %v3328_v59  ;;  %v2762_v50 = vld [vmem:[#allocation2 + $0x100] sm:$0xff]  ;;  %v3307_v59 = vld [vmem:[%s10552_s5 + $0x10] sm:$0xff] }
 0x3ba   :  { %v2679_v40 = vpop.f32.mrf.mxu1  ;;  %3483 = vmatpush.msra.mxu3 %v6055_v52  ;;  %v3310_v52 = vld [vmem:[%s10552_s5 + $0x28] sm:$0xff] }
 0x3bb   :  { %v8203_v31 = vadd.f32 %v2547_v8, %v7964_v47  ;;  %v2680_v37 = vadd.f32 %v2679_v40, %v2614_v25  ;;  %v3316_v8 = vld [vmem:[%s10552_s5 + $0x58] sm:$0xff]  ;;  %3611 = vmatpush.msra.mxu1 %v3327_v14  ;;  %v3306_v14 = vld [vmem:[%s10552_s5 + $0x8] sm:$0xff] }
 0x3bc   :  { %2907 = vmatmul.f32.gmra.mxu2 %v2754_v18  ;;  %v2757_v40 = vld [vmem:[#allocation2 + $0xd8] sm:$0xff]  ;;  %3541 = vmatpush.msra.mxu0 %v3316_v8 }
 0x3bd   :  { %v8212_v46 = vadd.f32 %v2680_v37, %v7967_v11  ;;  %6013 = vmatmul.msk.f32.gmra.mxu3 %vm1154_vm1, %v2753_v57  ;;  %6029 = vmatmul.msk.f32.gmra.mxu1 %vm1154_vm1, %v2753_v57  ;;  %v2617_v47 = vpop.f32.mrf.mxu0  ;;  %v3314_v57 = vld [vmem:[%s10552_s5 + $0x48] sm:$0xff]  ;;  %v2761_v8 = vld [vmem:[#allocation2 + $0xf8] sm:$0xff] }
 0x3bf   :  { %v2487_v44 = vpop.f32.mrf.mxu2 }
 0x3c0   :  { %v2549_v13 = vpop.f32.mrf.mxu3  ;;  %3037 = vmatmul.f32.gmra.mxu0 %v2754_v18  ;;  %v3315_v18 = vld [vmem:[%s10552_s5 + $0x50] sm:$0xff] }
 0x3c1   :  { %v2550_v49 = vadd.f32 %v2549_v13, %v2484_v36  ;;  %v6041_v36 = vld [vmem:[%s10552_s5 + $0xd8] sm:$0xff]  ;;  %3542 = vmatpush.msra.mxu0 %v3315_v18 }
 0x3c2   :  { %v2682_v2 = vpop.f32.mrf.mxu1  ;;  %3416 = vmatpush.msrb.mxu2 %v6041_v36  ;;  %v6054_v36 = vld [vmem:[%s10552_s5 + $0x140] sm:$0xff]  ;;  %v8311_v18 = vld [vmem:[#allocation2 + $0x138] sm:$0xff] }
 0x3c3   :  { %v8220_v51 = vadd.f32 %v2550_v49, %v7979_v63  ;;  %v2683_v11 = vadd.f32 %v2682_v2, %v2617_v47  ;;  %v2760_v49 = vld [vmem:[#allocation2 + $0xf0] sm:$0xff]  ;;  %3543 = vmatpush.msra.mxu0 %v3314_v57  ;;  %3484 = vmatpush.msra.mxu3 %v6054_v36  ;;  %3268 = vst.msk [vmem:[#allocation2 + $0x138] sm:$0xff] %vm1154_vm1, %v8080_v38  ;;  %v2765_v36 = vld [vmem:[#allocation2 + $0x118] sm:$0xff] }
 0x3c4   :  { %2910 = vmatmul.f32.gmra.mxu2 %v2756_v53  ;;  %v6040_v2 = vld [vmem:[%s10552_s5 + $0xd0] sm:$0xff] }
 0x3c5   :  { %v8229_v55 = vadd.f32 %v2683_v11, %v7982_v33  ;;  %6014 = vmatmul.msk.f32.gmra.mxu3 %vm1154_vm1, %v2755_v10  ;;  %6030 = vmatmul.msk.f32.gmra.mxu1 %vm1154_vm1, %v2755_v10  ;;  %v2620_v63 = vpop.f32.mrf.mxu0  ;;  %v2759_v11 = vld [vmem:[#allocation2 + $0xe8] sm:$0xff]  ;;  %v3312_v10 = vld [vmem:[%s10552_s5 + $0x38] sm:$0xff] }
 0x3c6   :  { %3417 = vmatpush.msrb.mxu2 %v6040_v2  ;;  %3544 = vmatpush.msra.mxu0 %v3313_v32 }
 0x3c7   :  { %v2490_v43 = vpop.f32.mrf.mxu2 }
 0x3c8   :  { %v2552_v1 = vpop.f32.mrf.mxu3  ;;  %3040 = vmatmul.f32.gmra.mxu0 %v2756_v53 }
 0x3c9   :  { %v2553_v33 = vadd.f32 %v2552_v1, %v2487_v44  ;;  %3545 = vmatpush.msra.mxu0 %v3312_v10  ;;  %v3322_v10 = vld [vmem:[%s10552_s5 + $0x88] sm:$0xff] }
 0x3ca   :  { %v2685_v26 = vpop.f32.mrf.mxu1 }
 0x3cb   :  { %v8240_v39 = vadd.f32 %v2553_v33, %v7994_v22  ;;  %v2686_v25 = vadd.f32 %v2685_v26, %v2620_v63  ;;  %v3326_v33 = vld [vmem:[%s10552_s5 + $0xa8] sm:$0xff] }
 0x3cc   :  { %2913 = vmatmul.f32.gmra.mxu2 %v2758_v30  ;;  %3612 = vmatpush.msra.mxu1 %v3326_v33 }
 0x3cd   :  { %v8252_v22 = vadd.f32 %v2686_v25, %v7997_v0  ;;  %6015 = vmatmul.msk.f32.gmra.mxu3 %vm1154_vm1, %v2757_v40  ;;  %6031 = vmatmul.msk.f32.gmra.mxu1 %vm1154_vm1, %v2757_v40  ;;  %v2623_v37 = vpop.f32.mrf.mxu0  ;;  %v6039_v25 = vld [vmem:[%s10552_s5 + $0xc8] sm:$0xff] }
 0x3ce   :  { %3418 = vmatpush.msrb.mxu2 %v6039_v25 }
 0x3cf   :  { %v2493_v27 = vpop.f32.mrf.mxu2 }
 0x3d0   :  { %v2555_v23 = vpop.f32.mrf.mxu3  ;;  %3043 = vmatmul.f32.gmra.mxu0 %v2758_v30 }
 0x3d1   :  { %v2556_v0 = vadd.f32 %v2555_v23, %v2490_v43 }
 0x3d2   :  { %v2688_v47 = vpop.f32.mrf.mxu1 }
 0x3d3   :  { %v8263_v44 = vadd.f32 %v2556_v0, %v8009_v34  ;;  %v2689_v13 = vadd.f32 %v2688_v47, %v2623_v37  ;;  %v3308_v0 = vld [vmem:[%s10552_s5 + $0x18] sm:$0xff]  ;;  %v3323_v47 = vld [vmem:[%s10552_s5 + $0x90] sm:$0xff] }
 0x3d4   :  { %2916 = vmatmul.f32.gmra.mxu2 %v2760_v49 }
 0x3d5   :  { %v8272_v53 = vadd.f32 %v2689_v13, %v8012_v29  ;;  %6016 = vmatmul.msk.f32.gmra.mxu3 %vm1154_vm1, %v2759_v11  ;;  %6032 = vmatmul.msk.f32.gmra.mxu1 %vm1154_vm1, %v2759_v11  ;;  %v2626_v34 = vpop.f32.mrf.mxu0  ;;  %v3311_v29 = vld [vmem:[%s10552_s5 + $0x30] sm:$0xff]  ;;  %v6038_v13 = vld [vmem:[%s10552_s5 + $0xc0] sm:$0xff] }
 0x3d6   :  { %3546 = vmatpush.msra.mxu0 %v3311_v29  ;;  %3419 = vmatpush.msrb.mxu2 %v6038_v13  ;;  %v3321_v29 = vld [vmem:[%s10552_s5 + $0x80] sm:$0xff] }
 0x3d7   :  { %v2496_v41 = vpop.f32.mrf.mxu2 }
 0x3d8   :  { %v2558_v63 = vpop.f32.mrf.mxu3  ;;  %3046 = vmatmul.f32.gmra.mxu0 %v2760_v49 }
 0x3d9   :  { %v2559_v43 = vadd.f32 %v2558_v63, %v2493_v27  ;;  %3547 = vmatpush.msra.mxu0 %v3310_v52  ;;  %v3309_v27 = vld [vmem:[%s10552_s5 + $0x20] sm:$0xff] }
 0x3da   :  { %v2691_v1 = vpop.f32.mrf.mxu1 }
 0x3db   :  { %v8292_v26 = vadd.f32 %v2559_v43, %v8024_v28  ;;  %v2692_v30 = vadd.f32 %v2691_v1, %v2626_v34  ;;  %v3325_v28 = vld [vmem:[%s10552_s5 + $0xa0] sm:$0xff]  ;;  %3548 = vmatpush.msra.mxu0 %v3309_v27  ;;  %v2764_v34 = vld [vmem:[#allocation2 + $0x110] sm:$0xff] }
 0x3dc   :  { %2919 = vmatmul.f32.gmra.mxu2 %v2762_v50  ;;  %3613 = vmatpush.msra.mxu1 %v3325_v28 }
 0x3dd   :  { %v8307_v40 = vadd.f32 %v2692_v30, %v8027_v17  ;;  %6017 = vmatmul.msk.f32.gmra.mxu3 %vm1154_vm1, %v2761_v8  ;;  %6033 = vmatmul.msk.f32.gmra.mxu1 %vm1154_vm1, %v2761_v8  ;;  %v2629_v37 = vpop.f32.mrf.mxu0  ;;  %v3324_v17 = vld [vmem:[%s10552_s5 + $0x98] sm:$0xff] }
 0x3de   :  { %3614 = vmatpush.msra.mxu1 %v3324_v17  ;;  %3549 = vmatpush.msra.mxu0 %v3308_v0  ;;  %v6117_v17 = vld [vmem:[%s10552_s5 + $0x238] sm:$0xff] }
 0x3df   :  { %v2499_v23 = vpop.f32.mrf.mxu2  ;;  %3845 = vmatpush.msrb.mxu3 %v6117_v17  ;;  %v8421_v17 = vld [vmem:[#allocation2 + $0x28] sm:$0xff] }
 0x3e0   :  { %v2561_v57 = vpop.f32.mrf.mxu3  ;;  %3049 = vmatmul.f32.gmra.mxu0 %v2762_v50  ;;  %3615 = vmatpush.msra.mxu1 %v3323_v47 }
 0x3e1   :  { %v2562_v49 = vadd.f32 %v2561_v57, %v2496_v41  ;;  %v2763_v41 = vld [vmem:[#allocation2 + $0x108] sm:$0xff]  ;;  %3550 = vmatpush.msra.mxu0 %v3307_v59 }
 0x3e2   :  { %v2694_v2 = vpop.f32.mrf.mxu1  ;;  %3616 = vmatpush.msra.mxu1 %v3322_v10 }
 0x3e3   :  { %v8331_v32 = vadd.f32 %v2562_v49, %v8039_v54  ;;  %v2695_v11 = vadd.f32 %v2694_v2, %v2629_v37  ;;  %3551 = vmatpush.msra.mxu0 %v3306_v14 }
 0x3e4   :  { %2922 = vmatmul.f32.gmra.mxu2 %v2764_v34  ;;  %3617 = vmatpush.msra.mxu1 %v3321_v29  ;;  %v6116_v29 = vld [vmem:[%s10552_s5 + $0x230] sm:$0xff] }
 0x3e5   :  { %v8340_v63 = vadd.f32 %v2695_v11, %v8042_v35  ;;  %6018 = vmatmul.msk.f32.gmra.mxu3 %vm1154_vm1, %v2763_v41  ;;  %6034 = vmatmul.msk.f32.gmra.mxu1 %vm1154_vm1, %v2763_v41  ;;  %v2632_v54 = vpop.f32.mrf.mxu0  ;;  %v3305_v35 = vld [vmem:[%s10552_s5] sm:$0xff] }
 0x3e6   :  { %3552 = vmatpush.msra.mxu0 %v3305_v35  ;;  %3846 = vmatpush.msrb.mxu3 %v6116_v29 }
 0x3e7   :  { %v2502_v43 = vpop.f32.mrf.mxu2 }
 0x3e8   :  { %v2564_v1 = vpop.f32.mrf.mxu3  ;;  %3052 = vmatmul.f32.gmra.mxu0 %v2764_v34 }
 0x3e9   :  { %v2565_v50 = vadd.f32 %v2564_v1, %v2499_v23 }
 0x3ea   :  { %v2697_v33 = vpop.f32.mrf.mxu1 }
 0x3eb   :  { %v8354_v30 = vadd.f32 %v2565_v50, %v8054_v45  ;;  %v2698_v25 = vadd.f32 %v2697_v33, %v2632_v54  ;;  %v6109_v45 = vld [vmem:[%s10552_s5 + $0x1f8] sm:$0xff] }
 0x3ec   :  { %2925 = vmatmul.f32.gmra.mxu2 %v8080_v38 }
 0x3ed   :  { %v8358_v52 = vadd.f32 %v2698_v25, %v8063_v42  ;;  %6019 = vmatmul.msk.f32.gmra.mxu3 %vm1154_vm1, %v2765_v36  ;;  %6035 = vmatmul.msk.f32.gmra.mxu1 %vm1154_vm1, %v2765_v36  ;;  %v2635_v8 = vpop.f32.mrf.mxu0 }
 0x3ee   :  { %3772 = vmatpush.msra.mxu2 %v6109_v45  ;;  %v6106_v45 = vld [vmem:[%s10552_s5 + $0x1e0] sm:$0xff] }
 0x3ef   :  { %v2505_v28 = vpop.f32.mrf.mxu2 }
 0x3f0   :  { %v2567_v37 = vpop.f32.mrf.mxu3  ;;  %3055 = vmatmul.f32.gmra.mxu0 %v8080_v38 }
 0x3f1   :  { %v2568_v27 = vadd.f32 %v2567_v37, %v2502_v43  ;;  %v3274_v43 = vld [vmem:[#allocation2 + $0x8] sm:$0xff] }
 0x3f2   :  { %v2700_v42 = vpop.f32.mrf.mxu1 }
 0x3f3   :  { %v8370_v23 = vadd.f32 %v2568_v27, %v8075_v20  ;;  %v2701_v57 = vadd.f32 %v2700_v42, %v2635_v8  ;;  %v6108_v20 = vld [vmem:[%s10552_s5 + $0x1f0] sm:$0xff] }
 0x3f4   :  { %2928 = vmatmul.f32.gmra.mxu2 %v8080_v38 }
 0x3f5   :  { %v8374_v0 = vadd.f32 %v2701_v57, %v8083_v19  ;;  %6020 = vmatmul.msk.f32.gmra.mxu3 %vm1154_vm1, %v8093_v3  ;;  %6036 = vmatmul.msk.f32.gmra.mxu1 %vm1154_vm1, %v8093_v3  ;;  %v2638_v47 = vpop.f32.mrf.mxu0 }
 0x3f6   :  { %3773 = vmatpush.msra.mxu2 %v6108_v20 }
 0x3f7   :  { %v2508_v13 = vpop.f32.mrf.mxu2 }
 0x3f8   :  { %v2570_v49 = vpop.f32.mrf.mxu3  ;;  %3058 = vmatmul.f32.gmra.mxu0 %v8080_v38 }
 0x3f9   :  { %v2571_v2 = vadd.f32 %v2570_v49, %v2505_v28 }
 0x3fa   :  { %v2703_v11 = vpop.f32.mrf.mxu1 }
 0x3fb   :  { %v8385_v19 = vadd.f32 %v2571_v2, %v8097_v16  ;;  %v2704_v34 = vadd.f32 %v2703_v11, %v2638_v47  ;;  %v3159_v16 = vld [vmem:[%s10551_s4] sm:$0x3]  ;;  %s6360_s4 = smov 64  }
 0x3fc   :  { %3420 = vmatmul.f32.vlgmr.msrb.gmra.mxu2 %v8080_v38  ;;  %v8408_v50 = vperm.slane %v3159_v16, 1  ;;  %v8416_v27 = vperm.slane %v3159_v16, 0 }
 0x3fd   :  { %v8389_v3 = vadd.f32 %v2704_v34, %v8107_v5  ;;  %6021 = vmatmul.msk.f32.gmra.mxu3 %vm1154_vm1, %v8311_v18  ;;  %6037 = vmatmul.msk.f32.gmra.mxu1 %vm1154_vm1, %v8311_v18  ;;  %v3014_v59 = vpop.f32.mrf.mxu0  ;;  %v6107_v5 = vld [vmem:[%s10552_s5 + $0x1e8] sm:$0xff]  ;;  %v3276_v18 = vld [vmem:[#allocation2 + $0x18] sm:$0xff] }
 0x3fe   :  { %3774 = vmatpush.msra.mxu2 %v6107_v5 }
 0x3ff   :  { %v2884_v10 = vpop.f32.mrf.mxu2 }
 0x400   :  { %v2573_v41 = vpop.f32.mrf.mxu3  ;;  %3553 = vmatmul.f32.vlgmr.msra.gmra.mxu0 %v8080_v38  ;;  %3775 = vmatpush.msra.mxu2 %v6106_v45 }
 0x401   :  { %v2574_v54 = vadd.f32 %v2573_v41, %v2508_v13 }
 0x402   :  { %v3079_v14 = vpop.f32.mrf.mxu1 }
 0x403   :  { %v8406_v1 = vadd.f32 %v2574_v54, %v8118_v58  ;;  %v3080_v35 = vadd.f32 %v3079_v14, %v3014_v59 }
 0x404   :  { %3423 = vmatmul.f32.gmra.mxu2 %v8080_v38 }
 0x405   :  { %v3128_v33 = vadd.f32 %v3080_v35, %v8123_v62  ;;  %6062 = vmatmul.msk.f32.vlgmr.msra.gmra.mxu3 %vm1154_vm1, %v3276_v18  ;;  %6078 = vmatmul.msk.f32.vlgmr.msra.gmra.mxu1 %vm1154_vm1, %v3274_v43  ;;  %v3017_v25 = vpop.f32.mrf.mxu0 }
 0x407   :  { %v3166_v36 = vadd.f32 %v8408_v50, %v3128_v33  ;;  %v2887_v8 = vpop.f32.mrf.mxu2 }
 0x408   :  { %v2949_v28 = vpop.f32.mrf.mxu3  ;;  %3556 = vmatmul.f32.gmra.mxu0 %v8080_v38 }
 0x409   :  { %v3198_v58 = vmax.f32 %v3166_v36, 0.0  ;;  %v2950_v37 = vadd.f32 %v2949_v28, %v2884_v10  ;;  %v6115_v10 = vld [vmem:[%s10552_s5 + $0x228] sm:$0xff] }
 0x40a   :  { %v3082_v62 = vpop.f32.mrf.mxu1  ;;  %3847 = vmatpush.msrb.mxu3 %v6115_v10 }
 0x40b   :  { %3236 = vst.msk [vmem:[#allocation2 + $0x38] sm:$0xff] %vm1154_vm1, %v3198_v58  ;;  %v3127_v42 = vadd.f32 %v2950_v37, %v8128_v4  ;;  %v3083_v57 = vadd.f32 %v3082_v62, %v3017_v25 }
 0x40d   :  { %v3165_v47 = vadd.f32 %v8416_v27, %v3127_v42  ;;  %v3130_v13 = vadd.f32 %v3083_v57, %v8137_v15  ;;  %6063 = vmatmul.msk.f32.gmra.mxu3 %vm1154_vm1, %v8421_v17  ;;  %6079 = vmatmul.msk.f32.gmra.mxu1 %vm1154_vm1, %v3276_v18  ;;  %v3020_v49 = vpop.f32.mrf.mxu0  ;;  %v6105_v15 = vld [vmem:[%s10552_s5 + $0x1d8] sm:$0xff] }
 0x40e   :  { %3776 = vmatpush.msra.mxu2 %v6105_v15 }
 0x40f   :  { %v8430_v2 = vmax.f32 %v3165_v47, 0.0  ;;  %v3168_v20 = vadd.f32 %v8408_v50, %v3130_v13  ;;  %v2890_v11 = vpop.f32.mrf.mxu2 }
 0x410   :  { %v2952_v34 = vpop.f32.mrf.mxu3  ;;  %3559 = vmatmul.f32.gmra.mxu0 %v8080_v38 }
 0x411   :  { %3235 = vst [vmem:[#allocation2 + $0x30] sm:$0xff] %v8430_v2  ;;  %v3200_v4 = vmax.f32 %v3168_v20, 0.0  ;;  %v2953_v59 = vadd.f32 %v2952_v34, %v2887_v8  ;;  %3426 = vmatmul.f32.gmra.mxu2 %v8430_v2  ;;  %v6114_v20 = vld [vmem:[%s10552_s5 + $0x220] sm:$0xff] }
 0x412   :  { %v3085_v41 = vpop.f32.mrf.mxu1  ;;  %v8444_v54 = vld [vmem:[#allocation2 + $0x38] sm:$0xff]  ;;  %3848 = vmatpush.msrb.mxu3 %v6114_v20 }
 0x413   :  { %3238 = vst.msk [vmem:[#allocation2 + $0x48] sm:$0xff] %vm1154_vm1, %v3200_v4  ;;  %v3129_v38 = vadd.f32 %v2953_v59, %v8142_v60  ;;  %v3086_v16 = vadd.f32 %v3085_v41, %v3020_v49 }
 0x415   :  { %v3167_v5 = vadd.f32 %v8416_v27, %v3129_v38  ;;  %v3132_v29 = vadd.f32 %v3086_v16, %v8148_v24  ;;  %6064 = vmatmul.msk.f32.gmra.mxu3 %vm1154_vm1, %v8444_v54  ;;  %6080 = vmatmul.msk.f32.gmra.mxu1 %vm1154_vm1, %v8421_v17  ;;  %v3023_v14 = vpop.f32.mrf.mxu0  ;;  %v6104_v24 = vld [vmem:[%s10552_s5 + $0x1d0] sm:$0xff] }
 0x416   :  { %3777 = vmatpush.msra.mxu2 %v6104_v24 }
 0x417   :  { %v8452_v18 = vmax.f32 %v3167_v5, 0.0  ;;  %v3170_v43 = vadd.f32 %v8408_v50, %v3132_v29  ;;  %v2893_v35 = vpop.f32.mrf.mxu2 }
 0x418   :  { %v2955_v60 = vpop.f32.mrf.mxu3  ;;  %3562 = vmatmul.f32.gmra.mxu0 %v8430_v2 }
 0x419   :  { %3237 = vst [vmem:[#allocation2 + $0x40] sm:$0xff] %v8452_v18  ;;  %v3202_v33 = vmax.f32 %v3170_v43, 0.0  ;;  %v2956_v25 = vadd.f32 %v2955_v60, %v2890_v11  ;;  %3429 = vmatmul.f32.gmra.mxu2 %v8452_v18 }
 0x41a   :  { %v3088_v36 = vpop.f32.mrf.mxu1  ;;  %v8463_v58 = vld [vmem:[#allocation2 + $0x48] sm:$0xff] }
 0x41b   :  { %3240 = vst.msk [vmem:[#allocation2 + $0x58] sm:$0xff] %vm1154_vm1, %v3202_v33  ;;  %v3131_v8 = vadd.f32 %v2956_v25, %v8153_v7  ;;  %v3089_v28 = vadd.f32 %v3088_v36, %v3023_v14 }
 0x41d   :  { %v3169_v37 = vadd.f32 %v8416_v27, %v3131_v8  ;;  %v3134_v45 = vadd.f32 %v3089_v28, %v8162_v9  ;;  %6065 = vmatmul.msk.f32.gmra.mxu3 %vm1154_vm1, %v8463_v58  ;;  %6081 = vmatmul.msk.f32.gmra.mxu1 %vm1154_vm1, %v8444_v54  ;;  %v3026_v62 = vpop.f32.mrf.mxu0  ;;  %v6103_v9 = vld [vmem:[%s10552_s5 + $0x1c8] sm:$0xff] }
 0x41e   :  { %3778 = vmatpush.msra.mxu2 %v6103_v9 }
 0x41f   :  { %v8471_v42 = vmax.f32 %v3169_v37, 0.0  ;;  %v3172_v57 = vadd.f32 %v8408_v50, %v3134_v45  ;;  %v2896_v47 = vpop.f32.mrf.mxu2 }
 0x420   :  { %v2958_v7 = vpop.f32.mrf.mxu3  ;;  %3565 = vmatmul.f32.gmra.mxu0 %v8452_v18 }
 0x421   :  { %3239 = vst [vmem:[#allocation2 + $0x50] sm:$0xff] %v8471_v42  ;;  %v3204_v13 = vmax.f32 %v3172_v57, 0.0  ;;  %v2959_v49 = vadd.f32 %v2958_v7, %v2893_v35  ;;  %3432 = vmatmul.f32.gmra.mxu2 %v8471_v42  ;;  %v6113_v57 = vld [vmem:[%s10552_s5 + $0x218] sm:$0xff] }
 0x422   :  { %v3091_v11 = vpop.f32.mrf.mxu1  ;;  %v8485_v59 = vld [vmem:[#allocation2 + $0x58] sm:$0xff]  ;;  %3849 = vmatpush.msrb.mxu3 %v6113_v57  ;;  %v6148_v57 = vld [vmem:[%s10552_s5 + $0x2b0] sm:$0xff] }
 0x423   :  { %3242 = vst.msk [vmem:[#allocation2 + $0x68] sm:$0xff] %vm1154_vm1, %v3204_v13  ;;  %v3133_v34 = vadd.f32 %v2959_v49, %v8167_v21  ;;  %v3092_v4 = vadd.f32 %v3091_v11, %v3026_v62 }
 0x425   :  { %v3171_v15 = vadd.f32 %v8416_v27, %v3133_v34  ;;  %v3136_v10 = vadd.f32 %v3092_v4, %v8173_v61  ;;  %6066 = vmatmul.msk.f32.gmra.mxu3 %vm1154_vm1, %v8485_v59  ;;  %6082 = vmatmul.msk.f32.gmra.mxu1 %vm1154_vm1, %v8463_v58  ;;  %v3029_v41 = vpop.f32.mrf.mxu0  ;;  %v6102_v61 = vld [vmem:[%s10552_s5 + $0x1c0] sm:$0xff] }
 0x426   :  { %3779 = vmatpush.msra.mxu2 %v6102_v61 }
 0x427   :  { %v8493_v38 = vmax.f32 %v3171_v15, 0.0  ;;  %v3174_v16 = vadd.f32 %v8408_v50, %v3136_v10  ;;  %v2899_v5 = vpop.f32.mrf.mxu2 }
 0x428   :  { %v2961_v21 = vpop.f32.mrf.mxu3  ;;  %3568 = vmatmul.f32.gmra.mxu0 %v8471_v42 }
 0x429   :  { %3241 = vst [vmem:[#allocation2 + $0x60] sm:$0xff] %v8493_v38  ;;  %v3206_v29 = vmax.f32 %v3174_v16, 0.0  ;;  %v2962_v14 = vadd.f32 %v2961_v21, %v2896_v47  ;;  %3435 = vmatmul.f32.gmra.mxu2 %v8493_v38 }
 0x42a   :  { %v3094_v43 = vpop.f32.mrf.mxu1  ;;  %v8504_v33 = vld [vmem:[#allocation2 + $0x68] sm:$0xff] }
 0x42b   :  { %3244 = vst.msk [vmem:[#allocation2 + $0x78] sm:$0xff] %vm1154_vm1, %v3206_v29  ;;  %v3135_v35 = vadd.f32 %v2962_v14, %v8178_v12  ;;  %v3095_v60 = vadd.f32 %v3094_v43, %v3029_v41 }
 0x42d   :  { %v3173_v25 = vadd.f32 %v8416_v27, %v3135_v35  ;;  %v3138_v24 = vadd.f32 %v3095_v60, %v8187_v48  ;;  %6067 = vmatmul.msk.f32.gmra.mxu3 %vm1154_vm1, %v8504_v33  ;;  %6083 = vmatmul.msk.f32.gmra.mxu1 %vm1154_vm1, %v8485_v59  ;;  %v3032_v36 = vpop.f32.mrf.mxu0  ;;  %v6101_v48 = vld [vmem:[%s10552_s5 + $0x1b8] sm:$0xff] }
 0x42e   :  { %3780 = vmatpush.msra.mxu2 %v6101_v48 }
 0x42f   :  { %v8512_v8 = vmax.f32 %v3173_v25, 0.0  ;;  %v3176_v28 = vadd.f32 %v8408_v50, %v3138_v24  ;;  %v2902_v37 = vpop.f32.mrf.mxu2 }
 0x430   :  { %v2964_v12 = vpop.f32.mrf.mxu3  ;;  %3571 = vmatmul.f32.gmra.mxu0 %v8493_v38 }
 0x431   :  { %3243 = vst [vmem:[#allocation2 + $0x70] sm:$0xff] %v8512_v8  ;;  %v3208_v45 = vmax.f32 %v3176_v28, 0.0  ;;  %v2965_v62 = vadd.f32 %v2964_v12, %v2899_v5  ;;  %3438 = vmatmul.f32.gmra.mxu2 %v8512_v8  ;;  %v6112_v28 = vld [vmem:[%s10552_s5 + $0x210] sm:$0xff]  ;;  %v6149_v12 = vld [vmem:[%s10552_s5 + $0x2b8] sm:$0xff] }
 0x432   :  { %v3097_v47 = vpop.f32.mrf.mxu1  ;;  %v8526_v49 = vld [vmem:[#allocation2 + $0x78] sm:$0xff]  ;;  %3850 = vmatpush.msrb.mxu3 %v6112_v28  ;;  %4023 = vmatpush.msrb.mxu0 %v6149_v12 }
 0x433   :  { %3246 = vst.msk [vmem:[#allocation2 + $0x88] sm:$0xff] %vm1154_vm1, %v3208_v45  ;;  %v3137_v7 = vadd.f32 %v2965_v62, %v8192_v6  ;;  %v3098_v13 = vadd.f32 %v3097_v47, %v3032_v36  ;;  %v6097_v28 = vld [vmem:[%s10552_s5 + $0x198] sm:$0xff] }
 0x434   :  { %4024 = vmatpush.msrb.mxu0 %v6148_v57  ;;  %v6142_v57 = vld [vmem:[%s10552_s5 + $0x280] sm:$0xff] }
 0x435   :  { %v3175_v9 = vadd.f32 %v8416_v27, %v3137_v7  ;;  %v3140_v20 = vadd.f32 %v3098_v13, %v8198_v56  ;;  %6068 = vmatmul.msk.f32.gmra.mxu3 %vm1154_vm1, %v8526_v49  ;;  %6084 = vmatmul.msk.f32.gmra.mxu1 %vm1154_vm1, %v8504_v33  ;;  %v3035_v11 = vpop.f32.mrf.mxu0  ;;  %v6100_v56 = vld [vmem:[%s10552_s5 + $0x1b0] sm:$0xff] }
 0x436   :  { %3781 = vmatpush.msra.mxu2 %v6100_v56 }
 0x437   :  { %v8534_v34 = vmax.f32 %v3175_v9, 0.0  ;;  %v3178_v4 = vadd.f32 %v8408_v50, %v3140_v20  ;;  %v2905_v15 = vpop.f32.mrf.mxu2 }
 0x438   :  { %v2967_v6 = vpop.f32.mrf.mxu3  ;;  %3574 = vmatmul.f32.gmra.mxu0 %v8512_v8 }
 0x439   :  { %3245 = vst [vmem:[#allocation2 + $0x80] sm:$0xff] %v8534_v34  ;;  %v3210_v10 = vmax.f32 %v3178_v4, 0.0  ;;  %v2968_v41 = vadd.f32 %v2967_v6, %v2902_v37  ;;  %3441 = vmatmul.f32.gmra.mxu2 %v8534_v34 }
 0x43a   :  { %v3100_v16 = vpop.f32.mrf.mxu1  ;;  %v8545_v29 = vld [vmem:[#allocation2 + $0x88] sm:$0xff] }
 0x43b   :  { %3248 = vst.msk [vmem:[#allocation2 + $0x98] sm:$0xff] %vm1154_vm1, %v3210_v10  ;;  %v3139_v5 = vadd.f32 %v2968_v41, %v8203_v31  ;;  %v3101_v21 = vadd.f32 %v3100_v16, %v3035_v11  ;;  %v6098_v10 = vld [vmem:[%s10552_s5 + $0x1a0] sm:$0xff] }
 0x43d   :  { %v3177_v14 = vadd.f32 %v8416_v27, %v3139_v5  ;;  %v3142_v61 = vadd.f32 %v3101_v21, %v8212_v46  ;;  %6069 = vmatmul.msk.f32.gmra.mxu3 %vm1154_vm1, %v8545_v29  ;;  %6085 = vmatmul.msk.f32.gmra.mxu1 %vm1154_vm1, %v8526_v49  ;;  %v3038_v43 = vpop.f32.mrf.mxu0  ;;  %v6099_v46 = vld [vmem:[%s10552_s5 + $0x1a8] sm:$0xff]  ;;  %v6145_v5 = vld [vmem:[%s10552_s5 + $0x298] sm:$0xff] }
 0x43e   :  { %3782 = vmatpush.msra.mxu2 %v6099_v46 }
 0x43f   :  { %v8553_v35 = vmax.f32 %v3177_v14, 0.0  ;;  %v3180_v60 = vadd.f32 %v8408_v50, %v3142_v61  ;;  %v2908_v25 = vpop.f32.mrf.mxu2 }
 0x440   :  { %v2970_v31 = vpop.f32.mrf.mxu3  ;;  %3577 = vmatmul.f32.gmra.mxu0 %v8534_v34  ;;  %3783 = vmatpush.msra.mxu2 %v6098_v10 }
 0x441   :  { %3247 = vst [vmem:[#allocation2 + $0x90] sm:$0xff] %v8553_v35  ;;  %v3212_v24 = vmax.f32 %v3180_v60, 0.0  ;;  %v2971_v36 = vadd.f32 %v2970_v31, %v2905_v15  ;;  %3444 = vmatmul.f32.gmra.mxu2 %v8553_v35 }
 0x442   :  { %v3103_v37 = vpop.f32.mrf.mxu1  ;;  %v8570_v48 = vld [vmem:[#allocation2 + $0x98] sm:$0xff]  ;;  %3784 = vmatpush.msra.mxu2 %v6097_v28 }
 0x443   :  { %3250 = vst.msk [vmem:[#allocation2 + $0xa8] sm:$0xff] %vm1154_vm1, %v3212_v24  ;;  %v3141_v45 = vadd.f32 %v2971_v36, %v8220_v51  ;;  %v3104_v62 = vadd.f32 %v3103_v37, %v3038_v43  ;;  %v6147_v51 = vld [vmem:[%s10552_s5 + $0x2a8] sm:$0xff] }
 0x444   :  { %4025 = vmatpush.msrb.mxu0 %v6147_v51  ;;  %v6111_v37 = vld [vmem:[%s10552_s5 + $0x208] sm:$0xff] }
 0x445   :  { %v3179_v47 = vadd.f32 %v8416_v27, %v3141_v45  ;;  %v3144_v7 = vadd.f32 %v3104_v62, %v8229_v55  ;;  %6070 = vmatmul.msk.f32.gmra.mxu3 %vm1154_vm1, %v8570_v48  ;;  %6086 = vmatmul.msk.f32.gmra.mxu1 %vm1154_vm1, %v8545_v29  ;;  %v3041_v13 = vpop.f32.mrf.mxu0  ;;  %v6146_v55 = vld [vmem:[%s10552_s5 + $0x2a0] sm:$0xff] }
 0x446   :  { %4026 = vmatpush.msrb.mxu0 %v6146_v55  ;;  %3851 = vmatpush.msrb.mxu3 %v6111_v37 }
 0x447   :  { %v8584_v9 = vmax.f32 %v3179_v47, 0.0  ;;  %v3182_v20 = vadd.f32 %v8408_v50, %v3144_v7  ;;  %v2911_v11 = vpop.f32.mrf.mxu2 }
 0x448   :  { %v2973_v4 = vpop.f32.mrf.mxu3  ;;  %3580 = vmatmul.f32.gmra.mxu0 %v8553_v35 }
 0x449   :  { %3249 = vst [vmem:[#allocation2 + $0xa0] sm:$0xff] %v8584_v9  ;;  %v3214_v15 = vmax.f32 %v3182_v20, 0.0  ;;  %v2974_v6 = vadd.f32 %v2973_v4, %v2908_v25  ;;  %3447 = vmatmul.f32.gmra.mxu2 %v8584_v9  ;;  %4027 = vmatpush.msrb.mxu0 %v6145_v5  ;;  %v6157_v20 = vld [vmem:[%s10552_s5 + $0x2f8] sm:$0xff]  ;;  %v6155_v5 = vld [vmem:[%s10552_s5 + $0x2e8] sm:$0xff] }
 0x44a   :  { %v3106_v41 = vpop.f32.mrf.mxu1  ;;  %v8601_v21 = vld [vmem:[#allocation2 + $0xa8] sm:$0xff]  ;;  %4096 = vmatpush.msrb.mxu1 %v6157_v20 }
 0x44b   :  { %3252 = vst.msk [vmem:[#allocation2 + $0xb8] sm:$0xff] %vm1154_vm1, %v3214_v15  ;;  %v3143_v56 = vadd.f32 %v2974_v6, %v8240_v39  ;;  %v3107_v16 = vadd.f32 %v3106_v41, %v3041_v13  ;;  %v6144_v39 = vld [vmem:[%s10552_s5 + $0x290] sm:$0xff]  ;;  %v6151_v20 = vld [vmem:[%s10552_s5 + $0x2c8] sm:$0xff] }
 0x44c   :  { %4028 = vmatpush.msrb.mxu0 %v6144_v39  ;;  %v6140_v15 = vld [vmem:[%s10552_s5 + $0x270] sm:$0xff] }
 0x44d   :  { %v3181_v14 = vadd.f32 %v8416_v27, %v3143_v56  ;;  %v3146_v61 = vadd.f32 %v3107_v16, %v8252_v22  ;;  %6071 = vmatmul.msk.f32.gmra.mxu3 %vm1154_vm1, %v8601_v21  ;;  %6087 = vmatmul.msk.f32.gmra.mxu1 %vm1154_vm1, %v8570_v48  ;;  %v3044_v43 = vpop.f32.mrf.mxu0  ;;  %v6143_v22 = vld [vmem:[%s10552_s5 + $0x288] sm:$0xff]  ;;  %v6156_v6 = vld [vmem:[%s10552_s5 + $0x2f0] sm:$0xff] }
 0x44e   :  { %4029 = vmatpush.msrb.mxu0 %v6143_v22  ;;  %v6096_v56 = vld [vmem:[%s10552_s5 + $0x190] sm:$0xff]  ;;  %4097 = vmatpush.msrb.mxu1 %v6156_v6  ;;  %v6095_v22 = vld [vmem:[%s10552_s5 + $0x188] sm:$0xff]  ;;  %v6150_v6 = vld [vmem:[%s10552_s5 + $0x2c0] sm:$0xff] }
 0x44f   :  { %v8612_v60 = vmax.f32 %v3181_v14, 0.0  ;;  %v3184_v25 = vadd.f32 %v8408_v50, %v3146_v61  ;;  %v2914_v31 = vpop.f32.mrf.mxu2  ;;  %3785 = vmatpush.msra.mxu2 %v6096_v56  ;;  %v6135_v56 = vld [vmem:[%s10552_s5 + $0x248] sm:$0xff] }
 0x450   :  { %v2976_v24 = vpop.f32.mrf.mxu3  ;;  %3583 = vmatmul.f32.gmra.mxu0 %v8584_v9  ;;  %4098 = vmatpush.msrb.mxu1 %v6155_v5 }
 0x451   :  { %3251 = vst [vmem:[#allocation2 + $0xb0] sm:$0xff] %v8612_v60  ;;  %v3216_v36 = vmax.f32 %v3184_v25, 0.0  ;;  %v2977_v46 = vadd.f32 %v2976_v24, %v2911_v11  ;;  %3450 = vmatmul.f32.gmra.mxu2 %v8612_v60  ;;  %4030 = vmatpush.msrb.mxu0 %v6142_v57  ;;  %v6154_v25 = vld [vmem:[%s10552_s5 + $0x2e0] sm:$0xff] }
 0x452   :  { %v3109_v12 = vpop.f32.mrf.mxu1  ;;  %v8632_v47 = vld [vmem:[#allocation2 + $0xb8] sm:$0xff]  ;;  %4099 = vmatpush.msrb.mxu1 %v6154_v25  ;;  %3786 = vmatpush.msra.mxu2 %v6095_v22  ;;  %v6094_v57 = vld [vmem:[%s10552_s5 + $0x180] sm:$0xff] }
 0x453   :  { %3254 = vst.msk [vmem:[#allocation2 + $0xc8] sm:$0xff] %vm1154_vm1, %v3216_v36  ;;  %v3145_v45 = vadd.f32 %v2977_v46, %v8263_v44  ;;  %v3110_v62 = vadd.f32 %v3109_v12, %v3044_v43  ;;  %v6141_v44 = vld [vmem:[%s10552_s5 + $0x278] sm:$0xff]  ;;  %v6139_v43 = vld [vmem:[%s10552_s5 + $0x268] sm:$0xff]  ;;  %v6138_v36 = vld [vmem:[%s10552_s5 + $0x260] sm:$0xff] }
 0x454   :  { %4031 = vmatpush.msrb.mxu0 %v6141_v44  ;;  %3787 = vmatpush.msra.mxu2 %v6094_v57 }
 0x455   :  { %v3183_v7 = vadd.f32 %v8416_v27, %v3145_v45  ;;  %v3148_v13 = vadd.f32 %v3110_v62, %v8272_v53  ;;  %6072 = vmatmul.msk.f32.gmra.mxu3 %vm1154_vm1, %v8632_v47  ;;  %6088 = vmatmul.msk.f32.gmra.mxu1 %vm1154_vm1, %v8601_v21  ;;  %v3047_v51 = vpop.f32.mrf.mxu0  ;;  %v6137_v45 = vld [vmem:[%s10552_s5 + $0x258] sm:$0xff]  ;;  %v6152_v62 = vld [vmem:[%s10552_s5 + $0x2d0] sm:$0xff] }
 0x456   :  { %4032 = vmatpush.msrb.mxu0 %v6140_v15 }
 0x457   :  { %v8646_v11 = vmax.f32 %v3183_v7, 0.0  ;;  %v3186_v53 = vadd.f32 %v8408_v50, %v3148_v13  ;;  %v2917_v4 = vpop.f32.mrf.mxu2 }
 0x458   :  { %v2979_v55 = vpop.f32.mrf.mxu3  ;;  %3586 = vmatmul.f32.gmra.mxu0 %v8612_v60 }
 0x459   :  { %3253 = vst [vmem:[#allocation2 + $0xc0] sm:$0xff] %v8646_v11  ;;  %v3218_v10 = vmax.f32 %v3186_v53, 0.0  ;;  %v2980_v41 = vadd.f32 %v2979_v55, %v2914_v31  ;;  %3453 = vmatmul.f32.gmra.mxu2 %v8646_v11  ;;  %4033 = vmatpush.msrb.mxu0 %v6139_v43 }
 0x45a   :  { %v3112_v16 = vpop.f32.mrf.mxu1  ;;  %v8669_v39 = vld [vmem:[#allocation2 + $0xc8] sm:$0xff] }
 0x45b   :  { %3256 = vst.msk [vmem:[#allocation2 + $0xd8] sm:$0xff] %vm1154_vm1, %v3218_v10  ;;  %v3147_v14 = vadd.f32 %v2980_v41, %v8292_v26  ;;  %v3113_v61 = vadd.f32 %v3112_v16, %v3047_v51  ;;  %v6110_v51 = vld [vmem:[%s10552_s5 + $0x200] sm:$0xff]  ;;  %4034 = vmatpush.msrb.mxu0 %v6138_v36 }
 0x45c   :  { %3852 = vmatpush.msrb.mxu3 %v6110_v51 }
 0x45d   :  { %v3185_v31 = vadd.f32 %v8416_v27, %v3147_v14  ;;  %v3150_v24 = vadd.f32 %v3113_v61, %v8307_v40  ;;  %6073 = vmatmul.msk.f32.gmra.mxu3 %vm1154_vm1, %v8669_v39  ;;  %6089 = vmatmul.msk.f32.gmra.mxu1 %vm1154_vm1, %v8632_v47  ;;  %v3050_v26 = vpop.f32.mrf.mxu0  ;;  %v6153_v40 = vld [vmem:[%s10552_s5 + $0x2d8] sm:$0xff] }
 0x45e   :  { %4100 = vmatpush.msrb.mxu1 %v6153_v40  ;;  %4035 = vmatpush.msrb.mxu0 %v6137_v45 }
 0x45f   :  { %v8689_v46 = vmax.f32 %v3185_v31, 0.0  ;;  %v3188_v28 = vadd.f32 %v8408_v50, %v3150_v24  ;;  %v2920_v37 = vpop.f32.mrf.mxu2  ;;  %v6189_v31 = vld [vmem:[%s10552_s5 + $0x378] sm:$0xff] }
 0x460   :  { %v2982_v12 = vpop.f32.mrf.mxu3  ;;  %3589 = vmatmul.f32.gmra.mxu0 %v8646_v11  ;;  %4101 = vmatpush.msrb.mxu1 %v6152_v62  ;;  %v6197_v24 = vld [vmem:[%s10552_s5 + $0x3b8] sm:$0xff] }
 0x461   :  { %3255 = vst [vmem:[#allocation2 + $0xd0] sm:$0xff] %v8689_v46  ;;  %v3220_v7 = vmax.f32 %v3188_v28, 0.0  ;;  %v2983_v13 = vadd.f32 %v2982_v12, %v2917_v4  ;;  %3456 = vmatmul.f32.gmra.mxu2 %v8689_v46  ;;  %v6136_v4 = vld [vmem:[%s10552_s5 + $0x250] sm:$0xff]  ;;  %4347 = vmatpush.msra.mxu3 %v6197_v24 }
 0x462   :  { %v3115_v44 = vpop.f32.mrf.mxu1  ;;  %v8715_v15 = vld [vmem:[#allocation2 + $0xd8] sm:$0xff]  ;;  %4102 = vmatpush.msrb.mxu1 %v6151_v20  ;;  %4036 = vmatpush.msrb.mxu0 %v6136_v4 }
 0x463   :  { %3258 = vst.msk [vmem:[#allocation2 + $0xe8] sm:$0xff] %vm1154_vm1, %v3220_v7  ;;  %v3149_v53 = vadd.f32 %v2983_v13, %v8331_v32  ;;  %v3116_v55 = vadd.f32 %v3115_v44, %v3050_v26  ;;  %4274 = vmatpush.msrb.mxu2 %v6189_v31  ;;  %v6188_v7 = vld [vmem:[%s10552_s5 + $0x370] sm:$0xff] }
 0x464   :  { %4103 = vmatpush.msrb.mxu1 %v6150_v6  ;;  %4037 = vmatpush.msrb.mxu0 %v6135_v56  ;;  %v6187_v56 = vld [vmem:[%s10552_s5 + $0x368] sm:$0xff] }
 0x465   :  { %v3187_v10 = vadd.f32 %v8416_v27, %v3149_v53  ;;  %v3152_v41 = vadd.f32 %v3116_v55, %v8340_v63  ;;  %6074 = vmatmul.msk.f32.gmra.mxu3 %vm1154_vm1, %v8715_v15  ;;  %6090 = vmatmul.msk.f32.gmra.mxu1 %vm1154_vm1, %v8669_v39  ;;  %v3053_v32 = vpop.f32.mrf.mxu0  ;;  %v6134_v63 = vld [vmem:[%s10552_s5 + $0x240] sm:$0xff] }
 0x466   :  { %4038 = vmatpush.msrb.mxu0 %v6134_v63  ;;  %4275 = vmatpush.msrb.mxu2 %v6188_v7 }
 0x467   :  { %v8729_v16 = vmax.f32 %v3187_v10, 0.0  ;;  %v3190_v5 = vadd.f32 %v8408_v50, %v3152_v41  ;;  %v2923_v14 = vpop.f32.mrf.mxu2 }
 0x468   :  { %v2985_v61 = vpop.f32.mrf.mxu3  ;;  %3592 = vmatmul.f32.gmra.mxu0 %v8689_v46  ;;  %4276 = vmatpush.msrb.mxu2 %v6187_v56 }
 0x469   :  { %3257 = vst [vmem:[#allocation2 + $0xe0] sm:$0xff] %v8729_v16  ;;  %v3222_v43 = vmax.f32 %v3190_v5, 0.0  ;;  %v2986_v25 = vadd.f32 %v2985_v61, %v2920_v37  ;;  %3459 = vmatmul.f32.gmra.mxu2 %v8729_v16 }
 0x46a   :  { %v3118_v26 = vpop.f32.mrf.mxu1  ;;  %v8746_v40 = vld [vmem:[#allocation2 + $0xe8] sm:$0xff] }
 0x46b   :  { %3260 = vst.msk [vmem:[#allocation2 + $0xf8] sm:$0xff] %vm1154_vm1, %v3222_v43  ;;  %v3151_v22 = vadd.f32 %v2986_v25, %v8354_v30  ;;  %v3119_v36 = vadd.f32 %v3118_v26, %v3053_v32 }
 0x46d   :  { %v3189_v28 = vadd.f32 %v8416_v27, %v3151_v22  ;;  %v3154_v37 = vadd.f32 %v3119_v36, %v8358_v52  ;;  %6075 = vmatmul.msk.f32.gmra.mxu3 %vm1154_vm1, %v8746_v40  ;;  %6091 = vmatmul.msk.f32.gmra.mxu1 %vm1154_vm1, %v8715_v15  ;;  %v3056_v12 = vpop.f32.mrf.mxu0 }
 0x46f   :  { %v8754_v45 = vmax.f32 %v3189_v28, 0.0  ;;  %v3192_v62 = vadd.f32 %v8408_v50, %v3154_v37  ;;  %v2926_v30 = vpop.f32.mrf.mxu2  ;;  %v6186_v37 = vld [vmem:[%s10552_s5 + $0x360] sm:$0xff] }
 0x470   :  { %v2988_v57 = vpop.f32.mrf.mxu3  ;;  %3595 = vmatmul.f32.gmra.mxu0 %v8729_v16  ;;  %4277 = vmatpush.msrb.mxu2 %v6186_v37 }
 0x471   :  { %3259 = vst [vmem:[#allocation2 + $0xf0] sm:$0xff] %v8754_v45  ;;  %v3224_v52 = vmax.f32 %v3192_v62, 0.0  ;;  %v2989_v13 = vadd.f32 %v2988_v57, %v2923_v14  ;;  %3462 = vmatmul.f32.gmra.mxu2 %v8754_v45  ;;  %v8803_v62 = vld [vmem:[#allocation2 + $0x10] sm:$0xff] }
 0x472   :  { %v3121_v51 = vpop.f32.mrf.mxu1  ;;  %v8765_v53 = vld [vmem:[#allocation2 + $0xf8] sm:$0xff] }
 0x473   :  { %3262 = vst.msk [vmem:[#allocation2 + $0x108] sm:$0xff] %vm1154_vm1, %v3224_v52  ;;  %v3153_v44 = vadd.f32 %v2989_v13, %v8370_v23  ;;  %v3122_v20 = vadd.f32 %v3121_v51, %v3056_v12  ;;  %v6185_v51 = vld [vmem:[%s10552_s5 + $0x358] sm:$0xff] }
 0x474   :  { %4278 = vmatpush.msrb.mxu2 %v6185_v51 }
 0x475   :  { %v3191_v55 = vadd.f32 %v8416_v27, %v3153_v44  ;;  %v3156_v4 = vadd.f32 %v3122_v20, %v8374_v0  ;;  %6076 = vmatmul.msk.f32.gmra.mxu3 %vm1154_vm1, %v8765_v53  ;;  %6092 = vmatmul.msk.f32.gmra.mxu1 %vm1154_vm1, %v8746_v40  ;;  %v3059_v6 = vpop.f32.mrf.mxu0  ;;  %v6196_v0 = vld [vmem:[%s10552_s5 + $0x3b0] sm:$0xff] }
 0x476   :  { %4348 = vmatpush.msra.mxu3 %v6196_v0 }
 0x477   :  { %v8773_v10 = vmax.f32 %v3191_v55, 0.0  ;;  %v3194_v41 = vadd.f32 %v8408_v50, %v3156_v4  ;;  %v2929_v32 = vpop.f32.mrf.mxu2 }
 0x478   :  { %v2991_v23 = vpop.f32.mrf.mxu3  ;;  %3598 = vmatmul.f32.gmra.mxu0 %v8754_v45 }
 0x479   :  { %3261 = vst [vmem:[#allocation2 + $0x100] sm:$0xff] %v8773_v10  ;;  %v3226_v5 = vmax.f32 %v3194_v41, 0.0  ;;  %v2992_v14 = vadd.f32 %v2991_v23, %v2926_v30  ;;  %3465 = vmatmul.f32.gmra.mxu2 %v8773_v10 }
 0x47a   :  { %v3124_v61 = vpop.f32.mrf.mxu1  ;;  %v8787_v25 = vld [vmem:[#allocation2 + $0x108] sm:$0xff] }
 0x47b   :  { %3264 = vst.msk [vmem:[#allocation2 + $0x118] sm:$0xff] %vm1154_vm1, %v3226_v5  ;;  %v3155_v63 = vadd.f32 %v2992_v14, %v8385_v19  ;;  %v3125_v43 = vadd.f32 %v3124_v61, %v3059_v6  ;;  %v6194_v14 = vld [vmem:[%s10552_s5 + $0x3a0] sm:$0xff] }
 0x47d   :  { %v3193_v31 = vadd.f32 %v8416_v27, %v3155_v63  ;;  %v3158_v24 = vadd.f32 %v3125_v43, %v8389_v3  ;;  %6077 = vmatmul.msk.f32.gmra.mxu3 %vm1154_vm1, %v8787_v25  ;;  %6093 = vmatmul.msk.f32.gmra.mxu1 %vm1154_vm1, %v8765_v53  ;;  %v3554_v26 = vpop.f32.mrf.mxu0 }
 0x47f   :  { %v8795_v22 = vmax.f32 %v3193_v31, 0.0  ;;  %v3196_v36 = vadd.f32 %v8408_v50, %v3158_v24  ;;  %v3421_v19 = vpop.f32.mrf.mxu2 }
 0x480   :  { %v2994_v28 = vpop.f32.mrf.mxu3  ;;  %4039 = vmatmul.f32.vlgmr.msrb.gmra.mxu0 %v8430_v2 }
 0x481   :  { %3263 = vst [vmem:[#allocation2 + $0x110] sm:$0xff] %v8795_v22  ;;  %v3228_v3 = vmax.f32 %v3196_v36, 0.0  ;;  %v2995_v12 = vadd.f32 %v2994_v28, %v2929_v32  ;;  %3788 = vmatmul.f32.vlgmr.msra.gmra.mxu2 %v8803_v62 }
 0x482   :  { %v3619_v30 = vpop.f32.mrf.mxu1 }
 0x483   :  { %3266 = vst.msk [vmem:[#allocation2 + $0x128] sm:$0xff] %vm1154_vm1, %v3228_v3  ;;  %v3157_v50 = vadd.f32 %v2995_v12, %v8406_v1  ;;  %v6195_v1 = vld [vmem:[%s10552_s5 + $0x3a8] sm:$0xff] }
 0x484   :  { %4349 = vmatpush.msra.mxu3 %v6195_v1 }
 0x485   :  { %v8809_v57 = vadd.f32 %v8416_v27, %v3157_v50  ;;  %6118 = vmatmul.msk.f32.vlgmr.msrb.gmra.mxu3 %vm1154_vm1, %v8421_v17  ;;  %6158 = vmatmul.msk.f32.vlgmr.msrb.gmra.mxu1 %vm1154_vm1, %v8444_v54  ;;  %v3557_v7 = vpop.f32.mrf.mxu0 }
 0x486   :  { %4350 = vmatpush.msra.mxu3 %v6194_v14 }
 0x487   :  { %v3227_v52 = vmax.f32 %v8809_v57, 0.0  ;;  %v3424_v44 = vpop.f32.mrf.mxu2 }
 0x488   :  { %v3486_v13 = vpop.f32.mrf.mxu3  ;;  %4042 = vmatmul.f32.gmra.mxu0 %v8452_v18 }
 0x489   :  { %3265 = vst [vmem:[#allocation2 + $0x120] sm:$0xff] %v3227_v52  ;;  %v3487_v27 = vadd.f32 %v3486_v13, %v3421_v19  ;;  %3791 = vmatmul.f32.gmra.mxu2 %v8430_v2  ;;  %v6184_v2 = vld [vmem:[%s10552_s5 + $0x350] sm:$0xff] }
 0x48a   :  { %v3622_v17 = vpop.f32.mrf.mxu1  ;;  %4279 = vmatpush.msrb.mxu2 %v6184_v2 }
 0x48b   :  { %v3555_v20 = vadd.f32 %v3554_v26, %v3487_v27 }
 0x48d   :  { %6119 = vmatmul.msk.f32.gmra.mxu3 %vm1154_vm1, %v8444_v54  ;;  %6159 = vmatmul.msk.f32.gmra.mxu1 %vm1154_vm1, %v8463_v58  ;;  %v3560_v55 = vpop.f32.mrf.mxu0  ;;  %v8830_v4 = vadd.f32 %v3619_v30, %v3555_v20  ;;  %v6193_v30 = vld [vmem:[%s10552_s5 + $0x398] sm:$0xff] }
 0x48e   :  { %4351 = vmatpush.msra.mxu3 %v6193_v30 }
 0x490   :  { %v3489_v6 = vpop.f32.mrf.mxu3  ;;  %4045 = vmatmul.f32.gmra.mxu0 %v8471_v42 }
 0x491   :  { %v3490_v41 = vadd.f32 %v3489_v6, %v3424_v44  ;;  %3794 = vmatmul.f32.gmra.mxu2 %v8452_v18  ;;  %v6183_v18 = vld [vmem:[%s10552_s5 + $0x348] sm:$0xff] }
 0x492   :  { %v3625_v32 = vpop.f32.mrf.mxu1  ;;  %4280 = vmatpush.msrb.mxu2 %v6183_v18 }
 0x493   :  { %v3558_v23 = vadd.f32 %v3557_v7, %v3490_v41  ;;  %v6192_v41 = vld [vmem:[%s10552_s5 + $0x390] sm:$0xff] }
 0x494   :  { %v3427_v54 = vpop.f32.mrf.mxu2  ;;  %4352 = vmatpush.msra.mxu3 %v6192_v41  ;;  %v6190_v41 = vld [vmem:[%s10552_s5 + $0x380] sm:$0xff] }
 0x495   :  { %6120 = vmatmul.msk.f32.gmra.mxu3 %vm1154_vm1, %v8463_v58  ;;  %6160 = vmatmul.msk.f32.gmra.mxu1 %vm1154_vm1, %v8485_v59  ;;  %v3563_v56 = vpop.f32.mrf.mxu0  ;;  %v8841_v0 = vadd.f32 %v3622_v17, %v3558_v23 }
 0x498   :  { %v3492_v5 = vpop.f32.mrf.mxu3  ;;  %4048 = vmatmul.f32.gmra.mxu0 %v8493_v38 }
 0x499   :  { %v3493_v61 = vadd.f32 %v3492_v5, %v3427_v54  ;;  %3797 = vmatmul.f32.gmra.mxu2 %v8471_v42  ;;  %v6182_v42 = vld [vmem:[%s10552_s5 + $0x340] sm:$0xff] }
 0x49a   :  { %v3628_v58 = vpop.f32.mrf.mxu1  ;;  %4281 = vmatpush.msrb.mxu2 %v6182_v42 }
 0x49b   :  { %v3561_v63 = vadd.f32 %v3560_v55, %v3493_v61 }
 0x49c   :  { %v3430_v43 = vpop.f32.mrf.mxu2 }
 0x49d   :  { %6121 = vmatmul.msk.f32.gmra.mxu3 %vm1154_vm1, %v8485_v59  ;;  %6161 = vmatmul.msk.f32.gmra.mxu1 %vm1154_vm1, %v8504_v33  ;;  %v3566_v31 = vpop.f32.mrf.mxu0  ;;  %v8855_v24 = vadd.f32 %v3625_v32, %v3561_v63 }
 0x4a0   :  { %v3495_v26 = vpop.f32.mrf.mxu3  ;;  %4051 = vmatmul.f32.gmra.mxu0 %v8512_v8 }
 0x4a1   :  { %v3496_v36 = vadd.f32 %v3495_v26, %v3430_v43  ;;  %3800 = vmatmul.f32.gmra.mxu2 %v8493_v38  ;;  %v6181_v38 = vld [vmem:[%s10552_s5 + $0x338] sm:$0xff]  ;;  %v6228_v43 = vld [vmem:[%s10552_s5 + $0x430] sm:$0xff]  ;;  %v6227_v26 = vld [vmem:[%s10552_s5 + $0x428] sm:$0xff] }
 0x4a2   :  { %v3631_v28 = vpop.f32.mrf.mxu1  ;;  %4282 = vmatpush.msrb.mxu2 %v6181_v38 }
 0x4a3   :  { %v3564_v19 = vadd.f32 %v3563_v56, %v3496_v36  ;;  %v6177_v36 = vld [vmem:[%s10552_s5 + $0x318] sm:$0xff] }
 0x4a4   :  { %v3433_v59 = vpop.f32.mrf.mxu2 }
 0x4a5   :  { %6122 = vmatmul.msk.f32.gmra.mxu3 %vm1154_vm1, %v8504_v33  ;;  %6162 = vmatmul.msk.f32.gmra.mxu1 %vm1154_vm1, %v8526_v49  ;;  %v3569_v37 = vpop.f32.mrf.mxu0  ;;  %v8866_v3 = vadd.f32 %v3628_v58, %v3564_v19  ;;  %v6226_v19 = vld [vmem:[%s10552_s5 + $0x420] sm:$0xff] }
 0x4a8   :  { %v3498_v12 = vpop.f32.mrf.mxu3  ;;  %4054 = vmatmul.f32.gmra.mxu0 %v8534_v34 }
 0x4a9   :  { %v3499_v50 = vadd.f32 %v3498_v12, %v3433_v59  ;;  %3803 = vmatmul.f32.gmra.mxu2 %v8512_v8  ;;  %v6180_v8 = vld [vmem:[%s10552_s5 + $0x330] sm:$0xff]  ;;  %v6225_v12 = vld [vmem:[%s10552_s5 + $0x418] sm:$0xff] }
 0x4aa   :  { %v3634_v33 = vpop.f32.mrf.mxu1  ;;  %4283 = vmatpush.msrb.mxu2 %v6180_v8  ;;  %v6222_v8 = vld [vmem:[%s10552_s5 + $0x400] sm:$0xff] }
 0x4ab   :  { %v3567_v7 = vadd.f32 %v3566_v31, %v3499_v50  ;;  %v6224_v50 = vld [vmem:[%s10552_s5 + $0x410] sm:$0xff] }
 0x4ac   :  { %v3436_v13 = vpop.f32.mrf.mxu2 }
 0x4ad   :  { %6123 = vmatmul.msk.f32.gmra.mxu3 %vm1154_vm1, %v8526_v49  ;;  %6163 = vmatmul.msk.f32.gmra.mxu1 %vm1154_vm1, %v8545_v29  ;;  %v3572_v51 = vpop.f32.mrf.mxu0  ;;  %v8880_v1 = vadd.f32 %v3631_v28, %v3567_v7  ;;  %v6176_v7 = vld [vmem:[%s10552_s5 + $0x310] sm:$0xff] }
 0x4b0   :  { %v3501_v27 = vpop.f32.mrf.mxu3  ;;  %4057 = vmatmul.f32.gmra.mxu0 %v8553_v35 }
 0x4b1   :  { %v3502_v17 = vadd.f32 %v3501_v27, %v3436_v13  ;;  %3806 = vmatmul.f32.gmra.mxu2 %v8534_v34  ;;  %v6179_v34 = vld [vmem:[%s10552_s5 + $0x328] sm:$0xff] }
 0x4b2   :  { %v3637_v44 = vpop.f32.mrf.mxu1  ;;  %4284 = vmatpush.msrb.mxu2 %v6179_v34  ;;  %v6175_v34 = vld [vmem:[%s10552_s5 + $0x308] sm:$0xff] }
 0x4b3   :  { %v3570_v20 = vadd.f32 %v3569_v37, %v3502_v17 }
 0x4b4   :  { %v3439_v49 = vpop.f32.mrf.mxu2 }
 0x4b5   :  { %6124 = vmatmul.msk.f32.gmra.mxu3 %vm1154_vm1, %v8545_v29  ;;  %6164 = vmatmul.msk.f32.gmra.mxu1 %vm1154_vm1, %v8570_v48  ;;  %v3575_v55 = vpop.f32.mrf.mxu0  ;;  %v8891_v6 = vadd.f32 %v3634_v33, %v3570_v20 }
 0x4b8   :  { %v3504_v2 = vpop.f32.mrf.mxu3  ;;  %4060 = vmatmul.f32.gmra.mxu0 %v8584_v9 }
 0x4b9   :  { %v3505_v32 = vadd.f32 %v3504_v2, %v3439_v49  ;;  %3809 = vmatmul.f32.gmra.mxu2 %v8553_v35  ;;  %v6178_v35 = vld [vmem:[%s10552_s5 + $0x320] sm:$0xff]  ;;  %v6221_v49 = vld [vmem:[%s10552_s5 + $0x3f8] sm:$0xff]  ;;  %v6236_v2 = vld [vmem:[%s10552_s5 + $0x470] sm:$0xff] }
 0x4ba   :  { %v3640_v29 = vpop.f32.mrf.mxu1  ;;  %4285 = vmatpush.msrb.mxu2 %v6178_v35 }
 0x4bb   :  { %v3573_v23 = vadd.f32 %v3572_v51, %v3505_v32 }
 0x4bc   :  { %v3442_v54 = vpop.f32.mrf.mxu2  ;;  %4286 = vmatpush.msrb.mxu2 %v6177_v36 }
 0x4bd   :  { %6125 = vmatmul.msk.f32.gmra.mxu3 %vm1154_vm1, %v8570_v48  ;;  %6165 = vmatmul.msk.f32.gmra.mxu1 %vm1154_vm1, %v8601_v21  ;;  %v3578_v56 = vpop.f32.mrf.mxu0  ;;  %v8905_v5 = vadd.f32 %v3637_v44, %v3573_v23  ;;  %v6229_v48 = vld [vmem:[%s10552_s5 + $0x438] sm:$0xff]  ;;  %v6235_v23 = vld [vmem:[%s10552_s5 + $0x468] sm:$0xff] }
 0x4be   :  { %4525 = vmatpush.msra.mxu0 %v6229_v48  ;;  %4287 = vmatpush.msrb.mxu2 %v6176_v7  ;;  %v6218_v48 = vld [vmem:[%s10552_s5 + $0x3e0] sm:$0xff] }
 0x4c0   :  { %v3507_v18 = vpop.f32.mrf.mxu3  ;;  %4063 = vmatmul.f32.gmra.mxu0 %v8612_v60  ;;  %4288 = vmatpush.msrb.mxu2 %v6175_v34 }
 0x4c1   :  { %v3508_v14 = vadd.f32 %v3507_v18, %v3442_v54  ;;  %3812 = vmatmul.f32.gmra.mxu2 %v8584_v9  ;;  %4526 = vmatpush.msra.mxu0 %v6228_v43  ;;  %v6234_v18 = vld [vmem:[%s10552_s5 + $0x460] sm:$0xff] }
 0x4c2   :  { %v3643_v61 = vpop.f32.mrf.mxu1  ;;  %v6174_v43 = vld [vmem:[%s10552_s5 + $0x300] sm:$0xff] }
 0x4c3   :  { %v3576_v58 = vadd.f32 %v3575_v55, %v3508_v14  ;;  %4527 = vmatpush.msra.mxu0 %v6227_v26  ;;  %v6233_v14 = vld [vmem:[%s10552_s5 + $0x458] sm:$0xff]  ;;  %4289 = vmatpush.msrb.mxu2 %v6174_v43  ;;  %v9091_v43 = vld [vmem:[#allocation2 + $0x60] sm:$0xff] }
 0x4c4   :  { %v3445_v63 = vpop.f32.mrf.mxu2 }
 0x4c5   :  { %6126 = vmatmul.msk.f32.gmra.mxu3 %vm1154_vm1, %v8601_v21  ;;  %6166 = vmatmul.msk.f32.gmra.mxu1 %vm1154_vm1, %v8632_v47  ;;  %v3581_v9 = vpop.f32.mrf.mxu0  ;;  %v8922_v31 = vadd.f32 %v3640_v29, %v3576_v58  ;;  %v6191_v21 = vld [vmem:[%s10552_s5 + $0x388] sm:$0xff] }
 0x4c6   :  { %4353 = vmatpush.msra.mxu3 %v6191_v21  ;;  %4528 = vmatpush.msra.mxu0 %v6226_v19  ;;  %v6216_v21 = vld [vmem:[%s10552_s5 + $0x3d0] sm:$0xff] }
 0x4c8   :  { %v3510_v42 = vpop.f32.mrf.mxu3  ;;  %4066 = vmatmul.f32.gmra.mxu0 %v8646_v11  ;;  %4354 = vmatpush.msra.mxu3 %v6190_v41 }
 0x4c9   :  { %v3511_v28 = vadd.f32 %v3510_v42, %v3445_v63  ;;  %3815 = vmatmul.f32.gmra.mxu2 %v8612_v60  ;;  %4529 = vmatpush.msra.mxu0 %v6225_v12  ;;  %v6232_v63 = vld [vmem:[%s10552_s5 + $0x450] sm:$0xff]  ;;  %v6231_v42 = vld [vmem:[%s10552_s5 + $0x448] sm:$0xff] }
 0x4ca   :  { %v3646_v59 = vpop.f32.mrf.mxu1 }
 0x4cb   :  { %v3579_v37 = vadd.f32 %v3578_v56, %v3511_v28  ;;  %4530 = vmatpush.msra.mxu0 %v6224_v50  ;;  %v6219_v56 = vld [vmem:[%s10552_s5 + $0x3e8] sm:$0xff]  ;;  %v6230_v28 = vld [vmem:[%s10552_s5 + $0x440] sm:$0xff] }
 0x4cc   :  { %v3448_v38 = vpop.f32.mrf.mxu2 }
 0x4cd   :  { %6127 = vmatmul.msk.f32.gmra.mxu3 %vm1154_vm1, %v8632_v47  ;;  %6167 = vmatmul.msk.f32.gmra.mxu1 %vm1154_vm1, %v8669_v39  ;;  %v3584_v60 = vpop.f32.mrf.mxu0  ;;  %v8945_v30 = vadd.f32 %v3643_v61, %v3579_v37  ;;  %v6223_v47 = vld [vmem:[%s10552_s5 + $0x408] sm:$0xff] }
 0x4ce   :  { %4531 = vmatpush.msra.mxu0 %v6223_v47  ;;  %v6215_v37 = vld [vmem:[%s10552_s5 + $0x3c8] sm:$0xff] }
 0x4d0   :  { %v3513_v33 = vpop.f32.mrf.mxu3  ;;  %4069 = vmatmul.f32.gmra.mxu0 %v8689_v46 }
 0x4d1   :  { %v3514_v13 = vadd.f32 %v3513_v33, %v3448_v38  ;;  %3818 = vmatmul.f32.gmra.mxu2 %v8646_v11  ;;  %v6237_v11 = vld [vmem:[%s10552_s5 + $0x478] sm:$0xff]  ;;  %4532 = vmatpush.msra.mxu0 %v6222_v8  ;;  %v6214_v38 = vld [vmem:[%s10552_s5 + $0x3c0] sm:$0xff] }
 0x4d2   :  { %v3649_v51 = vpop.f32.mrf.mxu1  ;;  %4598 = vmatpush.msra.mxu1 %v6237_v11 }
 0x4d3   :  { %v3582_v27 = vadd.f32 %v3581_v9, %v3514_v13  ;;  %4533 = vmatpush.msra.mxu0 %v6221_v49 }
 0x4d4   :  { %v3451_v17 = vpop.f32.mrf.mxu2  ;;  %4599 = vmatpush.msra.mxu1 %v6236_v2  ;;  %v6276_v2 = vld [vmem:[%s10552_s5 + $0x530] sm:$0xff] }
 0x4d5   :  { %6128 = vmatmul.msk.f32.gmra.mxu3 %vm1154_vm1, %v8669_v39  ;;  %6168 = vmatmul.msk.f32.gmra.mxu1 %vm1154_vm1, %v8715_v15  ;;  %v3587_v44 = vpop.f32.mrf.mxu0  ;;  %v8968_v20 = vadd.f32 %v3646_v59, %v3582_v27  ;;  %v6220_v39 = vld [vmem:[%s10552_s5 + $0x3f0] sm:$0xff] }
 0x4d6   :  { %4534 = vmatpush.msra.mxu0 %v6220_v39  ;;  %4600 = vmatpush.msra.mxu1 %v6235_v23  ;;  %v4420_v23 = vld [vmem:[#allocation2 + $0x50] sm:$0xff] }
 0x4d8   :  { %v3516_v55 = vpop.f32.mrf.mxu3  ;;  %4072 = vmatmul.f32.gmra.mxu0 %v8729_v16  ;;  %4601 = vmatpush.msra.mxu1 %v6234_v18 }
 0x4d9   :  { %v3517_v32 = vadd.f32 %v3516_v55, %v3451_v17  ;;  %3821 = vmatmul.f32.gmra.mxu2 %v8689_v46  ;;  %4535 = vmatpush.msra.mxu0 %v6219_v56  ;;  %v6266_v56 = vld [vmem:[%s10552_s5 + $0x4e0] sm:$0xff] }
 0x4da   :  { %v3652_v29 = vpop.f32.mrf.mxu1  ;;  %4602 = vmatpush.msra.mxu1 %v6233_v14  ;;  %v4170_v14 = vld [vmem:[#allocation2 + $0x48] sm:$0xff] }
 0x4db   :  { %v3585_v54 = vadd.f32 %v3584_v60, %v3517_v32  ;;  %4536 = vmatpush.msra.mxu0 %v6218_v48  ;;  %v6277_v60 = vld [vmem:[%s10552_s5 + $0x538] sm:$0xff]  ;;  %v9076_v32 = vld [vmem:[#allocation2 + $0x128] sm:$0xff] }
 0x4dc   :  { %v3454_v46 = vpop.f32.mrf.mxu2  ;;  %4603 = vmatpush.msra.mxu1 %v6232_v63  ;;  %4849 = vmatpush.msrb.mxu3 %v6277_v60  ;;  %v4421_v48 = vld [vmem:[#allocation2 + $0x58] sm:$0xff] }
 0x4dd   :  { %6129 = vmatmul.msk.f32.gmra.mxu3 %vm1154_vm1, %v8715_v15  ;;  %6169 = vmatmul.msk.f32.gmra.mxu1 %vm1154_vm1, %v8746_v40  ;;  %v3590_v35 = vpop.f32.mrf.mxu0  ;;  %v9003_v61 = vadd.f32 %v3649_v51, %v3585_v54  ;;  %v6217_v15 = vld [vmem:[%s10552_s5 + $0x3d8] sm:$0xff] }
 0x4de   :  { %4537 = vmatpush.msra.mxu0 %v6217_v15  ;;  %4604 = vmatpush.msra.mxu1 %v6231_v42  ;;  %v6275_v42 = vld [vmem:[%s10552_s5 + $0x528] sm:$0xff] }
 0x4df   :  { %4850 = vmatpush.msrb.mxu3 %v6276_v2 }
 0x4e0   :  { %v3519_v58 = vpop.f32.mrf.mxu3  ;;  %4075 = vmatmul.f32.gmra.mxu0 %v8754_v45  ;;  %4605 = vmatpush.msra.mxu1 %v6230_v28 }
 0x4e1   :  { %v3520_v9 = vadd.f32 %v3519_v58, %v3454_v46  ;;  %3824 = vmatmul.f32.gmra.mxu2 %v8729_v16  ;;  %4538 = vmatpush.msra.mxu0 %v6216_v21 }
 0x4e2   :  { %v3655_v26 = vpop.f32.mrf.mxu1  ;;  %4851 = vmatpush.msrb.mxu3 %v6275_v42 }
 0x4e3   :  { %v3588_v36 = vadd.f32 %v3587_v44, %v3520_v9  ;;  %4539 = vmatpush.msra.mxu0 %v6215_v37 }
 0x4e4   :  { %v3457_v19 = vpop.f32.mrf.mxu2 }
 0x4e5   :  { %6130 = vmatmul.msk.f32.gmra.mxu3 %vm1154_vm1, %v8746_v40  ;;  %6170 = vmatmul.msk.f32.gmra.mxu1 %vm1154_vm1, %v8765_v53  ;;  %v3593_v16 = vpop.f32.mrf.mxu0  ;;  %v9032_v59 = vadd.f32 %v3652_v29, %v3588_v36  ;;  %v6269_v40 = vld [vmem:[%s10552_s5 + $0x4f8] sm:$0xff] }
 0x4e6   :  { %4776 = vmatpush.msra.mxu2 %v6269_v40  ;;  %4540 = vmatpush.msra.mxu0 %v6214_v38  ;;  %v9108_v40 = vld [vmem:[#allocation2 + $0x70] sm:$0xff] }
 0x4e8   :  { %v3522_v12 = vpop.f32.mrf.mxu3  ;;  %4078 = vmatmul.f32.gmra.mxu0 %v8773_v10 }
 0x4e9   :  { %v3523_v50 = vadd.f32 %v3522_v12, %v3457_v19  ;;  %3827 = vmatmul.f32.gmra.mxu2 %v8754_v45  ;;  %v6268_v45 = vld [vmem:[%s10552_s5 + $0x4f0] sm:$0xff] }
 0x4ea   :  { %v3658_v33 = vpop.f32.mrf.mxu1  ;;  %4777 = vmatpush.msra.mxu2 %v6268_v45 }
 0x4eb   :  { %v3591_v7 = vadd.f32 %v3590_v35, %v3523_v50 }
 0x4ec   :  { %v3460_v47 = vpop.f32.mrf.mxu2 }
 0x4ed   :  { %6131 = vmatmul.msk.f32.gmra.mxu3 %vm1154_vm1, %v8765_v53  ;;  %6171 = vmatmul.msk.f32.gmra.mxu1 %vm1154_vm1, %v8787_v25  ;;  %v3596_v13 = vpop.f32.mrf.mxu0  ;;  %v9052_v51 = vadd.f32 %v3655_v26, %v3591_v7  ;;  %v9059_v53 = vld [vmem:[#allocation2 + $0x118] sm:$0xff] }
 0x4ee   :  { %v6265_v26 = vld [vmem:[%s10552_s5 + $0x4d8] sm:$0xff] }
 0x4f0   :  { %v3525_v27 = vpop.f32.mrf.mxu3  ;;  %4081 = vmatmul.f32.gmra.mxu0 %v8795_v22 }
 0x4f1   :  { %v3526_v8 = vadd.f32 %v3525_v27, %v3460_v47  ;;  %3830 = vmatmul.f32.gmra.mxu2 %v8773_v10  ;;  %v6267_v10 = vld [vmem:[%s10552_s5 + $0x4e8] sm:$0xff] }
 0x4f2   :  { %v3661_v17 = vpop.f32.mrf.mxu1  ;;  %4778 = vmatpush.msra.mxu2 %v6267_v10 }
 0x4f3   :  { %v3594_v44 = vadd.f32 %v3593_v16, %v3526_v8  ;;  %v9101_v16 = vld [vmem:[#allocation2 + $0x68] sm:$0xff] }
 0x4f4   :  { %v3463_v11 = vpop.f32.mrf.mxu2  ;;  %4779 = vmatpush.msra.mxu2 %v6266_v56 }
 0x4f5   :  { %6132 = vmatmul.msk.f32.gmra.mxu3 %vm1154_vm1, %v8787_v25  ;;  %6172 = vmatmul.msk.f32.gmra.mxu1 %vm1154_vm1, %v9059_v53  ;;  %v3599_v49 = vpop.f32.mrf.mxu0  ;;  %v9065_v39 = vadd.f32 %v3658_v33, %v3594_v44 }
 0x4f6   :  { %4780 = vmatpush.msra.mxu2 %v6265_v26 }
 0x4f8   :  { %v3528_v55 = vpop.f32.mrf.mxu3  ;;  %4084 = vmatmul.f32.gmra.mxu0 %v3227_v52 }
 0x4f9   :  { %v3529_v34 = vadd.f32 %v3528_v55, %v3463_v11  ;;  %3833 = vmatmul.f32.gmra.mxu2 %v8795_v22  ;;  %v4169_v22 = vld [vmem:[#allocation2 + $0x40] sm:$0xff] }
 0x4fa   :  { %v3664_v25 = vpop.f32.mrf.mxu1  ;;  %v6274_v11 = vld [vmem:[%s10552_s5 + $0x520] sm:$0xff] }
 0x4fb   :  { %v3597_v41 = vadd.f32 %v3596_v13, %v3529_v34  ;;  %v9116_v13 = vld [vmem:[#allocation2 + $0x78] sm:$0xff]  ;;  %4852 = vmatpush.msrb.mxu3 %v6274_v11  ;;  %v9135_v34 = vld [vmem:[#allocation2 + $0x88] sm:$0xff]  ;;  %v9194_v11 = vld [vmem:[#allocation2 + $0xc0] sm:$0xff] }
 0x4fc   :  { %v3466_v29 = vpop.f32.mrf.mxu2 }
 0x4fd   :  { %6133 = vmatmul.msk.f32.gmra.mxu3 %vm1154_vm1, %v9059_v53  ;;  %6173 = vmatmul.msk.f32.gmra.mxu1 %vm1154_vm1, %v9076_v32  ;;  %v4040_v57 = vpop.f32.mrf.mxu0  ;;  %v9082_v52 = vadd.f32 %v3661_v17, %v3597_v41  ;;  %v9124_v17 = vld [vmem:[#allocation2 + $0x80] sm:$0xff] }
 0x500   :  { %v3531_v54 = vpop.f32.mrf.mxu3  ;;  %4541 = vmatmul.f32.vlgmr.msra.gmra.mxu0 %v4420_v23 }
 0x501   :  { %v3532_v18 = vadd.f32 %v3531_v54, %v3466_v29  ;;  %4290 = vmatmul.f32.vlgmr.msrb.gmra.mxu2 %v4169_v22 }
 0x502   :  { %v4105_v46 = vpop.f32.mrf.mxu1 }
 0x503   :  { %v3600_v35 = vadd.f32 %v3599_v49, %v3532_v18  ;;  %v4106_v28 = vadd.f32 %v4105_v46, %v4040_v57  ;;  %v9143_v57 = vld [vmem:[#allocation2 + $0x90] sm:$0xff]  ;;  %v9151_v46 = vld [vmem:[#allocation2 + $0x98] sm:$0xff] }
 0x504   :  { %v3789_v58 = vpop.f32.mrf.mxu2 }
 0x505   :  { %6198 = vmatmul.msk.f32.vlgmr.msra.gmra.mxu3 %vm1154_vm1, %v4170_v14  ;;  %6238 = vmatmul.msk.f32.vlgmr.msra.gmra.mxu1 %vm1154_vm1, %v4421_v48  ;;  %v4043_v15 = vpop.f32.mrf.mxu0  ;;  %v9089_v63 = vadd.f32 %v3664_v25, %v3600_v35 }
 0x508   :  { %v3854_v9 = vpop.f32.mrf.mxu3  ;;  %4544 = vmatmul.f32.gmra.mxu0 %v9091_v43 }
 0x509   :  { %v3855_v36 = vadd.f32 %v3854_v9, %v3789_v58  ;;  %4293 = vmatmul.f32.gmra.mxu2 %v4420_v23  ;;  %v9159_v58 = vld [vmem:[#allocation2 + $0xa0] sm:$0xff]  ;;  %v6273_v9 = vld [vmem:[%s10552_s5 + $0x518] sm:$0xff] }
 0x50a   :  { %v4108_v21 = vpop.f32.mrf.mxu1  ;;  %4853 = vmatpush.msrb.mxu3 %v6273_v9  ;;  %v9225_v9 = vld [vmem:[#allocation2 + $0xd8] sm:$0xff] }
 0x50b   :  { %v3902_v19 = vadd.f32 %v3855_v36, %v8830_v4  ;;  %v6264_v4 = vld [vmem:[%s10552_s5 + $0x4d0] sm:$0xff]  ;;  %v4109_v7 = vadd.f32 %v4108_v21, %v4043_v15 }
 0x50c   :  { %v3792_v37 = vpop.f32.mrf.mxu2  ;;  %4781 = vmatpush.msra.mxu2 %v6264_v4 }
 0x50d   :  { %6199 = vmatmul.msk.f32.gmra.mxu3 %vm1154_vm1, %v4421_v48  ;;  %6239 = vmatmul.msk.f32.gmra.mxu1 %vm1154_vm1, %v9101_v16  ;;  %v4046_v12 = vpop.f32.mrf.mxu0  ;;  %v9106_v38 = vadd.f32 %v4106_v28, %v3902_v19  ;;  %v9170_v28 = vld [vmem:[#allocation2 + $0xa8] sm:$0xff] }
 0x510   :  { %v3857_v60 = vpop.f32.mrf.mxu3  ;;  %4547 = vmatmul.f32.gmra.mxu0 %v9108_v40 }
 0x511   :  { %v3858_v50 = vadd.f32 %v3857_v60, %v3792_v37  ;;  %4296 = vmatmul.f32.gmra.mxu2 %v9091_v43  ;;  %v9178_v60 = vld [vmem:[#allocation2 + $0xb0] sm:$0xff] }
 0x512   :  { %v4111_v33 = vpop.f32.mrf.mxu1 }
 0x513   :  { %v3903_v47 = vadd.f32 %v3858_v50, %v8841_v0  ;;  %v6263_v0 = vld [vmem:[%s10552_s5 + $0x4c8] sm:$0xff]  ;;  %v4112_v10 = vadd.f32 %v4111_v33, %v4046_v12 }
 0x514   :  { %v3795_v27 = vpop.f32.mrf.mxu2  ;;  %4782 = vmatpush.msra.mxu2 %v6263_v0 }
 0x515   :  { %6200 = vmatmul.msk.f32.gmra.mxu3 %vm1154_vm1, %v9101_v16  ;;  %6240 = vmatmul.msk.f32.gmra.mxu1 %vm1154_vm1, %v9116_v13  ;;  %v4049_v45 = vpop.f32.mrf.mxu0  ;;  %v9122_v8 = vadd.f32 %v4109_v7, %v3903_v47 }
 0x518   :  { %v3860_v44 = vpop.f32.mrf.mxu3  ;;  %4550 = vmatmul.f32.gmra.mxu0 %v9124_v17 }
 0x519   :  { %v3861_v49 = vadd.f32 %v3860_v44, %v3795_v27  ;;  %4299 = vmatmul.f32.gmra.mxu2 %v9108_v40  ;;  %v9186_v27 = vld [vmem:[#allocation2 + $0xb8] sm:$0xff] }
 0x51a   :  { %v4114_v55 = vpop.f32.mrf.mxu1 }
 0x51b   :  { %v3904_v2 = vadd.f32 %v3861_v49, %v8855_v24  ;;  %v6262_v24 = vld [vmem:[%s10552_s5 + $0x4c0] sm:$0xff]  ;;  %v4115_v56 = vadd.f32 %v4114_v55, %v4049_v45  ;;  %v6272_v55 = vld [vmem:[%s10552_s5 + $0x510] sm:$0xff] }
 0x51c   :  { %v3798_v25 = vpop.f32.mrf.mxu2  ;;  %4783 = vmatpush.msra.mxu2 %v6262_v24  ;;  %4854 = vmatpush.msrb.mxu3 %v6272_v55 }
 0x51d   :  { %6201 = vmatmul.msk.f32.gmra.mxu3 %vm1154_vm1, %v9116_v13  ;;  %6241 = vmatmul.msk.f32.gmra.mxu1 %vm1154_vm1, %v9135_v34  ;;  %v4052_v41 = vpop.f32.mrf.mxu0  ;;  %v9141_v29 = vadd.f32 %v4112_v10, %v3904_v2 }
 0x520   :  { %v3863_v23 = vpop.f32.mrf.mxu3  ;;  %4553 = vmatmul.f32.gmra.mxu0 %v9143_v57 }
 0x521   :  { %v3864_v54 = vadd.f32 %v3863_v23, %v3798_v25  ;;  %4302 = vmatmul.f32.gmra.mxu2 %v9124_v17  ;;  %v9205_v23 = vld [vmem:[#allocation2 + $0xc8] sm:$0xff] }
 0x522   :  { %v4117_v22 = vpop.f32.mrf.mxu1 }
 0x523   :  { %v3905_v18 = vadd.f32 %v3864_v54, %v8866_v3  ;;  %v6261_v3 = vld [vmem:[%s10552_s5 + $0x4b8] sm:$0xff]  ;;  %v4118_v36 = vadd.f32 %v4117_v22, %v4052_v41 }
 0x524   :  { %v3801_v35 = vpop.f32.mrf.mxu2  ;;  %4784 = vmatpush.msra.mxu2 %v6261_v3 }
 0x525   :  { %6202 = vmatmul.msk.f32.gmra.mxu3 %vm1154_vm1, %v9135_v34  ;;  %6242 = vmatmul.msk.f32.gmra.mxu1 %vm1154_vm1, %v9151_v46  ;;  %v4055_v14 = vpop.f32.mrf.mxu0  ;;  %v9157_v48 = vadd.f32 %v4115_v56, %v3905_v18  ;;  %v9215_v56 = vld [vmem:[#allocation2 + $0xd0] sm:$0xff] }
 0x528   :  { %v3866_v15 = vpop.f32.mrf.mxu3  ;;  %4556 = vmatmul.f32.gmra.mxu0 %v9159_v58 }
 0x529   :  { %v3867_v26 = vadd.f32 %v3866_v15, %v3801_v35  ;;  %4305 = vmatmul.f32.gmra.mxu2 %v9143_v57 }
 0x52a   :  { %v4120_v42 = vpop.f32.mrf.mxu1 }
 0x52b   :  { %v3906_v21 = vadd.f32 %v3867_v26, %v8880_v1  ;;  %v6260_v1 = vld [vmem:[%s10552_s5 + $0x4b0] sm:$0xff]  ;;  %v4121_v7 = vadd.f32 %v4120_v42, %v4055_v14 }
 0x52c   :  { %v3804_v19 = vpop.f32.mrf.mxu2  ;;  %4785 = vmatpush.msra.mxu2 %v6260_v1 }
 0x52d   :  { %6203 = vmatmul.msk.f32.gmra.mxu3 %vm1154_vm1, %v9151_v46  ;;  %6243 = vmatmul.msk.f32.gmra.mxu1 %vm1154_vm1, %v9170_v28  ;;  %v4058_v37 = vpop.f32.mrf.mxu0  ;;  %v9176_v12 = vadd.f32 %v4118_v36, %v3906_v21  ;;  %v9235_v21 = vld [vmem:[#allocation2 + $0xe0] sm:$0xff] }
 0x530   :  { %v3869_v4 = vpop.f32.mrf.mxu3  ;;  %4559 = vmatmul.f32.gmra.mxu0 %v9178_v60 }
 0x531   :  { %v3870_v50 = vadd.f32 %v3869_v4, %v3804_v19  ;;  %4308 = vmatmul.f32.gmra.mxu2 %v9159_v58 }
 0x532   :  { %v4123_v33 = vpop.f32.mrf.mxu1 }
 0x533   :  { %v3907_v47 = vadd.f32 %v3870_v50, %v8891_v6  ;;  %v6259_v6 = vld [vmem:[%s10552_s5 + $0x4a8] sm:$0xff]  ;;  %v4124_v25 = vadd.f32 %v4123_v33, %v4058_v37 }
 0x534   :  { %v3807_v45 = vpop.f32.mrf.mxu2  ;;  %4786 = vmatpush.msra.mxu2 %v6259_v6  ;;  %v6271_v37 = vld [vmem:[%s10552_s5 + $0x508] sm:$0xff] }
 0x535   :  { %6204 = vmatmul.msk.f32.gmra.mxu3 %vm1154_vm1, %v9170_v28  ;;  %6244 = vmatmul.msk.f32.gmra.mxu1 %vm1154_vm1, %v9186_v27  ;;  %v4061_v44 = vpop.f32.mrf.mxu0  ;;  %v9192_v0 = vadd.f32 %v4121_v7, %v3907_v47  ;;  %v9250_v33 = vld [vmem:[#allocation2 + $0xe8] sm:$0xff] }
 0x536   :  { %4855 = vmatpush.msrb.mxu3 %v6271_v37 }
 0x538   :  { %v3872_v49 = vpop.f32.mrf.mxu3  ;;  %4562 = vmatmul.f32.gmra.mxu0 %v9194_v11 }
 0x539   :  { %v3873_v10 = vadd.f32 %v3872_v49, %v3807_v45  ;;  %4311 = vmatmul.f32.gmra.mxu2 %v9178_v60  ;;  %v9258_v45 = vld [vmem:[#allocation2 + $0xf0] sm:$0xff] }
 0x53a   :  { %v4126_v2 = vpop.f32.mrf.mxu1 }
 0x53b   :  { %v3908_v41 = vadd.f32 %v3873_v10, %v8905_v5  ;;  %v6258_v5 = vld [vmem:[%s10552_s5 + $0x4a0] sm:$0xff]  ;;  %v4127_v15 = vadd.f32 %v4126_v2, %v4061_v44  ;;  %v9270_v10 = vld [vmem:[#allocation2 + $0xf8] sm:$0xff] }
 0x53c   :  { %v3810_v24 = vpop.f32.mrf.mxu2  ;;  %4787 = vmatpush.msra.mxu2 %v6258_v5 }
 0x53d   :  { %6205 = vmatmul.msk.f32.gmra.mxu3 %vm1154_vm1, %v9186_v27  ;;  %6245 = vmatmul.msk.f32.gmra.mxu1 %vm1154_vm1, %v9205_v23  ;;  %v9211_v54 = vpop.f32.mrf.mxu0  ;;  %v9213_v22 = vadd.f32 %v4124_v25, %v3908_v41  ;;  %v9278_v41 = vld [vmem:[#allocation2 + $0x100] sm:$0xff] }
 0x540   :  { %v3875_v18 = vpop.f32.mrf.mxu3  ;;  %4565 = vmatmul.f32.gmra.mxu0 %v9215_v56 }
 0x541   :  { %v3876_v35 = vadd.f32 %v3875_v18, %v3810_v24  ;;  %4314 = vmatmul.f32.gmra.mxu2 %v9194_v11  ;;  %v6270_v18 = vld [vmem:[%s10552_s5 + $0x500] sm:$0xff] }
 0x542   :  { %v9222_v14 = vpop.f32.mrf.mxu1  ;;  %4856 = vmatpush.msrb.mxu3 %v6270_v18 }
 0x543   :  { %v3909_v3 = vadd.f32 %v3876_v35, %v8922_v31  ;;  %v6257_v31 = vld [vmem:[%s10552_s5 + $0x498] sm:$0xff] }
 0x544   :  { %v3813_v26 = vpop.f32.mrf.mxu2  ;;  %4788 = vmatpush.msra.mxu2 %v6257_v31  ;;  %v9301_v31 = vld [vmem:[#allocation2 + $0x110] sm:$0xff] }
 0x545   :  { %6206 = vmatmul.msk.f32.gmra.mxu3 %vm1154_vm1, %v9205_v23  ;;  %6246 = vmatmul.msk.f32.gmra.mxu1 %vm1154_vm1, %v9225_v9  ;;  %v9231_v42 = vpop.f32.mrf.mxu0  ;;  %v9233_v36 = vadd.f32 %v4127_v15, %v3909_v3  ;;  %v9293_v3 = vld [vmem:[#allocation2 + $0x108] sm:$0xff] }
 0x546   :  { %10777 = vst [vmem:[#allocation15_spill] sm:$0xff] %v9231_v42 }
 0x548   :  { %v3878_v19 = vpop.f32.mrf.mxu3  ;;  %4568 = vmatmul.f32.gmra.mxu0 %v9235_v21 }
 0x549   :  { %v3879_v4 = vadd.f32 %v3878_v19, %v3813_v26  ;;  %4317 = vmatmul.f32.gmra.mxu2 %v9215_v56 }
 0x54a   :  { %v9245_v1 = vpop.f32.mrf.mxu1 }
 0x54b   :  { %10778 = vst [vmem:[#allocation39_spill] sm:$0xff] %v9245_v1  ;;  %v9248_v50 = vadd.f32 %v3879_v4, %v8945_v30  ;;  %v6256_v30 = vld [vmem:[%s10552_s5 + $0x490] sm:$0xff] }
 0x54c   :  { %v3816_v7 = vpop.f32.mrf.mxu2  ;;  %4789 = vmatpush.msra.mxu2 %v6256_v30 }
 0x54d   :  { %6207 = vmatmul.msk.f32.gmra.mxu3 %vm1154_vm1, %v9225_v9  ;;  %6247 = vmatmul.msk.f32.gmra.mxu1 %vm1154_vm1, %v9250_v33  ;;  %v9256_v47 = vpop.f32.mrf.mxu0 }
 0x550   :  { %v3881_v44 = vpop.f32.mrf.mxu3  ;;  %4571 = vmatmul.f32.gmra.mxu0 %v9258_v45 }
 0x551   :  { %v3882_v49 = vadd.f32 %v3881_v44, %v3816_v7  ;;  %4320 = vmatmul.f32.gmra.mxu2 %v9235_v21 }
 0x552   :  { %v9265_v6 = vpop.f32.mrf.mxu1 }
 0x553   :  { %v9268_v55 = vadd.f32 %v3882_v49, %v8968_v20  ;;  %v6255_v20 = vld [vmem:[%s10552_s5 + $0x488] sm:$0xff] }
 0x554   :  { %v3819_v2 = vpop.f32.mrf.mxu2  ;;  %4790 = vmatpush.msra.mxu2 %v6255_v20 }
 0x555   :  { %10779 = vst [vmem:[#allocation27_spill] sm:$0xff] %v9268_v55  ;;  %6208 = vmatmul.msk.f32.gmra.mxu3 %vm1154_vm1, %v9250_v33  ;;  %6248 = vmatmul.msk.f32.gmra.mxu1 %vm1154_vm1, %v9270_v10  ;;  %v9276_v25 = vpop.f32.mrf.mxu0 }
 0x556   :  { %10780 = vst [vmem:[#allocation28_spill] sm:$0xff] %v9276_v25 }
 0x558   :  { %v3884_v24 = vpop.f32.mrf.mxu3  ;;  %4574 = vmatmul.f32.gmra.mxu0 %v9278_v41 }
 0x559   :  { %v3885_v5 = vadd.f32 %v3884_v24, %v3819_v2  ;;  %4323 = vmatmul.f32.gmra.mxu2 %v9258_v45  ;;  %v9317_v2 = vld [vmem:[#allocation2 + $0x120] sm:$0xff] }
 0x55a   :  { %v9288_v35 = vpop.f32.mrf.mxu1 }
 0x55b   :  { %10781 = vst [vmem:[#allocation29_spill] sm:$0xff] %v9288_v35  ;;  %v9291_v15 = vadd.f32 %v3885_v5, %v9003_v61  ;;  %v6254_v61 = vld [vmem:[%s10552_s5 + $0x480] sm:$0xff] }
 0x55c   :  { %v3822_v26 = vpop.f32.mrf.mxu2  ;;  %4791 = vmatpush.msra.mxu2 %v6254_v61 }
 0x55d   :  { %6209 = vmatmul.msk.f32.gmra.mxu3 %vm1154_vm1, %v9270_v10  ;;  %6249 = vmatmul.msk.f32.gmra.mxu1 %vm1154_vm1, %v9293_v3  ;;  %v9299_v19 = vpop.f32.mrf.mxu0 }
 0x560   :  { %v3887_v37 = vpop.f32.mrf.mxu3  ;;  %4577 = vmatmul.f32.gmra.mxu0 %v9301_v31 }
 0x561   :  { %v3888_v4 = vadd.f32 %v3887_v37, %v3822_v26  ;;  %4326 = vmatmul.f32.gmra.mxu2 %v9278_v41 }
 0x562   :  { %v9308_v7 = vpop.f32.mrf.mxu1 }
 0x563   :  { %v9311_v44 = vadd.f32 %v3888_v4, %v9032_v59 }
 0x564   :  { %v3825_v30 = vpop.f32.mrf.mxu2 }
 0x565   :  { %10782 = vst [vmem:[#allocation26_spill] sm:$0xff] %v9311_v44  ;;  %6210 = vmatmul.msk.f32.gmra.mxu3 %vm1154_vm1, %v9293_v3  ;;  %6250 = vmatmul.msk.f32.gmra.mxu1 %vm1154_vm1, %v9059_v53  ;;  %v4079_v49 = vpop.f32.mrf.mxu0 }
 0x568   :  { %v3890_v24 = vpop.f32.mrf.mxu3  ;;  %4580 = vmatmul.f32.gmra.mxu0 %v9317_v2 }
 0x569   :  { %v3891_v20 = vadd.f32 %v3890_v24, %v3825_v30  ;;  %4329 = vmatmul.f32.gmra.mxu2 %v9301_v31  ;;  %v9330_v24 = vld [vmem:[#allocation2 + $0x138] sm:$0xff] }
 0x56a   :  { %v4144_v18 = vpop.f32.mrf.mxu1 }
 0x56b   :  { %v4145_v5 = vadd.f32 %v4144_v18, %v4079_v49  ;;  %v9322_v59 = vadd.f32 %v3891_v20, %v9052_v51 }
 0x56c   :  { %v3828_v26 = vpop.f32.mrf.mxu2 }
 0x56d   :  { %6211 = vmatmul.msk.f32.gmra.mxu3 %vm1154_vm1, %v9059_v53  ;;  %6251 = vmatmul.msk.f32.gmra.mxu1 %vm1154_vm1, %v9076_v32  ;;  %v4082_v37 = vpop.f32.mrf.mxu0 }
 0x570   :  { %v3893_v61 = vpop.f32.mrf.mxu3  ;;  %4583 = vmatmul.f32.gmra.mxu0 %v8803_v62 }
 0x571   :  { %v3894_v4 = vadd.f32 %v3893_v61, %v3828_v26  ;;  %4332 = vmatmul.f32.gmra.mxu2 %v9317_v2  ;;  %v9340_v61 = vld [vmem:[#allocation2 + $0x10] sm:$0xff] }
 0x572   :  { %v4147_v30 = vpop.f32.mrf.mxu1 }
 0x573   :  { %v4148_v49 = vadd.f32 %v4147_v30, %v4082_v37  ;;  %v3915_v51 = vadd.f32 %v3894_v4, %v9065_v39  ;;  %v9343_v39 = vld [vmem:[#allocation2 + $0x148] sm:$0xff] }
 0x574   :  { %v3831_v20 = vpop.f32.mrf.mxu2 }
 0x575   :  { %6212 = vmatmul.msk.f32.gmra.mxu3 %vm1154_vm1, %v9076_v32  ;;  %v4085_v18 = vpop.f32.mrf.mxu0  ;;  %6252 = vmatmul.msk.f32.gmra.mxu1 %vm1154_vm1, %v9330_v24  ;;  %v9337_v44 = vadd.f32 %v4145_v5, %v3915_v51 }
 0x578   :  { %v3896_v35 = vpop.f32.mrf.mxu3  ;;  %4586 = vmatmul.f32.gmra.mxu0 %v8803_v62 }
 0x579   :  { %v3897_v26 = vadd.f32 %v3896_v35, %v3831_v20  ;;  %4335 = vmatmul.f32.gmra.mxu2 %v9340_v61 }
 0x57a   :  { %v4150_v37 = vpop.f32.mrf.mxu1 }
 0x57b   :  { %v4151_v4 = vadd.f32 %v4150_v37, %v4085_v18  ;;  %v3916_v30 = vadd.f32 %v3897_v26, %v9082_v52 }
 0x57c   :  { %v3834_v25 = vpop.f32.mrf.mxu2 }
 0x57d   :  { %6213 = vmatmul.msk.f32.gmra.mxu3 %vm1154_vm1, %v9330_v24  ;;  %v4542_v5 = vpop.f32.mrf.mxu0  ;;  %6253 = vmatmul.msk.f32.gmra.mxu1 %vm1154_vm1, %v9343_v39  ;;  %v9350_v62 = vadd.f32 %v4148_v49, %v3916_v30 }
 0x580   :  { %v3899_v35 = vpop.f32.mrf.mxu3 }
 0x581   :  { %v3900_v51 = vadd.f32 %v3899_v35, %v3834_v25  ;;  %4792 = vmatmul.f32.vlgmr.msra.gmra.mxu2 %v9091_v43 }
 0x582   :  { %v4607_v20 = vpop.f32.mrf.mxu1 }
 0x583   :  { %v4608_v55 = vadd.f32 %v4607_v20, %v4542_v5  ;;  %v3917_v18 = vadd.f32 %v3900_v51, %v9089_v63 }
 0x584   :  { %v4291_v37 = vpop.f32.mrf.mxu2 }
 0x585   :  { %6278 = vmatmul.msk.f32.vlgmr.msrb.gmra.mxu3 %vm1154_vm1, %v9101_v16  ;;  %v9356_v52 = vpop.f32.mrf.mxu0  ;;  %v9358_v26 = vadd.f32 %v4151_v4, %v3917_v18 }
 0x588   :  { %v4356_v1 = vpop.f32.mrf.mxu3 }
 0x589   :  { %v4357_v42 = vadd.f32 %v4356_v1, %v4291_v37  ;;  %4795 = vmatmul.f32.gmra.mxu2 %v9108_v40 }
 0x58a   :  { %v9361_v49 = vpop.f32.mrf.mxu1 }
 0x58b   :  { %v4404_v43 = vadd.f32 %v4357_v42, %v9106_v38 }
 0x58c   :  { %v4294_v25 = vpop.f32.mrf.mxu2 }
 0x58d   :  { %6279 = vmatmul.msk.f32.gmra.mxu3 %vm1154_vm1, %v9116_v13  ;;  %v4548_v63 = vpop.f32.mrf.mxu0  ;;  %v9366_v30 = vadd.f32 %v4608_v55, %v4404_v43 }
 0x590   :  { %v4359_v16 = vpop.f32.mrf.mxu3 }
 0x591   :  { %v4360_v5 = vadd.f32 %v4359_v16, %v4294_v25  ;;  %4798 = vmatmul.f32.gmra.mxu2 %v9124_v17 }
 0x592   :  { %v4613_v4 = vpop.f32.mrf.mxu1 }
 0x593   :  { %v4614_v35 = vadd.f32 %v4613_v4, %v4548_v63  ;;  %v9370_v1 = vadd.f32 %v4360_v5, %v9122_v8 }
 0x594   :  { %v4297_v40 = vpop.f32.mrf.mxu2 }
 0x595   :  { %6280 = vmatmul.msk.f32.gmra.mxu3 %vm1154_vm1, %v9135_v34  ;;  %v9374_v38 = vpop.f32.mrf.mxu0 }
 0x598   :  { %v4362_v42 = vpop.f32.mrf.mxu3 }
 0x599   :  { %v4363_v13 = vadd.f32 %v4362_v42, %v4297_v40  ;;  %4801 = vmatmul.f32.gmra.mxu2 %v9143_v57 }
 0x59a   :  { %v9377_v55 = vpop.f32.mrf.mxu1 }
 0x59b   :  { %v4406_v51 = vadd.f32 %v4363_v13, %v9141_v29 }
 0x59c   :  { %v4300_v17 = vpop.f32.mrf.mxu2 }
 0x59d   :  { %6281 = vmatmul.msk.f32.gmra.mxu3 %vm1154_vm1, %v9151_v46  ;;  %v4554_v8 = vpop.f32.mrf.mxu0  ;;  %v9382_v20 = vadd.f32 %v4614_v35, %v4406_v51 }
 0x5a0   :  { %v4365_v18 = vpop.f32.mrf.mxu3 }
 0x5a1   :  { %v4366_v37 = vadd.f32 %v4365_v18, %v4300_v17  ;;  %4804 = vmatmul.f32.gmra.mxu2 %v9159_v58 }
 0x5a2   :  { %v4619_v34 = vpop.f32.mrf.mxu1 }
 0x5a3   :  { %v4620_v43 = vadd.f32 %v4619_v34, %v4554_v8  ;;  %v9386_v25 = vadd.f32 %v4366_v37, %v9157_v48 }
 0x5a4   :  { %v4303_v57 = vpop.f32.mrf.mxu2 }
 0x5a5   :  { %6282 = vmatmul.msk.f32.gmra.mxu3 %vm1154_vm1, %v9170_v28  ;;  %v9390_v29 = vpop.f32.mrf.mxu0 }
 0x5a8   :  { %v4368_v63 = vpop.f32.mrf.mxu3 }
 0x5a9   :  { %v4369_v46 = vadd.f32 %v4368_v63, %v4303_v57  ;;  %4807 = vmatmul.f32.gmra.mxu2 %v9178_v60 }
 0x5aa   :  { %v9393_v16 = vpop.f32.mrf.mxu1 }
 0x5ab   :  { %v4408_v5 = vadd.f32 %v4369_v46, %v9176_v12 }
 0x5ac   :  { %v4306_v58 = vpop.f32.mrf.mxu2 }
 0x5ad   :  { %6283 = vmatmul.msk.f32.gmra.mxu3 %vm1154_vm1, %v9186_v27  ;;  %v4560_v48 = vpop.f32.mrf.mxu0  ;;  %v9398_v4 = vadd.f32 %v4620_v43, %v4408_v5 }
 0x5b0   :  { %v4371_v35 = vpop.f32.mrf.mxu3 }
 0x5b1   :  { %v4372_v40 = vadd.f32 %v4371_v35, %v4306_v58  ;;  %4810 = vmatmul.f32.gmra.mxu2 %v9194_v11 }
 0x5b2   :  { %v4625_v28 = vpop.f32.mrf.mxu1 }
 0x5b3   :  { %v4626_v42 = vadd.f32 %v4625_v28, %v4560_v48  ;;  %v9402_v13 = vadd.f32 %v4372_v40, %v9192_v0  ;;  %v4136_v40 = vadd.f32 %v9265_v6, %v9256_v47 }
 0x5b4   :  { %v4309_v60 = vpop.f32.mrf.mxu2 }
 0x5b5   :  { %6284 = vmatmul.msk.f32.gmra.mxu3 %vm1154_vm1, %v9205_v23  ;;  %v9406_v12 = vpop.f32.mrf.mxu0 }
 0x5b8   :  { %v4374_v51 = vpop.f32.mrf.mxu3 }
 0x5b9   :  { %v4375_v27 = vadd.f32 %v4374_v51, %v4309_v60  ;;  %4813 = vmatmul.f32.gmra.mxu2 %v9215_v56 }
 0x5ba   :  { %v9409_v17 = vpop.f32.mrf.mxu1 }
 0x5bb   :  { %v4410_v8 = vadd.f32 %v4375_v27, %v9213_v22 }
 0x5bc   :  { %v4312_v11 = vpop.f32.mrf.mxu2 }
 0x5bd   :  { %6285 = vmatmul.msk.f32.gmra.mxu3 %vm1154_vm1, %v9225_v9  ;;  %v4566_v0 = vpop.f32.mrf.mxu0  ;;  %v9414_v18 = vadd.f32 %v4626_v42, %v4410_v8  ;;  %v4130_v9 = vadd.f32 %v9222_v14, %v9211_v54 }
 0x5bf   :  { %v4161_v46 = vadd.f32 %v4130_v9, %v9248_v50 }
 0x5c0   :  { %v4377_v37 = vpop.f32.mrf.mxu3 }
 0x5c1   :  { %v4378_v34 = vadd.f32 %v4377_v37, %v4312_v11  ;;  %4816 = vmatmul.f32.gmra.mxu2 %v9235_v21 }
 0x5c2   :  { %v4631_v23 = vpop.f32.mrf.mxu1 }
 0x5c3   :  { %v4632_v43 = vadd.f32 %v4631_v23, %v4566_v0  ;;  %v9418_v57 = vadd.f32 %v4378_v34, %v9233_v36 }
 0x5c4   :  { %v4315_v56 = vpop.f32.mrf.mxu2 }
 0x5c5   :  { %6286 = vmatmul.msk.f32.gmra.mxu3 %vm1154_vm1, %v9250_v33  ;;  %v9422_v22 = vpop.f32.mrf.mxu0 }
 0x5c8   :  { %v4380_v63 = vpop.f32.mrf.mxu3 }
 0x5c9   :  { %v4381_v5 = vadd.f32 %v4380_v63, %v4315_v56  ;;  %4819 = vmatmul.f32.gmra.mxu2 %v9258_v45 }
 0x5ca   :  { %v9428_v21 = vpop.f32.mrf.mxu1 }
 0x5cb   :  { %v4412_v58 = vadd.f32 %v4381_v5, %v4161_v46 }
 0x5cc   :  { %v9430_v36 = vpop.f32.mrf.mxu2 }
 0x5cd   :  { %6287 = vmatmul.msk.f32.gmra.mxu3 %vm1154_vm1, %v9270_v10  ;;  %v4572_v33 = vpop.f32.mrf.mxu0  ;;  %v9434_v48 = vadd.f32 %v4632_v43, %v4412_v58  ;;  %v4163_v10 = vadd.f32 %v4136_v40, %v9291_v15 }
 0x5d0   :  { %v9436_v35 = vpop.f32.mrf.mxu3 }
 0x5d1   :  { %4822 = vmatmul.f32.gmra.mxu2 %v9278_v41 }
 0x5d2   :  { %v4637_v54 = vpop.f32.mrf.mxu1 }
 0x5d3   :  { %v4638_v14 = vadd.f32 %v4637_v54, %v4572_v33 }
 0x5d4   :  { %v4321_v50 = vpop.f32.mrf.mxu2 }
 0x5d5   :  { %6288 = vmatmul.msk.f32.gmra.mxu3 %vm1154_vm1, %v9293_v3  ;;  %v9441_v45 = vpop.f32.mrf.mxu0 }
 0x5d8   :  { %v4386_v28 = vpop.f32.mrf.mxu3 }
 0x5d9   :  { %v4387_v42 = vadd.f32 %v4386_v28, %v4321_v50  ;;  %4825 = vmatmul.f32.gmra.mxu2 %v9301_v31  ;;  %v4142_v31 = vadd.f32 %v9308_v7, %v9299_v19 }
 0x5da   :  { %v9447_v60 = vpop.f32.mrf.mxu1 }
 0x5db   :  { %v4414_v41 = vadd.f32 %v4387_v42, %v4163_v10 }
 0x5dc   :  { %v9449_v51 = vpop.f32.mrf.mxu2 }
 0x5dd   :  { %6289 = vmatmul.msk.f32.gmra.mxu3 %vm1154_vm1, %v9059_v53  ;;  %v9453_v3 = vadd.f32 %v4638_v14, %v4414_v41  ;;  %v4578_v27 = vpop.f32.mrf.mxu0  ;;  %v4165_v53 = vadd.f32 %v4142_v31, %v9322_v59 }
 0x5e0   :  { %v9455_v8 = vpop.f32.mrf.mxu3 }
 0x5e1   :  { %4828 = vmatmul.f32.gmra.mxu2 %v9317_v2 }
 0x5e2   :  { %v4643_v47 = vpop.f32.mrf.mxu1 }
 0x5e3   :  { %v4644_v6 = vadd.f32 %v4643_v47, %v4578_v27 }
 0x5e4   :  { %v4327_v15 = vpop.f32.mrf.mxu2 }
 0x5e5   :  { %6290 = vmatmul.msk.f32.gmra.mxu3 %vm1154_vm1, %v9076_v32  ;;  %v9462_v0 = vpop.f32.mrf.mxu0 }
 0x5e8   :  { %v4392_v11 = vpop.f32.mrf.mxu3 }
 0x5e9   :  { %v4393_v37 = vadd.f32 %v4392_v11, %v4327_v15  ;;  %4831 = vmatmul.f32.gmra.mxu2 %v9340_v61 }
 0x5ea   :  { %v9466_v34 = vpop.f32.mrf.mxu1 }
 0x5eb   :  { %v4416_v2 = vadd.f32 %v4393_v37, %v4165_v53  ;;  %v4611_v53 = vadd.f32 %v9361_v49, %v9356_v52 }
 0x5ec   :  { %v4330_v23 = vpop.f32.mrf.mxu2 }
 0x5ed   :  { %6291 = vmatmul.msk.f32.gmra.mxu3 %vm1154_vm1, %v9330_v24  ;;  %v9470_v43 = vadd.f32 %v4644_v6, %v4416_v2  ;;  %v4584_v56 = vpop.f32.mrf.mxu0  ;;  %v4702_v24 = vld [vmem:[#allocation2 + $0x158] sm:$0xff] }
 0x5f0   :  { %v4395_v32 = vpop.f32.mrf.mxu3 }
 0x5f1   :  { %v4396_v19 = vadd.f32 %v4395_v32, %v4330_v23  ;;  %4834 = vmatmul.f32.gmra.mxu2 %v9340_v61  ;;  %v4656_v23 = vadd.f32 %v4611_v53, %v9370_v1  ;;  %v4623_v32 = vadd.f32 %v9393_v16, %v9390_v29 }
 0x5f2   :  { %v4649_v7 = vpop.f32.mrf.mxu1 }
 0x5f3   :  { %v9474_v59 = vadd.f32 %v4396_v19, %v9337_v44  ;;  %v4650_v9 = vadd.f32 %v4649_v7, %v4584_v56  ;;  %v9503_v19 = vld [vmem:[%s10553_s6] ss:$0 sm:$0xff]  ;;  %v4660_v7 = vadd.f32 %v4623_v32, %v9402_v13 }
 0x5f4   :  { %v4333_v63 = vpop.f32.mrf.mxu2 }
 0x5f5   :  { %6292 = vmatmul.msk.f32.gmra.mxu3 %vm1154_vm1, %v9343_v39 }
 0x5f8   :  { %v4398_v46 = vpop.f32.mrf.mxu3 }
 0x5f9   :  { %v4399_v5 = vadd.f32 %v4398_v46, %v4333_v63  ;;  %4837 = vmatmul.f32.gmra.mxu2 %v9340_v61 }
 0x5fb   :  { %v4418_v58 = vadd.f32 %v4399_v5, %v9350_v62 }
 0x5fc   :  { %v4336_v33 = vpop.f32.mrf.mxu2 }
 0x5fd   :  { %v9480_v54 = vadd.f32 %v4650_v9, %v4418_v58  ;;  %6293 = vmatmul.msk.f32.gmra.mxu3 %vm1154_vm1, %v4702_v24  ;;  %v4617_v24 = vadd.f32 %v9377_v55, %v9374_v38 }
 0x600   :  { %v4401_v14 = vpop.f32.mrf.mxu3 }
 0x601   :  { %v4402_v44 = vadd.f32 %v4401_v14, %v4336_v33  ;;  %v4658_v14 = vadd.f32 %v4617_v24, %v9386_v25 }
 0x603   :  { %v9484_v50 = vadd.f32 %v4402_v44, %v9358_v26  ;;  %v4629_v44 = vadd.f32 %v9409_v17, %v9406_v12 }
 0x604   :  { %v4793_v40 = vpop.f32.mrf.mxu2 }
 0x608   :  { %v4858_v28 = vpop.f32.mrf.mxu3 }
 0x609   :  { %v4859_v39 = vadd.f32 %v4858_v28, %v4793_v40 }
 0x60b   :  { %v9487_v10 = vadd.f32 %v4859_v39, %v9366_v30  ;;  %v4662_v39 = vadd.f32 %v4629_v44, %v9418_v57  ;;  %v5092_v57 = vld [vmem:[%s10554_s7 + $0x2f0] sm:$0xff] }
 0x60c   :  { %v4796_v61 = vpop.f32.mrf.mxu2  ;;  %5300 = vmatpush.msrb.mxu2 %v5092_v57 }
 0x610   :  { %v4861_v42 = vpop.f32.mrf.mxu3 }
 0x611   :  { %v4862_v37 = vadd.f32 %v4861_v42, %v4796_v61 }
 0x614   :  { %v4799_v41 = vpop.f32.mrf.mxu2 }
 0x618   :  { %v4864_v62 = vpop.f32.mrf.mxu3 }
 0x619   :  { %v4865_v27 = vadd.f32 %v4864_v62, %v4799_v41 }
 0x61b   :  { %v9490_v47 = vadd.f32 %v4865_v27, %v9382_v20  ;;  %v4907_v20 = vadd.f32 %v4862_v37, %v4656_v23  ;;  %v5060_v23 = vld [vmem:[%s10554_s7 + $0x1f0] sm:$0xff] }
 0x61c   :  { %v4802_v6 = vpop.f32.mrf.mxu2  ;;  %5280 = vmatpush.msrb.mxu1 %v5060_v23  ;;  %v5112_v23 = vld [vmem:[%s10554_s7 + $0x390] sm:$0xff] }
 0x620   :  { %v4867_v15 = vpop.f32.mrf.mxu3 }
 0x621   :  { %v4868_v58 = vadd.f32 %v4867_v15, %v4802_v6 }
 0x623   :  { %v4909_v40 = vadd.f32 %v4868_v58, %v4658_v14  ;;  %v5056_v58 = vld [vmem:[%s10554_s7 + $0x1d0] sm:$0xff] }
 0x624   :  { %v4805_v31 = vpop.f32.mrf.mxu2 }
 0x625   :  { %v4929_v38 = vadd.f32 %v9503_v19, %v4909_v40  ;;  %v5086_v40 = vld [vmem:[%s10554_s7 + $0x2c0] sm:$0xff] }
 0x627   :  { %v4945_v41 = vmax.f32 %v4929_v38, 0.0 }
 0x628   :  { %v4870_v11 = vpop.f32.mrf.mxu3 }
 0x629   :  { %v4871_v26 = vadd.f32 %v4870_v11, %v4805_v31 }
 0x62b   :  { %v9495_v30 = vadd.f32 %v4871_v26, %v9398_v4  ;;  %v4927_v4 = vadd.f32 %v9503_v19, %v4907_v20 }
 0x62c   :  { %v4808_v2 = vpop.f32.mrf.mxu2 }
 0x62d   :  { %v4943_v1 = vmax.f32 %v4927_v4, 0.0  ;;  %v10785_v4 = vld [vmem:[#allocation27_spill] sm:$0xff] }
 0x630   :  { %v4873_v56 = vpop.f32.mrf.mxu3 }
 0x631   :  { %v4874_v52 = vadd.f32 %v4873_v56, %v4808_v2  ;;  %v5124_v2 = vld [vmem:[%s10554_s7 + $0x3f0] sm:$0xff]  ;;  %v10783_v56 = vld [vmem:[#allocation15_spill] sm:$0xff] }
 0x632   :  { %5320 = vmatpush.msra.mxu3 %v5124_v2  ;;  %v5076_v2 = vld [vmem:[%s10554_s7 + $0x270] sm:$0xff] }
 0x633   :  { %v4911_v49 = vadd.f32 %v4874_v52, %v4660_v7  ;;  %v10784_v7 = vld [vmem:[#allocation39_spill] sm:$0xff] }
 0x634   :  { %v4811_v9 = vpop.f32.mrf.mxu2  ;;  %v4133_v52 = vadd.f32 %v10784_v7, %v10783_v56  ;;  %v10786_v56 = vld [vmem:[#allocation28_spill] sm:$0xff]  ;;  %v10787_v7 = vld [vmem:[#allocation29_spill] sm:$0xff] }
 0x635   :  { %v4931_v63 = vadd.f32 %v9503_v19, %v4911_v49  ;;  %v4384_v49 = vadd.f32 %v9436_v35, %v9430_v36  ;;  %v5088_v36 = vld [vmem:[%s10554_s7 + $0x2d0] sm:$0xff] }
 0x636   :  { %v5024_v35 = vld [vmem:[%s10554_s7 + $0xd0] sm:$0xff] }
 0x637   :  { %v4947_v46 = vmax.f32 %v4931_v63, 0.0  ;;  %v5026_v63 = vld [vmem:[%s10554_s7 + $0xe0] sm:$0xff] }
 0x638   :  { %v4876_v5 = vpop.f32.mrf.mxu3 }
 0x639   :  { %v4877_v29 = vadd.f32 %v4876_v5, %v4811_v9  ;;  %v6302_v16 = vpack.i.bf16 %v4943_v1, %v4947_v46  ;;  %v4162_v9 = vadd.f32 %v4133_v52, %v10785_v4  ;;  %v5122_v1 = vld [vmem:[%s10554_s7 + $0x3e0] sm:$0xff]  ;;  %v4139_v52 = vadd.f32 %v10787_v7, %v10786_v56  ;;  %v5104_v56 = vld [vmem:[%s10554_s7 + $0x350] sm:$0xff] }
 0x63a   :  { %v5058_v46 = vld [vmem:[%s10554_s7 + $0x1e0] sm:$0xff]  ;;  %5321 = vmatpush.msra.mxu3 %v5122_v1  ;;  %v5152_v7 = vld [vmem:[%s10554_s7 + $0x4d0] sm:$0xff] }
 0x63b   :  { %v9511_v33 = vadd.f32 %v4877_v29, %v9414_v18  ;;  %6303 = vrot.lane.b32.xlu0 %v6302_v16, %s6360_s4  ;;  %v5120_v29 = vld [vmem:[%s10554_s7 + $0x3d0] sm:$0xff]  ;;  %v4413_v16 = vadd.f32 %v4384_v49, %v4162_v9  ;;  %5281 = vmatpush.msrb.mxu1 %v5058_v46  ;;  %v4390_v49 = vadd.f32 %v9455_v8, %v9449_v51  ;;  %v5010_v9 = vld [vmem:[%s10554_s7 + $0x60] sm:$0xff] }
 0x63c   :  { %v4814_v13 = vpop.f32.mrf.mxu2  ;;  %5322 = vmatpush.msra.mxu3 %v5120_v29  ;;  %v10788_v1 = vld [vmem:[#allocation26_spill] sm:$0xff]  ;;  %v5008_v51 = vld [vmem:[%s10554_s7 + $0x50] sm:$0xff] }
 0x63d   :  { %5282 = vmatpush.msrb.mxu1 %v5056_v58  ;;  %v4164_v46 = vadd.f32 %v4139_v52, %v10788_v1  ;;  %v5072_v8 = vld [vmem:[%s10554_s7 + $0x250] sm:$0xff]  ;;  %v5006_v58 = vld [vmem:[%s10554_s7 + $0x40] sm:$0xff] }
 0x63e   :  { %v5216_v52 = vld [vmem:[%s10554_s7 + $0x6d0] sm:$0xff] }
 0x63f   :  { %v4415_v29 = vadd.f32 %v4390_v49, %v4164_v46  ;;  %v5038_v49 = vld [vmem:[%s10554_s7 + $0x140] sm:$0xff]  ;;  %v5036_v1 = vld [vmem:[%s10554_s7 + $0x130] sm:$0xff] }
 0x640   :  { %v4879_v28 = vpop.f32.mrf.mxu3  ;;  %v5100_v46 = vld [vmem:[%s10554_s7 + $0x330] sm:$0xff] }
 0x641   :  { %v4880_v61 = vadd.f32 %v4879_v28, %v4814_v13  ;;  %v4635_v13 = vadd.f32 %v9428_v21, %v9422_v22  ;;  %v5022_v28 = vld [vmem:[%s10554_s7 + $0xc0] sm:$0xff]  ;;  %v5084_v21 = vld [vmem:[%s10554_s7 + $0x2b0] sm:$0xff] }
 0x642   :  { %v5054_v22 = vld [vmem:[%s10554_s7 + $0x1c0] sm:$0xff] }
 0x643   :  { %v4913_v55 = vadd.f32 %v4880_v61, %v4662_v39  ;;  %v5118_v39 = vld [vmem:[%s10554_s7 + $0x3c0] sm:$0xff]  ;;  %v4664_v38 = vadd.f32 %v4635_v13, %v4413_v16  ;;  %5283 = vmatpush.msrb.mxu1 %v5054_v22  ;;  %v5004_v22 = vld [vmem:[%s10554_s7 + $0x30] sm:$0xff] }
 0x644   :  { %v4817_v42 = vpop.f32.mrf.mxu2  ;;  %5323 = vmatpush.msra.mxu3 %v5118_v39  ;;  %v5070_v13 = vld [vmem:[%s10554_s7 + $0x240] sm:$0xff] }
 0x645   :  { %v4933_v18 = vadd.f32 %v9503_v19, %v4913_v55  ;;  %v5116_v55 = vld [vmem:[%s10554_s7 + $0x3b0] sm:$0xff] }
 0x646   :  { %5324 = vmatpush.msra.mxu3 %v5116_v55 }
 0x647   :  { %v4949_v62 = vmax.f32 %v4933_v18, 0.0  ;;  %v5018_v18 = vld [vmem:[%s10554_s7 + $0xa0] sm:$0xff] }
 0x648   :  { %v4882_v27 = vpop.f32.mrf.mxu3 }
 0x649   :  { %v4883_v6 = vadd.f32 %v4882_v27, %v4817_v42  ;;  %v6307_v15 = vpack.i.bf16 %v4945_v41, %v4949_v62  ;;  %v5052_v42 = vld [vmem:[%s10554_s7 + $0x1b0] sm:$0xff]  ;;  %v5082_v41 = vld [vmem:[%s10554_s7 + $0x2a0] sm:$0xff]  ;;  %v4647_v62 = vadd.f32 %v9466_v34, %v9462_v0 }
 0x64a   :  { %5284 = vmatpush.msrb.mxu1 %v5052_v42  ;;  %v5050_v0 = vld [vmem:[%s10554_s7 + $0x1a0] sm:$0xff] }
 0x64b   :  { %v9521_v25 = vadd.f32 %v4883_v6, %v9434_v48  ;;  %6308 = vrot.lane.b32.xlu0 %v6307_v15, %s6360_s4  ;;  %v5028_v48 = vld [vmem:[%s10554_s7 + $0xf0] sm:$0xff]  ;;  %v4668_v34 = vadd.f32 %v4647_v62, %v9474_v59 }
 0x64c   :  { %v4820_v12 = vpop.f32.mrf.mxu2  ;;  %5260 = vmatpush.msrb.mxu0 %v5028_v48  ;;  %v5016_v6 = vld [vmem:[%s10554_s7 + $0x90] sm:$0xff]  ;;  %5285 = vmatpush.msrb.mxu1 %v5050_v0  ;;  %v5046_v0 = vld [vmem:[%s10554_s7 + $0x180] sm:$0xff] }
 0x64d   :  { %v5080_v15 = vld [vmem:[%s10554_s7 + $0x290] sm:$0xff] }
 0x64e   :  { %5261 = vmatpush.msrb.mxu0 %v5026_v63  ;;  %v5012_v59 = vld [vmem:[%s10554_s7 + $0x70] sm:$0xff]  ;;  %v5074_v63 = vld [vmem:[%s10554_s7 + $0x260] sm:$0xff] }
 0x650   :  { %v4885_v17 = vpop.f32.mrf.mxu3  ;;  %5262 = vmatpush.msrb.mxu0 %v5024_v35 }
 0x651   :  { %v4886_v14 = vadd.f32 %v4885_v17, %v4820_v12  ;;  %v5114_v12 = vld [vmem:[%s10554_s7 + $0x3a0] sm:$0xff] }
 0x652   :  { %5263 = vmatpush.msrb.mxu0 %v5022_v28  ;;  %5325 = vmatpush.msra.mxu3 %v5114_v12  ;;  %v4641_v28 = vadd.f32 %v9447_v60, %v9441_v45  ;;  %v5002_v60 = vld [vmem:[%s10554_s7 + $0x20] sm:$0xff]  ;;  %v5000_v12 = vld [vmem:[%s10554_s7 + $0x10] sm:$0xff] }
 0x653   :  { %v4915_v27 = vadd.f32 %v4886_v14, %v4664_v38  ;;  %v4587_v14 = vpop.f32.mrf.mxu0 }
 0x654   :  { %v4823_v31 = vpop.f32.mrf.mxu2  ;;  %5326 = vmatpush.msra.mxu3 %v5112_v23  ;;  %v4666_v45 = vadd.f32 %v4641_v28, %v4415_v29  ;;  %v5154_v23 = vld [vmem:[%s10554_s7 + $0x4e0] sm:$0xff] }
 0x655   :  { %v4935_v48 = vadd.f32 %v9503_v19, %v4915_v27  ;;  %v5210_v29 = vld [vmem:[%s10554_s7 + $0x6a0] sm:$0xff] }
 0x656   :  { %v5142_v28 = vld [vmem:[%s10554_s7 + $0x480] sm:$0xff] }
 0x658   :  { %v4888_v11 = vpop.f32.mrf.mxu3 }
 0x659   :  { %v4889_v26 = vadd.f32 %v4888_v11, %v4823_v31  ;;  %v5014_v31 = vld [vmem:[%s10554_s7 + $0x80] sm:$0xff] }
 0x65a   :  { %v5078_v11 = vld [vmem:[%s10554_s7 + $0x280] sm:$0xff] }
 0x65b   :  { %v9528_v53 = vadd.f32 %v4889_v26, %v9453_v3  ;;  %v5090_v3 = vld [vmem:[%s10554_s7 + $0x2e0] sm:$0xff] }
 0x65c   :  { %v9530_v37 = vpop.f32.mrf.mxu2  ;;  %5301 = vmatpush.msrb.mxu2 %v5090_v3 }
 0x65e   :  { %5302 = vmatpush.msrb.mxu2 %v5088_v36 }
 0x660   :  { %v9541_v32 = vpop.f32.mrf.mxu3  ;;  %5303 = vmatpush.msrb.mxu2 %v5086_v40  ;;  %v4652_v40 = vpop.f32.mrf.mxu1 }
 0x661   :  { %v4892_v39 = vadd.f32 %v9541_v32, %v9530_v37 }
 0x662   :  { %5304 = vmatpush.msrb.mxu2 %v5084_v21  ;;  %v5068_v21 = vld [vmem:[%s10554_s7 + $0x230] sm:$0xff] }
 0x663   :  { %v4917_v32 = vadd.f32 %v4892_v39, %v4666_v45  ;;  %v5206_v39 = vld [vmem:[%s10554_s7 + $0x680] sm:$0xff]  ;;  %v5252_v45 = vld [vmem:[%s10554_s7 + $0x7f0] sm:$0xff] }
 0x664   :  { %v4829_v20 = vpop.f32.mrf.mxu2  ;;  %5305 = vmatpush.msrb.mxu2 %v5082_v41 }
 0x666   :  { %5306 = vmatpush.msrb.mxu2 %v5080_v15 }
 0x668   :  { %v4894_v5 = vpop.f32.mrf.mxu3  ;;  %5307 = vmatpush.msrb.mxu2 %v5078_v11  ;;  %v5108_v11 = vld [vmem:[%s10554_s7 + $0x370] sm:$0xff] }
 0x669   :  { %v4895_v24 = vadd.f32 %v4894_v5, %v4829_v20  ;;  %v5048_v20 = vld [vmem:[%s10554_s7 + $0x190] sm:$0xff]  ;;  %v4951_v5 = vmax.f32 %v4935_v48, 0.0 }
 0x66a   :  { %5286 = vmatpush.msrb.mxu1 %v5048_v20  ;;  %5308 = vmatpush.msrb.mxu2 %v5076_v2  ;;  %v5220_v48 = vld [vmem:[%s10554_s7 + $0x6f0] sm:$0xff]  ;;  %v5106_v2 = vld [vmem:[%s10554_s7 + $0x360] sm:$0xff] }
 0x66b   :  { %v9575_v44 = vadd.f32 %v4895_v24, %v9470_v43  ;;  %v5020_v43 = vld [vmem:[%s10554_s7 + $0xb0] sm:$0xff] }
 0x66c   :  { %v4832_v61 = vpop.f32.mrf.mxu2  ;;  %5264 = vmatpush.msrb.mxu0 %v5020_v43  ;;  %5309 = vmatpush.msrb.mxu2 %v5074_v63  ;;  %v4653_v43 = vadd.f32 %v4652_v40, %v4587_v14  ;;  %v5040_v20 = vld [vmem:[%s10554_s7 + $0x150] sm:$0xff]  ;;  %v5214_v63 = vld [vmem:[%s10554_s7 + $0x6c0] sm:$0xff] }
 0x66d   :  { %5287 = vmatpush.msrb.mxu1 %v5046_v0  ;;  %v5030_v14 = vld [vmem:[%s10554_s7 + $0x100] sm:$0xff]  ;;  %v4926_v0 = vadd.f32 %v9503_v19, %v9487_v10 }
 0x66e   :  { %5265 = vmatpush.msrb.mxu0 %v5018_v18  ;;  %5310 = vmatpush.msrb.mxu2 %v5072_v8  ;;  %v4670_v55 = vadd.f32 %v4653_v43, %v9484_v50  ;;  %v4937_v18 = vadd.f32 %v9503_v19, %v4917_v32  ;;  %v4998_v50 = vld [vmem:[%s10554_s7] sm:$0xff]  ;;  %v5204_v43 = vld [vmem:[%s10554_s7 + $0x670] sm:$0xff] }
 0x66f   :  { %v5098_v8 = vld [vmem:[%s10554_s7 + $0x320] sm:$0xff] }
 0x670   :  { %v4897_v17 = vpop.f32.mrf.mxu3  ;;  %5266 = vmatpush.msrb.mxu0 %v5016_v6  ;;  %5311 = vmatpush.msrb.mxu2 %v5070_v13  ;;  %v4953_v27 = vmax.f32 %v4937_v18, 0.0  ;;  %v5208_v13 = vld [vmem:[%s10554_s7 + $0x690] sm:$0xff]  ;;  %v5094_v40 = vld [vmem:[%s10554_s7 + $0x300] sm:$0xff] }
 0x671   :  { %v4898_v57 = vadd.f32 %v4897_v17, %v4832_v61  ;;  %v5064_v17 = vld [vmem:[%s10554_s7 + $0x210] sm:$0xff]  ;;  %v5250_v32 = vld [vmem:[%s10554_s7 + $0x7e0] sm:$0xff] }
 0x672   :  { %5267 = vmatpush.msrb.mxu0 %v5014_v31  ;;  %5312 = vmatpush.msrb.mxu2 %v5068_v21  ;;  %v5044_v31 = vld [vmem:[%s10554_s7 + $0x170] sm:$0xff]  ;;  %v5194_v10 = vld [vmem:[%s10554_s7 + $0x620] sm:$0xff] }
 0x673   :  { %v4919_v26 = vadd.f32 %v4898_v57, %v4668_v34  ;;  %v5062_v34 = vld [vmem:[%s10554_s7 + $0x200] sm:$0xff]  ;;  %5288 = vmatpush.msrb.mxu1 %v5044_v31  ;;  %v5188_v21 = vld [vmem:[%s10554_s7 + $0x5f0] sm:$0xff] }
 0x674   :  { %v4835_v3 = vpop.f32.mrf.mxu2  ;;  %5268 = vmatpush.msrb.mxu0 %v5012_v59  ;;  %v5110_v57 = vld [vmem:[%s10554_s7 + $0x380] sm:$0xff]  ;;  %v5248_v18 = vld [vmem:[%s10554_s7 + $0x7d0] sm:$0xff] }
 0x675   :  { %v4939_v4 = vadd.f32 %v9503_v19, %v4919_v26  ;;  %5327 = vmatpush.msra.mxu3 %v5110_v57  ;;  %v5156_v26 = vld [vmem:[%s10554_s7 + $0x4f0] sm:$0xff]  ;;  %v5042_v59 = vld [vmem:[%s10554_s7 + $0x160] sm:$0xff] }
 0x676   :  { %5269 = vmatpush.msrb.mxu0 %v5010_v9  ;;  %5289 = vmatpush.msrb.mxu1 %v5042_v59  ;;  %v5150_v9 = vld [vmem:[%s10554_s7 + $0x4c0] sm:$0xff]  ;;  %v5128_v59 = vld [vmem:[%s10554_s7 + $0x410] sm:$0xff] }
 0x677   :  { %v4955_v36 = vmax.f32 %v4939_v4, 0.0  ;;  %5328 = vmatpush.msra.mxu3 %v5108_v11  ;;  %v5102_v4 = vld [vmem:[%s10554_s7 + $0x340] sm:$0xff] }
 0x678   :  { %v4900_v35 = vpop.f32.mrf.mxu3  ;;  %5270 = vmatpush.msrb.mxu0 %v5008_v51  ;;  %5290 = vmatpush.msrb.mxu1 %v5040_v20  ;;  %v5034_v51 = vld [vmem:[%s10554_s7 + $0x120] sm:$0xff] }
 0x679   :  { %v4901_v16 = vadd.f32 %v4900_v35, %v4835_v3  ;;  %v6312_v24 = vpack.i.bf16 %v4951_v5, %v4955_v36  ;;  %v5218_v3 = vld [vmem:[%s10554_s7 + $0x6e0] sm:$0xff]  ;;  %5329 = vmatpush.msra.mxu3 %v5106_v2  ;;  %v5148_v5 = vld [vmem:[%s10554_s7 + $0x4b0] sm:$0xff] }
 0x67a   :  { %5271 = vmatpush.msrb.mxu0 %v5006_v58  ;;  %5291 = vmatpush.msrb.mxu1 %v5038_v49  ;;  %v5212_v36 = vld [vmem:[%s10554_s7 + $0x6b0] sm:$0xff]  ;;  %v5146_v35 = vld [vmem:[%s10554_s7 + $0x4a0] sm:$0xff] }
 0x67b   :  { %v9670_v61 = vadd.f32 %v4901_v16, %v9480_v54  ;;  %6313 = vrot.lane.b32.xlu1 %v6312_v24, %s6360_s4  ;;  %v5066_v54 = vld [vmem:[%s10554_s7 + $0x220] sm:$0xff]  ;;  %5330 = vmatpush.msra.mxu3 %v5104_v56  ;;  %v5032_v16 = vld [vmem:[%s10554_s7 + $0x110] sm:$0xff] }
 0x67c   :  { %v4838_v37 = vpop.f32.mrf.mxu2  ;;  %5272 = vmatpush.msrb.mxu0 %v5004_v22  ;;  %5313 = vmatpush.msrb.mxu2 %v5066_v54  ;;  %v5096_v24 = vld [vmem:[%s10554_s7 + $0x310] sm:$0xff]  ;;  %v5186_v54 = vld [vmem:[%s10554_s7 + $0x5e0] sm:$0xff] }
 0x67d   :  { %5331 = vmatpush.msra.mxu3 %v5102_v4  ;;  %5292 = vmatpush.msrb.mxu1 %v5036_v1  ;;  %v5144_v58 = vld [vmem:[%s10554_s7 + $0x490] sm:$0xff]  ;;  %v5178_v57 = vld [vmem:[%s10554_s7 + $0x5a0] sm:$0xff]  ;;  %v5029_v1 = vld [vmem:[%s10554_s7 + $0xf8] sm:$0xff] }
 0x67e   :  { %5273 = vmatpush.msrb.mxu0 %v5002_v60  ;;  %5314 = vmatpush.msrb.mxu2 %v5064_v17  ;;  %v5140_v22 = vld [vmem:[%s10554_s7 + $0x470] sm:$0xff]  ;;  %v5138_v60 = vld [vmem:[%s10554_s7 + $0x460] sm:$0xff] }
 0x67f   :  { %5332 = vmatpush.msra.mxu3 %v5100_v46  ;;  %5293 = vmatpush.msrb.mxu1 %v5034_v51  ;;  %v5132_v17 = vld [vmem:[%s10554_s7 + $0x430] sm:$0xff]  ;;  %v5242_v31 = vld [vmem:[%s10554_s7 + $0x7a0] sm:$0xff]  ;;  %v5093_v46 = vld [vmem:[%s10554_s7 + $0x2f8] sm:$0xff] }
 0x680   :  { %v4903_v38 = vpop.f32.mrf.mxu3  ;;  %5274 = vmatpush.msrb.mxu0 %v5000_v12  ;;  %5315 = vmatpush.msrb.mxu2 %v5062_v34  ;;  %v5244_v12 = vld [vmem:[%s10554_s7 + $0x7b0] sm:$0xff]  ;;  %v4930_v34 = vadd.f32 %v9503_v19, %v9495_v30  ;;  %v5130_v11 = vld [vmem:[%s10554_s7 + $0x420] sm:$0xff]  ;;  %v5027_v51 = vld [vmem:[%s10554_s7 + $0xe8] sm:$0xff] }
 0x681   :  { %v4904_v42 = vadd.f32 %v4903_v38, %v4838_v37  ;;  %5333 = vmatpush.msra.mxu3 %v5098_v8  ;;  %5294 = vmatpush.msrb.mxu1 %v5032_v16  ;;  %v5202_v37 = vld [vmem:[%s10554_s7 + $0x660] sm:$0xff]  ;;  %v5184_v38 = vld [vmem:[%s10554_s7 + $0x5d0] sm:$0xff]  ;;  %v5091_v8 = vld [vmem:[%s10554_s7 + $0x2e8] sm:$0xff] }
 0x682   :  { %5275 = vmatpush.msrb.mxu0 %v4998_v50  ;;  %5380 = vmatpush.msra.mxu2 %v5220_v48  ;;  %v5196_v50 = vld [vmem:[%s10554_s7 + $0x630] sm:$0xff]  ;;  %v5025_v16 = vld [vmem:[%s10554_s7 + $0xd8] sm:$0xff] }
 0x683   :  { %v4921_v41 = vadd.f32 %v4904_v42, %v4670_v55  ;;  %5334 = vmatpush.msra.mxu3 %v5096_v24  ;;  %5295 = vmatpush.msrb.mxu1 %v5030_v14  ;;  %v5136_v55 = vld [vmem:[%s10554_s7 + $0x450] sm:$0xff]  ;;  %v5089_v24 = vld [vmem:[%s10554_s7 + $0x2d8] sm:$0xff]  ;;  %v5023_v14 = vld [vmem:[%s10554_s7 + $0xc8] sm:$0xff] }
 0x684   :  { %5340 = vmatpush.msra.mxu0 %v5156_v26  ;;  %5381 = vmatpush.msra.mxu2 %v5218_v3  ;;  %v5200_v42 = vld [vmem:[%s10554_s7 + $0x650] sm:$0xff]  ;;  %v4946_v3 = vmax.f32 %v4930_v34, 0.0  ;;  %v5158_v34 = vld [vmem:[%s10554_s7 + $0x500] sm:$0xff] }
 0x685   :  { %v4941_v62 = vadd.f32 %v9503_v19, %v4921_v41  ;;  %5335 = vmatpush.msra.mxu3 %v5094_v40  ;;  %5360 = vmatpush.msra.mxu1 %v5188_v21  ;;  %v5182_v41 = vld [vmem:[%s10554_s7 + $0x5c0] sm:$0xff]  ;;  %v5176_v30 = vld [vmem:[%s10554_s7 + $0x590] sm:$0xff]  ;;  %v5087_v40 = vld [vmem:[%s10554_s7 + $0x2c8] sm:$0xff] }
 0x686   :  { %5341 = vmatpush.msra.mxu0 %v5154_v23  ;;  %5382 = vmatpush.msra.mxu2 %v5216_v52  ;;  %v5240_v26 = vld [vmem:[%s10554_s7 + $0x790] sm:$0xff]  ;;  %v4942_v23 = vmax.f32 %v4926_v0, 0.0  ;;  %v5174_v52 = vld [vmem:[%s10554_s7 + $0x580] sm:$0xff]  ;;  %v5085_v21 = vld [vmem:[%s10554_s7 + $0x2b8] sm:$0xff] }
 0x687   :  { %v4957_v6 = vmax.f32 %v4941_v62, 0.0  ;;  %5400 = vmatpush.msrb.mxu3 %v5252_v45  ;;  %5361 = vmatpush.msra.mxu1 %v5186_v54  ;;  %v5246_v62 = vld [vmem:[%s10554_s7 + $0x7c0] sm:$0xff]  ;;  %v5192_v2 = vld [vmem:[%s10554_s7 + $0x610] sm:$0xff]  ;;  %v4932_v45 = vadd.f32 %v9503_v19, %v9511_v33  ;;  %v5079_v0 = vld [vmem:[%s10554_s7 + $0x288] sm:$0xff] }
 0x688   :  { %5342 = vmatpush.msra.mxu0 %v5152_v7  ;;  %5383 = vmatpush.msra.mxu2 %v5214_v63  ;;  %v5126_v7 = vld [vmem:[%s10554_s7 + $0x400] sm:$0xff]  ;;  %v5228_v54 = vld [vmem:[%s10554_s7 + $0x730] sm:$0xff] }
 0x689   :  { %v6317_v15 = vpack.i.bf16 %v4953_v27, %v4957_v6  ;;  %5401 = vmatpush.msrb.mxu3 %v5250_v32  ;;  %5362 = vmatpush.msra.mxu1 %v5184_v38  ;;  %v5134_v27 = vld [vmem:[%s10554_s7 + $0x440] sm:$0xff] }
 0x68a   :  { %5343 = vmatpush.msra.mxu0 %v5150_v9  ;;  %5384 = vmatpush.msra.mxu2 %v5212_v36  ;;  %v5198_v6 = vld [vmem:[%s10554_s7 + $0x640] sm:$0xff]  ;;  %v5236_v36 = vld [vmem:[%s10554_s7 + $0x770] sm:$0xff] }
 0x68b   :  { %6318 = vrot.lane.b32.xlu1 %v6317_v15, %s6360_s4  ;;  %5402 = vmatpush.msrb.mxu3 %v5248_v18  ;;  %v5180_v15 = vld [vmem:[%s10554_s7 + $0x5b0] sm:$0xff]  ;;  %v5190_v9 = vld [vmem:[%s10554_s7 + $0x600] sm:$0xff] }
 0x68c   :  { %5344 = vmatpush.msra.mxu0 %v5148_v5  ;;  %5385 = vmatpush.msra.mxu2 %v5210_v29  ;;  %v5238_v63 = vld [vmem:[%s10554_s7 + $0x780] sm:$0xff]  ;;  %v5172_v5 = vld [vmem:[%s10554_s7 + $0x570] sm:$0xff] }
 0x68d   :  { %5363 = vmatpush.msra.mxu1 %v5182_v41  ;;  %5403 = vmatpush.msrb.mxu3 %v5246_v62  ;;  %v5234_v29 = vld [vmem:[%s10554_s7 + $0x760] sm:$0xff]  ;;  %v4948_v41 = vmax.f32 %v4932_v45, 0.0  ;;  %v5107_v45 = vld [vmem:[%s10554_s7 + $0x368] sm:$0xff] }
 0x68e   :  { %5345 = vmatpush.msra.mxu0 %v5146_v35  ;;  %5386 = vmatpush.msra.mxu2 %v5208_v13  ;;  %v5170_v35 = vld [vmem:[%s10554_s7 + $0x560] sm:$0xff]  ;;  %v5232_v13 = vld [vmem:[%s10554_s7 + $0x750] sm:$0xff] }
 0x68f   :  { %5364 = vmatpush.msra.mxu1 %v5180_v15  ;;  %5404 = vmatpush.msrb.mxu3 %v5244_v12  ;;  %v5162_v33 = vld [vmem:[%s10554_s7 + $0x520] sm:$0xff]  ;;  %v5224_v15 = vld [vmem:[%s10554_s7 + $0x710] sm:$0xff] }
 0x690   :  { %5346 = vmatpush.msra.mxu0 %v5144_v58  ;;  %5387 = vmatpush.msra.mxu2 %v5206_v39  ;;  %v5168_v58 = vld [vmem:[%s10554_s7 + $0x550] sm:$0xff]  ;;  %v5230_v39 = vld [vmem:[%s10554_s7 + $0x740] sm:$0xff] }
 0x691   :  { %5365 = vmatpush.msra.mxu1 %v5178_v57  ;;  %5405 = vmatpush.msrb.mxu3 %v5242_v31  ;;  %v5226_v32 = vld [vmem:[%s10554_s7 + $0x720] sm:$0xff]  ;;  %v5013_v31 = vld [vmem:[%s10554_s7 + $0x78] sm:$0xff] }
 0x692   :  { %5347 = vmatpush.msra.mxu0 %v5142_v28  ;;  %5388 = vmatpush.msra.mxu2 %v5204_v43  ;;  %v5166_v28 = vld [vmem:[%s10554_s7 + $0x540] sm:$0xff]  ;;  %v4928_v43 = vadd.f32 %v9503_v19, %v9490_v47  ;;  %v5083_v47 = vld [vmem:[%s10554_s7 + $0x2a8] sm:$0xff] }
 0x693   :  { %5366 = vmatpush.msra.mxu1 %v5176_v30  ;;  %5406 = vmatpush.msrb.mxu3 %v5240_v26  ;;  %v5222_v57 = vld [vmem:[%s10554_s7 + $0x700] sm:$0xff]  ;;  %v5125_v30 = vld [vmem:[%s10554_s7 + $0x3f8] sm:$0xff]  ;;  %v5011_v26 = vld [vmem:[%s10554_s7 + $0x68] sm:$0xff] }
 0x694   :  { %5348 = vmatpush.msra.mxu0 %v5140_v22  ;;  %5389 = vmatpush.msra.mxu2 %v5202_v37  ;;  %v5021_v22 = vld [vmem:[%s10554_s7 + $0xb8] sm:$0xff]  ;;  %v5019_v37 = vld [vmem:[%s10554_s7 + $0xa8] sm:$0xff]  ;;  %v4944_v18 = vmax.f32 %v4928_v43, 0.0 }
 0x695   :  { %5367 = vmatpush.msra.mxu1 %v5174_v52  ;;  %5407 = vmatpush.msrb.mxu3 %v5238_v63  ;;  %v5055_v52 = vld [vmem:[%s10554_s7 + $0x1c8] sm:$0xff] }
 0x696   :  { %5349 = vmatpush.msra.mxu0 %v5138_v60  ;;  %5390 = vmatpush.msra.mxu2 %v5200_v42  ;;  %v5164_v60 = vld [vmem:[%s10554_s7 + $0x530] sm:$0xff]  ;;  %v5081_v42 = vld [vmem:[%s10554_s7 + $0x298] sm:$0xff]  ;;  %v5119_v63 = vld [vmem:[%s10554_s7 + $0x3c8] sm:$0xff] }
 0x697   :  { %5368 = vmatpush.msra.mxu1 %v5172_v5  ;;  %5408 = vmatpush.msrb.mxu3 %v5236_v36  ;;  %v5069_v5 = vld [vmem:[%s10554_s7 + $0x238] sm:$0xff]  ;;  %v5043_v43 = vld [vmem:[%s10554_s7 + $0x168] sm:$0xff] }
 0x698   :  { %5350 = vmatpush.msra.mxu0 %v5136_v55  ;;  %5391 = vmatpush.msra.mxu2 %v5198_v6  ;;  %v5017_v55 = vld [vmem:[%s10554_s7 + $0x98] sm:$0xff]  ;;  %v5160_v6 = vld [vmem:[%s10554_s7 + $0x510] sm:$0xff] }
 0x699   :  { %5369 = vmatpush.msra.mxu1 %v5170_v35  ;;  %5409 = vmatpush.msrb.mxu3 %v5234_v29  ;;  %v5117_v36 = vld [vmem:[%s10554_s7 + $0x3b8] sm:$0xff]  ;;  %v5067_v35 = vld [vmem:[%s10554_s7 + $0x228] sm:$0xff] }
 0x69a   :  { %5351 = vmatpush.msra.mxu0 %v5134_v27  ;;  %5392 = vmatpush.msra.mxu2 %v5196_v50  ;;  %v5015_v50 = vld [vmem:[%s10554_s7 + $0x88] sm:$0xff] }
 0x69b   :  { %5370 = vmatpush.msra.mxu1 %v5168_v58  ;;  %5410 = vmatpush.msrb.mxu3 %v5232_v13  ;;  %v5115_v29 = vld [vmem:[%s10554_s7 + $0x3a8] sm:$0xff]  ;;  %v5065_v58 = vld [vmem:[%s10554_s7 + $0x218] sm:$0xff] }
 0x69c   :  { %5352 = vmatpush.msra.mxu0 %v5132_v17  ;;  %5393 = vmatpush.msra.mxu2 %v5194_v10  ;;  %v5077_v10 = vld [vmem:[%s10554_s7 + $0x278] sm:$0xff] }
 0x69d   :  { %5371 = vmatpush.msra.mxu1 %v5166_v28  ;;  %5411 = vmatpush.msrb.mxu3 %v5230_v39  ;;  %v5113_v13 = vld [vmem:[%s10554_s7 + $0x398] sm:$0xff]  ;;  %v5063_v28 = vld [vmem:[%s10554_s7 + $0x208] sm:$0xff] }
 0x69e   :  { %5353 = vmatpush.msra.mxu0 %v5130_v11  ;;  %5394 = vmatpush.msra.mxu2 %v5192_v2  ;;  %v5061_v11 = vld [vmem:[%s10554_s7 + $0x1f8] sm:$0xff]  ;;  %v5123_v2 = vld [vmem:[%s10554_s7 + $0x3e8] sm:$0xff] }
 0x69f   :  { %5372 = vmatpush.msra.mxu1 %v5164_v60  ;;  %5412 = vmatpush.msrb.mxu3 %v5228_v54  ;;  %v5111_v39 = vld [vmem:[%s10554_s7 + $0x388] sm:$0xff]  ;;  %v5041_v60 = vld [vmem:[%s10554_s7 + $0x158] sm:$0xff] }
 0x6a0   :  { %5354 = vmatpush.msra.mxu0 %v5128_v59  ;;  %5395 = vmatpush.msra.mxu2 %v5190_v9  ;;  %v5075_v59 = vld [vmem:[%s10554_s7 + $0x268] sm:$0xff]  ;;  %v5105_v54 = vld [vmem:[%s10554_s7 + $0x358] sm:$0xff] }
 0x6a1   :  { %5373 = vmatpush.msra.mxu1 %v5162_v33  ;;  %5413 = vmatpush.msrb.mxu3 %v5226_v32  ;;  %v5071_v9 = vld [vmem:[%s10554_s7 + $0x248] sm:$0xff]  ;;  %v5037_v33 = vld [vmem:[%s10554_s7 + $0x138] sm:$0xff] }
 0x6a2   :  { %5355 = vmatpush.msra.mxu0 %v5126_v7  ;;  %v5007_v7 = vld [vmem:[%s10554_s7 + $0x48] sm:$0xff]  ;;  %v5101_v32 = vld [vmem:[%s10554_s7 + $0x338] sm:$0xff] }
 0x6a3   :  { %5374 = vmatpush.msra.mxu1 %v5160_v6  ;;  %5414 = vmatpush.msrb.mxu3 %v5224_v15  ;;  %v4938_v6 = vadd.f32 %v9503_v19, %v9575_v44  ;;  %v5219_v44 = vld [vmem:[%s10554_s7 + $0x6e8] sm:$0xff] }
 0x6a5   :  { %5375 = vmatpush.msra.mxu1 %v5158_v34  ;;  %5415 = vmatpush.msrb.mxu3 %v5222_v57 }
 0x6ad   :  { %v6304_v48 = vpop.permute.xlu0 %6303 }
 0x6ae   :  { %v6306_v20 = vunpack.i.h.bf16 %v6304_v48  ;;  %v6305_v56 = vunpack.i.l.bf16 %v6304_v48  ;;  %v5059_v48 = vld [vmem:[%s10554_s7 + $0x1e8] sm:$0xff] }
 0x6b0   :  { %v9898_v49 = vsel %vm1154_vm1, %v4942_v23, %v6306_v20  ;;  %v9901_v4 = vsel %vm1154_vm1, %v4946_v3, %v6305_v56  ;;  %v5009_v23 = vld [vmem:[%s10554_s7 + $0x58] sm:$0xff] }
 0x6b1   :  { %5276 = vmatmul.f32.vlgmr.msrb.gmra.mxu0 %v9898_v49  ;;  %5316 = vmatmul.f32.vlgmr.msrb.gmra.mxu2 %v9901_v4  ;;  %v5057_v3 = vld [vmem:[%s10554_s7 + $0x1d8] sm:$0xff] }
 0x6b2   :  { %5420 = vmatpush.msrb.mxu0 %v5029_v1  ;;  %5460 = vmatpush.msrb.mxu2 %v5093_v46  ;;  %v5073_v20 = vld [vmem:[%s10554_s7 + $0x258] sm:$0xff] }
 0x6b3   :  { %v5121_v56 = vld [vmem:[%s10554_s7 + $0x3d8] sm:$0xff] }
 0x6b4   :  { %5421 = vmatpush.msrb.mxu0 %v5027_v51  ;;  %5461 = vmatpush.msrb.mxu2 %v5091_v8  ;;  %v5005_v1 = vld [vmem:[%s10554_s7 + $0x38] sm:$0xff]  ;;  %v5003_v51 = vld [vmem:[%s10554_s7 + $0x28] sm:$0xff] }
 0x6b5   :  { %v5053_v46 = vld [vmem:[%s10554_s7 + $0x1b8] sm:$0xff]  ;;  %v5051_v8 = vld [vmem:[%s10554_s7 + $0x1a8] sm:$0xff] }
 0x6b6   :  { %5422 = vmatpush.msrb.mxu0 %v5025_v16  ;;  %5462 = vmatpush.msrb.mxu2 %v5089_v24  ;;  %v5001_v16 = vld [vmem:[%s10554_s7 + $0x18] sm:$0xff] }
 0x6b7   :  { %v5049_v24 = vld [vmem:[%s10554_s7 + $0x198] sm:$0xff] }
 0x6b8   :  { %5423 = vmatpush.msrb.mxu0 %v5023_v14  ;;  %5463 = vmatpush.msrb.mxu2 %v5087_v40  ;;  %v4999_v14 = vld [vmem:[%s10554_s7 + $0x8] sm:$0xff] }
 0x6b9   :  { %v5047_v40 = vld [vmem:[%s10554_s7 + $0x188] sm:$0xff] }
 0x6ba   :  { %5424 = vmatpush.msrb.mxu0 %v5021_v22  ;;  %5464 = vmatpush.msrb.mxu2 %v5085_v21  ;;  %v5045_v22 = vld [vmem:[%s10554_s7 + $0x178] sm:$0xff] }
 0x6bb   :  { %v5109_v21 = vld [vmem:[%s10554_s7 + $0x378] sm:$0xff] }
 0x6bc   :  { %5425 = vmatpush.msrb.mxu0 %v5019_v37  ;;  %5465 = vmatpush.msrb.mxu2 %v5083_v47  ;;  %v5039_v37 = vld [vmem:[%s10554_s7 + $0x148] sm:$0xff] }
 0x6bd   :  { %v6309_v38 = vpop.permute.xlu0 %6308  ;;  %v5103_v47 = vld [vmem:[%s10554_s7 + $0x348] sm:$0xff] }
 0x6be   :  { %v6311_v62 = vunpack.i.h.bf16 %v6309_v38  ;;  %v6310_v27 = vunpack.i.l.bf16 %v6309_v38  ;;  %5426 = vmatpush.msrb.mxu0 %v5017_v55  ;;  %5466 = vmatpush.msrb.mxu2 %v5081_v42  ;;  %v5035_v38 = vld [vmem:[%s10554_s7 + $0x128] sm:$0xff]  ;;  %v5033_v42 = vld [vmem:[%s10554_s7 + $0x118] sm:$0xff] }
 0x6bf   :  { %v5099_v55 = vld [vmem:[%s10554_s7 + $0x328] sm:$0xff] }
 0x6c0   :  { %v10000_v12 = vsel %vm1154_vm1, %v4944_v18, %v6311_v62  ;;  %v10003_v17 = vsel %vm1154_vm1, %v4948_v41, %v6310_v27  ;;  %5427 = vmatpush.msrb.mxu0 %v5015_v50  ;;  %5467 = vmatpush.msrb.mxu2 %v5079_v0  ;;  %v5097_v18 = vld [vmem:[%s10554_s7 + $0x318] sm:$0xff]  ;;  %v5031_v41 = vld [vmem:[%s10554_s7 + $0x108] sm:$0xff]  ;;  %v4934_v27 = vadd.f32 %v9503_v19, %v9521_v25  ;;  %v4954_v0 = vmax.f32 %v4938_v6, 0.0 }
 0x6c1   :  { %5296 = vmatmul.f32.vlgmr.msrb.gmra.mxu1 %v10000_v12  ;;  %5336 = vmatmul.f32.vlgmr.msra.gmra.mxu3 %v10003_v17  ;;  %v5095_v62 = vld [vmem:[%s10554_s7 + $0x308] sm:$0xff] }
 0x6c2   :  { %5428 = vmatpush.msrb.mxu0 %v5013_v31  ;;  %5440 = vmatpush.msrb.mxu1 %v5061_v11  ;;  %v4950_v50 = vmax.f32 %v4934_v27, 0.0  ;;  %v5157_v31 = vld [vmem:[%s10554_s7 + $0x4f8] sm:$0xff]  ;;  %v5155_v19 = vld [vmem:[%s10554_s7 + $0x4e8] sm:$0xff] }
 0x6c3   :  { %5468 = vmatpush.msrb.mxu2 %v5077_v10  ;;  %5480 = vmatpush.msra.mxu3 %v5125_v30  ;;  %v5221_v11 = vld [vmem:[%s10554_s7 + $0x6f8] sm:$0xff]  ;;  %v5175_v27 = vld [vmem:[%s10554_s7 + $0x588] sm:$0xff] }
 0x6c4   :  { %5429 = vmatpush.msrb.mxu0 %v5011_v26  ;;  %5441 = vmatpush.msrb.mxu1 %v5059_v48  ;;  %v5153_v30 = vld [vmem:[%s10554_s7 + $0x4d8] sm:$0xff]  ;;  %v5151_v48 = vld [vmem:[%s10554_s7 + $0x4c8] sm:$0xff] }
 0x6c5   :  { %5469 = vmatpush.msrb.mxu2 %v5075_v59  ;;  %5481 = vmatpush.msra.mxu3 %v5123_v2  ;;  %v5217_v26 = vld [vmem:[%s10554_s7 + $0x6d8] sm:$0xff]  ;;  %v5215_v59 = vld [vmem:[%s10554_s7 + $0x6c8] sm:$0xff] }
 0x6c6   :  { %5430 = vmatpush.msrb.mxu0 %v5009_v23  ;;  %5442 = vmatpush.msrb.mxu1 %v5057_v3  ;;  %v5149_v2 = vld [vmem:[%s10554_s7 + $0x4b8] sm:$0xff]  ;;  %v5147_v3 = vld [vmem:[%s10554_s7 + $0x4a8] sm:$0xff] }
 0x6c7   :  { %5470 = vmatpush.msrb.mxu2 %v5073_v20  ;;  %5482 = vmatpush.msra.mxu3 %v5121_v56  ;;  %v5213_v23 = vld [vmem:[%s10554_s7 + $0x6b8] sm:$0xff]  ;;  %v5211_v20 = vld [vmem:[%s10554_s7 + $0x6a8] sm:$0xff]  ;;  %v6329_v56 = vld [vmem:[%s10553_s6] ss:$0 sm:$0xff] }
 0x6c8   :  { %5431 = vmatpush.msrb.mxu0 %v5007_v7  ;;  %5443 = vmatpush.msrb.mxu1 %v5055_v52  ;;  %v4936_v7 = vadd.f32 %v6329_v56, %v9528_v53  ;;  %v4940_v52 = vadd.f32 %v6329_v56, %v9670_v61  ;;  %v5207_v53 = vld [vmem:[%s10554_s7 + $0x688] sm:$0xff] }
 0x6c9   :  { %5471 = vmatpush.msrb.mxu2 %v5071_v9  ;;  %5483 = vmatpush.msra.mxu3 %v5119_v63  ;;  %v5143_v63 = vld [vmem:[%s10554_s7 + $0x488] sm:$0xff] }
 0x6ca   :  { %5432 = vmatpush.msrb.mxu0 %v5005_v1  ;;  %5444 = vmatpush.msrb.mxu1 %v5053_v46  ;;  %v4952_v61 = vmax.f32 %v4936_v7, 0.0  ;;  %v4956_v1 = vmax.f32 %v4940_v52, 0.0  ;;  %v5191_v6 = vld [vmem:[%s10554_s7 + $0x608] sm:$0xff]  ;;  %v5594_v7 = vld [vmem:[%s10556_s9 + $0x60] sm:$0xff]  ;;  %v5593_v52 = vld [vmem:[%s10556_s9 + $0x58] sm:$0xff] }
 0x6cb   :  { %5472 = vmatpush.msrb.mxu2 %v5069_v5  ;;  %5484 = vmatpush.msra.mxu3 %v5117_v36  ;;  %v5141_v36 = vld [vmem:[%s10554_s7 + $0x478] sm:$0xff]  ;;  %v5595_v56 = vld [vmem:[%s10556_s9 + $0x68] sm:$0xff] }
 0x6cc   :  { %5433 = vmatpush.msrb.mxu0 %v5003_v51  ;;  %5445 = vmatpush.msrb.mxu1 %v5051_v8  ;;  %v5189_v51 = vld [vmem:[%s10554_s7 + $0x5f8] sm:$0xff] }
 0x6cd   :  { %5473 = vmatpush.msrb.mxu2 %v5067_v35  ;;  %5485 = vmatpush.msra.mxu3 %v5115_v29  ;;  %v5205_v29 = vld [vmem:[%s10554_s7 + $0x678] sm:$0xff] }
 0x6ce   :  { %5434 = vmatpush.msrb.mxu0 %v5001_v16  ;;  %5446 = vmatpush.msrb.mxu1 %v5049_v24  ;;  %v5253_v16 = vld [vmem:[%s10554_s7 + $0x7f8] sm:$0xff]  ;;  %v5139_v24 = vld [vmem:[%s10554_s7 + $0x468] sm:$0xff] }
 0x6cf   :  { %5474 = vmatpush.msrb.mxu2 %v5065_v58  ;;  %5486 = vmatpush.msra.mxu3 %v5113_v13  ;;  %v5187_v58 = vld [vmem:[%s10554_s7 + $0x5e8] sm:$0xff] }
 0x6d0   :  { %5435 = vmatpush.msrb.mxu0 %v4999_v14  ;;  %5447 = vmatpush.msrb.mxu1 %v5047_v40  ;;  %v5203_v13 = vld [vmem:[%s10554_s7 + $0x668] sm:$0xff]  ;;  %v5137_v40 = vld [vmem:[%s10554_s7 + $0x458] sm:$0xff] }
 0x6d1   :  { %5475 = vmatpush.msrb.mxu2 %v5063_v28  ;;  %5487 = vmatpush.msra.mxu3 %v5111_v39  ;;  %v5251_v14 = vld [vmem:[%s10554_s7 + $0x7e8] sm:$0xff]  ;;  %v5185_v28 = vld [vmem:[%s10554_s7 + $0x5d8] sm:$0xff] }
 0x6d2   :  { %5448 = vmatpush.msrb.mxu1 %v5045_v22  ;;  %v5201_v39 = vld [vmem:[%s10554_s7 + $0x658] sm:$0xff] }
 0x6d3   :  { %5488 = vmatpush.msra.mxu3 %v5109_v21  ;;  %v5249_v22 = vld [vmem:[%s10554_s7 + $0x7d8] sm:$0xff]  ;;  %v5135_v21 = vld [vmem:[%s10554_s7 + $0x448] sm:$0xff] }
 0x6d4   :  { %5449 = vmatpush.msrb.mxu1 %v5043_v43  ;;  %v5183_v43 = vld [vmem:[%s10554_s7 + $0x5c8] sm:$0xff] }
 0x6d5   :  { %5489 = vmatpush.msra.mxu3 %v5107_v45  ;;  %v5199_v45 = vld [vmem:[%s10554_s7 + $0x648] sm:$0xff] }
 0x6d6   :  { %5450 = vmatpush.msrb.mxu1 %v5041_v60  ;;  %v5247_v60 = vld [vmem:[%s10554_s7 + $0x7c8] sm:$0xff] }
 0x6d7   :  { %5490 = vmatpush.msra.mxu3 %v5105_v54  ;;  %v5133_v54 = vld [vmem:[%s10554_s7 + $0x438] sm:$0xff] }
 0x6d8   :  { %5451 = vmatpush.msrb.mxu1 %v5039_v37  ;;  %v5181_v37 = vld [vmem:[%s10554_s7 + $0x5b8] sm:$0xff] }
 0x6d9   :  { %5491 = vmatpush.msra.mxu3 %v5103_v47  ;;  %v5197_v47 = vld [vmem:[%s10554_s7 + $0x638] sm:$0xff] }
 0x6da   :  { %5452 = vmatpush.msrb.mxu1 %v5037_v33  ;;  %v5245_v33 = vld [vmem:[%s10554_s7 + $0x7b8] sm:$0xff] }
 0x6db   :  { %5492 = vmatpush.msra.mxu3 %v5101_v32  ;;  %v5131_v32 = vld [vmem:[%s10554_s7 + $0x428] sm:$0xff] }
 0x6dc   :  { %5453 = vmatpush.msrb.mxu1 %v5035_v38  ;;  %v5179_v38 = vld [vmem:[%s10554_s7 + $0x5a8] sm:$0xff] }
 0x6dd   :  { %5493 = vmatpush.msra.mxu3 %v5099_v55  ;;  %v5195_v55 = vld [vmem:[%s10554_s7 + $0x628] sm:$0xff] }
 0x6de   :  { %5454 = vmatpush.msrb.mxu1 %v5033_v42  ;;  %v5177_v42 = vld [vmem:[%s10554_s7 + $0x598] sm:$0xff] }
 0x6df   :  { %5494 = vmatpush.msra.mxu3 %v5097_v18  ;;  %v5193_v18 = vld [vmem:[%s10554_s7 + $0x618] sm:$0xff] }
 0x6e0   :  { %5455 = vmatpush.msrb.mxu1 %v5031_v41  ;;  %v5241_v41 = vld [vmem:[%s10554_s7 + $0x798] sm:$0xff] }
 0x6e1   :  { %5495 = vmatpush.msra.mxu3 %v5095_v62  ;;  %v5127_v62 = vld [vmem:[%s10554_s7 + $0x408] sm:$0xff] }
 0x6ed   :  { %v6314_v15 = vpop.permute.xlu1 %6313 }
 0x6ee   :  { %v6316_v34 = vunpack.i.h.bf16 %v6314_v15  ;;  %v6315_v57 = vunpack.i.l.bf16 %v6314_v15  ;;  %v5239_v15 = vld [vmem:[%s10554_s7 + $0x788] sm:$0xff] }
 0x6f0   :  { %v10174_v10 = vsel %vm1154_vm1, %v4950_v50, %v6316_v34  ;;  %v10177_v25 = vsel %vm1154_vm1, %v4954_v0, %v6315_v57  ;;  %v5173_v50 = vld [vmem:[%s10554_s7 + $0x578] sm:$0xff]  ;;  %v5171_v34 = vld [vmem:[%s10554_s7 + $0x568] sm:$0xff] }
 0x6f1   :  { %5356 = vmatmul.f32.vlgmr.msra.gmra.mxu0 %v10174_v10  ;;  %5396 = vmatmul.f32.vlgmr.msra.gmra.mxu2 %v10177_v25  ;;  %v5237_v0 = vld [vmem:[%s10554_s7 + $0x778] sm:$0xff]  ;;  %v5235_v57 = vld [vmem:[%s10554_s7 + $0x768] sm:$0xff] }
 0x6f2   :  { %5500 = vmatpush.msra.mxu0 %v5157_v31  ;;  %5540 = vmatpush.msra.mxu2 %v5221_v11  ;;  %v5169_v31 = vld [vmem:[%s10554_s7 + $0x558] sm:$0xff] }
 0x6f3   :  { %v5233_v11 = vld [vmem:[%s10554_s7 + $0x758] sm:$0xff] }
 0x6f4   :  { %5501 = vmatpush.msra.mxu0 %v5155_v19  ;;  %5541 = vmatpush.msra.mxu2 %v5219_v44  ;;  %v5165_v19 = vld [vmem:[%s10554_s7 + $0x538] sm:$0xff] }
 0x6f5   :  { %v5229_v44 = vld [vmem:[%s10554_s7 + $0x738] sm:$0xff] }
 0x6f6   :  { %5502 = vmatpush.msra.mxu0 %v5153_v30  ;;  %5542 = vmatpush.msra.mxu2 %v5217_v26  ;;  %v5163_v30 = vld [vmem:[%s10554_s7 + $0x528] sm:$0xff] }
 0x6f7   :  { %v5227_v26 = vld [vmem:[%s10554_s7 + $0x728] sm:$0xff] }
 0x6f8   :  { %5503 = vmatpush.msra.mxu0 %v5151_v48  ;;  %5543 = vmatpush.msra.mxu2 %v5215_v59  ;;  %v5161_v48 = vld [vmem:[%s10554_s7 + $0x518] sm:$0xff] }
 0x6f9   :  { %5436 = vmatmul.f32.vlgmr.msrb.gmra.mxu0 %v9898_v49  ;;  %5476 = vmatmul.f32.vlgmr.msrb.gmra.mxu2 %v9901_v4  ;;  %v5145_v49 = vld [vmem:[%s10554_s7 + $0x498] sm:$0xff] }
 0x6fa   :  { %5504 = vmatpush.msra.mxu0 %v5149_v2  ;;  %5544 = vmatpush.msra.mxu2 %v5213_v23  ;;  %v5209_v4 = vld [vmem:[%s10554_s7 + $0x698] sm:$0xff]  ;;  %v5159_v2 = vld [vmem:[%s10554_s7 + $0x508] sm:$0xff] }
 0x6fb   :  { %v5225_v59 = vld [vmem:[%s10554_s7 + $0x718] sm:$0xff]  ;;  %v5223_v23 = vld [vmem:[%s10554_s7 + $0x708] sm:$0xff] }
 0x6fc   :  { %5505 = vmatpush.msra.mxu0 %v5147_v3  ;;  %5545 = vmatpush.msra.mxu2 %v5211_v20  ;;  %v5597_v3 = vld [vmem:[%s10556_s9 + $0x78] sm:$0xff]  ;;  %v5596_v20 = vld [vmem:[%s10556_s9 + $0x70] sm:$0xff] }
 0x6fd   :  { %v6319_v9 = vpop.permute.xlu1 %6318 }
 0x6fe   :  { %5506 = vmatpush.msra.mxu0 %v5145_v49  ;;  %5546 = vmatpush.msra.mxu2 %v5209_v4  ;;  %v6321_v46 = vunpack.i.h.bf16 %v6319_v9  ;;  %v6320_v5 = vunpack.i.l.bf16 %v6319_v9  ;;  %v5592_v49 = vld [vmem:[%s10556_s9 + $0x50] sm:$0xff]  ;;  %v5591_v4 = vld [vmem:[%s10556_s9 + $0x48] sm:$0xff]  ;;  %v5590_v9 = vld [vmem:[%s10556_s9 + $0x40] sm:$0xff] }
 0x700   :  { %v10237_v8 = vsel %vm1154_vm1, %v4952_v61, %v6321_v46  ;;  %v10240_v35 = vsel %vm1154_vm1, %v4956_v1, %v6320_v5  ;;  %5507 = vmatpush.msra.mxu0 %v5143_v63  ;;  %5547 = vmatpush.msra.mxu2 %v5207_v53  ;;  %v5589_v63 = vld [vmem:[%s10556_s9 + $0x38] sm:$0xff]  ;;  %v5588_v53 = vld [vmem:[%s10556_s9 + $0x30] sm:$0xff]  ;;  %v5587_v61 = vld [vmem:[%s10556_s9 + $0x28] sm:$0xff] }
 0x701   :  { %5376 = vmatmul.f32.vlgmr.msra.gmra.mxu1 %v10237_v8  ;;  %5416 = vmatmul.f32.vlgmr.msrb.gmra.mxu3 %v10240_v35  ;;  %v5586_v1 = vld [vmem:[%s10556_s9 + $0x20] sm:$0xff]  ;;  %v5585_v46 = vld [vmem:[%s10556_s9 + $0x18] sm:$0xff]  ;;  %v5584_v5 = vld [vmem:[%s10556_s9 + $0x10] sm:$0xff] }
 0x702   :  { %5508 = vmatpush.msra.mxu0 %v5141_v36  ;;  %5520 = vmatpush.msra.mxu1 %v5189_v51  ;;  %v5583_v36 = vld [vmem:[%s10556_s9 + $0x8] sm:$0xff]  ;;  %v5582_v51 = vld [vmem:[%s10556_s9] sm:$0xff] }
 0x703   :  { %5548 = vmatpush.msra.mxu2 %v5205_v29  ;;  %5560 = vmatpush.msrb.mxu3 %v5253_v16  ;;  %v5254_v29 = vld [vmem:[%s10555_s8] sm:$0x3] }
 0x704   :  { %5509 = vmatpush.msra.mxu0 %v5139_v24  ;;  %5521 = vmatpush.msra.mxu1 %v5187_v58  ;;  %v5256_v16 = vperm.slane %v5254_v29, 0  ;;  %v5611_v24 = vld [vmem:[%s10556_s9 + $0xe8] sm:$0xff] }
 0x705   :  { %5549 = vmatpush.msra.mxu2 %v5203_v13  ;;  %5561 = vmatpush.msrb.mxu3 %v5251_v14  ;;  %v5610_v13 = vld [vmem:[%s10556_s9 + $0xe0] sm:$0xff]  ;;  %v5609_v14 = vld [vmem:[%s10556_s9 + $0xd8] sm:$0xff] }
 0x706   :  { %5510 = vmatpush.msra.mxu0 %v5137_v40  ;;  %5522 = vmatpush.msra.mxu1 %v5185_v28 }
 0x707   :  { %5550 = vmatpush.msra.mxu2 %v5201_v39  ;;  %5562 = vmatpush.msrb.mxu3 %v5249_v22  ;;  %v5608_v22 = vld [vmem:[%s10556_s9 + $0xd0] sm:$0xff] }
 0x708   :  { %5511 = vmatpush.msra.mxu0 %v5135_v21  ;;  %5523 = vmatpush.msra.mxu1 %v5183_v43  ;;  %v5607_v21 = vld [vmem:[%s10556_s9 + $0xc8] sm:$0xff]  ;;  %v5606_v43 = vld [vmem:[%s10556_s9 + $0xc0] sm:$0xff] }
 0x709   :  { %5551 = vmatpush.msra.mxu2 %v5199_v45  ;;  %5563 = vmatpush.msrb.mxu3 %v5247_v60 }
 0x70a   :  { %5456 = vmatmul.f32.vlgmr.msrb.gmra.mxu1 %v10000_v12  ;;  %5496 = vmatmul.f32.vlgmr.msra.gmra.mxu3 %v10003_v17  ;;  %v5243_v12 = vld [vmem:[%s10554_s7 + $0x7a8] sm:$0xff]  ;;  %v5129_v17 = vld [vmem:[%s10554_s7 + $0x418] sm:$0xff] }
 0x70b   :  { %5512 = vmatpush.msra.mxu0 %v5133_v54  ;;  %5524 = vmatpush.msra.mxu1 %v5181_v37  ;;  %v5605_v37 = vld [vmem:[%s10556_s9 + $0xb8] sm:$0xff] }
 0x70c   :  { %5552 = vmatpush.msra.mxu2 %v5197_v47  ;;  %5564 = vmatpush.msrb.mxu3 %v5245_v33 }
 0x70d   :  { %5513 = vmatpush.msra.mxu0 %v5131_v32  ;;  %5525 = vmatpush.msra.mxu1 %v5179_v38  ;;  %v5604_v32 = vld [vmem:[%s10556_s9 + $0xb0] sm:$0xff] }
 0x70e   :  { %5553 = vmatpush.msra.mxu2 %v5195_v55  ;;  %5565 = vmatpush.msrb.mxu3 %v5243_v12 }
 0x70f   :  { %5514 = vmatpush.msra.mxu0 %v5129_v17  ;;  %5526 = vmatpush.msra.mxu1 %v5177_v42  ;;  %v5603_v17 = vld [vmem:[%s10556_s9 + $0xa8] sm:$0xff]  ;;  %v5602_v42 = vld [vmem:[%s10556_s9 + $0xa0] sm:$0xff] }
 0x710   :  { %5554 = vmatpush.msra.mxu2 %v5193_v18  ;;  %5566 = vmatpush.msrb.mxu3 %v5241_v41  ;;  %v5601_v18 = vld [vmem:[%s10556_s9 + $0x98] sm:$0xff] }
 0x711   :  { %5515 = vmatpush.msra.mxu0 %v5127_v62  ;;  %5527 = vmatpush.msra.mxu1 %v5175_v27 }
 0x712   :  { %5555 = vmatpush.msra.mxu2 %v5191_v6  ;;  %5567 = vmatpush.msrb.mxu3 %v5239_v15  ;;  %v5600_v15 = vld [vmem:[%s10556_s9 + $0x90] sm:$0xff] }
 0x713   :  { %5516 = vmatmul.f32.vlgmr.msra.gmra.mxu0 %v10174_v10  ;;  %5556 = vmatmul.f32.vlgmr.msra.gmra.mxu2 %v10177_v25  ;;  %v5167_v10 = vld [vmem:[%s10554_s7 + $0x548] sm:$0xff] }
 0x714   :  { %5528 = vmatpush.msra.mxu1 %v5173_v50  ;;  %5568 = vmatpush.msrb.mxu3 %v5237_v0  ;;  %v5231_v25 = vld [vmem:[%s10554_s7 + $0x748] sm:$0xff] }
 0x715   :  { %5618 = vmatpush.msrb.mxu0 %v5597_v3  ;;  %v5599_v0 = vld [vmem:[%s10556_s9 + $0x88] sm:$0xff] }
 0x716   :  { %5529 = vmatpush.msra.mxu1 %v5171_v34  ;;  %5569 = vmatpush.msrb.mxu3 %v5235_v57  ;;  %v5598_v34 = vld [vmem:[%s10556_s9 + $0x80] sm:$0xff]  ;;  %v5257_v57 = vperm.slane %v5254_v29, 1  ;;  %v5661_v29 = vld [vmem:[%s10558_s11 + $0x10] sm:$0xff] }
 0x717   :  { %5619 = vmatpush.msrb.mxu0 %v5596_v20 }
 0x718   :  { %5530 = vmatpush.msra.mxu1 %v5169_v31  ;;  %5570 = vmatpush.msrb.mxu3 %v5233_v11 }
 0x719   :  { %5620 = vmatpush.msrb.mxu0 %v5595_v56 }
 0x71a   :  { %5531 = vmatpush.msra.mxu1 %v5167_v10  ;;  %5571 = vmatpush.msrb.mxu3 %v5231_v25 }
 0x71b   :  { %5621 = vmatpush.msrb.mxu0 %v5594_v7 }
 0x71c   :  { %5532 = vmatpush.msra.mxu1 %v5165_v19  ;;  %5572 = vmatpush.msrb.mxu3 %v5229_v44 }
 0x71d   :  { %5622 = vmatpush.msrb.mxu0 %v5593_v52 }
 0x71e   :  { %5533 = vmatpush.msra.mxu1 %v5163_v30  ;;  %5573 = vmatpush.msrb.mxu3 %v5227_v26 }
 0x71f   :  { %5623 = vmatpush.msrb.mxu0 %v5592_v49  ;;  %v5674_v49 = vld [vmem:[%s10558_s11 + $0x78] sm:$0xff] }
 0x720   :  { %5534 = vmatpush.msra.mxu1 %v5161_v48  ;;  %5574 = vmatpush.msrb.mxu3 %v5225_v59 }
 0x721   :  { %5624 = vmatpush.msrb.mxu0 %v5591_v4  ;;  %v5673_v4 = vld [vmem:[%s10558_s11 + $0x70] sm:$0xff]  ;;  %5679 = vmatpush.msrb.mxu2 %v5674_v49 }
 0x722   :  { %5535 = vmatpush.msra.mxu1 %v5159_v2  ;;  %5575 = vmatpush.msrb.mxu3 %v5223_v23 }
 0x723   :  { %5536 = vmatmul.f32.vlgmr.msra.gmra.mxu1 %v10237_v8  ;;  %5576 = vmatmul.f32.vlgmr.msrb.gmra.mxu3 %v10240_v35  ;;  %v5613_v8 = vld [vmem:[%s10556_s9 + $0xf8] sm:$0xff]  ;;  %v5612_v35 = vld [vmem:[%s10556_s9 + $0xf0] sm:$0xff] }
 0x724   :  { %5625 = vmatpush.msrb.mxu0 %v5590_v9  ;;  %5638 = vmatpush.msrb.mxu1 %v5613_v8  ;;  %v5672_v9 = vld [vmem:[%s10558_s11 + $0x68] sm:$0xff]  ;;  %v5663_v8 = vld [vmem:[%s10558_s11 + $0x20] sm:$0xff] }
 0x725   :  { %5680 = vmatpush.msrb.mxu2 %v5673_v4 }
 0x726   :  { %5626 = vmatpush.msrb.mxu0 %v5589_v63  ;;  %5639 = vmatpush.msrb.mxu1 %v5612_v35  ;;  %v5671_v63 = vld [vmem:[%s10558_s11 + $0x60] sm:$0xff]  ;;  %v5662_v35 = vld [vmem:[%s10558_s11 + $0x18] sm:$0xff] }
 0x727   :  { %5681 = vmatpush.msrb.mxu2 %v5672_v9 }
 0x728   :  { %5627 = vmatpush.msrb.mxu0 %v5588_v53  ;;  %5640 = vmatpush.msrb.mxu1 %v5611_v24  ;;  %v5670_v53 = vld [vmem:[%s10558_s11 + $0x58] sm:$0xff]  ;;  %v5659_v24 = vld [vmem:[%s10558_s11] sm:$0xff] }
 0x729   :  { %5682 = vmatpush.msrb.mxu2 %v5671_v63 }
 0x72a   :  { %5628 = vmatpush.msrb.mxu0 %v5587_v61  ;;  %5641 = vmatpush.msrb.mxu1 %v5610_v13  ;;  %v5669_v61 = vld [vmem:[%s10558_s11 + $0x50] sm:$0xff] }
 0x72b   :  { %5683 = vmatpush.msrb.mxu2 %v5670_v53 }
 0x72c   :  { %5629 = vmatpush.msrb.mxu0 %v5586_v1  ;;  %5642 = vmatpush.msrb.mxu1 %v5609_v14  ;;  %v5668_v1 = vld [vmem:[%s10558_s11 + $0x48] sm:$0xff] }
 0x72d   :  { %5684 = vmatpush.msrb.mxu2 %v5669_v61 }
 0x72e   :  { %5630 = vmatpush.msrb.mxu0 %v5585_v46  ;;  %v5277_v58 = vpop.f32.mrf.mxu0  ;;  %5643 = vmatpush.msrb.mxu1 %v5608_v22  ;;  %v5667_v46 = vld [vmem:[%s10558_s11 + $0x40] sm:$0xff] }
 0x72f   :  { %v5278_v28 = vadd.f32 %v5277_v58, %v5256_v16  ;;  %5685 = vmatpush.msrb.mxu2 %v5668_v1  ;;  %v5660_v16 = vld [vmem:[%s10558_s11 + $0x8] sm:$0xff]  ;;  %v6323_v58 = vld [vmem:[%s10557_s10] ss:$0 sm:$0xff] }
 0x730   :  { %5631 = vmatpush.msrb.mxu0 %v5584_v5  ;;  %5644 = vmatpush.msrb.mxu1 %v5607_v21  ;;  %v5666_v5 = vld [vmem:[%s10558_s11 + $0x38] sm:$0xff]  ;;  %v6324_v22 = vld [vmem:[%s10559_s12] ss:$0 sm:$0xff] }
 0x731   :  { %5686 = vmatpush.msrb.mxu2 %v5667_v46 }
 0x732   :  { %5632 = vmatpush.msrb.mxu0 %v5583_v36  ;;  %5645 = vmatpush.msrb.mxu1 %v5606_v43  ;;  %v5665_v36 = vld [vmem:[%s10558_s11 + $0x30] sm:$0xff] }
 0x733   :  { %5687 = vmatpush.msrb.mxu2 %v5666_v5 }
 0x734   :  { %5633 = vmatpush.msrb.mxu0 %v5582_v51  ;;  %v5317_v45 = vpop.f32.mrf.mxu2  ;;  %5646 = vmatpush.msrb.mxu1 %v5605_v37  ;;  %v5664_v51 = vld [vmem:[%s10558_s11 + $0x28] sm:$0xff] }
 0x735   :  { %5688 = vmatpush.msrb.mxu2 %v5665_v36 }
 0x736   :  { %5647 = vmatpush.msrb.mxu1 %v5604_v32 }
 0x737   :  { %5689 = vmatpush.msrb.mxu2 %v5664_v51 }
 0x738   :  { %5648 = vmatpush.msrb.mxu1 %v5603_v17 }
 0x739   :  { %5690 = vmatpush.msrb.mxu2 %v5663_v8 }
 0x73a   :  { %5649 = vmatpush.msrb.mxu1 %v5602_v42 }
 0x73b   :  { %5691 = vmatpush.msrb.mxu2 %v5662_v35 }
 0x73c   :  { %5650 = vmatpush.msrb.mxu1 %v5601_v18 }
 0x73d   :  { %5692 = vmatpush.msrb.mxu2 %v5661_v29 }
 0x73e   :  { %v5297_v40 = vpop.f32.mrf.mxu1  ;;  %5651 = vmatpush.msrb.mxu1 %v5600_v15 }
 0x73f   :  { %v5298_v39 = vadd.f32 %v5297_v40, %v5278_v28  ;;  %5693 = vmatpush.msrb.mxu2 %v5660_v16 }
 0x740   :  { %5652 = vmatpush.msrb.mxu1 %v5599_v0 }
 0x741   :  { %v5318_v54 = vadd.f32 %v5317_v45, %v5298_v39  ;;  %5694 = vmatpush.msrb.mxu2 %v5659_v24 }
 0x742   :  { %5653 = vmatpush.msrb.mxu1 %v5598_v34 }
 0x744   :  { %v5337_v60 = vpop.f32.mrf.mxu3 }
 0x745   :  { %v5338_v33 = vadd.f32 %v5337_v60, %v5318_v54 }
 0x76e   :  { %v5357_v47 = vpop.f32.mrf.mxu0 }
 0x76f   :  { %v5358_v38 = vadd.f32 %v5357_v47, %v5338_v33 }
 0x774   :  { %v5397_v41 = vpop.f32.mrf.mxu2 }
 0x776   :  { %v5437_v31 = vpop.f32.mrf.mxu0 }
 0x777   :  { %v5438_v10 = vadd.f32 %v5437_v31, %v5257_v57 }
 0x77c   :  { %v5477_v19 = vpop.f32.mrf.mxu2 }
 0x77e   :  { %v5377_v55 = vpop.f32.mrf.mxu1 }
 0x77f   :  { %v5378_v12 = vadd.f32 %v5377_v55, %v5358_v38 }
 0x781   :  { %v5398_v62 = vadd.f32 %v5397_v41, %v5378_v12 }
 0x784   :  { %v5417_v27 = vpop.f32.mrf.mxu3 }
 0x785   :  { %v5418_v6 = vadd.f32 %v5417_v27, %v5398_v62 }
 0x787   :  { %v5580_v50 = vmax.f32 %v5418_v6, 0.0  ;;  %v5457_v11 = vpop.f32.mrf.mxu1 }
 0x788   :  { %v5458_v25 = vadd.f32 %v5457_v11, %v5438_v10 }
 0x789   :  { %5634 = vmatmul.f32.vlgmr.msrb.gmra.mxu0 %v5580_v50 }
 0x78a   :  { %v5478_v30 = vadd.f32 %v5477_v19, %v5458_v25 }
 0x78d   :  { %v5497_v44 = vpop.f32.mrf.mxu3 }
 0x78e   :  { %v5498_v26 = vadd.f32 %v5497_v44, %v5478_v30 }
 0x790   :  { %v5517_v48 = vpop.f32.mrf.mxu0 }
 0x791   :  { %v5518_v59 = vadd.f32 %v5517_v48, %v5498_v26 }
 0x796   :  { %v5557_v3 = vpop.f32.mrf.mxu2 }
 0x7a0   :  { %v5537_v2 = vpop.f32.mrf.mxu1 }
 0x7a1   :  { %v5538_v23 = vadd.f32 %v5537_v2, %v5518_v59 }
 0x7a3   :  { %v5558_v20 = vadd.f32 %v5557_v3, %v5538_v23 }
 0x7a6   :  { %v5577_v56 = vpop.f32.mrf.mxu3 }
 0x7a7   :  { %v5578_v7 = vadd.f32 %v5577_v56, %v5558_v20 }
 0x7a9   :  { %v5581_v52 = vmax.f32 %v5578_v7, 0.0 }
 0x7ab   :  { %5654 = vmatmul.f32.vlgmr.msrb.gmra.mxu1 %v5581_v52 }
 0x806   :  { %v5635_v13 = vpop.f32.mrf.mxu0 }
 0x807   :  { %v5636_v14 = vadd.f32 %v6323_v58, %v5635_v13 }
 0x828   :  { %v5655_v40 = vpop.f32.mrf.mxu1 }
 0x829   :  { %v5656_v28 = vadd.f32 %v5655_v40, %v5636_v14 }
 0x82b   :  { %v5658_v39 = vmax.f32 %v5656_v28, 0.0 }
 0x82d   :  { %5699 = vst [vmem:[%s10560_s13] sm:$0xff] %v5658_v39  ;;  %5695 = vmatmul.f32.vlgmr.msrb.gmra.mxu2 %v5658_v39 }
 0x8b0   :  { %v5696_v21 = vpop.f32.mrf.mxu2 }
 0x8b1   :  { %v5697_v43 = vadd.f32 %v6324_v22, %v5696_v21 }
 0x8b3   :  { %5700 = vst [vmem:[%s10561_s14] sm:$0xff] %v5697_v43 }
 0x8b4   :  { %5709 = vsyncpa [#allocation4], 1 }

</bundles_post_ra>
